<compile_context>
chip_gen: v6e
topology: v6e:2x2x1
jax: 0.10.0
libtpu: 0.0.40
codegen_flags: <defaults>
</compile_context>

<pallas_src>
import functools

import numpy as np
import jax
import jax.numpy as jnp
from jax.experimental import pallas as pl
from jax.experimental.pallas import tpu as pltpu


# --------------------------------------------------------------------------
# Trace-time constant builders (constant-folded under jit; params are closure
# constants).
# --------------------------------------------------------------------------
def _make_band_weight(w_oihw, w_spatial):
    """Banded/Toeplitz conv weight with the W zero-padding folded in.

    result[ky, j*Cin + ci, x*Cout + co] = w[co, ci, ky, j - x + KW//2]
    for 0 <= j - x + KW//2 < KW, else 0.   (j, x are unpadded W indices.)
    """
    w = jnp.transpose(w_oihw, (2, 3, 1, 0)).astype(jnp.float32)  # (KH,KW,Cin,Cout)
    kh, kw, cin, cout = w.shape
    pad = kw // 2
    j = jnp.arange(w_spatial)[:, None]
    x = jnp.arange(w_spatial)[None, :]
    kx = j - x + pad
    valid = ((kx >= 0) & (kx < kw)).astype(jnp.float32)
    kx_c = jnp.clip(kx, 0, kw - 1)
    t = w[:, kx_c, :, :]                                  # (KH, W, W, Cin, Cout)
    t = t * valid[None, :, :, None, None]
    t = jnp.transpose(t, (0, 1, 3, 2, 4))                 # (KH, W, Cin, W, Cout)
    return t.reshape(kh, w_spatial * cin, w_spatial * cout)


# --------------------------------------------------------------------------
# Fused kernel: conv1 -> BN1 -> ReLU -> pool -> conv2 -> BN2 -> ReLU -> pool
#               -> FC, everything batched over samples, all in VMEM.
# Activation layout: rows = n*H + y (samples stacked on sublanes),
#                    lanes = x*C + c (lane-dense, 224..448 wide).
# --------------------------------------------------------------------------
def _cnn_fused_kernel(x_ref, w1t_ref, w2t_hbm, g1_ref, be1_ref, g2_ref, be2_ref,
                      wfk_ref, bfc_ref,
                      o_ref,
                      w2t_vmem, dma_sem,
                      *, N, eps):
    f32 = jnp.float32
    bf16 = jnp.bfloat16
    H1, W1, C1 = 28, 28, 16       # conv1 output spatial / channels
    H2, W2, C2 = 14, 14, 32       # conv2 output spatial / channels
    KH = 5
    R1 = N * H1                   # conv1 rows (batched)
    R2 = N * H2                   # pooled-1 / conv2 rows
    R3 = N * 7                    # pooled-2 rows

    # Kick off the layer-2 band-weight DMA now; it overlaps all of layer 1.
    w2t_copy = pltpu.make_async_copy(w2t_hbm, w2t_vmem, dma_sem)
    w2t_copy.start()

    def dotf(a, b):
        return jnp.dot(a, b, preferred_element_type=f32)

    def sel(cond, dtype=bf16):
        # 0/1 selection matrix (exact in bf16).
        return jnp.where(cond, 1.0, 0.0).astype(dtype)

    def row_in_sample(R, H):
        # y index of each stacked row, built without non-pow2 div/mod.
        r = jax.lax.broadcasted_iota(jnp.int32, (R, 1), 0)
        y = r
        for n in range(1, R // H):
            y = y - H * (r >= n * H).astype(jnp.int32)
        return y                                           # (R, 1) in [0, H)

    def shift_mats(R, H):
        """5 (R,R) 0/1 matrices: S_ky @ x = rows shifted by (ky-2), with zero
        fill at the per-sample H boundaries (the conv's H zero-padding)."""
        oi = jax.lax.broadcasted_iota(jnp.int32, (R, R), 0)
        ri = jax.lax.broadcasted_iota(jnp.int32, (R, R), 1)
        yo = row_in_sample(R, H)
        mats = []
        for ky in range(KH):
            d = ky - 2
            mats.append(sel((ri == oi + d) & (yo + d >= 0) & (yo + d < H)))
        return mats

    def pool_row_mats(Rout, Rin):
        # Rin == 2*Rout per sample  =>  selector is simply r == 2*o (+1).
        oi = jax.lax.broadcasted_iota(jnp.int32, (Rout, Rin), 0)
        ri = jax.lax.broadcasted_iota(jnp.int32, (Rout, Rin), 1)
        return sel(ri == 2 * oi), sel(ri == 2 * oi + 1)

    def pool_lane_mats(Wl, C):
        # lanes l = x*C + c; output lane m = xo*C + c picks x = 2*xo (+1).
        L, M = Wl * C, (Wl // 2) * C
        li = jax.lax.broadcasted_iota(jnp.int32, (L, M), 0)
        mi = jax.lax.broadcasted_iota(jnp.int32, (L, M), 1)
        base = 2 * mi - (mi & (C - 1))                     # lane of even x
        return sel(li == base), sel(li == base + C)

    def chan_mats(Wl, C):
        # fold (L,C): lane -> channel sum;  bcast (C,L): channel -> lane.
        L = Wl * C
        li = jax.lax.broadcasted_iota(jnp.int32, (L, C), 0)
        ci = jax.lax.broadcasted_iota(jnp.int32, (L, C), 1)
        fold = sel((li & (C - 1)) == ci, f32)
        cit = jax.lax.broadcasted_iota(jnp.int32, (C, L), 0)
        lit = jax.lax.broadcasted_iota(jnp.int32, (C, L), 1)
        bcast = sel((lit & (C - 1)) == cit, f32)
        return fold, bcast

    def conv(x_bf, shifts, w_ref, out_lanes):
        # z = sum_ky (Shift_ky @ x) @ W_ky   (all bf16 MXU, f32 accumulate)
        acc = jnp.zeros((x_bf.shape[0], out_lanes), f32)
        for ky in range(KH):
            lhs = dotf(shifts[ky], x_bf).astype(bf16)
            acc = acc + dotf(lhs, w_ref[ky])
        return acc

    def bn_relu(z, C, g_ref, be_ref, count):
        # training-mode BatchNorm (batch stats, biased variance) + ReLU, f32.
        fold, bcast = chan_mats(z.shape[1] // C, C)
        csum = jnp.sum(z, axis=0, keepdims=True)
        csq = jnp.sum(z * z, axis=0, keepdims=True)
        mean = dotf(csum, fold) / count                    # (1, C)
        var = jnp.maximum(dotf(csq, fold) / count - mean * mean, 0.0)
        scale = g_ref[...] * jax.lax.rsqrt(var + eps)
        shift = be_ref[...] - mean * scale
        sc_l = dotf(scale, bcast)                          # (1, L) exact gather
        sh_l = dotf(shift, bcast)
        return jnp.maximum(z * sc_l + sh_l, 0.0)

    def pool(y, Rout, Wl, C):
        # 2x2 max pool: row selection matmuls then lane compaction matmuls.
        pe, po = pool_row_mats(Rout, y.shape[0])
        ce, co = pool_lane_mats(Wl, C)
        y_bf = y.astype(bf16)
        yh = jnp.maximum(dotf(pe, y_bf), dotf(po, y_bf)).astype(bf16)
        return jnp.maximum(dotf(yh, ce), dotf(yh, co))

    # ---------------- layer 1: Conv(1->16,5,p2) + BN + ReLU + pool ----------
    x_bf = x_ref[...].astype(bf16)                         # (R1, 28)
    sh1 = shift_mats(R1, H1)
    z1 = conv(x_bf, sh1, w1t_ref, W1 * C1)                 # (R1, 448) f32
    y1 = bn_relu(z1, C1, g1_ref, be1_ref, float(N * H1 * W1))
    p1 = pool(y1, R2, W1, C1)                              # (R2, 224) f32

    # Layer-2 selectors are independent of the prefetched weights; build them
    # before waiting so the VPU work overlaps the DMA tail.
    sh2 = shift_mats(R2, H2)
    w2t_copy.wait()

    # ---------------- layer 2: Conv(16->32,5,p2) + BN + ReLU + pool ---------
    z2 = conv(p1.astype(bf16), sh2, w2t_vmem, W2 * C2)     # (R2, 448) f32
    y2 = bn_relu(z2, C2, g2_ref, be2_ref, float(N * H2 * W2))
    p2 = pool(y2, R3, W2, C2)                              # (R3, 224) f32

    # ---------------- fc: Linear(7*7*32, 10), NCHW flatten in the weight ----
    p2_bf = p2.astype(bf16)
    oi = jax.lax.broadcasted_iota(jnp.int32, (N, R3), 0)
    ri = jax.lax.broadcasted_iota(jnp.int32, (N, R3), 1)
    out = jnp.zeros((N, 16), f32) + bfc_ref[...]
    for yy in range(7):
        fsel = sel(ri == 7 * oi + yy)                      # pick row n*7 + yy
        row = dotf(fsel, p2_bf).astype(bf16)               # (N, 224)
        out = out + dotf(row, wfk_ref[yy])                 # (N, 16)

    o_ref[...] = jnp.zeros_like(o_ref)
    o_ref[:, 0:16] = out


# --------------------------------------------------------------------------
# Wrapper: builds the (bf16) weights and issues ONE pallas_call.
# --------------------------------------------------------------------------
def cnn_forward(x_nchw, params, eps=1e-5):
    (w1, b1, g1, be1), (w2, b2, g2, be2), (wf, bf) = params
    del b1, b2  # cancelled exactly by training-mode BatchNorm (batch mean)
    N = x_nchw.shape[0]
    f32, bf16 = jnp.float32, jnp.bfloat16

    w1t = _make_band_weight(w1, 28).astype(bf16)           # (5, 28, 448)
    w2t = _make_band_weight(w2, 14).astype(bf16)           # (5, 224, 448)

    # FC weight: fold the PyTorch NCHW flatten; keep only 10 real cols + pad.
    t = jnp.transpose(wf.reshape(10, 32, 7, 7), (2, 3, 1, 0)).reshape(7, 224, 10)
    wfk = jnp.zeros((7, 224, 16), f32).at[:, :, :10].set(t.astype(f32)).astype(bf16)
    bfc = jnp.zeros((1, 16), f32).at[0, :10].set(bf.astype(f32))

    x2d = x_nchw.astype(f32).reshape(N * 28, 28)

    kernel = functools.partial(_cnn_fused_kernel, N=N, eps=eps)
    vmem = pl.BlockSpec(memory_space=pltpu.MemorySpace.VMEM)
    out = pl.pallas_call(
        kernel,
        out_shape=jax.ShapeDtypeStruct((N, 128), f32),
        in_specs=[
            vmem,                                   # x
            vmem,                                   # w1t
            pl.BlockSpec(memory_space=pl.ANY),      # w2t (stays in HBM, manual DMA)
            vmem, vmem,                             # g1, be1
            vmem, vmem,                             # g2, be2
            vmem,                                   # wfk
            vmem,                                   # fc bias
        ],
        out_specs=pl.BlockSpec(memory_space=pltpu.MemorySpace.VMEM),
        scratch_shapes=[
            pltpu.VMEM((5, 224, 448), bf16),        # prefetched layer-2 weights
            pltpu.SemaphoreType.DMA,
        ],
    )(x2d, w1t, w2t,
      g1.reshape(1, 16).astype(f32), be1.reshape(1, 16).astype(f32),
      g2.reshape(1, 32).astype(f32), be2.reshape(1, 32).astype(f32),
      wfk, bfc)
    return out[:, :10]


# --------------------------------------------------------------------------
# Pure-JAX f32 reference (includes conv biases; they are cancelled by
# training-mode BN, so results match the kernel).
# --------------------------------------------------------------------------
def _reference_forward(x_nchw, params, eps=1e-5):
    (w1, b1, g1, be1), (w2, b2, g2, be2), (wf, bf) = params

    def conv(x, w, b):
        y = jax.lax.conv_general_dilated(
            x, w, window_strides=(1, 1), padding=((2, 2), (2, 2)),
            dimension_numbers=("NCHW", "OIHW", "NCHW"),
            precision=jax.lax.Precision.HIGHEST)
        return y + b[None, :, None, None]

    def bn(x, g, be):
        m = jnp.mean(x, axis=(0, 2, 3), keepdims=True)
        v = jnp.mean((x - m) ** 2, axis=(0, 2, 3), keepdims=True)
        return ((x - m) / jnp.sqrt(v + eps) * g[None, :, None, None]
                + be[None, :, None, None])

    def pool(x):
        n, c, h, w = x.shape
        return jnp.max(x.reshape(n, c, h // 2, 2, w // 2, 2), axis=(3, 5))

    y = pool(jnp.maximum(bn(conv(x_nchw, w1, b1), g1, be1), 0.0))
    y = pool(jnp.maximum(bn(conv(y, w2, b2), g2, be2), 0.0))
    y = y.reshape(y.shape[0], -1)
    return jnp.dot(y, wf.T, precision=jax.lax.Precision.HIGHEST) + bf


if __name__ == "__main__":
    key = jax.random.PRNGKey(0)
    ks = jax.random.split(key, 9)
    # layer1: Conv2d(1, 16, 5, padding=2) + BatchNorm2d(16)
    w1 = 0.10 * jax.random.normal(ks[0], (16, 1, 5, 5), jnp.float32)
    b1 = 0.05 * jax.random.normal(ks[1], (16,), jnp.float32)
    g1 = 1.0 + 0.10 * jax.random.normal(ks[2], (16,), jnp.float32)
    be1 = 0.10 * jax.random.normal(ks[3], (16,), jnp.float32)
    # layer2: Conv2d(16, 32, 5, padding=2) + BatchNorm2d(32)
    w2 = 0.05 * jax.random.normal(ks[4], (32, 16, 5, 5), jnp.float32)
    b2 = 0.05 * jax.random.normal(ks[5], (32,), jnp.float32)
    g2 = 1.0 + 0.10 * jax.random.normal(ks[6], (32,), jnp.float32)
    be2 = 0.10 * jax.random.normal(ks[7], (32,), jnp.float32)
    # fc: Linear(7*7*32, 10), PyTorch weight layout (out_features, in_features)
    kf1, kf2, kx = jax.random.split(ks[8], 3)
    wf = 0.02 * jax.random.normal(kf1, (10, 7 * 7 * 32), jnp.float32)
    bf = 0.02 * jax.random.normal(kf2, (10,), jnp.float32)

    params = ((w1, b1, g1, be1), (w2, b2, g2, be2), (wf, bf))

    # MNIST-style input implied by fc = Linear(7*7*32, 10): 28x28, 1 channel.
    x = jax.random.normal(kx, (2, 1, 28, 28), jnp.float32)

    out = jax.jit(lambda xx: cnn_forward(xx, params))(x)
    out = jax.block_until_ready(out)

    ref = _reference_forward(x, params)
    # bf16 MXU operands (f32 accumulate): verified within a 2e-2 tolerance.
    np.testing.assert_allclose(np.asarray(out), np.asarray(ref),
                               rtol=2e-2, atol=2e-2)
    assert out.shape == (2, 10) and out.dtype == jnp.float32

    print("KERNEL_OK")
</pallas_src>

<mosaic_0001>
module attributes {stable_mosaic.version = 11 : i64} {
  func.func @_cnn_fused_kernel(%arg0: memref<56x28xf32, #tpu.memory_space<vmem>>, %arg1: memref<5x28x448xbf16, #tpu.memory_space<vmem>>, %arg2: memref<5x224x448xbf16, #tpu.memory_space<any>>, %arg3: memref<1x16xf32, #tpu.memory_space<vmem>>, %arg4: memref<1x16xf32, #tpu.memory_space<vmem>>, %arg5: memref<1x32xf32, #tpu.memory_space<vmem>>, %arg6: memref<1x32xf32, #tpu.memory_space<vmem>>, %arg7: memref<7x224x16xbf16, #tpu.memory_space<vmem>>, %arg8: memref<1x16xf32, #tpu.memory_space<vmem>>, %arg9: memref<2x128xf32, #tpu.memory_space<vmem>>, %arg10: memref<5x224x448xbf16, #tpu.memory_space<vmem>>, %arg11: memref<!tpu.dma_semaphore, #tpu.memory_space<semaphore_mem>>) attributes {dimension_semantics = [], scalar_prefetch = 0 : i64, scratch_operands = 2 : i64, tpu.core_type = #tpu.core_type<tc>} {
    tpu.enqueue_dma source(%arg2 : memref<5x224x448xbf16, #tpu.memory_space<any>>) target(%arg10 : memref<5x224x448xbf16, #tpu.memory_space<vmem>>) target_semaphore(%arg11 : memref<!tpu.dma_semaphore, #tpu.memory_space<semaphore_mem>>)
    %c0 = arith.constant 0 : index
    %c0_0 = arith.constant 0 : index
    %0 = vector.load %arg0[%c0, %c0_0] : memref<56x28xf32, #tpu.memory_space<vmem>>, vector<56x28xf32>
    %1 = arith.truncf %0 : vector<56x28xf32> to vector<56x28xbf16>
    %2 = tpu.iota {dimensions = array<i32: 0>} : vector<56x56xi32>
    %3 = tpu.iota {dimensions = array<i32: 1>} : vector<56x56xi32>
    %4 = tpu.iota {dimensions = array<i32: 0>} : vector<56x1xi32>
    %c28_i32 = arith.constant 28 : i32
    %5 = vector.broadcast %c28_i32 : i32 to vector<56x1xi32>
    %6 = arith.cmpi sge, %4, %5 : vector<56x1xi32>
    %7 = arith.extui %6 : vector<56x1xi1> to vector<56x1xi32>
    %c28_i32_1 = arith.constant 28 : i32
    %8 = vector.broadcast %c28_i32_1 : i32 to vector<56x1xi32>
    %9 = arith.muli %8, %7 : vector<56x1xi32>
    %10 = arith.subi %4, %9 : vector<56x1xi32>
    %c-2_i32 = arith.constant -2 : i32
    %11 = vector.broadcast %c-2_i32 : i32 to vector<56x56xi32>
    %12 = arith.addi %2, %11 : vector<56x56xi32>
    %13 = arith.cmpi eq, %3, %12 : vector<56x56xi32>
    %c-2_i32_2 = arith.constant -2 : i32
    %14 = vector.broadcast %c-2_i32_2 : i32 to vector<56x1xi32>
    %15 = arith.addi %10, %14 : vector<56x1xi32>
    %c0_i32 = arith.constant 0 : i32
    %16 = vector.broadcast %c0_i32 : i32 to vector<56x1xi32>
    %17 = arith.cmpi sge, %15, %16 : vector<56x1xi32>
    %18 = vector.broadcast %17 : vector<56x1xi1> to vector<56x56xi1>
    %19 = arith.andi %13, %18 : vector<56x56xi1>
    %c-2_i32_3 = arith.constant -2 : i32
    %20 = vector.broadcast %c-2_i32_3 : i32 to vector<56x1xi32>
    %21 = arith.addi %10, %20 : vector<56x1xi32>
    %c28_i32_4 = arith.constant 28 : i32
    %22 = vector.broadcast %c28_i32_4 : i32 to vector<56x1xi32>
    %23 = arith.cmpi slt, %21, %22 : vector<56x1xi32>
    %24 = vector.broadcast %23 : vector<56x1xi1> to vector<56x56xi1>
    %25 = arith.andi %19, %24 : vector<56x56xi1>
    %cst = arith.constant 1.000000e+00 : f32
    %cst_5 = arith.constant 0.000000e+00 : f32
    %26 = vector.broadcast %cst : f32 to vector<56x56xf32>
    %27 = vector.broadcast %cst_5 : f32 to vector<56x56xf32>
    %28 = arith.select %25, %26, %27 : vector<56x56xi1>, vector<56x56xf32>
    %29 = arith.truncf %28 : vector<56x56xf32> to vector<56x56xbf16>
    %c-1_i32 = arith.constant -1 : i32
    %30 = vector.broadcast %c-1_i32 : i32 to vector<56x56xi32>
    %31 = arith.addi %2, %30 : vector<56x56xi32>
    %32 = arith.cmpi eq, %3, %31 : vector<56x56xi32>
    %c-1_i32_6 = arith.constant -1 : i32
    %33 = vector.broadcast %c-1_i32_6 : i32 to vector<56x1xi32>
    %34 = arith.addi %10, %33 : vector<56x1xi32>
    %c0_i32_7 = arith.constant 0 : i32
    %35 = vector.broadcast %c0_i32_7 : i32 to vector<56x1xi32>
    %36 = arith.cmpi sge, %34, %35 : vector<56x1xi32>
    %37 = vector.broadcast %36 : vector<56x1xi1> to vector<56x56xi1>
    %38 = arith.andi %32, %37 : vector<56x56xi1>
    %c-1_i32_8 = arith.constant -1 : i32
    %39 = vector.broadcast %c-1_i32_8 : i32 to vector<56x1xi32>
    %40 = arith.addi %10, %39 : vector<56x1xi32>
    %c28_i32_9 = arith.constant 28 : i32
    %41 = vector.broadcast %c28_i32_9 : i32 to vector<56x1xi32>
    %42 = arith.cmpi slt, %40, %41 : vector<56x1xi32>
    %43 = vector.broadcast %42 : vector<56x1xi1> to vector<56x56xi1>
    %44 = arith.andi %38, %43 : vector<56x56xi1>
    %cst_10 = arith.constant 1.000000e+00 : f32
    %cst_11 = arith.constant 0.000000e+00 : f32
    %45 = vector.broadcast %cst_10 : f32 to vector<56x56xf32>
    %46 = vector.broadcast %cst_11 : f32 to vector<56x56xf32>
    %47 = arith.select %44, %45, %46 : vector<56x56xi1>, vector<56x56xf32>
    %48 = arith.truncf %47 : vector<56x56xf32> to vector<56x56xbf16>
    %c0_i32_12 = arith.constant 0 : i32
    %49 = vector.broadcast %c0_i32_12 : i32 to vector<56x56xi32>
    %50 = arith.addi %2, %49 : vector<56x56xi32>
    %51 = arith.cmpi eq, %3, %50 : vector<56x56xi32>
    %c0_i32_13 = arith.constant 0 : i32
    %52 = vector.broadcast %c0_i32_13 : i32 to vector<56x1xi32>
    %53 = arith.addi %10, %52 : vector<56x1xi32>
    %c0_i32_14 = arith.constant 0 : i32
    %54 = vector.broadcast %c0_i32_14 : i32 to vector<56x1xi32>
    %55 = arith.cmpi sge, %53, %54 : vector<56x1xi32>
    %56 = vector.broadcast %55 : vector<56x1xi1> to vector<56x56xi1>
    %57 = arith.andi %51, %56 : vector<56x56xi1>
    %c0_i32_15 = arith.constant 0 : i32
    %58 = vector.broadcast %c0_i32_15 : i32 to vector<56x1xi32>
    %59 = arith.addi %10, %58 : vector<56x1xi32>
    %c28_i32_16 = arith.constant 28 : i32
    %60 = vector.broadcast %c28_i32_16 : i32 to vector<56x1xi32>
    %61 = arith.cmpi slt, %59, %60 : vector<56x1xi32>
    %62 = vector.broadcast %61 : vector<56x1xi1> to vector<56x56xi1>
    %63 = arith.andi %57, %62 : vector<56x56xi1>
    %cst_17 = arith.constant 1.000000e+00 : f32
    %cst_18 = arith.constant 0.000000e+00 : f32
    %64 = vector.broadcast %cst_17 : f32 to vector<56x56xf32>
    %65 = vector.broadcast %cst_18 : f32 to vector<56x56xf32>
    %66 = arith.select %63, %64, %65 : vector<56x56xi1>, vector<56x56xf32>
    %67 = arith.truncf %66 : vector<56x56xf32> to vector<56x56xbf16>
    %c1_i32 = arith.constant 1 : i32
    %68 = vector.broadcast %c1_i32 : i32 to vector<56x56xi32>
    %69 = arith.addi %2, %68 : vector<56x56xi32>
    %70 = arith.cmpi eq, %3, %69 : vector<56x56xi32>
    %c1_i32_19 = arith.constant 1 : i32
    %71 = vector.broadcast %c1_i32_19 : i32 to vector<56x1xi32>
    %72 = arith.addi %10, %71 : vector<56x1xi32>
    %c0_i32_20 = arith.constant 0 : i32
    %73 = vector.broadcast %c0_i32_20 : i32 to vector<56x1xi32>
    %74 = arith.cmpi sge, %72, %73 : vector<56x1xi32>
    %75 = vector.broadcast %74 : vector<56x1xi1> to vector<56x56xi1>
    %76 = arith.andi %70, %75 : vector<56x56xi1>
    %c1_i32_21 = arith.constant 1 : i32
    %77 = vector.broadcast %c1_i32_21 : i32 to vector<56x1xi32>
    %78 = arith.addi %10, %77 : vector<56x1xi32>
    %c28_i32_22 = arith.constant 28 : i32
    %79 = vector.broadcast %c28_i32_22 : i32 to vector<56x1xi32>
    %80 = arith.cmpi slt, %78, %79 : vector<56x1xi32>
    %81 = vector.broadcast %80 : vector<56x1xi1> to vector<56x56xi1>
    %82 = arith.andi %76, %81 : vector<56x56xi1>
    %cst_23 = arith.constant 1.000000e+00 : f32
    %cst_24 = arith.constant 0.000000e+00 : f32
    %83 = vector.broadcast %cst_23 : f32 to vector<56x56xf32>
    %84 = vector.broadcast %cst_24 : f32 to vector<56x56xf32>
    %85 = arith.select %82, %83, %84 : vector<56x56xi1>, vector<56x56xf32>
    %86 = arith.truncf %85 : vector<56x56xf32> to vector<56x56xbf16>
    %c2_i32 = arith.constant 2 : i32
    %87 = vector.broadcast %c2_i32 : i32 to vector<56x56xi32>
    %88 = arith.addi %2, %87 : vector<56x56xi32>
    %89 = arith.cmpi eq, %3, %88 : vector<56x56xi32>
    %c2_i32_25 = arith.constant 2 : i32
    %90 = vector.broadcast %c2_i32_25 : i32 to vector<56x1xi32>
    %91 = arith.addi %10, %90 : vector<56x1xi32>
    %c0_i32_26 = arith.constant 0 : i32
    %92 = vector.broadcast %c0_i32_26 : i32 to vector<56x1xi32>
    %93 = arith.cmpi sge, %91, %92 : vector<56x1xi32>
    %94 = vector.broadcast %93 : vector<56x1xi1> to vector<56x56xi1>
    %95 = arith.andi %89, %94 : vector<56x56xi1>
    %c2_i32_27 = arith.constant 2 : i32
    %96 = vector.broadcast %c2_i32_27 : i32 to vector<56x1xi32>
    %97 = arith.addi %10, %96 : vector<56x1xi32>
    %c28_i32_28 = arith.constant 28 : i32
    %98 = vector.broadcast %c28_i32_28 : i32 to vector<56x1xi32>
    %99 = arith.cmpi slt, %97, %98 : vector<56x1xi32>
    %100 = vector.broadcast %99 : vector<56x1xi1> to vector<56x56xi1>
    %101 = arith.andi %95, %100 : vector<56x56xi1>
    %cst_29 = arith.constant 1.000000e+00 : f32
    %cst_30 = arith.constant 0.000000e+00 : f32
    %102 = vector.broadcast %cst_29 : f32 to vector<56x56xf32>
    %103 = vector.broadcast %cst_30 : f32 to vector<56x56xf32>
    %104 = arith.select %101, %102, %103 : vector<56x56xi1>, vector<56x56xf32>
    %105 = arith.truncf %104 : vector<56x56xf32> to vector<56x56xbf16>
    %cst_31 = arith.constant 0.000000e+00 : f32
    %106 = vector.broadcast %cst_31 : f32 to vector<56x448xf32>
    %cst_32 = arith.constant dense<0.000000e+00> : vector<56x28xf32>
    %107 = tpu.matmul %29, %1, %cst_32 {dimension_numbers = #tpu.dot_dimension_numbers<[1], [0], [0], [1], [0, 0, 1, 1], [], []>} : vector<56x56xbf16>, vector<56x28xbf16>, vector<56x28xf32> -> vector<56x28xf32>
    %108 = arith.truncf %107 : vector<56x28xf32> to vector<56x28xbf16>
    %c0_33 = arith.constant 0 : index
    %c0_34 = arith.constant 0 : index
    %c0_35 = arith.constant 0 : index
    %109 = vector.load %arg1[%c0_33, %c0_34, %c0_35] : memref<5x28x448xbf16, #tpu.memory_space<vmem>>, vector<1x28x448xbf16>
    %110 = vector.shape_cast %109 : vector<1x28x448xbf16> to vector<28x448xbf16>
    %cst_36 = arith.constant dense<0.000000e+00> : vector<56x448xf32>
    %111 = tpu.matmul %108, %110, %cst_36 {dimension_numbers = #tpu.dot_dimension_numbers<[1], [0], [0], [1], [0, 0, 1, 1], [], []>} : vector<56x28xbf16>, vector<28x448xbf16>, vector<56x448xf32> -> vector<56x448xf32>
    %112 = arith.addf %106, %111 : vector<56x448xf32>
    %cst_37 = arith.constant dense<0.000000e+00> : vector<56x28xf32>
    %113 = tpu.matmul %48, %1, %cst_37 {dimension_numbers = #tpu.dot_dimension_numbers<[1], [0], [0], [1], [0, 0, 1, 1], [], []>} : vector<56x56xbf16>, vector<56x28xbf16>, vector<56x28xf32> -> vector<56x28xf32>
    %114 = arith.truncf %113 : vector<56x28xf32> to vector<56x28xbf16>
    %c1 = arith.constant 1 : index
    %c0_38 = arith.constant 0 : index
    %c0_39 = arith.constant 0 : index
    %115 = vector.load %arg1[%c1, %c0_38, %c0_39] : memref<5x28x448xbf16, #tpu.memory_space<vmem>>, vector<1x28x448xbf16>
    %116 = vector.shape_cast %115 : vector<1x28x448xbf16> to vector<28x448xbf16>
    %cst_40 = arith.constant dense<0.000000e+00> : vector<56x448xf32>
    %117 = tpu.matmul %114, %116, %cst_40 {dimension_numbers = #tpu.dot_dimension_numbers<[1], [0], [0], [1], [0, 0, 1, 1], [], []>} : vector<56x28xbf16>, vector<28x448xbf16>, vector<56x448xf32> -> vector<56x448xf32>
    %118 = arith.addf %112, %117 : vector<56x448xf32>
    %cst_41 = arith.constant dense<0.000000e+00> : vector<56x28xf32>
    %119 = tpu.matmul %67, %1, %cst_41 {dimension_numbers = #tpu.dot_dimension_numbers<[1], [0], [0], [1], [0, 0, 1, 1], [], []>} : vector<56x56xbf16>, vector<56x28xbf16>, vector<56x28xf32> -> vector<56x28xf32>
    %120 = arith.truncf %119 : vector<56x28xf32> to vector<56x28xbf16>
    %c2 = arith.constant 2 : index
    %c0_42 = arith.constant 0 : index
    %c0_43 = arith.constant 0 : index
    %121 = vector.load %arg1[%c2, %c0_42, %c0_43] : memref<5x28x448xbf16, #tpu.memory_space<vmem>>, vector<1x28x448xbf16>
    %122 = vector.shape_cast %121 : vector<1x28x448xbf16> to vector<28x448xbf16>
    %cst_44 = arith.constant dense<0.000000e+00> : vector<56x448xf32>
    %123 = tpu.matmul %120, %122, %cst_44 {dimension_numbers = #tpu.dot_dimension_numbers<[1], [0], [0], [1], [0, 0, 1, 1], [], []>} : vector<56x28xbf16>, vector<28x448xbf16>, vector<56x448xf32> -> vector<56x448xf32>
    %124 = arith.addf %118, %123 : vector<56x448xf32>
    %cst_45 = arith.constant dense<0.000000e+00> : vector<56x28xf32>
    %125 = tpu.matmul %86, %1, %cst_45 {dimension_numbers = #tpu.dot_dimension_numbers<[1], [0], [0], [1], [0, 0, 1, 1], [], []>} : vector<56x56xbf16>, vector<56x28xbf16>, vector<56x28xf32> -> vector<56x28xf32>
    %126 = arith.truncf %125 : vector<56x28xf32> to vector<56x28xbf16>
    %c3 = arith.constant 3 : index
    %c0_46 = arith.constant 0 : index
    %c0_47 = arith.constant 0 : index
    %127 = vector.load %arg1[%c3, %c0_46, %c0_47] : memref<5x28x448xbf16, #tpu.memory_space<vmem>>, vector<1x28x448xbf16>
    %128 = vector.shape_cast %127 : vector<1x28x448xbf16> to vector<28x448xbf16>
    %cst_48 = arith.constant dense<0.000000e+00> : vector<56x448xf32>
    %129 = tpu.matmul %126, %128, %cst_48 {dimension_numbers = #tpu.dot_dimension_numbers<[1], [0], [0], [1], [0, 0, 1, 1], [], []>} : vector<56x28xbf16>, vector<28x448xbf16>, vector<56x448xf32> -> vector<56x448xf32>
    %130 = arith.addf %124, %129 : vector<56x448xf32>
    %cst_49 = arith.constant dense<0.000000e+00> : vector<56x28xf32>
    %131 = tpu.matmul %105, %1, %cst_49 {dimension_numbers = #tpu.dot_dimension_numbers<[1], [0], [0], [1], [0, 0, 1, 1], [], []>} : vector<56x56xbf16>, vector<56x28xbf16>, vector<56x28xf32> -> vector<56x28xf32>
    %132 = arith.truncf %131 : vector<56x28xf32> to vector<56x28xbf16>
    %c4 = arith.constant 4 : index
    %c0_50 = arith.constant 0 : index
    %c0_51 = arith.constant 0 : index
    %133 = vector.load %arg1[%c4, %c0_50, %c0_51] : memref<5x28x448xbf16, #tpu.memory_space<vmem>>, vector<1x28x448xbf16>
    %134 = vector.shape_cast %133 : vector<1x28x448xbf16> to vector<28x448xbf16>
    %cst_52 = arith.constant dense<0.000000e+00> : vector<56x448xf32>
    %135 = tpu.matmul %132, %134, %cst_52 {dimension_numbers = #tpu.dot_dimension_numbers<[1], [0], [0], [1], [0, 0, 1, 1], [], []>} : vector<56x28xbf16>, vector<28x448xbf16>, vector<56x448xf32> -> vector<56x448xf32>
    %136 = arith.addf %130, %135 : vector<56x448xf32>
    %137 = tpu.iota {dimensions = array<i32: 0>} : vector<448x16xi32>
    %138 = tpu.iota {dimensions = array<i32: 1>} : vector<448x16xi32>
    %c15_i32 = arith.constant 15 : i32
    %139 = vector.broadcast %c15_i32 : i32 to vector<448x16xi32>
    %140 = arith.andi %137, %139 : vector<448x16xi32>
    %141 = arith.cmpi eq, %140, %138 : vector<448x16xi32>
    %cst_53 = arith.constant 1.000000e+00 : f32
    %cst_54 = arith.constant 0.000000e+00 : f32
    %142 = vector.broadcast %cst_53 : f32 to vector<448x16xf32>
    %143 = vector.broadcast %cst_54 : f32 to vector<448x16xf32>
    %144 = arith.select %141, %142, %143 : vector<448x16xi1>, vector<448x16xf32>
    %145 = tpu.iota {dimensions = array<i32: 0>} : vector<16x448xi32>
    %146 = tpu.iota {dimensions = array<i32: 1>} : vector<16x448xi32>
    %c15_i32_55 = arith.constant 15 : i32
    %147 = vector.broadcast %c15_i32_55 : i32 to vector<16x448xi32>
    %148 = arith.andi %146, %147 : vector<16x448xi32>
    %149 = arith.cmpi eq, %148, %145 : vector<16x448xi32>
    %cst_56 = arith.constant 1.000000e+00 : f32
    %cst_57 = arith.constant 0.000000e+00 : f32
    %150 = vector.broadcast %cst_56 : f32 to vector<16x448xf32>
    %151 = vector.broadcast %cst_57 : f32 to vector<16x448xf32>
    %152 = arith.select %149, %150, %151 : vector<16x448xi1>, vector<16x448xf32>
    %cst_58 = arith.constant dense<0.000000e+00> : vector<448xf32>
    %153 = vector.multi_reduction <add>, %136, %cst_58 [0] : vector<56x448xf32> to vector<448xf32>
    %154 = vector.shape_cast %153 : vector<448xf32> to vector<1x448xf32>
    %155 = arith.mulf %136, %136 : vector<56x448xf32>
    %cst_59 = arith.constant dense<0.000000e+00> : vector<448xf32>
    %156 = vector.multi_reduction <add>, %155, %cst_59 [0] : vector<56x448xf32> to vector<448xf32>
    %157 = vector.shape_cast %156 : vector<448xf32> to vector<1x448xf32>
    %cst_60 = arith.constant dense<0.000000e+00> : vector<1x16xf32>
    %158 = tpu.matmul %154, %144, %cst_60 {dimension_numbers = #tpu.dot_dimension_numbers<[1], [0], [0], [1], [0, 0, 1, 1], [], []>} : vector<1x448xf32>, vector<448x16xf32>, vector<1x16xf32> -> vector<1x16xf32>
    %cst_61 = arith.constant 1.568000e+03 : f32
    %159 = vector.broadcast %cst_61 : f32 to vector<1x16xf32>
    %160 = arith.divf %158, %159 : vector<1x16xf32>
    %cst_62 = arith.constant dense<0.000000e+00> : vector<1x16xf32>
    %161 = tpu.matmul %157, %144, %cst_62 {dimension_numbers = #tpu.dot_dimension_numbers<[1], [0], [0], [1], [0, 0, 1, 1], [], []>} : vector<1x448xf32>, vector<448x16xf32>, vector<1x16xf32> -> vector<1x16xf32>
    %cst_63 = arith.constant 1.568000e+03 : f32
    %162 = vector.broadcast %cst_63 : f32 to vector<1x16xf32>
    %163 = arith.divf %161, %162 : vector<1x16xf32>
    %164 = arith.mulf %160, %160 : vector<1x16xf32>
    %165 = arith.subf %163, %164 : vector<1x16xf32>
    %cst_64 = arith.constant 0.000000e+00 : f32
    %166 = vector.broadcast %cst_64 : f32 to vector<1x16xf32>
    %167 = arith.maximumf %165, %166 : vector<1x16xf32>
    %c0_65 = arith.constant 0 : index
    %c0_66 = arith.constant 0 : index
    %168 = vector.load %arg3[%c0_65, %c0_66] : memref<1x16xf32, #tpu.memory_space<vmem>>, vector<1x16xf32>
    %cst_67 = arith.constant 9.99999974E-6 : f32
    %169 = vector.broadcast %cst_67 : f32 to vector<1x16xf32>
    %170 = arith.addf %167, %169 : vector<1x16xf32>
    %171 = math.rsqrt %170 : vector<1x16xf32>
    %172 = arith.mulf %168, %171 : vector<1x16xf32>
    %c0_68 = arith.constant 0 : index
    %c0_69 = arith.constant 0 : index
    %173 = vector.load %arg4[%c0_68, %c0_69] : memref<1x16xf32, #tpu.memory_space<vmem>>, vector<1x16xf32>
    %174 = arith.mulf %160, %172 : vector<1x16xf32>
    %175 = arith.subf %173, %174 : vector<1x16xf32>
    %cst_70 = arith.constant dense<0.000000e+00> : vector<1x448xf32>
    %176 = tpu.matmul %172, %152, %cst_70 {dimension_numbers = #tpu.dot_dimension_numbers<[1], [0], [0], [1], [0, 0, 1, 1], [], []>} : vector<1x16xf32>, vector<16x448xf32>, vector<1x448xf32> -> vector<1x448xf32>
    %cst_71 = arith.constant dense<0.000000e+00> : vector<1x448xf32>
    %177 = tpu.matmul %175, %152, %cst_71 {dimension_numbers = #tpu.dot_dimension_numbers<[1], [0], [0], [1], [0, 0, 1, 1], [], []>} : vector<1x16xf32>, vector<16x448xf32>, vector<1x448xf32> -> vector<1x448xf32>
    %178 = vector.broadcast %176 : vector<1x448xf32> to vector<56x448xf32>
    %179 = arith.mulf %136, %178 : vector<56x448xf32>
    %180 = vector.broadcast %177 : vector<1x448xf32> to vector<56x448xf32>
    %181 = arith.addf %179, %180 : vector<56x448xf32>
    %cst_72 = arith.constant 0.000000e+00 : f32
    %182 = vector.broadcast %cst_72 : f32 to vector<56x448xf32>
    %183 = arith.maximumf %181, %182 : vector<56x448xf32>
    %184 = tpu.iota {dimensions = array<i32: 0>} : vector<28x56xi32>
    %185 = tpu.iota {dimensions = array<i32: 1>} : vector<28x56xi32>
    %c2_i32_73 = arith.constant 2 : i32
    %186 = vector.broadcast %c2_i32_73 : i32 to vector<28x56xi32>
    %187 = arith.muli %186, %184 : vector<28x56xi32>
    %188 = arith.cmpi eq, %185, %187 : vector<28x56xi32>
    %cst_74 = arith.constant 1.000000e+00 : f32
    %cst_75 = arith.constant 0.000000e+00 : f32
    %189 = vector.broadcast %cst_74 : f32 to vector<28x56xf32>
    %190 = vector.broadcast %cst_75 : f32 to vector<28x56xf32>
    %191 = arith.select %188, %189, %190 : vector<28x56xi1>, vector<28x56xf32>
    %192 = arith.truncf %191 : vector<28x56xf32> to vector<28x56xbf16>
    %c2_i32_76 = arith.constant 2 : i32
    %193 = vector.broadcast %c2_i32_76 : i32 to vector<28x56xi32>
    %194 = arith.muli %193, %184 : vector<28x56xi32>
    %c1_i32_77 = arith.constant 1 : i32
    %195 = vector.broadcast %c1_i32_77 : i32 to vector<28x56xi32>
    %196 = arith.addi %194, %195 : vector<28x56xi32>
    %197 = arith.cmpi eq, %185, %196 : vector<28x56xi32>
    %cst_78 = arith.constant 1.000000e+00 : f32
    %cst_79 = arith.constant 0.000000e+00 : f32
    %198 = vector.broadcast %cst_78 : f32 to vector<28x56xf32>
    %199 = vector.broadcast %cst_79 : f32 to vector<28x56xf32>
    %200 = arith.select %197, %198, %199 : vector<28x56xi1>, vector<28x56xf32>
    %201 = arith.truncf %200 : vector<28x56xf32> to vector<28x56xbf16>
    %202 = tpu.iota {dimensions = array<i32: 0>} : vector<448x224xi32>
    %203 = tpu.iota {dimensions = array<i32: 1>} : vector<448x224xi32>
    %c2_i32_80 = arith.constant 2 : i32
    %204 = vector.broadcast %c2_i32_80 : i32 to vector<448x224xi32>
    %205 = arith.muli %204, %203 : vector<448x224xi32>
    %c15_i32_81 = arith.constant 15 : i32
    %206 = vector.broadcast %c15_i32_81 : i32 to vector<448x224xi32>
    %207 = arith.andi %203, %206 : vector<448x224xi32>
    %208 = arith.subi %205, %207 : vector<448x224xi32>
    %209 = arith.cmpi eq, %202, %208 : vector<448x224xi32>
    %cst_82 = arith.constant 1.000000e+00 : f32
    %cst_83 = arith.constant 0.000000e+00 : f32
    %210 = vector.broadcast %cst_82 : f32 to vector<448x224xf32>
    %211 = vector.broadcast %cst_83 : f32 to vector<448x224xf32>
    %212 = arith.select %209, %210, %211 : vector<448x224xi1>, vector<448x224xf32>
    %213 = arith.truncf %212 : vector<448x224xf32> to vector<448x224xbf16>
    %c16_i32 = arith.constant 16 : i32
    %214 = vector.broadcast %c16_i32 : i32 to vector<448x224xi32>
    %215 = arith.addi %208, %214 : vector<448x224xi32>
    %216 = arith.cmpi eq, %202, %215 : vector<448x224xi32>
    %cst_84 = arith.constant 1.000000e+00 : f32
    %cst_85 = arith.constant 0.000000e+00 : f32
    %217 = vector.broadcast %cst_84 : f32 to vector<448x224xf32>
    %218 = vector.broadcast %cst_85 : f32 to vector<448x224xf32>
    %219 = arith.select %216, %217, %218 : vector<448x224xi1>, vector<448x224xf32>
    %220 = arith.truncf %219 : vector<448x224xf32> to vector<448x224xbf16>
    %221 = arith.truncf %183 : vector<56x448xf32> to vector<56x448xbf16>
    %cst_86 = arith.constant dense<0.000000e+00> : vector<28x448xf32>
    %222 = tpu.matmul %192, %221, %cst_86 {dimension_numbers = #tpu.dot_dimension_numbers<[1], [0], [0], [1], [0, 0, 1, 1], [], []>} : vector<28x56xbf16>, vector<56x448xbf16>, vector<28x448xf32> -> vector<28x448xf32>
    %cst_87 = arith.constant dense<0.000000e+00> : vector<28x448xf32>
    %223 = tpu.matmul %201, %221, %cst_87 {dimension_numbers = #tpu.dot_dimension_numbers<[1], [0], [0], [1], [0, 0, 1, 1], [], []>} : vector<28x56xbf16>, vector<56x448xbf16>, vector<28x448xf32> -> vector<28x448xf32>
    %224 = arith.maximumf %222, %223 : vector<28x448xf32>
    %225 = arith.truncf %224 : vector<28x448xf32> to vector<28x448xbf16>
    %cst_88 = arith.constant dense<0.000000e+00> : vector<28x224xf32>
    %226 = tpu.matmul %225, %213, %cst_88 {dimension_numbers = #tpu.dot_dimension_numbers<[1], [0], [0], [1], [0, 0, 1, 1], [], []>} : vector<28x448xbf16>, vector<448x224xbf16>, vector<28x224xf32> -> vector<28x224xf32>
    %cst_89 = arith.constant dense<0.000000e+00> : vector<28x224xf32>
    %227 = tpu.matmul %225, %220, %cst_89 {dimension_numbers = #tpu.dot_dimension_numbers<[1], [0], [0], [1], [0, 0, 1, 1], [], []>} : vector<28x448xbf16>, vector<448x224xbf16>, vector<28x224xf32> -> vector<28x224xf32>
    %228 = arith.maximumf %226, %227 : vector<28x224xf32>
    %229 = tpu.iota {dimensions = array<i32: 0>} : vector<28x28xi32>
    %230 = tpu.iota {dimensions = array<i32: 1>} : vector<28x28xi32>
    %231 = tpu.iota {dimensions = array<i32: 0>} : vector<28x1xi32>
    %c14_i32 = arith.constant 14 : i32
    %232 = vector.broadcast %c14_i32 : i32 to vector<28x1xi32>
    %233 = arith.cmpi sge, %231, %232 : vector<28x1xi32>
    %234 = arith.extui %233 : vector<28x1xi1> to vector<28x1xi32>
    %c14_i32_90 = arith.constant 14 : i32
    %235 = vector.broadcast %c14_i32_90 : i32 to vector<28x1xi32>
    %236 = arith.muli %235, %234 : vector<28x1xi32>
    %237 = arith.subi %231, %236 : vector<28x1xi32>
    %c-2_i32_91 = arith.constant -2 : i32
    %238 = vector.broadcast %c-2_i32_91 : i32 to vector<28x28xi32>
    %239 = arith.addi %229, %238 : vector<28x28xi32>
    %240 = arith.cmpi eq, %230, %239 : vector<28x28xi32>
    %c-2_i32_92 = arith.constant -2 : i32
    %241 = vector.broadcast %c-2_i32_92 : i32 to vector<28x1xi32>
    %242 = arith.addi %237, %241 : vector<28x1xi32>
    %c0_i32_93 = arith.constant 0 : i32
    %243 = vector.broadcast %c0_i32_93 : i32 to vector<28x1xi32>
    %244 = arith.cmpi sge, %242, %243 : vector<28x1xi32>
    %245 = vector.broadcast %244 : vector<28x1xi1> to vector<28x28xi1>
    %246 = arith.andi %240, %245 : vector<28x28xi1>
    %c-2_i32_94 = arith.constant -2 : i32
    %247 = vector.broadcast %c-2_i32_94 : i32 to vector<28x1xi32>
    %248 = arith.addi %237, %247 : vector<28x1xi32>
    %c14_i32_95 = arith.constant 14 : i32
    %249 = vector.broadcast %c14_i32_95 : i32 to vector<28x1xi32>
    %250 = arith.cmpi slt, %248, %249 : vector<28x1xi32>
    %251 = vector.broadcast %250 : vector<28x1xi1> to vector<28x28xi1>
    %252 = arith.andi %246, %251 : vector<28x28xi1>
    %cst_96 = arith.constant 1.000000e+00 : f32
    %cst_97 = arith.constant 0.000000e+00 : f32
    %253 = vector.broadcast %cst_96 : f32 to vector<28x28xf32>
    %254 = vector.broadcast %cst_97 : f32 to vector<28x28xf32>
    %255 = arith.select %252, %253, %254 : vector<28x28xi1>, vector<28x28xf32>
    %256 = arith.truncf %255 : vector<28x28xf32> to vector<28x28xbf16>
    %c-1_i32_98 = arith.constant -1 : i32
    %257 = vector.broadcast %c-1_i32_98 : i32 to vector<28x28xi32>
    %258 = arith.addi %229, %257 : vector<28x28xi32>
    %259 = arith.cmpi eq, %230, %258 : vector<28x28xi32>
    %c-1_i32_99 = arith.constant -1 : i32
    %260 = vector.broadcast %c-1_i32_99 : i32 to vector<28x1xi32>
    %261 = arith.addi %237, %260 : vector<28x1xi32>
    %c0_i32_100 = arith.constant 0 : i32
    %262 = vector.broadcast %c0_i32_100 : i32 to vector<28x1xi32>
    %263 = arith.cmpi sge, %261, %262 : vector<28x1xi32>
    %264 = vector.broadcast %263 : vector<28x1xi1> to vector<28x28xi1>
    %265 = arith.andi %259, %264 : vector<28x28xi1>
    %c-1_i32_101 = arith.constant -1 : i32
    %266 = vector.broadcast %c-1_i32_101 : i32 to vector<28x1xi32>
    %267 = arith.addi %237, %266 : vector<28x1xi32>
    %c14_i32_102 = arith.constant 14 : i32
    %268 = vector.broadcast %c14_i32_102 : i32 to vector<28x1xi32>
    %269 = arith.cmpi slt, %267, %268 : vector<28x1xi32>
    %270 = vector.broadcast %269 : vector<28x1xi1> to vector<28x28xi1>
    %271 = arith.andi %265, %270 : vector<28x28xi1>
    %cst_103 = arith.constant 1.000000e+00 : f32
    %cst_104 = arith.constant 0.000000e+00 : f32
    %272 = vector.broadcast %cst_103 : f32 to vector<28x28xf32>
    %273 = vector.broadcast %cst_104 : f32 to vector<28x28xf32>
    %274 = arith.select %271, %272, %273 : vector<28x28xi1>, vector<28x28xf32>
    %275 = arith.truncf %274 : vector<28x28xf32> to vector<28x28xbf16>
    %c0_i32_105 = arith.constant 0 : i32
    %276 = vector.broadcast %c0_i32_105 : i32 to vector<28x28xi32>
    %277 = arith.addi %229, %276 : vector<28x28xi32>
    %278 = arith.cmpi eq, %230, %277 : vector<28x28xi32>
    %c0_i32_106 = arith.constant 0 : i32
    %279 = vector.broadcast %c0_i32_106 : i32 to vector<28x1xi32>
    %280 = arith.addi %237, %279 : vector<28x1xi32>
    %c0_i32_107 = arith.constant 0 : i32
    %281 = vector.broadcast %c0_i32_107 : i32 to vector<28x1xi32>
    %282 = arith.cmpi sge, %280, %281 : vector<28x1xi32>
    %283 = vector.broadcast %282 : vector<28x1xi1> to vector<28x28xi1>
    %284 = arith.andi %278, %283 : vector<28x28xi1>
    %c0_i32_108 = arith.constant 0 : i32
    %285 = vector.broadcast %c0_i32_108 : i32 to vector<28x1xi32>
    %286 = arith.addi %237, %285 : vector<28x1xi32>
    %c14_i32_109 = arith.constant 14 : i32
    %287 = vector.broadcast %c14_i32_109 : i32 to vector<28x1xi32>
    %288 = arith.cmpi slt, %286, %287 : vector<28x1xi32>
    %289 = vector.broadcast %288 : vector<28x1xi1> to vector<28x28xi1>
    %290 = arith.andi %284, %289 : vector<28x28xi1>
    %cst_110 = arith.constant 1.000000e+00 : f32
    %cst_111 = arith.constant 0.000000e+00 : f32
    %291 = vector.broadcast %cst_110 : f32 to vector<28x28xf32>
    %292 = vector.broadcast %cst_111 : f32 to vector<28x28xf32>
    %293 = arith.select %290, %291, %292 : vector<28x28xi1>, vector<28x28xf32>
    %294 = arith.truncf %293 : vector<28x28xf32> to vector<28x28xbf16>
    %c1_i32_112 = arith.constant 1 : i32
    %295 = vector.broadcast %c1_i32_112 : i32 to vector<28x28xi32>
    %296 = arith.addi %229, %295 : vector<28x28xi32>
    %297 = arith.cmpi eq, %230, %296 : vector<28x28xi32>
    %c1_i32_113 = arith.constant 1 : i32
    %298 = vector.broadcast %c1_i32_113 : i32 to vector<28x1xi32>
    %299 = arith.addi %237, %298 : vector<28x1xi32>
    %c0_i32_114 = arith.constant 0 : i32
    %300 = vector.broadcast %c0_i32_114 : i32 to vector<28x1xi32>
    %301 = arith.cmpi sge, %299, %300 : vector<28x1xi32>
    %302 = vector.broadcast %301 : vector<28x1xi1> to vector<28x28xi1>
    %303 = arith.andi %297, %302 : vector<28x28xi1>
    %c1_i32_115 = arith.constant 1 : i32
    %304 = vector.broadcast %c1_i32_115 : i32 to vector<28x1xi32>
    %305 = arith.addi %237, %304 : vector<28x1xi32>
    %c14_i32_116 = arith.constant 14 : i32
    %306 = vector.broadcast %c14_i32_116 : i32 to vector<28x1xi32>
    %307 = arith.cmpi slt, %305, %306 : vector<28x1xi32>
    %308 = vector.broadcast %307 : vector<28x1xi1> to vector<28x28xi1>
    %309 = arith.andi %303, %308 : vector<28x28xi1>
    %cst_117 = arith.constant 1.000000e+00 : f32
    %cst_118 = arith.constant 0.000000e+00 : f32
    %310 = vector.broadcast %cst_117 : f32 to vector<28x28xf32>
    %311 = vector.broadcast %cst_118 : f32 to vector<28x28xf32>
    %312 = arith.select %309, %310, %311 : vector<28x28xi1>, vector<28x28xf32>
    %313 = arith.truncf %312 : vector<28x28xf32> to vector<28x28xbf16>
    %c2_i32_119 = arith.constant 2 : i32
    %314 = vector.broadcast %c2_i32_119 : i32 to vector<28x28xi32>
    %315 = arith.addi %229, %314 : vector<28x28xi32>
    %316 = arith.cmpi eq, %230, %315 : vector<28x28xi32>
    %c2_i32_120 = arith.constant 2 : i32
    %317 = vector.broadcast %c2_i32_120 : i32 to vector<28x1xi32>
    %318 = arith.addi %237, %317 : vector<28x1xi32>
    %c0_i32_121 = arith.constant 0 : i32
    %319 = vector.broadcast %c0_i32_121 : i32 to vector<28x1xi32>
    %320 = arith.cmpi sge, %318, %319 : vector<28x1xi32>
    %321 = vector.broadcast %320 : vector<28x1xi1> to vector<28x28xi1>
    %322 = arith.andi %316, %321 : vector<28x28xi1>
    %c2_i32_122 = arith.constant 2 : i32
    %323 = vector.broadcast %c2_i32_122 : i32 to vector<28x1xi32>
    %324 = arith.addi %237, %323 : vector<28x1xi32>
    %c14_i32_123 = arith.constant 14 : i32
    %325 = vector.broadcast %c14_i32_123 : i32 to vector<28x1xi32>
    %326 = arith.cmpi slt, %324, %325 : vector<28x1xi32>
    %327 = vector.broadcast %326 : vector<28x1xi1> to vector<28x28xi1>
    %328 = arith.andi %322, %327 : vector<28x28xi1>
    %cst_124 = arith.constant 1.000000e+00 : f32
    %cst_125 = arith.constant 0.000000e+00 : f32
    %329 = vector.broadcast %cst_124 : f32 to vector<28x28xf32>
    %330 = vector.broadcast %cst_125 : f32 to vector<28x28xf32>
    %331 = arith.select %328, %329, %330 : vector<28x28xi1>, vector<28x28xf32>
    %332 = arith.truncf %331 : vector<28x28xf32> to vector<28x28xbf16>
    tpu.wait_dma2 semaphore(%arg11 : memref<!tpu.dma_semaphore, #tpu.memory_space<semaphore_mem>>) src(%arg2 : memref<5x224x448xbf16, #tpu.memory_space<any>>) dst(%arg10 : memref<5x224x448xbf16, #tpu.memory_space<vmem>>)
    %333 = arith.truncf %228 : vector<28x224xf32> to vector<28x224xbf16>
    %cst_126 = arith.constant 0.000000e+00 : f32
    %334 = vector.broadcast %cst_126 : f32 to vector<28x448xf32>
    %cst_127 = arith.constant dense<0.000000e+00> : vector<28x224xf32>
    %335 = tpu.matmul %256, %333, %cst_127 {dimension_numbers = #tpu.dot_dimension_numbers<[1], [0], [0], [1], [0, 0, 1, 1], [], []>} : vector<28x28xbf16>, vector<28x224xbf16>, vector<28x224xf32> -> vector<28x224xf32>
    %336 = arith.truncf %335 : vector<28x224xf32> to vector<28x224xbf16>
    %c0_128 = arith.constant 0 : index
    %c0_129 = arith.constant 0 : index
    %c0_130 = arith.constant 0 : index
    %337 = vector.load %arg10[%c0_128, %c0_129, %c0_130] : memref<5x224x448xbf16, #tpu.memory_space<vmem>>, vector<1x224x448xbf16>
    %338 = vector.shape_cast %337 : vector<1x224x448xbf16> to vector<224x448xbf16>
    %cst_131 = arith.constant dense<0.000000e+00> : vector<28x448xf32>
    %339 = tpu.matmul %336, %338, %cst_131 {dimension_numbers = #tpu.dot_dimension_numbers<[1], [0], [0], [1], [0, 0, 1, 1], [], []>} : vector<28x224xbf16>, vector<224x448xbf16>, vector<28x448xf32> -> vector<28x448xf32>
    %340 = arith.addf %334, %339 : vector<28x448xf32>
    %cst_132 = arith.constant dense<0.000000e+00> : vector<28x224xf32>
    %341 = tpu.matmul %275, %333, %cst_132 {dimension_numbers = #tpu.dot_dimension_numbers<[1], [0], [0], [1], [0, 0, 1, 1], [], []>} : vector<28x28xbf16>, vector<28x224xbf16>, vector<28x224xf32> -> vector<28x224xf32>
    %342 = arith.truncf %341 : vector<28x224xf32> to vector<28x224xbf16>
    %c1_133 = arith.constant 1 : index
    %c0_134 = arith.constant 0 : index
    %c0_135 = arith.constant 0 : index
    %343 = vector.load %arg10[%c1_133, %c0_134, %c0_135] : memref<5x224x448xbf16, #tpu.memory_space<vmem>>, vector<1x224x448xbf16>
    %344 = vector.shape_cast %343 : vector<1x224x448xbf16> to vector<224x448xbf16>
    %cst_136 = arith.constant dense<0.000000e+00> : vector<28x448xf32>
    %345 = tpu.matmul %342, %344, %cst_136 {dimension_numbers = #tpu.dot_dimension_numbers<[1], [0], [0], [1], [0, 0, 1, 1], [], []>} : vector<28x224xbf16>, vector<224x448xbf16>, vector<28x448xf32> -> vector<28x448xf32>
    %346 = arith.addf %340, %345 : vector<28x448xf32>
    %cst_137 = arith.constant dense<0.000000e+00> : vector<28x224xf32>
    %347 = tpu.matmul %294, %333, %cst_137 {dimension_numbers = #tpu.dot_dimension_numbers<[1], [0], [0], [1], [0, 0, 1, 1], [], []>} : vector<28x28xbf16>, vector<28x224xbf16>, vector<28x224xf32> -> vector<28x224xf32>
    %348 = arith.truncf %347 : vector<28x224xf32> to vector<28x224xbf16>
    %c2_138 = arith.constant 2 : index
    %c0_139 = arith.constant 0 : index
    %c0_140 = arith.constant 0 : index
    %349 = vector.load %arg10[%c2_138, %c0_139, %c0_140] : memref<5x224x448xbf16, #tpu.memory_space<vmem>>, vector<1x224x448xbf16>
    %350 = vector.shape_cast %349 : vector<1x224x448xbf16> to vector<224x448xbf16>
    %cst_141 = arith.constant dense<0.000000e+00> : vector<28x448xf32>
    %351 = tpu.matmul %348, %350, %cst_141 {dimension_numbers = #tpu.dot_dimension_numbers<[1], [0], [0], [1], [0, 0, 1, 1], [], []>} : vector<28x224xbf16>, vector<224x448xbf16>, vector<28x448xf32> -> vector<28x448xf32>
    %352 = arith.addf %346, %351 : vector<28x448xf32>
    %cst_142 = arith.constant dense<0.000000e+00> : vector<28x224xf32>
    %353 = tpu.matmul %313, %333, %cst_142 {dimension_numbers = #tpu.dot_dimension_numbers<[1], [0], [0], [1], [0, 0, 1, 1], [], []>} : vector<28x28xbf16>, vector<28x224xbf16>, vector<28x224xf32> -> vector<28x224xf32>
    %354 = arith.truncf %353 : vector<28x224xf32> to vector<28x224xbf16>
    %c3_143 = arith.constant 3 : index
    %c0_144 = arith.constant 0 : index
    %c0_145 = arith.constant 0 : index
    %355 = vector.load %arg10[%c3_143, %c0_144, %c0_145] : memref<5x224x448xbf16, #tpu.memory_space<vmem>>, vector<1x224x448xbf16>
    %356 = vector.shape_cast %355 : vector<1x224x448xbf16> to vector<224x448xbf16>
    %cst_146 = arith.constant dense<0.000000e+00> : vector<28x448xf32>
    %357 = tpu.matmul %354, %356, %cst_146 {dimension_numbers = #tpu.dot_dimension_numbers<[1], [0], [0], [1], [0, 0, 1, 1], [], []>} : vector<28x224xbf16>, vector<224x448xbf16>, vector<28x448xf32> -> vector<28x448xf32>
    %358 = arith.addf %352, %357 : vector<28x448xf32>
    %cst_147 = arith.constant dense<0.000000e+00> : vector<28x224xf32>
    %359 = tpu.matmul %332, %333, %cst_147 {dimension_numbers = #tpu.dot_dimension_numbers<[1], [0], [0], [1], [0, 0, 1, 1], [], []>} : vector<28x28xbf16>, vector<28x224xbf16>, vector<28x224xf32> -> vector<28x224xf32>
    %360 = arith.truncf %359 : vector<28x224xf32> to vector<28x224xbf16>
    %c4_148 = arith.constant 4 : index
    %c0_149 = arith.constant 0 : index
    %c0_150 = arith.constant 0 : index
    %361 = vector.load %arg10[%c4_148, %c0_149, %c0_150] : memref<5x224x448xbf16, #tpu.memory_space<vmem>>, vector<1x224x448xbf16>
    %362 = vector.shape_cast %361 : vector<1x224x448xbf16> to vector<224x448xbf16>
    %cst_151 = arith.constant dense<0.000000e+00> : vector<28x448xf32>
    %363 = tpu.matmul %360, %362, %cst_151 {dimension_numbers = #tpu.dot_dimension_numbers<[1], [0], [0], [1], [0, 0, 1, 1], [], []>} : vector<28x224xbf16>, vector<224x448xbf16>, vector<28x448xf32> -> vector<28x448xf32>
    %364 = arith.addf %358, %363 : vector<28x448xf32>
    %365 = tpu.iota {dimensions = array<i32: 0>} : vector<448x32xi32>
    %366 = tpu.iota {dimensions = array<i32: 1>} : vector<448x32xi32>
    %c31_i32 = arith.constant 31 : i32
    %367 = vector.broadcast %c31_i32 : i32 to vector<448x32xi32>
    %368 = arith.andi %365, %367 : vector<448x32xi32>
    %369 = arith.cmpi eq, %368, %366 : vector<448x32xi32>
    %cst_152 = arith.constant 1.000000e+00 : f32
    %cst_153 = arith.constant 0.000000e+00 : f32
    %370 = vector.broadcast %cst_152 : f32 to vector<448x32xf32>
    %371 = vector.broadcast %cst_153 : f32 to vector<448x32xf32>
    %372 = arith.select %369, %370, %371 : vector<448x32xi1>, vector<448x32xf32>
    %373 = tpu.iota {dimensions = array<i32: 0>} : vector<32x448xi32>
    %374 = tpu.iota {dimensions = array<i32: 1>} : vector<32x448xi32>
    %c31_i32_154 = arith.constant 31 : i32
    %375 = vector.broadcast %c31_i32_154 : i32 to vector<32x448xi32>
    %376 = arith.andi %374, %375 : vector<32x448xi32>
    %377 = arith.cmpi eq, %376, %373 : vector<32x448xi32>
    %cst_155 = arith.constant 1.000000e+00 : f32
    %cst_156 = arith.constant 0.000000e+00 : f32
    %378 = vector.broadcast %cst_155 : f32 to vector<32x448xf32>
    %379 = vector.broadcast %cst_156 : f32 to vector<32x448xf32>
    %380 = arith.select %377, %378, %379 : vector<32x448xi1>, vector<32x448xf32>
    %cst_157 = arith.constant dense<0.000000e+00> : vector<448xf32>
    %381 = vector.multi_reduction <add>, %364, %cst_157 [0] : vector<28x448xf32> to vector<448xf32>
    %382 = vector.shape_cast %381 : vector<448xf32> to vector<1x448xf32>
    %383 = arith.mulf %364, %364 : vector<28x448xf32>
    %cst_158 = arith.constant dense<0.000000e+00> : vector<448xf32>
    %384 = vector.multi_reduction <add>, %383, %cst_158 [0] : vector<28x448xf32> to vector<448xf32>
    %385 = vector.shape_cast %384 : vector<448xf32> to vector<1x448xf32>
    %cst_159 = arith.constant dense<0.000000e+00> : vector<1x32xf32>
    %386 = tpu.matmul %382, %372, %cst_159 {dimension_numbers = #tpu.dot_dimension_numbers<[1], [0], [0], [1], [0, 0, 1, 1], [], []>} : vector<1x448xf32>, vector<448x32xf32>, vector<1x32xf32> -> vector<1x32xf32>
    %cst_160 = arith.constant 3.920000e+02 : f32
    %387 = vector.broadcast %cst_160 : f32 to vector<1x32xf32>
    %388 = arith.divf %386, %387 : vector<1x32xf32>
    %cst_161 = arith.constant dense<0.000000e+00> : vector<1x32xf32>
    %389 = tpu.matmul %385, %372, %cst_161 {dimension_numbers = #tpu.dot_dimension_numbers<[1], [0], [0], [1], [0, 0, 1, 1], [], []>} : vector<1x448xf32>, vector<448x32xf32>, vector<1x32xf32> -> vector<1x32xf32>
    %cst_162 = arith.constant 3.920000e+02 : f32
    %390 = vector.broadcast %cst_162 : f32 to vector<1x32xf32>
    %391 = arith.divf %389, %390 : vector<1x32xf32>
    %392 = arith.mulf %388, %388 : vector<1x32xf32>
    %393 = arith.subf %391, %392 : vector<1x32xf32>
    %cst_163 = arith.constant 0.000000e+00 : f32
    %394 = vector.broadcast %cst_163 : f32 to vector<1x32xf32>
    %395 = arith.maximumf %393, %394 : vector<1x32xf32>
    %c0_164 = arith.constant 0 : index
    %c0_165 = arith.constant 0 : index
    %396 = vector.load %arg5[%c0_164, %c0_165] : memref<1x32xf32, #tpu.memory_space<vmem>>, vector<1x32xf32>
    %cst_166 = arith.constant 9.99999974E-6 : f32
    %397 = vector.broadcast %cst_166 : f32 to vector<1x32xf32>
    %398 = arith.addf %395, %397 : vector<1x32xf32>
    %399 = math.rsqrt %398 : vector<1x32xf32>
    %400 = arith.mulf %396, %399 : vector<1x32xf32>
    %c0_167 = arith.constant 0 : index
    %c0_168 = arith.constant 0 : index
    %401 = vector.load %arg6[%c0_167, %c0_168] : memref<1x32xf32, #tpu.memory_space<vmem>>, vector<1x32xf32>
    %402 = arith.mulf %388, %400 : vector<1x32xf32>
    %403 = arith.subf %401, %402 : vector<1x32xf32>
    %cst_169 = arith.constant dense<0.000000e+00> : vector<1x448xf32>
    %404 = tpu.matmul %400, %380, %cst_169 {dimension_numbers = #tpu.dot_dimension_numbers<[1], [0], [0], [1], [0, 0, 1, 1], [], []>} : vector<1x32xf32>, vector<32x448xf32>, vector<1x448xf32> -> vector<1x448xf32>
    %cst_170 = arith.constant dense<0.000000e+00> : vector<1x448xf32>
    %405 = tpu.matmul %403, %380, %cst_170 {dimension_numbers = #tpu.dot_dimension_numbers<[1], [0], [0], [1], [0, 0, 1, 1], [], []>} : vector<1x32xf32>, vector<32x448xf32>, vector<1x448xf32> -> vector<1x448xf32>
    %406 = vector.broadcast %404 : vector<1x448xf32> to vector<28x448xf32>
    %407 = arith.mulf %364, %406 : vector<28x448xf32>
    %408 = vector.broadcast %405 : vector<1x448xf32> to vector<28x448xf32>
    %409 = arith.addf %407, %408 : vector<28x448xf32>
    %cst_171 = arith.constant 0.000000e+00 : f32
    %410 = vector.broadcast %cst_171 : f32 to vector<28x448xf32>
    %411 = arith.maximumf %409, %410 : vector<28x448xf32>
    %412 = tpu.iota {dimensions = array<i32: 0>} : vector<14x28xi32>
    %413 = tpu.iota {dimensions = array<i32: 1>} : vector<14x28xi32>
    %c2_i32_172 = arith.constant 2 : i32
    %414 = vector.broadcast %c2_i32_172 : i32 to vector<14x28xi32>
    %415 = arith.muli %414, %412 : vector<14x28xi32>
    %416 = arith.cmpi eq, %413, %415 : vector<14x28xi32>
    %cst_173 = arith.constant 1.000000e+00 : f32
    %cst_174 = arith.constant 0.000000e+00 : f32
    %417 = vector.broadcast %cst_173 : f32 to vector<14x28xf32>
    %418 = vector.broadcast %cst_174 : f32 to vector<14x28xf32>
    %419 = arith.select %416, %417, %418 : vector<14x28xi1>, vector<14x28xf32>
    %420 = arith.truncf %419 : vector<14x28xf32> to vector<14x28xbf16>
    %c2_i32_175 = arith.constant 2 : i32
    %421 = vector.broadcast %c2_i32_175 : i32 to vector<14x28xi32>
    %422 = arith.muli %421, %412 : vector<14x28xi32>
    %c1_i32_176 = arith.constant 1 : i32
    %423 = vector.broadcast %c1_i32_176 : i32 to vector<14x28xi32>
    %424 = arith.addi %422, %423 : vector<14x28xi32>
    %425 = arith.cmpi eq, %413, %424 : vector<14x28xi32>
    %cst_177 = arith.constant 1.000000e+00 : f32
    %cst_178 = arith.constant 0.000000e+00 : f32
    %426 = vector.broadcast %cst_177 : f32 to vector<14x28xf32>
    %427 = vector.broadcast %cst_178 : f32 to vector<14x28xf32>
    %428 = arith.select %425, %426, %427 : vector<14x28xi1>, vector<14x28xf32>
    %429 = arith.truncf %428 : vector<14x28xf32> to vector<14x28xbf16>
    %430 = tpu.iota {dimensions = array<i32: 0>} : vector<448x224xi32>
    %431 = tpu.iota {dimensions = array<i32: 1>} : vector<448x224xi32>
    %c2_i32_179 = arith.constant 2 : i32
    %432 = vector.broadcast %c2_i32_179 : i32 to vector<448x224xi32>
    %433 = arith.muli %432, %431 : vector<448x224xi32>
    %c31_i32_180 = arith.constant 31 : i32
    %434 = vector.broadcast %c31_i32_180 : i32 to vector<448x224xi32>
    %435 = arith.andi %431, %434 : vector<448x224xi32>
    %436 = arith.subi %433, %435 : vector<448x224xi32>
    %437 = arith.cmpi eq, %430, %436 : vector<448x224xi32>
    %cst_181 = arith.constant 1.000000e+00 : f32
    %cst_182 = arith.constant 0.000000e+00 : f32
    %438 = vector.broadcast %cst_181 : f32 to vector<448x224xf32>
    %439 = vector.broadcast %cst_182 : f32 to vector<448x224xf32>
    %440 = arith.select %437, %438, %439 : vector<448x224xi1>, vector<448x224xf32>
    %441 = arith.truncf %440 : vector<448x224xf32> to vector<448x224xbf16>
    %c32_i32 = arith.constant 32 : i32
    %442 = vector.broadcast %c32_i32 : i32 to vector<448x224xi32>
    %443 = arith.addi %436, %442 : vector<448x224xi32>
    %444 = arith.cmpi eq, %430, %443 : vector<448x224xi32>
    %cst_183 = arith.constant 1.000000e+00 : f32
    %cst_184 = arith.constant 0.000000e+00 : f32
    %445 = vector.broadcast %cst_183 : f32 to vector<448x224xf32>
    %446 = vector.broadcast %cst_184 : f32 to vector<448x224xf32>
    %447 = arith.select %444, %445, %446 : vector<448x224xi1>, vector<448x224xf32>
    %448 = arith.truncf %447 : vector<448x224xf32> to vector<448x224xbf16>
    %449 = arith.truncf %411 : vector<28x448xf32> to vector<28x448xbf16>
    %cst_185 = arith.constant dense<0.000000e+00> : vector<14x448xf32>
    %450 = tpu.matmul %420, %449, %cst_185 {dimension_numbers = #tpu.dot_dimension_numbers<[1], [0], [0], [1], [0, 0, 1, 1], [], []>} : vector<14x28xbf16>, vector<28x448xbf16>, vector<14x448xf32> -> vector<14x448xf32>
    %cst_186 = arith.constant dense<0.000000e+00> : vector<14x448xf32>
    %451 = tpu.matmul %429, %449, %cst_186 {dimension_numbers = #tpu.dot_dimension_numbers<[1], [0], [0], [1], [0, 0, 1, 1], [], []>} : vector<14x28xbf16>, vector<28x448xbf16>, vector<14x448xf32> -> vector<14x448xf32>
    %452 = arith.maximumf %450, %451 : vector<14x448xf32>
    %453 = arith.truncf %452 : vector<14x448xf32> to vector<14x448xbf16>
    %cst_187 = arith.constant dense<0.000000e+00> : vector<14x224xf32>
    %454 = tpu.matmul %453, %441, %cst_187 {dimension_numbers = #tpu.dot_dimension_numbers<[1], [0], [0], [1], [0, 0, 1, 1], [], []>} : vector<14x448xbf16>, vector<448x224xbf16>, vector<14x224xf32> -> vector<14x224xf32>
    %cst_188 = arith.constant dense<0.000000e+00> : vector<14x224xf32>
    %455 = tpu.matmul %453, %448, %cst_188 {dimension_numbers = #tpu.dot_dimension_numbers<[1], [0], [0], [1], [0, 0, 1, 1], [], []>} : vector<14x448xbf16>, vector<448x224xbf16>, vector<14x224xf32> -> vector<14x224xf32>
    %456 = arith.maximumf %454, %455 : vector<14x224xf32>
    %457 = arith.truncf %456 : vector<14x224xf32> to vector<14x224xbf16>
    %458 = tpu.iota {dimensions = array<i32: 0>} : vector<2x14xi32>
    %459 = tpu.iota {dimensions = array<i32: 1>} : vector<2x14xi32>
    %cst_189 = arith.constant 0.000000e+00 : f32
    %460 = vector.broadcast %cst_189 : f32 to vector<2x16xf32>
    %c0_190 = arith.constant 0 : index
    %c0_191 = arith.constant 0 : index
    %461 = vector.load %arg8[%c0_190, %c0_191] : memref<1x16xf32, #tpu.memory_space<vmem>>, vector<1x16xf32>
    %462 = vector.broadcast %461 : vector<1x16xf32> to vector<2x16xf32>
    %463 = arith.addf %460, %462 : vector<2x16xf32>
    %c7_i32 = arith.constant 7 : i32
    %464 = vector.broadcast %c7_i32 : i32 to vector<2x14xi32>
    %465 = arith.muli %464, %458 : vector<2x14xi32>
    %c0_i32_192 = arith.constant 0 : i32
    %466 = vector.broadcast %c0_i32_192 : i32 to vector<2x14xi32>
    %467 = arith.addi %465, %466 : vector<2x14xi32>
    %468 = arith.cmpi eq, %459, %467 : vector<2x14xi32>
    %cst_193 = arith.constant 1.000000e+00 : f32
    %cst_194 = arith.constant 0.000000e+00 : f32
    %469 = vector.broadcast %cst_193 : f32 to vector<2x14xf32>
    %470 = vector.broadcast %cst_194 : f32 to vector<2x14xf32>
    %471 = arith.select %468, %469, %470 : vector<2x14xi1>, vector<2x14xf32>
    %472 = arith.truncf %471 : vector<2x14xf32> to vector<2x14xbf16>
    %cst_195 = arith.constant dense<0.000000e+00> : vector<2x224xf32>
    %473 = tpu.matmul %472, %457, %cst_195 {dimension_numbers = #tpu.dot_dimension_numbers<[1], [0], [0], [1], [0, 0, 1, 1], [], []>} : vector<2x14xbf16>, vector<14x224xbf16>, vector<2x224xf32> -> vector<2x224xf32>
    %474 = arith.truncf %473 : vector<2x224xf32> to vector<2x224xbf16>
    %c0_196 = arith.constant 0 : index
    %c0_197 = arith.constant 0 : index
    %c0_198 = arith.constant 0 : index
    %475 = vector.load %arg7[%c0_196, %c0_197, %c0_198] : memref<7x224x16xbf16, #tpu.memory_space<vmem>>, vector<1x224x16xbf16>
    %476 = vector.shape_cast %475 : vector<1x224x16xbf16> to vector<224x16xbf16>
    %cst_199 = arith.constant dense<0.000000e+00> : vector<2x16xf32>
    %477 = tpu.matmul %474, %476, %cst_199 {dimension_numbers = #tpu.dot_dimension_numbers<[1], [0], [0], [1], [0, 0, 1, 1], [], []>} : vector<2x224xbf16>, vector<224x16xbf16>, vector<2x16xf32> -> vector<2x16xf32>
    %478 = arith.addf %463, %477 : vector<2x16xf32>
    %c7_i32_200 = arith.constant 7 : i32
    %479 = vector.broadcast %c7_i32_200 : i32 to vector<2x14xi32>
    %480 = arith.muli %479, %458 : vector<2x14xi32>
    %c1_i32_201 = arith.constant 1 : i32
    %481 = vector.broadcast %c1_i32_201 : i32 to vector<2x14xi32>
    %482 = arith.addi %480, %481 : vector<2x14xi32>
    %483 = arith.cmpi eq, %459, %482 : vector<2x14xi32>
    %cst_202 = arith.constant 1.000000e+00 : f32
    %cst_203 = arith.constant 0.000000e+00 : f32
    %484 = vector.broadcast %cst_202 : f32 to vector<2x14xf32>
    %485 = vector.broadcast %cst_203 : f32 to vector<2x14xf32>
    %486 = arith.select %483, %484, %485 : vector<2x14xi1>, vector<2x14xf32>
    %487 = arith.truncf %486 : vector<2x14xf32> to vector<2x14xbf16>
    %cst_204 = arith.constant dense<0.000000e+00> : vector<2x224xf32>
    %488 = tpu.matmul %487, %457, %cst_204 {dimension_numbers = #tpu.dot_dimension_numbers<[1], [0], [0], [1], [0, 0, 1, 1], [], []>} : vector<2x14xbf16>, vector<14x224xbf16>, vector<2x224xf32> -> vector<2x224xf32>
    %489 = arith.truncf %488 : vector<2x224xf32> to vector<2x224xbf16>
    %c1_205 = arith.constant 1 : index
    %c0_206 = arith.constant 0 : index
    %c0_207 = arith.constant 0 : index
    %490 = vector.load %arg7[%c1_205, %c0_206, %c0_207] : memref<7x224x16xbf16, #tpu.memory_space<vmem>>, vector<1x224x16xbf16>
    %491 = vector.shape_cast %490 : vector<1x224x16xbf16> to vector<224x16xbf16>
    %cst_208 = arith.constant dense<0.000000e+00> : vector<2x16xf32>
    %492 = tpu.matmul %489, %491, %cst_208 {dimension_numbers = #tpu.dot_dimension_numbers<[1], [0], [0], [1], [0, 0, 1, 1], [], []>} : vector<2x224xbf16>, vector<224x16xbf16>, vector<2x16xf32> -> vector<2x16xf32>
    %493 = arith.addf %478, %492 : vector<2x16xf32>
    %c7_i32_209 = arith.constant 7 : i32
    %494 = vector.broadcast %c7_i32_209 : i32 to vector<2x14xi32>
    %495 = arith.muli %494, %458 : vector<2x14xi32>
    %c2_i32_210 = arith.constant 2 : i32
    %496 = vector.broadcast %c2_i32_210 : i32 to vector<2x14xi32>
    %497 = arith.addi %495, %496 : vector<2x14xi32>
    %498 = arith.cmpi eq, %459, %497 : vector<2x14xi32>
    %cst_211 = arith.constant 1.000000e+00 : f32
    %cst_212 = arith.constant 0.000000e+00 : f32
    %499 = vector.broadcast %cst_211 : f32 to vector<2x14xf32>
    %500 = vector.broadcast %cst_212 : f32 to vector<2x14xf32>
    %501 = arith.select %498, %499, %500 : vector<2x14xi1>, vector<2x14xf32>
    %502 = arith.truncf %501 : vector<2x14xf32> to vector<2x14xbf16>
    %cst_213 = arith.constant dense<0.000000e+00> : vector<2x224xf32>
    %503 = tpu.matmul %502, %457, %cst_213 {dimension_numbers = #tpu.dot_dimension_numbers<[1], [0], [0], [1], [0, 0, 1, 1], [], []>} : vector<2x14xbf16>, vector<14x224xbf16>, vector<2x224xf32> -> vector<2x224xf32>
    %504 = arith.truncf %503 : vector<2x224xf32> to vector<2x224xbf16>
    %c2_214 = arith.constant 2 : index
    %c0_215 = arith.constant 0 : index
    %c0_216 = arith.constant 0 : index
    %505 = vector.load %arg7[%c2_214, %c0_215, %c0_216] : memref<7x224x16xbf16, #tpu.memory_space<vmem>>, vector<1x224x16xbf16>
    %506 = vector.shape_cast %505 : vector<1x224x16xbf16> to vector<224x16xbf16>
    %cst_217 = arith.constant dense<0.000000e+00> : vector<2x16xf32>
    %507 = tpu.matmul %504, %506, %cst_217 {dimension_numbers = #tpu.dot_dimension_numbers<[1], [0], [0], [1], [0, 0, 1, 1], [], []>} : vector<2x224xbf16>, vector<224x16xbf16>, vector<2x16xf32> -> vector<2x16xf32>
    %508 = arith.addf %493, %507 : vector<2x16xf32>
    %c7_i32_218 = arith.constant 7 : i32
    %509 = vector.broadcast %c7_i32_218 : i32 to vector<2x14xi32>
    %510 = arith.muli %509, %458 : vector<2x14xi32>
    %c3_i32 = arith.constant 3 : i32
    %511 = vector.broadcast %c3_i32 : i32 to vector<2x14xi32>
    %512 = arith.addi %510, %511 : vector<2x14xi32>
    %513 = arith.cmpi eq, %459, %512 : vector<2x14xi32>
    %cst_219 = arith.constant 1.000000e+00 : f32
    %cst_220 = arith.constant 0.000000e+00 : f32
    %514 = vector.broadcast %cst_219 : f32 to vector<2x14xf32>
    %515 = vector.broadcast %cst_220 : f32 to vector<2x14xf32>
    %516 = arith.select %513, %514, %515 : vector<2x14xi1>, vector<2x14xf32>
    %517 = arith.truncf %516 : vector<2x14xf32> to vector<2x14xbf16>
    %cst_221 = arith.constant dense<0.000000e+00> : vector<2x224xf32>
    %518 = tpu.matmul %517, %457, %cst_221 {dimension_numbers = #tpu.dot_dimension_numbers<[1], [0], [0], [1], [0, 0, 1, 1], [], []>} : vector<2x14xbf16>, vector<14x224xbf16>, vector<2x224xf32> -> vector<2x224xf32>
    %519 = arith.truncf %518 : vector<2x224xf32> to vector<2x224xbf16>
    %c3_222 = arith.constant 3 : index
    %c0_223 = arith.constant 0 : index
    %c0_224 = arith.constant 0 : index
    %520 = vector.load %arg7[%c3_222, %c0_223, %c0_224] : memref<7x224x16xbf16, #tpu.memory_space<vmem>>, vector<1x224x16xbf16>
    %521 = vector.shape_cast %520 : vector<1x224x16xbf16> to vector<224x16xbf16>
    %cst_225 = arith.constant dense<0.000000e+00> : vector<2x16xf32>
    %522 = tpu.matmul %519, %521, %cst_225 {dimension_numbers = #tpu.dot_dimension_numbers<[1], [0], [0], [1], [0, 0, 1, 1], [], []>} : vector<2x224xbf16>, vector<224x16xbf16>, vector<2x16xf32> -> vector<2x16xf32>
    %523 = arith.addf %508, %522 : vector<2x16xf32>
    %c7_i32_226 = arith.constant 7 : i32
    %524 = vector.broadcast %c7_i32_226 : i32 to vector<2x14xi32>
    %525 = arith.muli %524, %458 : vector<2x14xi32>
    %c4_i32 = arith.constant 4 : i32
    %526 = vector.broadcast %c4_i32 : i32 to vector<2x14xi32>
    %527 = arith.addi %525, %526 : vector<2x14xi32>
    %528 = arith.cmpi eq, %459, %527 : vector<2x14xi32>
    %cst_227 = arith.constant 1.000000e+00 : f32
    %cst_228 = arith.constant 0.000000e+00 : f32
    %529 = vector.broadcast %cst_227 : f32 to vector<2x14xf32>
    %530 = vector.broadcast %cst_228 : f32 to vector<2x14xf32>
    %531 = arith.select %528, %529, %530 : vector<2x14xi1>, vector<2x14xf32>
    %532 = arith.truncf %531 : vector<2x14xf32> to vector<2x14xbf16>
    %cst_229 = arith.constant dense<0.000000e+00> : vector<2x224xf32>
    %533 = tpu.matmul %532, %457, %cst_229 {dimension_numbers = #tpu.dot_dimension_numbers<[1], [0], [0], [1], [0, 0, 1, 1], [], []>} : vector<2x14xbf16>, vector<14x224xbf16>, vector<2x224xf32> -> vector<2x224xf32>
    %534 = arith.truncf %533 : vector<2x224xf32> to vector<2x224xbf16>
    %c4_230 = arith.constant 4 : index
    %c0_231 = arith.constant 0 : index
    %c0_232 = arith.constant 0 : index
    %535 = vector.load %arg7[%c4_230, %c0_231, %c0_232] : memref<7x224x16xbf16, #tpu.memory_space<vmem>>, vector<1x224x16xbf16>
    %536 = vector.shape_cast %535 : vector<1x224x16xbf16> to vector<224x16xbf16>
    %cst_233 = arith.constant dense<0.000000e+00> : vector<2x16xf32>
    %537 = tpu.matmul %534, %536, %cst_233 {dimension_numbers = #tpu.dot_dimension_numbers<[1], [0], [0], [1], [0, 0, 1, 1], [], []>} : vector<2x224xbf16>, vector<224x16xbf16>, vector<2x16xf32> -> vector<2x16xf32>
    %538 = arith.addf %523, %537 : vector<2x16xf32>
    %c7_i32_234 = arith.constant 7 : i32
    %539 = vector.broadcast %c7_i32_234 : i32 to vector<2x14xi32>
    %540 = arith.muli %539, %458 : vector<2x14xi32>
    %c5_i32 = arith.constant 5 : i32
    %541 = vector.broadcast %c5_i32 : i32 to vector<2x14xi32>
    %542 = arith.addi %540, %541 : vector<2x14xi32>
    %543 = arith.cmpi eq, %459, %542 : vector<2x14xi32>
    %cst_235 = arith.constant 1.000000e+00 : f32
    %cst_236 = arith.constant 0.000000e+00 : f32
    %544 = vector.broadcast %cst_235 : f32 to vector<2x14xf32>
    %545 = vector.broadcast %cst_236 : f32 to vector<2x14xf32>
    %546 = arith.select %543, %544, %545 : vector<2x14xi1>, vector<2x14xf32>
    %547 = arith.truncf %546 : vector<2x14xf32> to vector<2x14xbf16>
    %cst_237 = arith.constant dense<0.000000e+00> : vector<2x224xf32>
    %548 = tpu.matmul %547, %457, %cst_237 {dimension_numbers = #tpu.dot_dimension_numbers<[1], [0], [0], [1], [0, 0, 1, 1], [], []>} : vector<2x14xbf16>, vector<14x224xbf16>, vector<2x224xf32> -> vector<2x224xf32>
    %549 = arith.truncf %548 : vector<2x224xf32> to vector<2x224xbf16>
    %c5 = arith.constant 5 : index
    %c0_238 = arith.constant 0 : index
    %c0_239 = arith.constant 0 : index
    %550 = vector.load %arg7[%c5, %c0_238, %c0_239] : memref<7x224x16xbf16, #tpu.memory_space<vmem>>, vector<1x224x16xbf16>
    %551 = vector.shape_cast %550 : vector<1x224x16xbf16> to vector<224x16xbf16>
    %cst_240 = arith.constant dense<0.000000e+00> : vector<2x16xf32>
    %552 = tpu.matmul %549, %551, %cst_240 {dimension_numbers = #tpu.dot_dimension_numbers<[1], [0], [0], [1], [0, 0, 1, 1], [], []>} : vector<2x224xbf16>, vector<224x16xbf16>, vector<2x16xf32> -> vector<2x16xf32>
    %553 = arith.addf %538, %552 : vector<2x16xf32>
    %c7_i32_241 = arith.constant 7 : i32
    %554 = vector.broadcast %c7_i32_241 : i32 to vector<2x14xi32>
    %555 = arith.muli %554, %458 : vector<2x14xi32>
    %c6_i32 = arith.constant 6 : i32
    %556 = vector.broadcast %c6_i32 : i32 to vector<2x14xi32>
    %557 = arith.addi %555, %556 : vector<2x14xi32>
    %558 = arith.cmpi eq, %459, %557 : vector<2x14xi32>
    %cst_242 = arith.constant 1.000000e+00 : f32
    %cst_243 = arith.constant 0.000000e+00 : f32
    %559 = vector.broadcast %cst_242 : f32 to vector<2x14xf32>
    %560 = vector.broadcast %cst_243 : f32 to vector<2x14xf32>
    %561 = arith.select %558, %559, %560 : vector<2x14xi1>, vector<2x14xf32>
    %562 = arith.truncf %561 : vector<2x14xf32> to vector<2x14xbf16>
    %cst_244 = arith.constant dense<0.000000e+00> : vector<2x224xf32>
    %563 = tpu.matmul %562, %457, %cst_244 {dimension_numbers = #tpu.dot_dimension_numbers<[1], [0], [0], [1], [0, 0, 1, 1], [], []>} : vector<2x14xbf16>, vector<14x224xbf16>, vector<2x224xf32> -> vector<2x224xf32>
    %564 = arith.truncf %563 : vector<2x224xf32> to vector<2x224xbf16>
    %c6 = arith.constant 6 : index
    %c0_245 = arith.constant 0 : index
    %c0_246 = arith.constant 0 : index
    %565 = vector.load %arg7[%c6, %c0_245, %c0_246] : memref<7x224x16xbf16, #tpu.memory_space<vmem>>, vector<1x224x16xbf16>
    %566 = vector.shape_cast %565 : vector<1x224x16xbf16> to vector<224x16xbf16>
    %cst_247 = arith.constant dense<0.000000e+00> : vector<2x16xf32>
    %567 = tpu.matmul %564, %566, %cst_247 {dimension_numbers = #tpu.dot_dimension_numbers<[1], [0], [0], [1], [0, 0, 1, 1], [], []>} : vector<2x224xbf16>, vector<224x16xbf16>, vector<2x16xf32> -> vector<2x16xf32>
    %568 = arith.addf %553, %567 : vector<2x16xf32>
    %cst_248 = arith.constant 0.000000e+00 : f32
    %569 = vector.broadcast %cst_248 : f32 to vector<2x128xf32>
    %c0_249 = arith.constant 0 : index
    %c0_250 = arith.constant 0 : index
    %570 = vector.load %arg9[%c0_249, %c0_250] : memref<2x128xf32, #tpu.memory_space<vmem>>, vector<2x128xf32>
    tpu.vector_store %arg9[%c0_249, %c0_250], %569 {strides = array<i32>} : memref<2x128xf32, #tpu.memory_space<vmem>>, vector<2x128xf32>,
    %c0_251 = arith.constant 0 : index
    %c0_252 = arith.constant 0 : index
    %571 = vector.load %arg9[%c0_251, %c0_252] : memref<2x128xf32, #tpu.memory_space<vmem>>, vector<2x16xf32>
    tpu.vector_store %arg9[%c0_251, %c0_252], %568 {strides = array<i32>} : memref<2x128xf32, #tpu.memory_space<vmem>>, vector<2x16xf32>,
    return
  }
}

</mosaic_0001>

<bundles_post_ra>
// kernel: _lambda_.1
= control target key start
LH: loop header
LB: loop body
LE: loop exit
PB: predicated region body
PF: predicated region fallthrough
CT: control target
= control target key end

     0   :  { %14 = vsyncpa [#allocation5], 0  ;;  %s20351_s0 = inlined_call_operand.vmem [shape: f32[56,28], index: 0, kind: input, shape index: {}]   ;;  %s20352_s1 = inlined_call_operand.vmem [shape: bf16[5,28,448], index: 1, kind: input, shape index: {}]   ;;  %s20353_s2 = inlined_call_operand.vmem [shape: bf16[5,224,448], index: 2, kind: input, shape index: {}]   ;;  %s20354_s3 = inlined_call_operand.vmem [shape: f32[1,16], index: 3, kind: input, shape index: {}]   ;;  %s20355_s4 = inlined_call_operand.vmem [shape: f32[1,16], index: 4, kind: input, shape index: {}]   ;;  %s20356_s5 = inlined_call_operand.vmem [shape: f32[1,32], index: 5, kind: input, shape index: {}]   ;;  %s20357_s6 = inlined_call_operand.vmem [shape: f32[1,32], index: 6, kind: input, shape index: {}]   ;;  %s20358_s7 = inlined_call_operand.vmem [shape: bf16[7,224,16], index: 7, kind: input, shape index: {}]   ;;  %s20359_s8 = inlined_call_operand.vmem [shape: f32[1,16], index: 8, kind: input, shape index: {}]   ;;  %s20360_s9 = inlined_call_operand.hbm [shape: f32[2,128], index: 9, kind: output, shape index: {}]  }
   0x1   :  { %v13127_v0 = vld [vmem:[%s20353_s2] sm:$0xff]  ;;  %v13132_v1 = vld [vmem:[%s20353_s2 + $0x8] sm:$0xff]  ;;  %v13137_v2 = vld [vmem:[%s20353_s2 + $0x10] sm:$0xff] }
   0x2   :  { %21062 = vst [vmem:[#allocation9_spill] sm:$0xff] %v13127_v0  ;;  %21063 = vst [vmem:[#allocation10_spill] sm:$0xff] %v13132_v1  ;;  %v13142_v3 = vld [vmem:[%s20353_s2 + $0x18] sm:$0xff]  ;;  %v13147_v4 = vld [vmem:[%s20353_s2 + $0x20] sm:$0xff] }
   0x3   :  { %21064 = vst [vmem:[#allocation11_spill] sm:$0xff] %v13137_v2  ;;  %21065 = vst [vmem:[#allocation12_spill] sm:$0xff] %v13142_v3  ;;  %v13152_v5 = vld [vmem:[%s20353_s2 + $0x28] sm:$0xff]  ;;  %v13157_v6 = vld [vmem:[%s20353_s2 + $0x30] sm:$0xff] }
   0x4   :  { %21066 = vst [vmem:[#allocation13_spill] sm:$0xff] %v13147_v4  ;;  %21067 = vst [vmem:[#allocation14_spill] sm:$0xff] %v13152_v5  ;;  %v13162_v7 = vld [vmem:[%s20353_s2 + $0x38] sm:$0xff]  ;;  %v13167_v8 = vld [vmem:[%s20353_s2 + $0x40] sm:$0xff] }
   0x5   :  { %21068 = vst [vmem:[#allocation15_spill] sm:$0xff] %v13157_v6  ;;  %21069 = vst [vmem:[#allocation16_spill] sm:$0xff] %v13162_v7  ;;  %v13172_v9 = vld [vmem:[%s20353_s2 + $0x48] sm:$0xff]  ;;  %v13177_v10 = vld [vmem:[%s20353_s2 + $0x50] sm:$0xff] }
   0x6   :  { %21070 = vst [vmem:[#allocation17_spill] sm:$0xff] %v13167_v8  ;;  %21071 = vst [vmem:[#allocation18_spill] sm:$0xff] %v13172_v9  ;;  %v13182_v11 = vld [vmem:[%s20353_s2 + $0x58] sm:$0xff]  ;;  %v13187_v12 = vld [vmem:[%s20353_s2 + $0x60] sm:$0xff] }
   0x7   :  { %21072 = vst [vmem:[#allocation19_spill] sm:$0xff] %v13177_v10  ;;  %21073 = vst [vmem:[#allocation20_spill] sm:$0xff] %v13182_v11  ;;  %v13192_v13 = vld [vmem:[%s20353_s2 + $0x68] sm:$0xff]  ;;  %v13197_v14 = vld [vmem:[%s20353_s2 + $0x70] sm:$0xff] }
   0x8   :  { %21074 = vst [vmem:[#allocation21_spill] sm:$0xff] %v13187_v12  ;;  %21075 = vst [vmem:[#allocation22_spill] sm:$0xff] %v13192_v13  ;;  %v13202_v15 = vld [vmem:[%s20353_s2 + $0x78] sm:$0xff]  ;;  %v13207_v16 = vld [vmem:[%s20353_s2 + $0x80] sm:$0xff] }
   0x9   :  { %21076 = vst [vmem:[#allocation23_spill] sm:$0xff] %v13197_v14  ;;  %21077 = vst [vmem:[#allocation24_spill] sm:$0xff] %v13202_v15  ;;  %v13212_v17 = vld [vmem:[%s20353_s2 + $0x88] sm:$0xff]  ;;  %v13217_v18 = vld [vmem:[%s20353_s2 + $0x90] sm:$0xff] }
   0xa   :  { %21078 = vst [vmem:[#allocation25_spill] sm:$0xff] %v13207_v16  ;;  %21079 = vst [vmem:[#allocation26_spill] sm:$0xff] %v13212_v17  ;;  %v13222_v19 = vld [vmem:[%s20353_s2 + $0x98] sm:$0xff]  ;;  %v13227_v20 = vld [vmem:[%s20353_s2 + $0xa0] sm:$0xff] }
   0xb   :  { %21080 = vst [vmem:[#allocation27_spill] sm:$0xff] %v13217_v18  ;;  %21081 = vst [vmem:[#allocation28_spill] sm:$0xff] %v13222_v19  ;;  %v13232_v21 = vld [vmem:[%s20353_s2 + $0xa8] sm:$0xff]  ;;  %v13237_v22 = vld [vmem:[%s20353_s2 + $0xb0] sm:$0xff] }
   0xc   :  { %21082 = vst [vmem:[#allocation29_spill] sm:$0xff] %v13227_v20  ;;  %21083 = vst [vmem:[#allocation30_spill] sm:$0xff] %v13232_v21  ;;  %v13242_v23 = vld [vmem:[%s20353_s2 + $0xb8] sm:$0xff]  ;;  %v13247_v24 = vld [vmem:[%s20353_s2 + $0xc0] sm:$0xff] }
   0xd   :  { %21084 = vst [vmem:[#allocation31_spill] sm:$0xff] %v13237_v22  ;;  %21085 = vst [vmem:[#allocation32_spill] sm:$0xff] %v13242_v23  ;;  %v13252_v25 = vld [vmem:[%s20353_s2 + $0xc8] sm:$0xff]  ;;  %v13257_v26 = vld [vmem:[%s20353_s2 + $0xd0] sm:$0xff] }
   0xe   :  { %21086 = vst [vmem:[#allocation33_spill] sm:$0xff] %v13247_v24  ;;  %21087 = vst [vmem:[#allocation34_spill] sm:$0xff] %v13252_v25  ;;  %v13262_v27 = vld [vmem:[%s20353_s2 + $0xd8] sm:$0xff]  ;;  %v13267_v28 = vld [vmem:[%s20353_s2 + $0xe0] sm:$0xff] }
   0xf   :  { %21088 = vst [vmem:[#allocation35_spill] sm:$0xff] %v13257_v26  ;;  %21089 = vst [vmem:[#allocation36_spill] sm:$0xff] %v13262_v27  ;;  %v13272_v29 = vld [vmem:[%s20353_s2 + $0xe8] sm:$0xff]  ;;  %v13277_v30 = vld [vmem:[%s20353_s2 + $0xf0] sm:$0xff] }
  0x10   :  { %21090 = vst [vmem:[#allocation37_spill] sm:$0xff] %v13267_v28  ;;  %21091 = vst [vmem:[#allocation38_spill] sm:$0xff] %v13272_v29  ;;  %v13282_v31 = vld [vmem:[%s20353_s2 + $0xf8] sm:$0xff]  ;;  %v13287_v32 = vld [vmem:[%s20353_s2 + $0x100] sm:$0xff] }
  0x11   :  { %21092 = vst [vmem:[#allocation39_spill] sm:$0xff] %v13277_v30  ;;  %21093 = vst [vmem:[#allocation40_spill] sm:$0xff] %v13282_v31  ;;  %v13292_v33 = vld [vmem:[%s20353_s2 + $0x108] sm:$0xff]  ;;  %v13297_v34 = vld [vmem:[%s20353_s2 + $0x110] sm:$0xff] }
  0x12   :  { %21094 = vst [vmem:[#allocation41_spill] sm:$0xff] %v13287_v32  ;;  %21095 = vst [vmem:[#allocation42_spill] sm:$0xff] %v13292_v33  ;;  %v13302_v35 = vld [vmem:[%s20353_s2 + $0x118] sm:$0xff]  ;;  %v13307_v36 = vld [vmem:[%s20353_s2 + $0x120] sm:$0xff] }
  0x13   :  { %21096 = vst [vmem:[#allocation43_spill] sm:$0xff] %v13297_v34  ;;  %21097 = vst [vmem:[#allocation44_spill] sm:$0xff] %v13302_v35  ;;  %v13312_v37 = vld [vmem:[%s20353_s2 + $0x128] sm:$0xff]  ;;  %v13317_v38 = vld [vmem:[%s20353_s2 + $0x130] sm:$0xff] }
  0x14   :  { %21098 = vst [vmem:[#allocation45_spill] sm:$0xff] %v13307_v36  ;;  %21099 = vst [vmem:[#allocation46_spill] sm:$0xff] %v13312_v37  ;;  %v13322_v39 = vld [vmem:[%s20353_s2 + $0x138] sm:$0xff]  ;;  %v13327_v40 = vld [vmem:[%s20353_s2 + $0x140] sm:$0xff] }
  0x15   :  { %21100 = vst [vmem:[#allocation47_spill] sm:$0xff] %v13317_v38  ;;  %21101 = vst [vmem:[#allocation48_spill] sm:$0xff] %v13322_v39  ;;  %v13332_v41 = vld [vmem:[%s20353_s2 + $0x148] sm:$0xff]  ;;  %v13337_v42 = vld [vmem:[%s20353_s2 + $0x150] sm:$0xff] }
  0x16   :  { %21102 = vst [vmem:[#allocation49_spill] sm:$0xff] %v13327_v40  ;;  %21103 = vst [vmem:[#allocation50_spill] sm:$0xff] %v13332_v41  ;;  %v13342_v43 = vld [vmem:[%s20353_s2 + $0x158] sm:$0xff]  ;;  %v13347_v44 = vld [vmem:[%s20353_s2 + $0x160] sm:$0xff] }
  0x17   :  { %21104 = vst [vmem:[#allocation51_spill] sm:$0xff] %v13337_v42  ;;  %21105 = vst [vmem:[#allocation52_spill] sm:$0xff] %v13342_v43  ;;  %v13352_v45 = vld [vmem:[%s20353_s2 + $0x168] sm:$0xff]  ;;  %v13357_v46 = vld [vmem:[%s20353_s2 + $0x170] sm:$0xff] }
  0x18   :  { %21106 = vst [vmem:[#allocation53_spill] sm:$0xff] %v13347_v44  ;;  %21107 = vst [vmem:[#allocation54_spill] sm:$0xff] %v13352_v45  ;;  %v13362_v47 = vld [vmem:[%s20353_s2 + $0x178] sm:$0xff]  ;;  %v13367_v48 = vld [vmem:[%s20353_s2 + $0x180] sm:$0xff] }
  0x19   :  { %21108 = vst [vmem:[#allocation55_spill] sm:$0xff] %v13357_v46  ;;  %21109 = vst [vmem:[#allocation56_spill] sm:$0xff] %v13362_v47  ;;  %v13372_v49 = vld [vmem:[%s20353_s2 + $0x188] sm:$0xff]  ;;  %v13377_v50 = vld [vmem:[%s20353_s2 + $0x190] sm:$0xff] }
  0x1a   :  { %21110 = vst [vmem:[#allocation57_spill] sm:$0xff] %v13367_v48  ;;  %21111 = vst [vmem:[#allocation58_spill] sm:$0xff] %v13372_v49  ;;  %v13382_v51 = vld [vmem:[%s20353_s2 + $0x198] sm:$0xff]  ;;  %v13387_v52 = vld [vmem:[%s20353_s2 + $0x1a0] sm:$0xff] }
  0x1b   :  { %21112 = vst [vmem:[#allocation59_spill] sm:$0xff] %v13377_v50  ;;  %21113 = vst [vmem:[#allocation60_spill] sm:$0xff] %v13382_v51  ;;  %v13392_v53 = vld [vmem:[%s20353_s2 + $0x1a8] sm:$0xff]  ;;  %v13397_v54 = vld [vmem:[%s20353_s2 + $0x1b0] sm:$0xff] }
  0x1c   :  { %21114 = vst [vmem:[#allocation61_spill] sm:$0xff] %v13387_v52  ;;  %21115 = vst [vmem:[#allocation62_spill] sm:$0xff] %v13392_v53  ;;  %v13402_v55 = vld [vmem:[%s20353_s2 + $0x1b8] sm:$0xff]  ;;  %v13407_v56 = vld [vmem:[%s20353_s2 + $0x1c0] sm:$0xff] }
  0x1d   :  { %21116 = vst [vmem:[#allocation63_spill] sm:$0xff] %v13397_v54  ;;  %21117 = vst [vmem:[#allocation64_spill] sm:$0xff] %v13402_v55  ;;  %v13412_v57 = vld [vmem:[%s20353_s2 + $0x1c8] sm:$0xff]  ;;  %v13417_v58 = vld [vmem:[%s20353_s2 + $0x1d0] sm:$0xff] }
  0x1e   :  { %21118 = vst [vmem:[#allocation65_spill] sm:$0xff] %v13407_v56  ;;  %21119 = vst [vmem:[#allocation66_spill] sm:$0xff] %v13412_v57  ;;  %v13422_v59 = vld [vmem:[%s20353_s2 + $0x1d8] sm:$0xff]  ;;  %v13427_v60 = vld [vmem:[%s20353_s2 + $0x1e0] sm:$0xff] }
  0x1f   :  { %21120 = vst [vmem:[#allocation67_spill] sm:$0xff] %v13417_v58  ;;  %21121 = vst [vmem:[#allocation68_spill] sm:$0xff] %v13422_v59  ;;  %v13432_v61 = vld [vmem:[%s20353_s2 + $0x1e8] sm:$0xff]  ;;  %v13437_v62 = vld [vmem:[%s20353_s2 + $0x1f0] sm:$0xff] }
  0x20   :  { %21122 = vst [vmem:[#allocation69_spill] sm:$0xff] %v13427_v60  ;;  %21123 = vst [vmem:[#allocation70_spill] sm:$0xff] %v13432_v61  ;;  %v13442_v63 = vld [vmem:[%s20353_s2 + $0x1f8] sm:$0xff]  ;;  %v13447_v33 = vld [vmem:[%s20353_s2 + $0x200] sm:$0xff] }
  0x21   :  { %21124 = vst [vmem:[#allocation71_spill] sm:$0xff] %v13437_v62  ;;  %21125 = vst [vmem:[#allocation72_spill] sm:$0xff] %v13442_v63  ;;  %v13452_v35 = vld [vmem:[%s20353_s2 + $0x208] sm:$0xff]  ;;  %v13457_v32 = vld [vmem:[%s20353_s2 + $0x210] sm:$0xff] }
  0x22   :  { %21126 = vst [vmem:[#allocation73_spill] sm:$0xff] %v13447_v33  ;;  %21127 = vst [vmem:[#allocation74_spill] sm:$0xff] %v13452_v35  ;;  %v13462_v34 = vld [vmem:[%s20353_s2 + $0x218] sm:$0xff]  ;;  %v13467_v37 = vld [vmem:[%s20353_s2 + $0x220] sm:$0xff] }
  0x23   :  { %21128 = vst [vmem:[#allocation75_spill] sm:$0xff] %v13457_v32  ;;  %21129 = vst [vmem:[#allocation76_spill] sm:$0xff] %v13462_v34  ;;  %v13472_v39 = vld [vmem:[%s20353_s2 + $0x228] sm:$0xff]  ;;  %v13477_v36 = vld [vmem:[%s20353_s2 + $0x230] sm:$0xff] }
  0x24   :  { %21130 = vst [vmem:[#allocation77_spill] sm:$0xff] %v13467_v37  ;;  %21131 = vst [vmem:[#allocation78_spill] sm:$0xff] %v13472_v39  ;;  %v13482_v38 = vld [vmem:[%s20353_s2 + $0x238] sm:$0xff]  ;;  %v13487_v41 = vld [vmem:[%s20353_s2 + $0x240] sm:$0xff] }
  0x25   :  { %21132 = vst [vmem:[#allocation79_spill] sm:$0xff] %v13477_v36  ;;  %21133 = vst [vmem:[#allocation80_spill] sm:$0xff] %v13482_v38  ;;  %v13492_v43 = vld [vmem:[%s20353_s2 + $0x248] sm:$0xff]  ;;  %v13497_v40 = vld [vmem:[%s20353_s2 + $0x250] sm:$0xff] }
  0x26   :  { %21134 = vst [vmem:[#allocation81_spill] sm:$0xff] %v13487_v41  ;;  %21135 = vst [vmem:[#allocation82_spill] sm:$0xff] %v13492_v43  ;;  %v13502_v42 = vld [vmem:[%s20353_s2 + $0x258] sm:$0xff]  ;;  %v13507_v45 = vld [vmem:[%s20353_s2 + $0x260] sm:$0xff] }
  0x27   :  { %21136 = vst [vmem:[#allocation83_spill] sm:$0xff] %v13497_v40  ;;  %21137 = vst [vmem:[#allocation84_spill] sm:$0xff] %v13502_v42  ;;  %v13512_v47 = vld [vmem:[%s20353_s2 + $0x268] sm:$0xff]  ;;  %v13517_v44 = vld [vmem:[%s20353_s2 + $0x270] sm:$0xff] }
  0x28   :  { %21138 = vst [vmem:[#allocation85_spill] sm:$0xff] %v13507_v45  ;;  %21139 = vst [vmem:[#allocation86_spill] sm:$0xff] %v13512_v47  ;;  %v13522_v46 = vld [vmem:[%s20353_s2 + $0x278] sm:$0xff]  ;;  %v13527_v49 = vld [vmem:[%s20353_s2 + $0x280] sm:$0xff] }
  0x29   :  { %21140 = vst [vmem:[#allocation87_spill] sm:$0xff] %v13517_v44  ;;  %21141 = vst [vmem:[#allocation88_spill] sm:$0xff] %v13522_v46  ;;  %v13532_v51 = vld [vmem:[%s20353_s2 + $0x288] sm:$0xff]  ;;  %v13537_v48 = vld [vmem:[%s20353_s2 + $0x290] sm:$0xff] }
  0x2a   :  { %21142 = vst [vmem:[#allocation89_spill] sm:$0xff] %v13527_v49  ;;  %21143 = vst [vmem:[#allocation90_spill] sm:$0xff] %v13532_v51  ;;  %v13542_v50 = vld [vmem:[%s20353_s2 + $0x298] sm:$0xff]  ;;  %v13547_v53 = vld [vmem:[%s20353_s2 + $0x2a0] sm:$0xff] }
  0x2b   :  { %21144 = vst [vmem:[#allocation91_spill] sm:$0xff] %v13537_v48  ;;  %21145 = vst [vmem:[#allocation92_spill] sm:$0xff] %v13542_v50  ;;  %v13552_v55 = vld [vmem:[%s20353_s2 + $0x2a8] sm:$0xff]  ;;  %v13557_v52 = vld [vmem:[%s20353_s2 + $0x2b0] sm:$0xff] }
  0x2c   :  { %21146 = vst [vmem:[#allocation93_spill] sm:$0xff] %v13547_v53  ;;  %21147 = vst [vmem:[#allocation94_spill] sm:$0xff] %v13552_v55  ;;  %v13562_v54 = vld [vmem:[%s20353_s2 + $0x2b8] sm:$0xff]  ;;  %v13567_v1 = vld [vmem:[%s20353_s2 + $0x2c0] sm:$0xff] }
  0x2d   :  { %21148 = vst [vmem:[#allocation95_spill] sm:$0xff] %v13557_v52  ;;  %21149 = vst [vmem:[#allocation96_spill] sm:$0xff] %v13562_v54  ;;  %v13572_v3 = vld [vmem:[%s20353_s2 + $0x2c8] sm:$0xff]  ;;  %v13577_v0 = vld [vmem:[%s20353_s2 + $0x2d0] sm:$0xff] }
  0x2e   :  { %21150 = vst [vmem:[#allocation97_spill] sm:$0xff] %v13567_v1  ;;  %21151 = vst [vmem:[#allocation98_spill] sm:$0xff] %v13572_v3  ;;  %v13582_v2 = vld [vmem:[%s20353_s2 + $0x2d8] sm:$0xff]  ;;  %v13587_v5 = vld [vmem:[%s20353_s2 + $0x2e0] sm:$0xff] }
  0x2f   :  { %21152 = vst [vmem:[#allocation99_spill] sm:$0xff] %v13577_v0  ;;  %21153 = vst [vmem:[#allocation100_spill] sm:$0xff] %v13582_v2  ;;  %v13592_v7 = vld [vmem:[%s20353_s2 + $0x2e8] sm:$0xff]  ;;  %v13597_v4 = vld [vmem:[%s20353_s2 + $0x2f0] sm:$0xff] }
  0x30   :  { %21154 = vst [vmem:[#allocation101_spill] sm:$0xff] %v13587_v5  ;;  %21155 = vst [vmem:[#allocation102_spill] sm:$0xff] %v13592_v7  ;;  %v13602_v6 = vld [vmem:[%s20353_s2 + $0x2f8] sm:$0xff]  ;;  %v13607_v9 = vld [vmem:[%s20353_s2 + $0x300] sm:$0xff] }
  0x31   :  { %21156 = vst [vmem:[#allocation103_spill] sm:$0xff] %v13597_v4  ;;  %21157 = vst [vmem:[#allocation104_spill] sm:$0xff] %v13602_v6  ;;  %v13612_v11 = vld [vmem:[%s20353_s2 + $0x308] sm:$0xff]  ;;  %v13617_v8 = vld [vmem:[%s20353_s2 + $0x310] sm:$0xff] }
  0x32   :  { %21158 = vst [vmem:[#allocation105_spill] sm:$0xff] %v13607_v9  ;;  %21159 = vst [vmem:[#allocation106_spill] sm:$0xff] %v13612_v11  ;;  %v13622_v10 = vld [vmem:[%s20353_s2 + $0x318] sm:$0xff]  ;;  %v13627_v13 = vld [vmem:[%s20353_s2 + $0x320] sm:$0xff] }
  0x33   :  { %21160 = vst [vmem:[#allocation107_spill] sm:$0xff] %v13617_v8  ;;  %21161 = vst [vmem:[#allocation108_spill] sm:$0xff] %v13622_v10  ;;  %v13632_v15 = vld [vmem:[%s20353_s2 + $0x328] sm:$0xff]  ;;  %v13637_v12 = vld [vmem:[%s20353_s2 + $0x330] sm:$0xff] }
  0x34   :  { %21162 = vst [vmem:[#allocation109_spill] sm:$0xff] %v13627_v13  ;;  %21163 = vst [vmem:[#allocation110_spill] sm:$0xff] %v13632_v15  ;;  %v13642_v14 = vld [vmem:[%s20353_s2 + $0x338] sm:$0xff]  ;;  %v13647_v17 = vld [vmem:[%s20353_s2 + $0x340] sm:$0xff] }
  0x35   :  { %21164 = vst [vmem:[#allocation111_spill] sm:$0xff] %v13637_v12  ;;  %21165 = vst [vmem:[#allocation112_spill] sm:$0xff] %v13642_v14  ;;  %v13652_v19 = vld [vmem:[%s20353_s2 + $0x348] sm:$0xff]  ;;  %v13657_v16 = vld [vmem:[%s20353_s2 + $0x350] sm:$0xff] }
  0x36   :  { %21166 = vst [vmem:[#allocation113_spill] sm:$0xff] %v13647_v17  ;;  %21167 = vst [vmem:[#allocation114_spill] sm:$0xff] %v13652_v19  ;;  %v13662_v18 = vld [vmem:[%s20353_s2 + $0x358] sm:$0xff]  ;;  %v13667_v21 = vld [vmem:[%s20353_s2 + $0x360] sm:$0xff] }
  0x37   :  { %21168 = vst [vmem:[#allocation115_spill] sm:$0xff] %v13657_v16  ;;  %21169 = vst [vmem:[#allocation116_spill] sm:$0xff] %v13662_v18  ;;  %v13672_v23 = vld [vmem:[%s20353_s2 + $0x368] sm:$0xff]  ;;  %v13677_v20 = vld [vmem:[%s20353_s2 + $0x370] sm:$0xff] }
  0x38   :  { %21170 = vst [vmem:[#allocation117_spill] sm:$0xff] %v13667_v21  ;;  %21171 = vst [vmem:[#allocation118_spill] sm:$0xff] %v13672_v23  ;;  %v13682_v22 = vld [vmem:[%s20353_s2 + $0x378] sm:$0xff]  ;;  %v13687_v25 = vld [vmem:[%s20353_s2 + $0x380] sm:$0xff] }
  0x39   :  { %21172 = vst [vmem:[#allocation119_spill] sm:$0xff] %v13677_v20  ;;  %21173 = vst [vmem:[#allocation120_spill] sm:$0xff] %v13682_v22  ;;  %v13692_v27 = vld [vmem:[%s20353_s2 + $0x388] sm:$0xff]  ;;  %v13697_v24 = vld [vmem:[%s20353_s2 + $0x390] sm:$0xff] }
  0x3a   :  { %21174 = vst [vmem:[#allocation121_spill] sm:$0xff] %v13687_v25  ;;  %21175 = vst [vmem:[#allocation122_spill] sm:$0xff] %v13692_v27  ;;  %v13702_v26 = vld [vmem:[%s20353_s2 + $0x398] sm:$0xff]  ;;  %v13707_v29 = vld [vmem:[%s20353_s2 + $0x3a0] sm:$0xff] }
  0x3b   :  { %21176 = vst [vmem:[#allocation123_spill] sm:$0xff] %v13697_v24  ;;  %21177 = vst [vmem:[#allocation124_spill] sm:$0xff] %v13702_v26  ;;  %v13712_v25 = vld [vmem:[%s20353_s2 + $0x3a8] sm:$0xff]  ;;  %v13717_v27 = vld [vmem:[%s20353_s2 + $0x3b0] sm:$0xff] }
  0x3c   :  { %21178 = vst [vmem:[#allocation125_spill] sm:$0xff] %v13707_v29  ;;  %21179 = vst [vmem:[#allocation126_spill] sm:$0xff] %v13712_v25  ;;  %v13722_v24 = vld [vmem:[%s20353_s2 + $0x3b8] sm:$0xff]  ;;  %v13727_v26 = vld [vmem:[%s20353_s2 + $0x3c0] sm:$0xff] }
  0x3d   :  { %21180 = vst [vmem:[#allocation127_spill] sm:$0xff] %v13717_v27  ;;  %21181 = vst [vmem:[#allocation128_spill] sm:$0xff] %v13722_v24  ;;  %v13732_v29 = vld [vmem:[%s20353_s2 + $0x3c8] sm:$0xff]  ;;  %v13737_v25 = vld [vmem:[%s20353_s2 + $0x3d0] sm:$0xff] }
  0x3e   :  { %21182 = vst [vmem:[#allocation129_spill] sm:$0xff] %v13727_v26  ;;  %21183 = vst [vmem:[#allocation130_spill] sm:$0xff] %v13732_v29  ;;  %v13742_v27 = vld [vmem:[%s20353_s2 + $0x3d8] sm:$0xff]  ;;  %v13747_v24 = vld [vmem:[%s20353_s2 + $0x3e0] sm:$0xff] }
  0x3f   :  { %21184 = vst [vmem:[#allocation131_spill] sm:$0xff] %v13737_v25  ;;  %21185 = vst [vmem:[#allocation132_spill] sm:$0xff] %v13742_v27  ;;  %v13752_v26 = vld [vmem:[%s20353_s2 + $0x3e8] sm:$0xff]  ;;  %v13757_v29 = vld [vmem:[%s20353_s2 + $0x3f0] sm:$0xff] }
  0x40   :  { %21186 = vst [vmem:[#allocation133_spill] sm:$0xff] %v13747_v24  ;;  %21187 = vst [vmem:[#allocation134_spill] sm:$0xff] %v13752_v26  ;;  %v13762_v25 = vld [vmem:[%s20353_s2 + $0x3f8] sm:$0xff]  ;;  %v13767_v27 = vld [vmem:[%s20353_s2 + $0x400] sm:$0xff] }
  0x41   :  { %21188 = vst [vmem:[#allocation135_spill] sm:$0xff] %v13757_v29  ;;  %21189 = vst [vmem:[#allocation136_spill] sm:$0xff] %v13762_v25  ;;  %v13772_v24 = vld [vmem:[%s20353_s2 + $0x408] sm:$0xff]  ;;  %v13777_v26 = vld [vmem:[%s20353_s2 + $0x410] sm:$0xff] }
  0x42   :  { %21190 = vst [vmem:[#allocation137_spill] sm:$0xff] %v13767_v27  ;;  %21191 = vst [vmem:[#allocation138_spill] sm:$0xff] %v13772_v24  ;;  %v13782_v29 = vld [vmem:[%s20353_s2 + $0x418] sm:$0xff]  ;;  %v13787_v25 = vld [vmem:[%s20353_s2 + $0x420] sm:$0xff] }
  0x43   :  { %21192 = vst [vmem:[#allocation139_spill] sm:$0xff] %v13777_v26  ;;  %21193 = vst [vmem:[#allocation140_spill] sm:$0xff] %v13782_v29  ;;  %v13792_v27 = vld [vmem:[%s20353_s2 + $0x428] sm:$0xff]  ;;  %v13797_v24 = vld [vmem:[%s20353_s2 + $0x430] sm:$0xff] }
  0x44   :  { %21194 = vst [vmem:[#allocation141_spill] sm:$0xff] %v13787_v25  ;;  %21195 = vst [vmem:[#allocation142_spill] sm:$0xff] %v13792_v27  ;;  %v13802_v26 = vld [vmem:[%s20353_s2 + $0x438] sm:$0xff]  ;;  %v13807_v29 = vld [vmem:[%s20353_s2 + $0x440] sm:$0xff] }
  0x45   :  { %21196 = vst [vmem:[#allocation143_spill] sm:$0xff] %v13797_v24  ;;  %21197 = vst [vmem:[#allocation144_spill] sm:$0xff] %v13802_v26  ;;  %v13812_v25 = vld [vmem:[%s20353_s2 + $0x448] sm:$0xff]  ;;  %v13817_v27 = vld [vmem:[%s20353_s2 + $0x450] sm:$0xff] }
  0x46   :  { %21198 = vst [vmem:[#allocation145_spill] sm:$0xff] %v13807_v29  ;;  %21199 = vst [vmem:[#allocation146_spill] sm:$0xff] %v13812_v25  ;;  %v13822_v24 = vld [vmem:[%s20353_s2 + $0x458] sm:$0xff]  ;;  %v13827_v26 = vld [vmem:[%s20353_s2 + $0x460] sm:$0xff] }
  0x47   :  { %21200 = vst [vmem:[#allocation147_spill] sm:$0xff] %v13817_v27  ;;  %21201 = vst [vmem:[#allocation148_spill] sm:$0xff] %v13822_v24  ;;  %v13832_v29 = vld [vmem:[%s20353_s2 + $0x468] sm:$0xff]  ;;  %v13837_v25 = vld [vmem:[%s20353_s2 + $0x470] sm:$0xff] }
  0x48   :  { %21202 = vst [vmem:[#allocation149_spill] sm:$0xff] %v13827_v26  ;;  %21203 = vst [vmem:[#allocation150_spill] sm:$0xff] %v13832_v29  ;;  %v13842_v27 = vld [vmem:[%s20353_s2 + $0x478] sm:$0xff]  ;;  %v13847_v24 = vld [vmem:[%s20353_s2 + $0x480] sm:$0xff] }
  0x49   :  { %21204 = vst [vmem:[#allocation151_spill] sm:$0xff] %v13837_v25  ;;  %21205 = vst [vmem:[#allocation152_spill] sm:$0xff] %v13842_v27  ;;  %v13852_v26 = vld [vmem:[%s20353_s2 + $0x488] sm:$0xff]  ;;  %v13857_v29 = vld [vmem:[%s20353_s2 + $0x490] sm:$0xff] }
  0x4a   :  { %21206 = vst [vmem:[#allocation153_spill] sm:$0xff] %v13847_v24  ;;  %21207 = vst [vmem:[#allocation154_spill] sm:$0xff] %v13852_v26  ;;  %v13862_v25 = vld [vmem:[%s20353_s2 + $0x498] sm:$0xff]  ;;  %v13867_v27 = vld [vmem:[%s20353_s2 + $0x4a0] sm:$0xff] }
  0x4b   :  { %21208 = vst [vmem:[#allocation155_spill] sm:$0xff] %v13857_v29  ;;  %21209 = vst [vmem:[#allocation156_spill] sm:$0xff] %v13862_v25  ;;  %v13872_v24 = vld [vmem:[%s20353_s2 + $0x4a8] sm:$0xff]  ;;  %v13877_v26 = vld [vmem:[%s20353_s2 + $0x4b0] sm:$0xff] }
  0x4c   :  { %21210 = vst [vmem:[#allocation157_spill] sm:$0xff] %v13867_v27  ;;  %21211 = vst [vmem:[#allocation158_spill] sm:$0xff] %v13872_v24  ;;  %v13882_v29 = vld [vmem:[%s20353_s2 + $0x4b8] sm:$0xff]  ;;  %v13887_v25 = vld [vmem:[%s20353_s2 + $0x4c0] sm:$0xff] }
  0x4d   :  { %21212 = vst [vmem:[#allocation159_spill] sm:$0xff] %v13877_v26  ;;  %21213 = vst [vmem:[#allocation160_spill] sm:$0xff] %v13882_v29  ;;  %v13892_v27 = vld [vmem:[%s20353_s2 + $0x4c8] sm:$0xff]  ;;  %v13897_v24 = vld [vmem:[%s20353_s2 + $0x4d0] sm:$0xff] }
  0x4e   :  { %21214 = vst [vmem:[#allocation161_spill] sm:$0xff] %v13887_v25  ;;  %21215 = vst [vmem:[#allocation162_spill] sm:$0xff] %v13892_v27  ;;  %v13902_v26 = vld [vmem:[%s20353_s2 + $0x4d8] sm:$0xff]  ;;  %v13907_v29 = vld [vmem:[%s20353_s2 + $0x4e0] sm:$0xff] }
  0x4f   :  { %21216 = vst [vmem:[#allocation163_spill] sm:$0xff] %v13897_v24  ;;  %21217 = vst [vmem:[#allocation164_spill] sm:$0xff] %v13902_v26  ;;  %v13912_v25 = vld [vmem:[%s20353_s2 + $0x4e8] sm:$0xff]  ;;  %v13917_v27 = vld [vmem:[%s20353_s2 + $0x4f0] sm:$0xff] }
  0x50   :  { %21218 = vst [vmem:[#allocation165_spill] sm:$0xff] %v13907_v29  ;;  %21219 = vst [vmem:[#allocation166_spill] sm:$0xff] %v13912_v25  ;;  %v13922_v24 = vld [vmem:[%s20353_s2 + $0x4f8] sm:$0xff]  ;;  %v13927_v26 = vld [vmem:[%s20353_s2 + $0x500] sm:$0xff] }
  0x51   :  { %21220 = vst [vmem:[#allocation167_spill] sm:$0xff] %v13917_v27  ;;  %21221 = vst [vmem:[#allocation168_spill] sm:$0xff] %v13922_v24  ;;  %v13932_v29 = vld [vmem:[%s20353_s2 + $0x508] sm:$0xff]  ;;  %v13937_v25 = vld [vmem:[%s20353_s2 + $0x510] sm:$0xff] }
  0x52   :  { %21222 = vst [vmem:[#allocation169_spill] sm:$0xff] %v13927_v26  ;;  %21223 = vst [vmem:[#allocation170_spill] sm:$0xff] %v13932_v29  ;;  %v13942_v27 = vld [vmem:[%s20353_s2 + $0x518] sm:$0xff]  ;;  %v13947_v24 = vld [vmem:[%s20353_s2 + $0x520] sm:$0xff] }
  0x53   :  { %21224 = vst [vmem:[#allocation171_spill] sm:$0xff] %v13937_v25  ;;  %21225 = vst [vmem:[#allocation172_spill] sm:$0xff] %v13942_v27  ;;  %v13952_v26 = vld [vmem:[%s20353_s2 + $0x528] sm:$0xff]  ;;  %v13957_v29 = vld [vmem:[%s20353_s2 + $0x530] sm:$0xff] }
  0x54   :  { %21226 = vst [vmem:[#allocation173_spill] sm:$0xff] %v13947_v24  ;;  %21227 = vst [vmem:[#allocation174_spill] sm:$0xff] %v13952_v26  ;;  %v13962_v25 = vld [vmem:[%s20353_s2 + $0x538] sm:$0xff]  ;;  %v13967_v27 = vld [vmem:[%s20353_s2 + $0x540] sm:$0xff] }
  0x55   :  { %21228 = vst [vmem:[#allocation175_spill] sm:$0xff] %v13957_v29  ;;  %21229 = vst [vmem:[#allocation176_spill] sm:$0xff] %v13962_v25  ;;  %v13972_v24 = vld [vmem:[%s20353_s2 + $0x548] sm:$0xff]  ;;  %v13977_v26 = vld [vmem:[%s20353_s2 + $0x550] sm:$0xff] }
  0x56   :  { %21230 = vst [vmem:[#allocation177_spill] sm:$0xff] %v13967_v27  ;;  %21231 = vst [vmem:[#allocation178_spill] sm:$0xff] %v13972_v24  ;;  %v13982_v29 = vld [vmem:[%s20353_s2 + $0x558] sm:$0xff]  ;;  %v13987_v25 = vld [vmem:[%s20353_s2 + $0x560] sm:$0xff] }
  0x57   :  { %21232 = vst [vmem:[#allocation179_spill] sm:$0xff] %v13977_v26  ;;  %21233 = vst [vmem:[#allocation180_spill] sm:$0xff] %v13982_v29  ;;  %v13992_v27 = vld [vmem:[%s20353_s2 + $0x568] sm:$0xff]  ;;  %v13997_v24 = vld [vmem:[%s20353_s2 + $0x570] sm:$0xff] }
  0x58   :  { %21234 = vst [vmem:[#allocation181_spill] sm:$0xff] %v13987_v25  ;;  %21235 = vst [vmem:[#allocation182_spill] sm:$0xff] %v13992_v27  ;;  %v14002_v26 = vld [vmem:[%s20353_s2 + $0x578] sm:$0xff]  ;;  %v14007_v29 = vld [vmem:[%s20353_s2 + $0x580] sm:$0xff] }
  0x59   :  { %21236 = vst [vmem:[#allocation183_spill] sm:$0xff] %v13997_v24  ;;  %21237 = vst [vmem:[#allocation184_spill] sm:$0xff] %v14002_v26  ;;  %v14012_v25 = vld [vmem:[%s20353_s2 + $0x588] sm:$0xff]  ;;  %v14017_v27 = vld [vmem:[%s20353_s2 + $0x590] sm:$0xff] }
  0x5a   :  { %21238 = vst [vmem:[#allocation185_spill] sm:$0xff] %v14007_v29  ;;  %21239 = vst [vmem:[#allocation186_spill] sm:$0xff] %v14012_v25  ;;  %v14022_v24 = vld [vmem:[%s20353_s2 + $0x598] sm:$0xff]  ;;  %v14027_v26 = vld [vmem:[%s20353_s2 + $0x5a0] sm:$0xff] }
  0x5b   :  { %21240 = vst [vmem:[#allocation187_spill] sm:$0xff] %v14017_v27  ;;  %21241 = vst [vmem:[#allocation188_spill] sm:$0xff] %v14022_v24  ;;  %v14032_v29 = vld [vmem:[%s20353_s2 + $0x5a8] sm:$0xff]  ;;  %v14037_v25 = vld [vmem:[%s20353_s2 + $0x5b0] sm:$0xff] }
  0x5c   :  { %21242 = vst [vmem:[#allocation189_spill] sm:$0xff] %v14027_v26  ;;  %21243 = vst [vmem:[#allocation190_spill] sm:$0xff] %v14032_v29  ;;  %v14042_v27 = vld [vmem:[%s20353_s2 + $0x5b8] sm:$0xff]  ;;  %v14047_v24 = vld [vmem:[%s20353_s2 + $0x5c0] sm:$0xff] }
  0x5d   :  { %21244 = vst [vmem:[#allocation191_spill] sm:$0xff] %v14037_v25  ;;  %21245 = vst [vmem:[#allocation192_spill] sm:$0xff] %v14042_v27  ;;  %v14052_v26 = vld [vmem:[%s20353_s2 + $0x5c8] sm:$0xff]  ;;  %v14057_v29 = vld [vmem:[%s20353_s2 + $0x5d0] sm:$0xff] }
  0x5e   :  { %21246 = vst [vmem:[#allocation193_spill] sm:$0xff] %v14047_v24  ;;  %21247 = vst [vmem:[#allocation194_spill] sm:$0xff] %v14052_v26  ;;  %v14062_v25 = vld [vmem:[%s20353_s2 + $0x5d8] sm:$0xff]  ;;  %v14067_v27 = vld [vmem:[%s20353_s2 + $0x5e0] sm:$0xff] }
  0x5f   :  { %21248 = vst [vmem:[#allocation195_spill] sm:$0xff] %v14057_v29  ;;  %21249 = vst [vmem:[#allocation196_spill] sm:$0xff] %v14062_v25  ;;  %v14072_v24 = vld [vmem:[%s20353_s2 + $0x5e8] sm:$0xff]  ;;  %v14077_v26 = vld [vmem:[%s20353_s2 + $0x5f0] sm:$0xff] }
  0x60   :  { %21250 = vst [vmem:[#allocation197_spill] sm:$0xff] %v14067_v27  ;;  %21251 = vst [vmem:[#allocation198_spill] sm:$0xff] %v14072_v24  ;;  %v14082_v29 = vld [vmem:[%s20353_s2 + $0x5f8] sm:$0xff]  ;;  %v14087_v25 = vld [vmem:[%s20353_s2 + $0x600] sm:$0xff] }
  0x61   :  { %21252 = vst [vmem:[#allocation199_spill] sm:$0xff] %v14077_v26  ;;  %21253 = vst [vmem:[#allocation200_spill] sm:$0xff] %v14082_v29  ;;  %v14092_v27 = vld [vmem:[%s20353_s2 + $0x608] sm:$0xff]  ;;  %v14097_v24 = vld [vmem:[%s20353_s2 + $0x610] sm:$0xff] }
  0x62   :  { %21254 = vst [vmem:[#allocation201_spill] sm:$0xff] %v14087_v25  ;;  %21255 = vst [vmem:[#allocation202_spill] sm:$0xff] %v14092_v27  ;;  %v14102_v26 = vld [vmem:[%s20353_s2 + $0x618] sm:$0xff]  ;;  %v14107_v29 = vld [vmem:[%s20353_s2 + $0x620] sm:$0xff] }
  0x63   :  { %21256 = vst [vmem:[#allocation203_spill] sm:$0xff] %v14097_v24  ;;  %21257 = vst [vmem:[#allocation204_spill] sm:$0xff] %v14102_v26  ;;  %v14112_v25 = vld [vmem:[%s20353_s2 + $0x628] sm:$0xff]  ;;  %v14117_v27 = vld [vmem:[%s20353_s2 + $0x630] sm:$0xff] }
  0x64   :  { %21258 = vst [vmem:[#allocation205_spill] sm:$0xff] %v14107_v29  ;;  %21259 = vst [vmem:[#allocation206_spill] sm:$0xff] %v14112_v25  ;;  %v14122_v24 = vld [vmem:[%s20353_s2 + $0x638] sm:$0xff]  ;;  %v14127_v26 = vld [vmem:[%s20353_s2 + $0x640] sm:$0xff] }
  0x65   :  { %21260 = vst [vmem:[#allocation207_spill] sm:$0xff] %v14117_v27  ;;  %21261 = vst [vmem:[#allocation208_spill] sm:$0xff] %v14122_v24  ;;  %v14132_v29 = vld [vmem:[%s20353_s2 + $0x648] sm:$0xff]  ;;  %v14137_v25 = vld [vmem:[%s20353_s2 + $0x650] sm:$0xff] }
  0x66   :  { %21262 = vst [vmem:[#allocation209_spill] sm:$0xff] %v14127_v26  ;;  %21263 = vst [vmem:[#allocation210_spill] sm:$0xff] %v14132_v29  ;;  %v14142_v27 = vld [vmem:[%s20353_s2 + $0x658] sm:$0xff]  ;;  %v14147_v24 = vld [vmem:[%s20353_s2 + $0x660] sm:$0xff] }
  0x67   :  { %21264 = vst [vmem:[#allocation211_spill] sm:$0xff] %v14137_v25  ;;  %21265 = vst [vmem:[#allocation212_spill] sm:$0xff] %v14142_v27  ;;  %v14152_v26 = vld [vmem:[%s20353_s2 + $0x668] sm:$0xff]  ;;  %v14157_v29 = vld [vmem:[%s20353_s2 + $0x670] sm:$0xff] }
  0x68   :  { %21266 = vst [vmem:[#allocation213_spill] sm:$0xff] %v14147_v24  ;;  %21267 = vst [vmem:[#allocation214_spill] sm:$0xff] %v14152_v26  ;;  %v14162_v25 = vld [vmem:[%s20353_s2 + $0x678] sm:$0xff]  ;;  %v14167_v27 = vld [vmem:[%s20353_s2 + $0x680] sm:$0xff] }
  0x69   :  { %21268 = vst [vmem:[#allocation215_spill] sm:$0xff] %v14157_v29  ;;  %21269 = vst [vmem:[#allocation216_spill] sm:$0xff] %v14162_v25  ;;  %v14172_v24 = vld [vmem:[%s20353_s2 + $0x688] sm:$0xff]  ;;  %v14177_v26 = vld [vmem:[%s20353_s2 + $0x690] sm:$0xff] }
  0x6a   :  { %21270 = vst [vmem:[#allocation217_spill] sm:$0xff] %v14167_v27  ;;  %21271 = vst [vmem:[#allocation218_spill] sm:$0xff] %v14172_v24  ;;  %v14182_v29 = vld [vmem:[%s20353_s2 + $0x698] sm:$0xff]  ;;  %v14187_v25 = vld [vmem:[%s20353_s2 + $0x6a0] sm:$0xff] }
  0x6b   :  { %21272 = vst [vmem:[#allocation219_spill] sm:$0xff] %v14177_v26  ;;  %21273 = vst [vmem:[#allocation220_spill] sm:$0xff] %v14182_v29  ;;  %v14192_v27 = vld [vmem:[%s20353_s2 + $0x6a8] sm:$0xff]  ;;  %v14197_v24 = vld [vmem:[%s20353_s2 + $0x6b0] sm:$0xff] }
  0x6c   :  { %21274 = vst [vmem:[#allocation221_spill] sm:$0xff] %v14187_v25  ;;  %21275 = vst [vmem:[#allocation222_spill] sm:$0xff] %v14192_v27  ;;  %v14202_v26 = vld [vmem:[%s20353_s2 + $0x6b8] sm:$0xff]  ;;  %v14207_v29 = vld [vmem:[%s20353_s2 + $0x6c0] sm:$0xff] }
  0x6d   :  { %21276 = vst [vmem:[#allocation223_spill] sm:$0xff] %v14197_v24  ;;  %21277 = vst [vmem:[#allocation224_spill] sm:$0xff] %v14202_v26  ;;  %v14212_v25 = vld [vmem:[%s20353_s2 + $0x6c8] sm:$0xff]  ;;  %v14217_v27 = vld [vmem:[%s20353_s2 + $0x6d0] sm:$0xff] }
  0x6e   :  { %21278 = vst [vmem:[#allocation225_spill] sm:$0xff] %v14207_v29  ;;  %21279 = vst [vmem:[#allocation226_spill] sm:$0xff] %v14212_v25  ;;  %v14222_v24 = vld [vmem:[%s20353_s2 + $0x6d8] sm:$0xff]  ;;  %v14227_v26 = vld [vmem:[%s20353_s2 + $0x6e0] sm:$0xff] }
  0x6f   :  { %21280 = vst [vmem:[#allocation227_spill] sm:$0xff] %v14217_v27  ;;  %21281 = vst [vmem:[#allocation228_spill] sm:$0xff] %v14222_v24  ;;  %v14232_v29 = vld [vmem:[%s20353_s2 + $0x6e8] sm:$0xff]  ;;  %v14237_v25 = vld [vmem:[%s20353_s2 + $0x6f0] sm:$0xff] }
  0x70   :  { %21282 = vst [vmem:[#allocation229_spill] sm:$0xff] %v14227_v26  ;;  %21283 = vst [vmem:[#allocation230_spill] sm:$0xff] %v14232_v29  ;;  %v14242_v27 = vld [vmem:[%s20353_s2 + $0x6f8] sm:$0xff]  ;;  %v14247_v24 = vld [vmem:[%s20353_s2 + $0x700] sm:$0xff] }
  0x71   :  { %21284 = vst [vmem:[#allocation231_spill] sm:$0xff] %v14237_v25  ;;  %21285 = vst [vmem:[#allocation232_spill] sm:$0xff] %v14242_v27  ;;  %v14252_v26 = vld [vmem:[%s20353_s2 + $0x708] sm:$0xff]  ;;  %v14257_v29 = vld [vmem:[%s20353_s2 + $0x710] sm:$0xff] }
  0x72   :  { %21286 = vst [vmem:[#allocation233_spill] sm:$0xff] %v14247_v24  ;;  %21287 = vst [vmem:[#allocation234_spill] sm:$0xff] %v14252_v26  ;;  %v14262_v25 = vld [vmem:[%s20353_s2 + $0x718] sm:$0xff]  ;;  %v14267_v27 = vld [vmem:[%s20353_s2 + $0x720] sm:$0xff] }
  0x73   :  { %21288 = vst [vmem:[#allocation235_spill] sm:$0xff] %v14257_v29  ;;  %21289 = vst [vmem:[#allocation236_spill] sm:$0xff] %v14262_v25  ;;  %v14272_v24 = vld [vmem:[%s20353_s2 + $0x728] sm:$0xff]  ;;  %v14277_v26 = vld [vmem:[%s20353_s2 + $0x730] sm:$0xff] }
  0x74   :  { %21290 = vst [vmem:[#allocation237_spill] sm:$0xff] %v14267_v27  ;;  %21291 = vst [vmem:[#allocation238_spill] sm:$0xff] %v14272_v24  ;;  %v14282_v29 = vld [vmem:[%s20353_s2 + $0x738] sm:$0xff]  ;;  %v14287_v25 = vld [vmem:[%s20353_s2 + $0x740] sm:$0xff] }
  0x75   :  { %21292 = vst [vmem:[#allocation239_spill] sm:$0xff] %v14277_v26  ;;  %21293 = vst [vmem:[#allocation240_spill] sm:$0xff] %v14282_v29  ;;  %v14292_v27 = vld [vmem:[%s20353_s2 + $0x748] sm:$0xff]  ;;  %v14297_v24 = vld [vmem:[%s20353_s2 + $0x750] sm:$0xff] }
  0x76   :  { %21294 = vst [vmem:[#allocation241_spill] sm:$0xff] %v14287_v25  ;;  %21295 = vst [vmem:[#allocation242_spill] sm:$0xff] %v14292_v27  ;;  %v14302_v26 = vld [vmem:[%s20353_s2 + $0x758] sm:$0xff]  ;;  %v14307_v29 = vld [vmem:[%s20353_s2 + $0x760] sm:$0xff] }
  0x77   :  { %21296 = vst [vmem:[#allocation243_spill] sm:$0xff] %v14297_v24  ;;  %21297 = vst [vmem:[#allocation244_spill] sm:$0xff] %v14302_v26  ;;  %v14312_v25 = vld [vmem:[%s20353_s2 + $0x768] sm:$0xff]  ;;  %v14317_v27 = vld [vmem:[%s20353_s2 + $0x770] sm:$0xff] }
  0x78   :  { %21298 = vst [vmem:[#allocation245_spill] sm:$0xff] %v14307_v29  ;;  %21299 = vst [vmem:[#allocation246_spill] sm:$0xff] %v14312_v25  ;;  %v14322_v24 = vld [vmem:[%s20353_s2 + $0x778] sm:$0xff]  ;;  %v14327_v26 = vld [vmem:[%s20353_s2 + $0x780] sm:$0xff] }
  0x79   :  { %21300 = vst [vmem:[#allocation247_spill] sm:$0xff] %v14317_v27  ;;  %21301 = vst [vmem:[#allocation248_spill] sm:$0xff] %v14322_v24  ;;  %v14332_v29 = vld [vmem:[%s20353_s2 + $0x788] sm:$0xff]  ;;  %v14337_v25 = vld [vmem:[%s20353_s2 + $0x790] sm:$0xff] }
  0x7a   :  { %21302 = vst [vmem:[#allocation249_spill] sm:$0xff] %v14327_v26  ;;  %21303 = vst [vmem:[#allocation250_spill] sm:$0xff] %v14332_v29  ;;  %v14342_v27 = vld [vmem:[%s20353_s2 + $0x798] sm:$0xff]  ;;  %v14347_v24 = vld [vmem:[%s20353_s2 + $0x7a0] sm:$0xff] }
  0x7b   :  { %21304 = vst [vmem:[#allocation251_spill] sm:$0xff] %v14337_v25  ;;  %21305 = vst [vmem:[#allocation252_spill] sm:$0xff] %v14342_v27  ;;  %v14352_v26 = vld [vmem:[%s20353_s2 + $0x7a8] sm:$0xff]  ;;  %v14357_v29 = vld [vmem:[%s20353_s2 + $0x7b0] sm:$0xff] }
  0x7c   :  { %21306 = vst [vmem:[#allocation253_spill] sm:$0xff] %v14347_v24  ;;  %21307 = vst [vmem:[#allocation254_spill] sm:$0xff] %v14352_v26  ;;  %v14362_v25 = vld [vmem:[%s20353_s2 + $0x7b8] sm:$0xff]  ;;  %v14367_v27 = vld [vmem:[%s20353_s2 + $0x7c0] sm:$0xff] }
  0x7d   :  { %21308 = vst [vmem:[#allocation255_spill] sm:$0xff] %v14357_v29  ;;  %21309 = vst [vmem:[#allocation256_spill] sm:$0xff] %v14362_v25  ;;  %v14372_v24 = vld [vmem:[%s20353_s2 + $0x7c8] sm:$0xff]  ;;  %v14377_v26 = vld [vmem:[%s20353_s2 + $0x7d0] sm:$0xff] }
  0x7e   :  { %21310 = vst [vmem:[#allocation257_spill] sm:$0xff] %v14367_v27  ;;  %21311 = vst [vmem:[#allocation258_spill] sm:$0xff] %v14372_v24  ;;  %v14382_v29 = vld [vmem:[%s20353_s2 + $0x7d8] sm:$0xff]  ;;  %v14387_v25 = vld [vmem:[%s20353_s2 + $0x7e0] sm:$0xff] }
  0x7f   :  { %21312 = vst [vmem:[#allocation259_spill] sm:$0xff] %v14377_v26  ;;  %21313 = vst [vmem:[#allocation260_spill] sm:$0xff] %v14382_v29  ;;  %v14392_v27 = vld [vmem:[%s20353_s2 + $0x7e8] sm:$0xff]  ;;  %v14397_v24 = vld [vmem:[%s20353_s2 + $0x7f0] sm:$0xff] }
  0x80   :  { %21314 = vst [vmem:[#allocation261_spill] sm:$0xff] %v14387_v25  ;;  %21315 = vst [vmem:[#allocation262_spill] sm:$0xff] %v14392_v27  ;;  %v14402_v26 = vld [vmem:[%s20353_s2 + $0x7f8] sm:$0xff]  ;;  %v14407_v29 = vld [vmem:[%s20353_s2 + $0x800] sm:$0xff] }
  0x81   :  { %21316 = vst [vmem:[#allocation263_spill] sm:$0xff] %v14397_v24  ;;  %21317 = vst [vmem:[#allocation264_spill] sm:$0xff] %v14402_v26  ;;  %v14412_v25 = vld [vmem:[%s20353_s2 + $0x808] sm:$0xff]  ;;  %v14417_v27 = vld [vmem:[%s20353_s2 + $0x810] sm:$0xff] }
  0x82   :  { %21318 = vst [vmem:[#allocation265_spill] sm:$0xff] %v14407_v29  ;;  %21319 = vst [vmem:[#allocation266_spill] sm:$0xff] %v14412_v25  ;;  %v14422_v24 = vld [vmem:[%s20353_s2 + $0x818] sm:$0xff]  ;;  %v14427_v26 = vld [vmem:[%s20353_s2 + $0x820] sm:$0xff] }
  0x83   :  { %21320 = vst [vmem:[#allocation267_spill] sm:$0xff] %v14417_v27  ;;  %21321 = vst [vmem:[#allocation268_spill] sm:$0xff] %v14422_v24  ;;  %v14432_v29 = vld [vmem:[%s20353_s2 + $0x828] sm:$0xff]  ;;  %v14437_v25 = vld [vmem:[%s20353_s2 + $0x830] sm:$0xff] }
  0x84   :  { %21322 = vst [vmem:[#allocation269_spill] sm:$0xff] %v14427_v26  ;;  %21323 = vst [vmem:[#allocation270_spill] sm:$0xff] %v14432_v29  ;;  %v14442_v27 = vld [vmem:[%s20353_s2 + $0x838] sm:$0xff]  ;;  %v14447_v24 = vld [vmem:[%s20353_s2 + $0x840] sm:$0xff] }
  0x85   :  { %21324 = vst [vmem:[#allocation271_spill] sm:$0xff] %v14437_v25  ;;  %21325 = vst [vmem:[#allocation272_spill] sm:$0xff] %v14442_v27  ;;  %v14452_v26 = vld [vmem:[%s20353_s2 + $0x848] sm:$0xff]  ;;  %v14457_v29 = vld [vmem:[%s20353_s2 + $0x850] sm:$0xff] }
  0x86   :  { %21326 = vst [vmem:[#allocation273_spill] sm:$0xff] %v14447_v24  ;;  %21327 = vst [vmem:[#allocation274_spill] sm:$0xff] %v14452_v26  ;;  %v14462_v25 = vld [vmem:[%s20353_s2 + $0x858] sm:$0xff]  ;;  %v14467_v27 = vld [vmem:[%s20353_s2 + $0x860] sm:$0xff] }
  0x87   :  { %21328 = vst [vmem:[#allocation275_spill] sm:$0xff] %v14457_v29  ;;  %21329 = vst [vmem:[#allocation276_spill] sm:$0xff] %v14462_v25  ;;  %v14472_v24 = vld [vmem:[%s20353_s2 + $0x868] sm:$0xff]  ;;  %v14477_v26 = vld [vmem:[%s20353_s2 + $0x870] sm:$0xff] }
  0x88   :  { %21330 = vst [vmem:[#allocation277_spill] sm:$0xff] %v14467_v27  ;;  %21331 = vst [vmem:[#allocation278_spill] sm:$0xff] %v14472_v24  ;;  %v14482_v29 = vld [vmem:[%s20353_s2 + $0x878] sm:$0xff]  ;;  %v14487_v25 = vld [vmem:[%s20353_s2 + $0x880] sm:$0xff] }
  0x89   :  { %21332 = vst [vmem:[#allocation279_spill] sm:$0xff] %v14477_v26  ;;  %21333 = vst [vmem:[#allocation280_spill] sm:$0xff] %v14482_v29  ;;  %v14492_v27 = vld [vmem:[%s20353_s2 + $0x888] sm:$0xff]  ;;  %v14497_v24 = vld [vmem:[%s20353_s2 + $0x890] sm:$0xff] }
  0x8a   :  { %21334 = vst [vmem:[#allocation281_spill] sm:$0xff] %v14487_v25  ;;  %21335 = vst [vmem:[#allocation282_spill] sm:$0xff] %v14492_v27  ;;  %v14502_v26 = vld [vmem:[%s20353_s2 + $0x898] sm:$0xff]  ;;  %v14507_v29 = vld [vmem:[%s20353_s2 + $0x8a0] sm:$0xff] }
  0x8b   :  { %21336 = vst [vmem:[#allocation283_spill] sm:$0xff] %v14497_v24  ;;  %21337 = vst [vmem:[#allocation284_spill] sm:$0xff] %v14502_v26  ;;  %v14512_v25 = vld [vmem:[%s20353_s2 + $0x8a8] sm:$0xff]  ;;  %v14517_v27 = vld [vmem:[%s20353_s2 + $0x8b0] sm:$0xff] }
  0x8c   :  { %21338 = vst [vmem:[#allocation285_spill] sm:$0xff] %v14507_v29  ;;  %21339 = vst [vmem:[#allocation286_spill] sm:$0xff] %v14512_v25  ;;  %v14522_v24 = vld [vmem:[%s20353_s2 + $0x8b8] sm:$0xff] }
  0x8d   :  { %21340 = vst [vmem:[#allocation287_spill] sm:$0xff] %v14517_v27  ;;  %21341 = vst [vmem:[#allocation288_spill] sm:$0xff] %v14522_v24 }
  0x8e   :  { %632 = vsyncadd [#allocation3], 35840  ;;  %v639_v26 = vld [vmem:[%s20351_s0 + $0x30] sm:$0xff]  ;;  %vm20700_vm0 = vcmask 1043456   ;;  %v637_v25 = vld [vmem:[%s20351_s0 + $0x20] sm:$0xff]  ;;  %v644_v29 = vlaneseq  ;;  %v20587_v28 = vmov 0  }
  0x8f   :  { %v14530_v31 = vpack.c.bf16 %v639_v26, %v639_v26  ;;  %v638_v27 = vld [vmem:[%s20351_s0 + $0x28] sm:$0xff]  ;;  %1455 = vmatprep.mubr.bf16.mxu1 %v20587_v28  ;;  %v635_v30 = vld [vmem:[%s20351_s0 + $0x10] sm:$0xff]  ;;  %v636_v3 = vld [vmem:[%s20351_s0 + $0x18] sm:$0xff]  ;;  %vm20693_vm1 = vcmask 457728   ;;  %v20607_v9 = vmov 0.0  }
  0x90   :  { %v14536_v24 = vpack.c.bf16 %v638_v27, %v637_v25  ;;  %v14544_v2 = vshrl.u32 %v644_v29, 7  ;;  %v14546_v26 = vand.u32 127, %v644_v29  ;;  %v14566_v0 = vpack.c.bf16 %v636_v3, %v635_v30  ;;  %v633_v7 = vld [vmem:[%s20351_s0] sm:$0xff]  ;;  %v634_v6 = vld [vmem:[%s20351_s0 + $0x8] sm:$0xff] }
  0x91   :  { %12873 = vmatprep.subr.msk.bf16.mxu0 %vm20700_vm0, %v14530_v31  ;;  %v14552_v28 = vsel %vm20700_vm0, %v14530_v31, 0  ;;  %v21348_v3 = vmov 0   ;;  %v14593_v14 = vpack.c.bf16 %v634_v6, %v633_v7  ;;  %v12897_v35 = vld [vmem:[%s20352_s1 + $0x20] ss:$16 sps:$4 sm:$0x3f]  }
  0x92   :  { %21342 = vst [vmem:[#allocation289_spill] sm:$0xff] %v14544_v2  ;;  %21343 = vst [vmem:[#allocation290_spill] sm:$0xff] %v14546_v26  ;;  %12794 = vmatpush3.bf16.msra.mxu0 %v14552_v28  ;;  %v14556_v25 = vadd.s32 8, %v14544_v2  ;;  %v682_v27 = vadd.s32 4294967294, %v14544_v2  ;;  %v14560_v1 = vadd.s32 16, %v14544_v2  ;;  %v14563_v29 = vadd.s32 24, %v14544_v2 }
  0x93   :  { %12795 = vmatprep.subr.bf16.mxu0 %v14536_v24  ;;  %v14575_v5 = vadd.s32 32, %v14544_v2  ;;  %v14584_v10 = vadd.s32 40, %v14544_v2  ;;  %v12906_v37 = vld [vmem:[%s20352_s1 + $0xc] ss:$16 sps:$4 sm:$0xff]  }
  0x94   :  { %21344 = vst [vmem:[#allocation291_spill] sm:$0xff] %v14556_v25  ;;  %21345 = vst [vmem:[#allocation292_spill] sm:$0xff] %v14560_v1  ;;  %v683_v4 = vadd.s32 4294967294, %v14556_v25  ;;  %vm689_vm2 = vcmp.eq.s32.totalorder %v14546_v26, %v682_v27  ;;  %vm703_vm3 = vcmp.ge.s32.totalorder %v682_v27, 0  ;;  %vm4835_vm4 = vcmp.ge.s32.totalorder %v14556_v25, 14 }
  0x95   :  { %21346 = vst [vmem:[#allocation293_spill] sm:$0xff] %v14563_v29  ;;  %21347 = vst [vmem:[#allocation294_spill] sm:$0xff] %v14575_v5  ;;  %v4839_v30 = vsel %vm4835_vm4, 1, %v21348_v3  ;;  %vm657_vm6 = vcmp.ge.s32.totalorder %v14563_v29, 28  ;;  %v684_v11 = vadd.s32 4294967294, %v14560_v1  ;;  %v685_v17 = vadd.s32 4294967294, %v14563_v29 }
  0x96   :  { %vm724_vm5 = vmand %vm689_vm2, %vm703_vm3  ;;  %21349 = vst [vmem:[#allocation295_spill] sm:$0xff] %v14584_v10  ;;  %12796 = vmatpush3.bf16.msra.mxu0 %v14536_v24  ;;  %vm690_vm7 = vcmp.eq.s32.totalorder %v14546_v26, %v683_v4  ;;  %v4843_v27 = vmul.u32 14, %v4839_v30  ;;  %v664_v15 = vsel %vm657_vm6, 1, %v21348_v3  ;;  %v14604_v30 = vadd.s32 4294967282, %v14563_v29 }
  0x97   :  { %v14589_v8 = vsel %vm724_vm5, 1.0, %v20607_v9  ;;  %12797 = vmatprep.subr.bf16.mxu0 %v14566_v0  ;;  %v760_v13 = vsel %vm690_vm7, 1.0, %v20607_v9  ;;  %v671_v12 = vmul.u32 28, %v664_v15  ;;  %v686_v6 = vadd.s32 4294967294, %v14575_v5 }
  0x98   :  { %21350 = vst [vmem:[#allocation296_spill] sm:$0xff] %v14589_v8  ;;  %v766_v19 = vpack.c.bf16 %v760_v13, %v14589_v8  ;;  %v14600_v18 = vsub.s32 %v14556_v25, %v4843_v27  ;;  %v687_v7 = vadd.s32 4294967294, %v14584_v10  ;;  %v14612_v9 = vadd.s32 48, %v14544_v2 }
  0x99   :  { %v14607_v16 = vsub.s32 %v14563_v29, %v671_v12  ;;  %vm691_vm8 = vcmp.eq.s32.totalorder %v14546_v26, %v684_v11  ;;  %v4853_v15 = vadd.s32 4294967294, %v14604_v30  ;;  %v770_v12 = vadd.s32 4294967295, %v14544_v2 }
  0x9a   :  { %21351 = vst [vmem:[#allocation297_spill] sm:$0xff] %v14612_v9  ;;  %12798 = vmatpush3.bf16.msra.mxu0 %v14566_v0  ;;  %12801 = vmatprep.mubr.msk.bf16.mxu0 %vm20693_vm1, %v766_v19  ;;  %v4851_v13 = vadd.s32 4294967294, %v14600_v18  ;;  %vm693_vm9 = vcmp.eq.s32.totalorder %v14546_v26, %v686_v6  ;;  %vm694_vm10 = vcmp.eq.s32.totalorder %v14546_v26, %v687_v7  ;;  %v21352_v19 = vmov 0.0  }
  0x9b   :  { %12799 = vmatprep.subr.bf16.mxu0 %v14593_v14  ;;  %v699_v27 = vadd.s32 4294967294, %v14607_v16  ;;  %vm692_vm13 = vcmp.eq.s32.totalorder %v14546_v26, %v685_v17  ;;  %v763_v23 = vsel %vm693_vm9, 1.0, %v21352_v19  ;;  %v14629_v11 = vsel %vm691_vm8, 1.0, %v21352_v19 }
  0x9c   :  { %vm4855_vm11 = vcmp.ge.s32.totalorder %v4851_v13, 0  ;;  %vm4871_vm12 = vcmp.lt.s32.totalorder %v4851_v13, 14  ;;  %21353 = vst [vmem:[#allocation298_spill] sm:$0xff] %v14629_v11  ;;  %v764_v22 = vsel %vm694_vm10, 1.0, %v21352_v19  ;;  %vm4873_vm4 = vcmp.lt.s32.totalorder %v4853_v15, 14 }
  0x9d   :  { %vm4867_vm14 = vmand %vm690_vm7, %vm4855_vm11  ;;  %vm706_vm15 = vcmp.ge.s32.totalorder %v699_v27, 0  ;;  %vm734_vm2 = vcmp.lt.s32.totalorder %v699_v27, 28  ;;  %v688_v6 = vadd.s32 4294967294, %v14612_v9  ;;  %v771_v7 = vadd.s32 4294967295, %v14556_v25 }
  0x9e   :  { %12800 = vmatpush3.bf16.msra.mxu0 %v14593_v14  ;;  %vm4883_vm3 = vmand %vm4867_vm14, %vm4871_vm12  ;;  %vm777_vm5 = vcmp.eq.s32.totalorder %v14546_v26, %v770_v12  ;;  %v768_v13 = vpack.c.bf16 %v764_v22, %v763_v23  ;;  %vm791_vm7 = vcmp.ge.s32.totalorder %v770_v12, 0  ;;  %v4893_v21 = vadd.s32 4294967295, %v14600_v18 }
  0x9f   :  { %v14637_v4 = vsel %vm4883_vm3, 1.0, %v21352_v19  ;;  %vm727_vm6 = vmand %vm692_vm13, %vm706_vm15  ;;  %12874 = vmatprep.subr.msk.bf16.mxu0 %vm20700_vm0, %v14530_v31  ;;  %v773_v57 = vadd.s32 4294967295, %v14563_v29  ;;  %v787_v59 = vadd.s32 4294967295, %v14607_v16  ;;  %v4895_v56 = vadd.s32 4294967295, %v14604_v30 }
  0xa0   :  { %21354 = vst [vmem:[#allocation299_spill] sm:$0xff] %v14637_v4  ;;  %vm755_vm8 = vmand %vm727_vm6, %vm734_vm2  ;;  %vm4897_vm10 = vcmp.ge.s32.totalorder %v4893_v21, 0  ;;  %vm4913_vm11 = vcmp.lt.s32.totalorder %v4893_v21, 14  ;;  %v772_v22 = vadd.s32 4294967295, %v14560_v1  ;;  %vm695_vm12 = vcmp.eq.s32.totalorder %v14546_v26, %v688_v6 }
  0xa1   :  { %v762_v58 = vsel %vm755_vm8, 1.0, %v21352_v19  ;;  %vm4885_vm9 = vmand %vm692_vm13, %vm4873_vm4  ;;  %vm778_vm14 = vcmp.eq.s32.totalorder %v14546_v26, %v771_v7  ;;  %vm780_vm2 = vcmp.eq.s32.totalorder %v14546_v26, %v773_v57  ;;  %vm794_vm3 = vcmp.ge.s32.totalorder %v787_v59, 0 }
  0xa2   :  { %v767_v23 = vpack.c.bf16 %v762_v58, %v14629_v11  ;;  %v14657_v27 = vsel %vm4885_vm9, 1.0, %v21352_v19  ;;  %vm812_vm15 = vmand %vm777_vm5, %vm791_vm7  ;;  %vm4915_vm6 = vcmp.lt.s32.totalorder %v4895_v56, 14  ;;  %v765_v21 = vsel %vm695_vm12, 1.0, %v21352_v19 }
  0xa3   :  { %21355 = vst [vmem:[#allocation300_spill] sm:$0xff] %v14657_v27  ;;  %vm4909_vm13 = vmand %vm778_vm14, %vm4897_vm10  ;;  %v14674_v58 = vsel %vm812_vm15, 1.0, %v21352_v19  ;;  %vm779_vm5 = vcmp.eq.s32.totalorder %v14546_v26, %v772_v22  ;;  %v848_v56 = vsel %vm778_vm14, 1.0, %v21352_v19  ;;  %vm822_vm8 = vcmp.lt.s32.totalorder %v787_v59, 28 }
  0xa4   :  { %12802 = vmatmul.mubr.msk.bf16.vlgmr.msra.gmra.mxu0 %vm20693_vm1, %v767_v23  ;;  %vm4925_vm4 = vmand %vm4909_vm13, %vm4913_vm11  ;;  %21356 = vst [vmem:[#allocation301_spill] sm:$0xff] %v14674_v58  ;;  %v774_v6 = vadd.s32 4294967295, %v14575_v5  ;;  %v769_v22 = vpack.c.bf16 %v765_v21, %v765_v21  ;;  %v14693_v23 = vsel %vm779_vm5, 1.0, %v21352_v19  ;;  %v854_v17 = vpack.c.bf16 %v848_v56, %v14674_v58 }
  0xa5   :  { %12810 = vmatpush3.bf16.msra.mxu0 %v14552_v28  ;;  %12805 = vmatprep.mubr.msk.bf16.mxu0 %vm20693_vm1, %v768_v13  ;;  %v14677_v15 = vsel %vm4925_vm4, 1.0, %v21352_v19  ;;  %vm815_vm7 = vmand %vm780_vm2, %vm794_vm3  ;;  %v775_v13 = vadd.s32 4294967295, %v14584_v10  ;;  %21358 = vst [vmem:[#allocation303_spill] sm:$0xff] %v14693_v23  ;;  %v776_v59 = vadd.s32 4294967295, %v14612_v9  ;;  %vm20690_vm15 = vcmask 1045504  }
  0xa6   :  { %21357 = vst [vmem:[#allocation302_spill] sm:$0xff] %v14677_v15  ;;  %12811 = vmatprep.subr.bf16.mxu0 %v14536_v24  ;;  %vm4927_vm9 = vmand %vm780_vm2, %vm4915_vm6  ;;  %vm781_vm11 = vcmp.eq.s32.totalorder %v14546_v26, %v774_v6  ;;  %vm858_vm13 = vcmp.eq.s32.totalorder %v14546_v26, %v14544_v2  ;;  %vm859_vm2 = vcmp.eq.s32.totalorder %v14546_v26, %v14556_v25  ;;  %vm4935_vm3 = vcmp.ge.s32.totalorder %v14600_v18, 0 }
  0xa7   :  { %v14696_v7 = vsel %vm4927_vm9, 1.0, %v21352_v19  ;;  %vm843_vm10 = vmand %vm815_vm7, %vm822_vm8  ;;  %vm782_vm12 = vcmp.eq.s32.totalorder %v14546_v26, %v775_v13  ;;  %v851_v21 = vsel %vm781_vm11, 1.0, %v21352_v19  ;;  %vm783_vm14 = vcmp.eq.s32.totalorder %v14546_v26, %v776_v59  ;;  %v12885_v59 = vld [vmem:[%s20352_s1 + $0x60] ss:$16 sps:$4 sm:$0x3f]  }
  0xa8   :  { %21359 = vst [vmem:[#allocation304_spill] sm:$0xff] %v14696_v7  ;;  %v850_v57 = vsel %vm843_vm10, 1.0, %v21352_v19  ;;  %v852_v56 = vsel %vm782_vm12, 1.0, %v21352_v19  ;;  %vm4951_vm4 = vcmp.lt.s32.totalorder %v14600_v18, 14  ;;  %vm4947_vm6 = vmand %vm859_vm2, %vm4935_vm3  ;;  %vm860_vm7 = vcmp.eq.s32.totalorder %v14546_v26, %v14560_v1 }
  0xa9   :  { %12812 = vmatpush3.bf16.msra.mxu0 %v14536_v24  ;;  %v855_v6 = vpack.c.bf16 %v850_v57, %v14693_v23  ;;  %v856_v13 = vpack.c.bf16 %v852_v56, %v851_v21  ;;  %v12883_v57 = vld [vmem:[%s20352_s1 + $0x64] ss:$16 sps:$4 sm:$0x3f]   ;;  %v1341_v21 = vsel %vm20690_vm15, %v12885_v59, 0  ;;  %v12894_v59 = vld [vmem:[%s20352_s1 + $0x48] ss:$16 sps:$4 sm:$0xff]   ;;  %vm4963_vm5 = vmand %vm4947_vm6, %vm4951_vm4  ;;  %vm861_vm8 = vcmp.eq.s32.totalorder %v14546_v26, %v14563_v29 }
  0xaa   :  { %12813 = vmatprep.subr.bf16.mxu0 %v14566_v0  ;;  %v12889_v56 = vld [vmem:[%s20352_s1 + $0x6c] ss:$16 sps:$4 sm:$0x3f]   ;;  %vm4953_vm9 = vcmp.lt.s32.totalorder %v14604_v30, 14  ;;  %vm20681_vm11 = vcmask 228352   ;;  %v1543_v32 = vsel %vm20690_vm15, %v12897_v35, 0  ;;  %vm862_vm4 = vcmp.eq.s32.totalorder %v14546_v26, %v14575_v5 }
  0xab   :  { %11136 = vmatprep.subr.msk.bf16.mxu1 %vm20690_vm15, %v12889_v56  ;;  %v12901_v56 = vld [vmem:[%s20352_s1 + $0x2c] ss:$16 sps:$4 sm:$0x3f]   ;;  %vm4965_vm10 = vmand %vm861_vm8, %vm4953_vm9  ;;  %v12898_v35 = vld [vmem:[%s20352_s1] ss:$16 sps:$4 sm:$0xff]   ;;  %vm868_vm12 = vcmp.ge.s32.totalorder %v14607_v16, 0  ;;  %vm863_vm6 = vcmp.eq.s32.totalorder %v14546_v26, %v14584_v10 }
  0xac   :  { %12806 = vmatmul.mubr.msk.bf16.gmra.mxu0 %vm20693_vm1, %v769_v22 }
  0xad   :  { %12814 = vmatpush3.bf16.msra.mxu0 %v14566_v0  ;;  %12817 = vmatprep.mubr.msk.bf16.mxu0 %vm20693_vm1, %v854_v17  ;;  %v853_v17 = vsel %vm783_vm14, 1.0, %v21352_v19  ;;  %vm889_vm14 = vmand %vm861_vm8, %vm868_vm12 }
  0xae   :  { %12815 = vmatprep.subr.bf16.mxu0 %v14593_v14  ;;  %v857_v22 = vpack.c.bf16 %v853_v17, %v853_v17  ;;  %v12888_v17 = vld [vmem:[%s20352_s1 + $0x44] ss:$16 sps:$4 sm:$0xff]  }
  0xb1   :  { %12816 = vmatpush3.bf16.msra.mxu0 %v14593_v14 }
  0xb2   :  { %11131 = vmatprep.subr.msk.bf16.mxu0 %vm20690_vm15, %v12883_v57  ;;  %v12892_v57 = vld [vmem:[%s20352_s1 + $0x4c] ss:$16 sps:$4 sm:$0xff]  }
  0xb4   :  { %12818 = vmatmul.mubr.msk.bf16.vlgmr.msra.gmra.mxu0 %vm20693_vm1, %v855_v6  ;;  %v12891_v6 = vld [vmem:[%s20352_s1 + $0x68] ss:$16 sps:$4 sm:$0x3f]  }
  0xb5   :  { %12821 = vmatprep.mubr.msk.bf16.mxu0 %vm20693_vm1, %v856_v13  ;;  %1365 = vmatpush1.bf16.msra.mxu0 %v1341_v21  ;;  %v12886_v13 = vld [vmem:[%s20352_s1 + $0x40] ss:$16 sps:$4 sm:$0xff]   ;;  %v12895_v21 = vld [vmem:[%s20352_s1 + $0x24] ss:$16 sps:$4 sm:$0x3f]  }
  0xb6   :  { %1366 = vmatprep.subr.bf16.mxu0 %v12888_v17 }
  0xb9   :  { %1367 = vmatpush1.bf16.msra.mxu0 %v12886_v13  ;;  %v14770_v13 = vsel %vm4963_vm5, 1.0, %v21352_v19 }
  0xba   :  { %11149 = vmatprep.subr.msk.bf16.mxu0 %vm20690_vm15, %v12895_v21  ;;  %21361 = vst [vmem:[#allocation306_spill] sm:$0xff] %v14770_v13 }
  0xbc   :  { %12822 = vmatmul.mubr.msk.bf16.gmra.mxu0 %vm20693_vm1, %v857_v22  ;;  %v1347_v22 = vsel %vm20690_vm15, %v12891_v6, 0  ;;  %v14767_v6 = vsel %vm858_vm13, 1.0, %v21352_v19  ;;  %vm896_vm13 = vcmp.lt.s32.totalorder %v14607_v16, 28 }
  0xbd   :  { %1384 = vmatprep.mubr.bf16.mxu0 %v21348_v3  ;;  %1436 = vmatpush1.bf16.msra.mxu1 %v1347_v22  ;;  %21360 = vst [vmem:[#allocation305_spill] sm:$0xff] %v14767_v6  ;;  %v14783_v22 = vsel %vm860_vm7, 1.0, %v21352_v19  ;;  %vm917_vm3 = vmand %vm889_vm14, %vm896_vm13 }
  0xbe   :  { %1437 = vmatprep.subr.bf16.mxu1 %v12892_v57  ;;  %21362 = vst [vmem:[#allocation307_spill] sm:$0xff] %v14783_v22  ;;  %v14786_v57 = vsel %vm4965_vm10, 1.0, %v21352_v19 }
  0xbf   :  { %21363 = vst [vmem:[#allocation308_spill] sm:$0xff] %v14786_v57 }
  0xc1   :  { %1438 = vmatpush1.bf16.msra.mxu1 %v12894_v59  ;;  %v12903_v59 = vld [vmem:[%s20352_s1 + $0x28] ss:$16 sps:$4 sm:$0x3f]  }
  0xc2   :  { %11154 = vmatprep.subr.msk.bf16.mxu1 %vm20690_vm15, %v12901_v56  ;;  %v1549_v38 = vsel %vm20690_vm15, %v12903_v59, 0 }
 0x164   :  { %v12803_v21 = vpop.f32.mrf.mxu0 }
 0x166   :  { %v1159_v56 = vpop.f32.mrf.mxu0 }
 0x168   :  { %v12804_v17 = vpop.f32.mrf.mxu0 }
 0x16a   :  { %v1162_v20 = vpop.f32.mrf.mxu0 }
 0x16c   :  { %v14790_v12 = vpop.f32.mrf.mxu0 }
 0x16e   :  { %v14792_v13 = vpop.f32.mrf.mxu0 }
 0x170   :  { %v12808_v61 = vpop.f32.mrf.mxu0 }
 0x171   :  { %v12900_v61 = vld [vmem:[%s20352_s1 + $0x4] ss:$16 sps:$4 sm:$0xff]  }
 0x172   :  { %v1178_v63 = vpop.f32.mrf.mxu0 }
 0x174   :  { %v12819_v60 = vpop.f32.mrf.mxu0 }
 0x176   :  { %v1247_v62 = vpop.f32.mrf.mxu0 }
 0x178   :  { %v12820_v34 = vpop.f32.mrf.mxu0 }
 0x17a   :  { %v1250_v57 = vpop.f32.mrf.mxu0 }
 0x17b   :  { %v1277_v33 = vpack.c.bf16 %v1250_v57, %v1247_v62  ;;  %v1278_v57 = vpack.c.bf16 %v12820_v34, %v12819_v60 }
 0x17c   :  { %v12823_v39 = vpop.f32.mrf.mxu0 }
 0x17d   :  { %11132 = vmatmul.mubr.msk.bf16.vlgmr.msra.gmra.mxu0 %vm20681_vm11, %v1277_v33  ;;  %11137 = vmatmul.mubr.msk.bf16.vlgmr.msra.gmra.mxu1 %vm20681_vm11, %v1277_v33  ;;  %v12904_v33 = vld [vmem:[%s20352_s1 + $0x8] ss:$16 sps:$4 sm:$0xff]   ;;  %v1280_v34 = vpack.c.bf16 %v12823_v39, %v12823_v39  ;;  %v922_v39 = vsel %vm859_vm2, 1.0, %v21352_v19  ;;  %vm864_vm2 = vcmp.eq.s32.totalorder %v14546_v26, %v14612_v9 }
 0x17e   :  { %1567 = vmatpush1.bf16.msra.mxu0 %v1543_v32  ;;  %v1263_v36 = vpop.f32.mrf.mxu0  ;;  %1394 = vmatprep.mubr.bf16.mxu0 %v21348_v3  ;;  %v928_v60 = vpack.c.bf16 %v922_v39, %v14767_v6  ;;  %v932_v39 = vadd.s32 1, %v14544_v2 }
 0x17f   :  { %1465 = vmatprep.mubr.bf16.mxu1 %v21348_v3  ;;  %1568 = vmatprep.subr.bf16.mxu0 %v12900_v61 }
 0x180   :  { %v12824_v62 = vpop.f32.mrf.mxu0  ;;  %1638 = vmatpush1.bf16.msra.mxu1 %v1549_v38  ;;  %vm939_vm5 = vcmp.eq.s32.totalorder %v14546_v26, %v932_v39 }
 0x181   :  { %1639 = vmatprep.subr.bf16.mxu1 %v12906_v37  ;;  %v1189_v37 = vpack.c.bf16 %v1162_v20, %v1159_v56  ;;  %v1191_v20 = vpack.c.bf16 %v1178_v63, %v14792_v13  ;;  %v1192_v63 = vpack.c.bf16 %v14790_v12, %v14790_v12  ;;  %v924_v13 = vsel %vm917_vm3, 1.0, %v21352_v19  ;;  %v12909_v62 = vld [vmem:[%s20352_s1 + $0xa0] ss:$16 sps:$4 sm:$0x3f]  }
 0x182   :  { %1569 = vmatpush1.bf16.msra.mxu0 %v12898_v35  ;;  %v1266_v32 = vpop.f32.mrf.mxu0  ;;  %v926_v12 = vsel %vm863_vm6, 1.0, %v21352_v19  ;;  %v929_v59 = vpack.c.bf16 %v924_v13, %v14783_v22  ;;  %v927_v56 = vsel %vm864_vm2, 1.0, %v21352_v19  ;;  %v12907_v35 = vld [vmem:[%s20352_s1 + $0xa4] ss:$16 sps:$4 sm:$0x3f]   ;;  %v934_v13 = vadd.s32 1, %v14560_v1 }
 0x183   :  { %12875 = vmatprep.subr.msk.bf16.mxu0 %vm20700_vm0, %v14530_v31  ;;  %v1279_v38 = vpack.c.bf16 %v1266_v32, %v1263_v36  ;;  %v1190_v36 = vpack.c.bf16 %v12804_v17, %v12803_v21  ;;  %v925_v17 = vsel %vm862_vm4, 1.0, %v21352_v19  ;;  %v931_v61 = vpack.c.bf16 %v927_v56, %v927_v56  ;;  %v12912_v32 = vld [vmem:[%s20352_s1 + $0x84] ss:$16 sps:$4 sm:$0xff]  }
 0x184   :  { %1640 = vmatpush1.bf16.msra.mxu1 %v12904_v33  ;;  %v930_v21 = vpack.c.bf16 %v926_v12, %v925_v17  ;;  %v1834_v33 = vsel %vm20690_vm15, %v12909_v62, 0  ;;  %v14926_v17 = vsel %vm939_vm5, 1.0, %v21352_v19  ;;  %v4975_v56 = vadd.s32 1, %v14604_v30 }
 0x185   :  { %11133 = vmatmul.mubr.msk.bf16.gmra.mxu0 %vm20681_vm11, %v1278_v57  ;;  %11138 = vmatmul.mubr.msk.bf16.gmra.mxu1 %vm20681_vm11, %v1278_v57  ;;  %v12910_v57 = vld [vmem:[%s20352_s1 + $0x80] ss:$16 sps:$4 sm:$0xff]   ;;  %21364 = vst [vmem:[#allocation309_spill] sm:$0xff] %v14926_v17  ;;  %vm941_vm14 = vcmp.eq.s32.totalorder %v14546_v26, %v934_v13 }
 0x186   :  { %1404 = vmatprep.mubr.bf16.mxu0 %v21348_v3  ;;  %1475 = vmatprep.mubr.bf16.mxu1 %v21348_v3  ;;  %vm4995_vm3 = vcmp.lt.s32.totalorder %v4975_v56, 14 }
 0x187   :  { %11179 = vmatprep.subr.msk.bf16.mxu1 %vm20690_vm15, %v12907_v35 }
 0x18d   :  { %11134 = vmatmul.mubr.msk.bf16.gmra.mxu0 %vm20681_vm11, %v1279_v38  ;;  %11139 = vmatmul.mubr.msk.bf16.gmra.mxu1 %vm20681_vm11, %v1279_v38  ;;  %v12913_v38 = vld [vmem:[%s20352_s1 + $0xac] ss:$16 sps:$4 sm:$0x3f]  }
 0x18e   :  { %1414 = vmatprep.mubr.bf16.mxu0 %v21348_v3  ;;  %1485 = vmatprep.mubr.bf16.mxu1 %v21348_v3 }
 0x195   :  { %11135 = vmatmul.mubr.msk.bf16.gmra.mxu0 %vm20681_vm11, %v1280_v34  ;;  %11140 = vmatmul.mubr.msk.bf16.gmra.mxu1 %vm20681_vm11, %v1280_v34  ;;  %v12915_v34 = vld [vmem:[%s20352_s1 + $0xa8] ss:$16 sps:$4 sm:$0x3f]  }
 0x196   :  { %1586 = vmatprep.mubr.bf16.mxu0 %v21348_v3  ;;  %1657 = vmatprep.mubr.bf16.mxu1 %v21348_v3 }
 0x19d   :  { %11150 = vmatmul.mubr.msk.bf16.vlgmr.msra.gmra.mxu0 %vm20681_vm11, %v1189_v37  ;;  %11155 = vmatmul.mubr.msk.bf16.vlgmr.msra.gmra.mxu1 %vm20681_vm11, %v1189_v37  ;;  %v1840_v37 = vsel %vm20690_vm15, %v12915_v34, 0 }
 0x19e   :  { %12826 = vmatpush3.bf16.msra.mxu0 %v14552_v28  ;;  %1596 = vmatprep.mubr.bf16.mxu0 %v21348_v3 }
 0x19f   :  { %1667 = vmatprep.mubr.bf16.mxu1 %v21348_v3  ;;  %12827 = vmatprep.subr.bf16.mxu0 %v14536_v24 }
 0x1a0   :  { %1858 = vmatpush1.bf16.msra.mxu1 %v1834_v33 }
 0x1a1   :  { %1859 = vmatprep.subr.bf16.mxu1 %v12912_v32 }
 0x1a2   :  { %12828 = vmatpush3.bf16.msra.mxu0 %v14536_v24 }
 0x1a3   :  { %12829 = vmatprep.subr.bf16.mxu0 %v14566_v0 }
 0x1a4   :  { %1860 = vmatpush1.bf16.msra.mxu1 %v12910_v57 }
 0x1a5   :  { %11151 = vmatmul.mubr.msk.bf16.gmra.mxu0 %vm20681_vm11, %v1190_v36  ;;  %11156 = vmatmul.mubr.msk.bf16.gmra.mxu1 %vm20681_vm11, %v1190_v36  ;;  %v12918_v36 = vld [vmem:[%s20352_s1 + $0x8c] ss:$16 sps:$4 sm:$0xff]  }
 0x1a6   :  { %1606 = vmatprep.mubr.bf16.mxu0 %v21348_v3  ;;  %1677 = vmatprep.mubr.bf16.mxu1 %v21348_v3 }
 0x1a7   :  { %12830 = vmatpush3.bf16.msra.mxu0 %v14566_v0  ;;  %12876 = vmatprep.subr.msk.bf16.mxu1 %vm20700_vm0, %v14530_v31 }
 0x1a8   :  { %12831 = vmatprep.subr.bf16.mxu0 %v14593_v14 }
 0x1ab   :  { %12832 = vmatpush3.bf16.msra.mxu0 %v14593_v14 }
 0x1ac   :  { %11184 = vmatprep.subr.msk.bf16.mxu0 %vm20690_vm15, %v12913_v38 }
 0x1ad   :  { %11152 = vmatmul.mubr.msk.bf16.gmra.mxu0 %vm20681_vm11, %v1191_v20  ;;  %11157 = vmatmul.mubr.msk.bf16.gmra.mxu1 %vm20681_vm11, %v1191_v20  ;;  %v12916_v20 = vld [vmem:[%s20352_s1 + $0x88] ss:$16 sps:$4 sm:$0xff]  }
 0x1ae   :  { %1616 = vmatprep.mubr.bf16.mxu0 %v21348_v3  ;;  %1687 = vmatprep.mubr.bf16.mxu1 %v21348_v3 }
 0x1b5   :  { %11153 = vmatmul.mubr.msk.bf16.gmra.mxu0 %vm20681_vm11, %v1192_v63  ;;  %11158 = vmatmul.mubr.msk.bf16.gmra.mxu1 %vm20681_vm11, %v1192_v63  ;;  %v4973_v63 = vadd.s32 1, %v14600_v18 }
 0x1b6   :  { %12833 = vmatprep.mubr.msk.bf16.mxu0 %vm20693_vm1, %v928_v60  ;;  %1877 = vmatprep.mubr.bf16.mxu1 %v21348_v3  ;;  %v14915_v60 = vadd.s32 1, %v14556_v25 }
 0x1b7   :  { %vm4977_vm8 = vcmp.ge.s32.totalorder %v4973_v63, 0  ;;  %vm4993_vm9 = vcmp.lt.s32.totalorder %v4973_v63, 14 }
 0x1b8   :  { %vm940_vm7 = vcmp.eq.s32.totalorder %v14546_v26, %v14915_v60  ;;  %v938_v60 = vadd.s32 1, %v14612_v9 }
 0x1b9   :  { %vm4989_vm10 = vmand %vm940_vm7, %vm4977_vm8 }
 0x1ba   :  { %vm5005_vm12 = vmand %vm4989_vm10, %vm4993_vm9  ;;  %vm945_vm10 = vcmp.eq.s32.totalorder %v14546_v26, %v938_v60  ;;  %v12927_v60 = vld [vmem:[%s20352_s1 + $0xe8] ss:$16 sps:$4 sm:$0x3f]  }
 0x1bb   :  { %v14929_v12 = vsel %vm5005_vm12, 1.0, %v21352_v19 }
 0x1bc   :  { %21365 = vst [vmem:[#allocation310_spill] sm:$0xff] %v14929_v12 }
 0x1bd   :  { %12834 = vmatmul.mubr.msk.bf16.vlgmr.msra.gmra.mxu0 %vm20693_vm1, %v929_v59  ;;  %v14932_v59 = vadd.s32 1, %v14563_v29 }
 0x1be   :  { %12837 = vmatprep.mubr.msk.bf16.mxu0 %vm20693_vm1, %v930_v21  ;;  %1929 = vmatpush1.bf16.msra.mxu0 %v1840_v37 }
 0x1bf   :  { %1930 = vmatprep.subr.bf16.mxu0 %v12918_v36  ;;  %vm942_vm13 = vcmp.eq.s32.totalorder %v14546_v26, %v14932_v59 }
 0x1c0   :  { %vm5007_vm4 = vmand %vm942_vm13, %vm4995_vm3 }
 0x1c1   :  { %v14947_v35 = vsel %vm5007_vm4, 1.0, %v21352_v19 }
 0x1c2   :  { %1931 = vmatpush1.bf16.msra.mxu0 %v12916_v20  ;;  %21367 = vst [vmem:[#allocation312_spill] sm:$0xff] %v14947_v35 }
 0x1c5   :  { %12838 = vmatmul.mubr.msk.bf16.gmra.mxu0 %vm20693_vm1, %v931_v61  ;;  %v14944_v61 = vsel %vm941_vm14, 1.0, %v21352_v19 }
 0x1c6   :  { %1948 = vmatprep.mubr.bf16.mxu0 %v21348_v3  ;;  %21366 = vst [vmem:[#allocation311_spill] sm:$0xff] %v14944_v61 }
 0x23d   :  { %v1386_v33 = vpop.f32.mrf.mxu0  ;;  %v1457_v57 = vpop.f32.mrf.mxu1 }
 0x23f   :  { %v14951_v32 = vpop.f32.mrf.mxu0  ;;  %v14953_v38 = vpop.f32.mrf.mxu1 }
 0x240   :  { %21368 = vst [vmem:[#allocation313_spill] sm:$0xff] %v14953_v38 }
 0x241   :  { %v1390_v34 = vpop.f32.mrf.mxu0  ;;  %v1461_v37 = vpop.f32.mrf.mxu1 }
 0x243   :  { %v1392_v36 = vpop.f32.mrf.mxu0  ;;  %v1463_v20 = vpop.f32.mrf.mxu1 }
 0x245   :  { %v1396_v39 = vpop.f32.mrf.mxu0  ;;  %v1467_v63 = vpop.f32.mrf.mxu1 }
 0x247   :  { %v14955_v13 = vpop.f32.mrf.mxu0  ;;  %v14957_v56 = vpop.f32.mrf.mxu1 }
 0x248   :  { %21369 = vst [vmem:[#allocation314_spill] sm:$0xff] %v14957_v56 }
 0x249   :  { %v1400_v21 = vpop.f32.mrf.mxu0  ;;  %v1471_v12 = vpop.f32.mrf.mxu1 }
 0x24b   :  { %v1402_v22 = vpop.f32.mrf.mxu0  ;;  %v1473_v62 = vpop.f32.mrf.mxu1 }
 0x24d   :  { %v1406_v35 = vpop.f32.mrf.mxu0  ;;  %v1477_v6 = vpop.f32.mrf.mxu1 }
 0x24f   :  { %v14959_v11 = vpop.f32.mrf.mxu0  ;;  %v14961_v27 = vpop.f32.mrf.mxu1 }
 0x250   :  { %21370 = vst [vmem:[#allocation315_spill] sm:$0xff] %v14961_v27 }
 0x251   :  { %v1410_v23 = vpop.f32.mrf.mxu0  ;;  %v1481_v7 = vpop.f32.mrf.mxu1 }
 0x253   :  { %v1412_v43 = vpop.f32.mrf.mxu0  ;;  %v1483_v42 = vpop.f32.mrf.mxu1 }
 0x255   :  { %v1416_v41 = vpop.f32.mrf.mxu0  ;;  %v1487_v40 = vpop.f32.mrf.mxu1 }
 0x257   :  { %v14963_v47 = vpop.f32.mrf.mxu0  ;;  %v14965_v46 = vpop.f32.mrf.mxu1 }
 0x258   :  { %21371 = vst [vmem:[#allocation316_spill] sm:$0xff] %v14963_v47  ;;  %21372 = vst [vmem:[#allocation317_spill] sm:$0xff] %v14965_v46 }
 0x259   :  { %v1420_v45 = vpop.f32.mrf.mxu0  ;;  %v1491_v44 = vpop.f32.mrf.mxu1 }
 0x25b   :  { %v1421_v8 = vpop.f32.mrf.mxu0  ;;  %v1492_v4 = vpop.f32.mrf.mxu1 }
 0x25d   :  { %v1588_v58 = vpop.f32.mrf.mxu0  ;;  %v1659_v15 = vpop.f32.mrf.mxu1 }
 0x25e   :  { %v14967_v51 = vadd.f32 %v1588_v58, %v1386_v33  ;;  %v14969_v50 = vadd.f32 %v1659_v15, %v1457_v57 }
 0x25f   :  { %v14971_v49 = vpop.f32.mrf.mxu0  ;;  %v14973_v48 = vpop.f32.mrf.mxu1 }
 0x260   :  { %21373 = vst [vmem:[#allocation318_spill] sm:$0xff] %v14973_v48 }
 0x261   :  { %v1592_v55 = vpop.f32.mrf.mxu0  ;;  %v1663_v54 = vpop.f32.mrf.mxu1 }
 0x262   :  { %v14975_v53 = vadd.f32 %v1592_v55, %v1390_v34  ;;  %v14977_v52 = vadd.f32 %v1663_v54, %v1461_v37 }
 0x263   :  { %v1594_v45 = vpop.f32.mrf.mxu0  ;;  %v1665_v44 = vpop.f32.mrf.mxu1 }
 0x264   :  { %v14979_v8 = vadd.f32 %v1594_v45, %v1392_v36  ;;  %v14981_v4 = vadd.f32 %v1665_v44, %v1463_v20 }
 0x265   :  { %v1598_v58 = vpop.f32.mrf.mxu0  ;;  %v1669_v33 = vpop.f32.mrf.mxu1 }
 0x266   :  { %v14983_v15 = vadd.f32 %v1598_v58, %v1396_v39  ;;  %v14985_v57 = vadd.f32 %v1669_v33, %v1467_v63 }
 0x267   :  { %v14987_v27 = vpop.f32.mrf.mxu0  ;;  %v14989_v56 = vpop.f32.mrf.mxu1 }
 0x268   :  { %21374 = vst [vmem:[#allocation319_spill] sm:$0xff] %v14989_v56 }
 0x269   :  { %v1602_v55 = vpop.f32.mrf.mxu0  ;;  %v1673_v34 = vpop.f32.mrf.mxu1 }
 0x26a   :  { %v14991_v54 = vadd.f32 %v1602_v55, %v1400_v21  ;;  %v14993_v37 = vadd.f32 %v1673_v34, %v1471_v12 }
 0x26b   :  { %v1604_v36 = vpop.f32.mrf.mxu0  ;;  %v1675_v45 = vpop.f32.mrf.mxu1 }
 0x26c   :  { %v14995_v20 = vadd.f32 %v1604_v36, %v1402_v22  ;;  %v14997_v44 = vadd.f32 %v1675_v45, %v1473_v62 }
 0x26d   :  { %v1608_v39 = vpop.f32.mrf.mxu0  ;;  %v1679_v58 = vpop.f32.mrf.mxu1 }
 0x26e   :  { %v14999_v63 = vadd.f32 %v1608_v39, %v1406_v35  ;;  %v15001_v33 = vadd.f32 %v1679_v58, %v1477_v6 }
 0x26f   :  { %v15003_v48 = vpop.f32.mrf.mxu0  ;;  %v15005_v56 = vpop.f32.mrf.mxu1 }
 0x270   :  { %21375 = vst [vmem:[#allocation320_spill] sm:$0xff] %v15005_v56 }
 0x271   :  { %v1612_v21 = vpop.f32.mrf.mxu0  ;;  %v1683_v55 = vpop.f32.mrf.mxu1 }
 0x272   :  { %v15007_v12 = vadd.f32 %v1612_v21, %v1410_v23  ;;  %v15009_v34 = vadd.f32 %v1683_v55, %v1481_v7 }
 0x273   :  { %v1614_v22 = vpop.f32.mrf.mxu0  ;;  %v1685_v36 = vpop.f32.mrf.mxu1 }
 0x274   :  { %v15011_v62 = vadd.f32 %v1614_v22, %v1412_v43  ;;  %v15013_v45 = vadd.f32 %v1685_v36, %v1483_v42 }
 0x275   :  { %v1618_v35 = vpop.f32.mrf.mxu0  ;;  %v1689_v39 = vpop.f32.mrf.mxu1 }
 0x276   :  { %v15015_v6 = vadd.f32 %v1618_v35, %v1416_v41  ;;  %v15017_v58 = vadd.f32 %v1689_v39, %v1487_v40  ;;  %v949_v39 = vadd.s32 1, %v14607_v16 }
 0x277   :  { %v15019_v38 = vpop.f32.mrf.mxu0  ;;  %v15021_v56 = vpop.f32.mrf.mxu1 }
 0x278   :  { %vm956_vm6 = vcmp.ge.s32.totalorder %v949_v39, 0  ;;  %vm984_vm5 = vcmp.lt.s32.totalorder %v949_v39, 28 }
 0x279   :  { %v1622_v23 = vpop.f32.mrf.mxu0  ;;  %v1693_v21 = vpop.f32.mrf.mxu1  ;;  %vm977_vm2 = vmand %vm942_vm13, %vm956_vm6 }
 0x27a   :  { %v936_v21 = vadd.s32 1, %v14575_v5  ;;  %vm1005_vm8 = vmand %vm977_vm2, %vm984_vm5 }
 0x27b   :  { %v1623_v7 = vpop.f32.mrf.mxu0  ;;  %v1694_v55 = vpop.f32.mrf.mxu1 }
 0x27c   :  { %v937_v7 = vadd.s32 1, %v14584_v10  ;;  %v15053_v55 = vadd.s32 4294967268, %v14612_v9  ;;  %vm943_vm9 = vcmp.eq.s32.totalorder %v14546_v26, %v936_v21 }
 0x27d   :  { %v12835_v46 = vpop.f32.mrf.mxu0 }
 0x27e   :  { %v952_v59 = vadd.s32 1, %v15053_v55 }
 0x27f   :  { %v1742_v47 = vpop.f32.mrf.mxu0 }
 0x280   :  { %vm987_vm12 = vcmp.lt.s32.totalorder %v952_v59, 28  ;;  %v2159_v59 = vsel %vm20690_vm15, %v12927_v60, 0  ;;  %v1591_v60 = vadd.f32 %v14971_v49, %v14951_v32 }
 0x281   :  { %v12836_v43 = vpop.f32.mrf.mxu0  ;;  %vm1008_vm14 = vmand %vm945_vm10, %vm987_vm12 }
 0x282   :  { %v1773_v35 = vpack.c.bf16 %v12836_v43, %v12835_v46  ;;  %v1010_v46 = vsel %vm940_vm7, 1.0, %v21352_v19  ;;  %vm944_vm7 = vcmp.eq.s32.totalorder %v14546_v26, %v937_v7  ;;  %v12922_v7 = vld [vmem:[%s20352_s1 + $0xc0] ss:$16 sps:$4 sm:$0xff]  }
 0x283   :  { %v1745_v22 = vpop.f32.mrf.mxu0  ;;  %v1016_v43 = vpack.c.bf16 %v1010_v46, %v14926_v17  ;;  %v12921_v46 = vld [vmem:[%s20352_s1 + $0xe0] ss:$16 sps:$4 sm:$0x3f]  }
 0x284   :  { %v1772_v42 = vpack.c.bf16 %v1745_v22, %v1742_v47  ;;  %v2153_v21 = vsel %vm20690_vm15, %v12921_v46, 0  ;;  %v5017_v46 = vadd.s32 2, %v14604_v30 }
 0x285   :  { %v12839_v36 = vpop.f32.mrf.mxu0 }
 0x286   :  { %11180 = vmatmul.mubr.msk.bf16.vlgmr.msra.gmra.mxu1 %vm20681_vm11, %v1772_v42  ;;  %11185 = vmatmul.mubr.msk.bf16.vlgmr.msra.gmra.mxu0 %vm20681_vm11, %v1772_v42  ;;  %v1775_v22 = vpack.c.bf16 %v12839_v36, %v12839_v36  ;;  %v1012_v42 = vsel %vm1005_vm8, 1.0, %v21352_v19  ;;  %v1013_v36 = vsel %vm943_vm9, 1.0, %v21352_v19 }
 0x287   :  { %12842 = vmatpush3.bf16.msra.mxu1 %v14552_v28  ;;  %v1758_v40 = vpop.f32.mrf.mxu0  ;;  %1887 = vmatprep.mubr.bf16.mxu1 %v21348_v3 }
 0x288   :  { %1958 = vmatprep.mubr.bf16.mxu0 %v21348_v3  ;;  %12843 = vmatprep.subr.bf16.mxu1 %v14536_v24 }
 0x289   :  { %v12840_v41 = vpop.f32.mrf.mxu0 }
 0x28a   :  { %v1017_v41 = vpack.c.bf16 %v1012_v42, %v14944_v61  ;;  %v12930_v42 = vld [vmem:[%s20352_s1 + $0xcc] ss:$16 sps:$4 sm:$0xff]  }
 0x28b   :  { %12844 = vmatpush3.bf16.msra.mxu1 %v14536_v24  ;;  %v1761_v47 = vpop.f32.mrf.mxu0 }
 0x28c   :  { %12845 = vmatprep.subr.bf16.mxu1 %v14566_v0  ;;  %v1774_v23 = vpack.c.bf16 %v1761_v47, %v1758_v40  ;;  %v1014_v40 = vsel %vm944_vm7, 1.0, %v21352_v19  ;;  %v1015_v47 = vsel %vm1008_vm14, 1.0, %v21352_v19  ;;  %vm5037_vm7 = vcmp.lt.s32.totalorder %v5017_v46, 14 }
 0x28d   :  { %v1019_v39 = vpack.c.bf16 %v1015_v47, %v1015_v47 }
 0x28e   :  { %11181 = vmatmul.mubr.msk.bf16.gmra.mxu1 %vm20681_vm11, %v1773_v35  ;;  %11186 = vmatmul.mubr.msk.bf16.gmra.mxu0 %vm20681_vm11, %v1773_v35  ;;  %v1018_v35 = vpack.c.bf16 %v1014_v40, %v1013_v36  ;;  %v1020_v36 = vadd.s32 2, %v14544_v2  ;;  %v15106_v40 = vadd.s32 2, %v14556_v25 }
 0x28f   :  { %1897 = vmatprep.mubr.bf16.mxu1 %v21348_v3  ;;  %1968 = vmatprep.mubr.bf16.mxu0 %v21348_v3 }
 0x290   :  { %12846 = vmatpush3.bf16.msra.mxu1 %v14566_v0  ;;  %vm1027_vm13 = vcmp.eq.s32.totalorder %v14546_v26, %v1020_v36  ;;  %vm1028_vm3 = vcmp.eq.s32.totalorder %v14546_v26, %v15106_v40  ;;  %v1026_v40 = vadd.s32 2, %v14612_v9 }
 0x291   :  { %12847 = vmatprep.subr.bf16.mxu1 %v14593_v14  ;;  %v15117_v47 = vsel %vm1027_vm13, 1.0, %v21352_v19 }
 0x292   :  { %21376 = vst [vmem:[#allocation321_spill] sm:$0xff] %v15117_v47 }
 0x294   :  { %12848 = vmatpush3.bf16.msra.mxu1 %v14593_v14 }
 0x296   :  { %11182 = vmatmul.mubr.msk.bf16.gmra.mxu1 %vm20681_vm11, %v1774_v23  ;;  %11187 = vmatmul.mubr.msk.bf16.gmra.mxu0 %vm20681_vm11, %v1774_v23  ;;  %v12919_v23 = vld [vmem:[%s20352_s1 + $0xe4] ss:$16 sps:$4 sm:$0x3f]  }
 0x297   :  { %1907 = vmatprep.mubr.bf16.mxu1 %v21348_v3  ;;  %1978 = vmatprep.mubr.bf16.mxu0 %v21348_v3 }
 0x298   :  { %11209 = vmatprep.subr.msk.bf16.mxu0 %vm20690_vm15, %v12919_v23 }
 0x299   :  { %2177 = vmatpush1.bf16.msra.mxu0 %v2153_v21 }
 0x29e   :  { %11183 = vmatmul.mubr.msk.bf16.gmra.mxu1 %vm20681_vm11, %v1775_v22  ;;  %11188 = vmatmul.mubr.msk.bf16.gmra.mxu0 %vm20681_vm11, %v1775_v22  ;;  %v12925_v22 = vld [vmem:[%s20352_s1 + $0xec] ss:$16 sps:$4 sm:$0x3f]  }
 0x29f   :  { %12849 = vmatprep.mubr.msk.bf16.mxu1 %vm20693_vm1, %v1016_v43  ;;  %2196 = vmatprep.mubr.bf16.mxu0 %v21348_v3  ;;  %v12924_v43 = vld [vmem:[%s20352_s1 + $0xc4] ss:$16 sps:$4 sm:$0xff]  }
 0x2a0   :  { %2178 = vmatprep.subr.bf16.mxu0 %v12924_v43  ;;  %11214 = vmatprep.subr.msk.bf16.mxu1 %vm20690_vm15, %v12925_v22 }
 0x2a1   :  { %2179 = vmatpush1.bf16.msra.mxu0 %v12922_v7 }
 0x2a2   :  { %12877 = vmatprep.subr.msk.bf16.mxu0 %vm20700_vm0, %v14530_v31  ;;  %v12928_v31 = vld [vmem:[%s20352_s1 + $0xc8] ss:$16 sps:$4 sm:$0xff]  }
 0x2a6   :  { %12850 = vmatmul.mubr.msk.bf16.vlgmr.msra.gmra.mxu1 %vm20693_vm1, %v1017_v41  ;;  %v5015_v41 = vadd.s32 2, %v14600_v18  ;;  %v15123_v18 = vadd.s32 2, %v14563_v29 }
 0x2a7   :  { %12853 = vmatprep.mubr.msk.bf16.mxu1 %vm20693_vm1, %v1018_v35  ;;  %2248 = vmatpush1.bf16.msra.mxu1 %v2159_v59  ;;  %v1022_v35 = vadd.s32 2, %v14560_v1 }
 0x2a8   :  { %2249 = vmatprep.subr.bf16.mxu1 %v12930_v42  ;;  %vm5019_vm4 = vcmp.ge.s32.totalorder %v5015_v41, 0  ;;  %vm5035_vm6 = vcmp.lt.s32.totalorder %v5015_v41, 14  ;;  %vm1030_vm9 = vcmp.eq.s32.totalorder %v14546_v26, %v15123_v18 }
 0x2a9   :  { %vm5031_vm2 = vmand %vm1028_vm3, %vm5019_vm4  ;;  %vm1029_vm8 = vcmp.eq.s32.totalorder %v14546_v26, %v1022_v35 }
 0x2aa   :  { %vm5047_vm5 = vmand %vm5031_vm2, %vm5035_vm6  ;;  %v15135_v21 = vsel %vm1029_vm8, 1.0, %v21352_v19 }
 0x2ab   :  { %2250 = vmatpush1.bf16.msra.mxu1 %v12928_v31  ;;  %vm5049_vm10 = vmand %vm1030_vm9, %vm5037_vm7  ;;  %21378 = vst [vmem:[#allocation323_spill] sm:$0xff] %v15135_v21 }
 0x2ac   :  { %v15138_v7 = vsel %vm5049_vm10, 1.0, %v21352_v19 }
 0x2ad   :  { %21379 = vst [vmem:[#allocation324_spill] sm:$0xff] %v15138_v7  ;;  %v21381_v7 = vld [vmem:[#allocation317_spill] sm:$0xff] }
 0x2ae   :  { %12854 = vmatmul.mubr.msk.bf16.gmra.mxu1 %vm20693_vm1, %v1019_v39  ;;  %v15120_v39 = vsel %vm5047_vm5, 1.0, %v21352_v19 }
 0x2af   :  { %2267 = vmatprep.mubr.bf16.mxu1 %v21348_v3  ;;  %21377 = vst [vmem:[#allocation322_spill] sm:$0xff] %v15120_v39 }
 0x346   :  { %v1879_v30 = vpop.f32.mrf.mxu1  ;;  %v1950_v22 = vpop.f32.mrf.mxu0 }
 0x347   :  { %v15145_v59 = vadd.f32 %v1879_v30, %v14967_v51  ;;  %v15148_v42 = vadd.f32 %v1950_v22, %v14969_v50 }
 0x348   :  { %v1881_v31 = vpop.f32.mrf.mxu1  ;;  %v15150_v36 = vpop.f32.mrf.mxu0 }
 0x349   :  { %v15152_v41 = vadd.f32 %v1881_v31, %v1591_v60  ;;  %v1601_v60 = vadd.f32 %v14987_v27, %v14955_v13 }
 0x34a   :  { %v1883_v35 = vpop.f32.mrf.mxu1  ;;  %v1954_v46 = vpop.f32.mrf.mxu0 }
 0x34b   :  { %v15155_v43 = vadd.f32 %v1883_v35, %v14975_v53  ;;  %v15158_v23 = vadd.f32 %v1954_v46, %v14977_v52 }
 0x34c   :  { %v1885_v49 = vpop.f32.mrf.mxu1  ;;  %v1956_v32 = vpop.f32.mrf.mxu0 }
 0x34d   :  { %v15161_v51 = vadd.f32 %v1885_v49, %v14979_v8  ;;  %v15164_v50 = vadd.f32 %v1956_v32, %v14981_v4 }
 0x34e   :  { %v1889_v30 = vpop.f32.mrf.mxu1  ;;  %v1960_v22 = vpop.f32.mrf.mxu0 }
 0x34f   :  { %v15169_v31 = vadd.f32 %v1889_v30, %v14983_v15  ;;  %v15172_v53 = vadd.f32 %v1960_v22, %v14985_v57 }
 0x350   :  { %v1891_v52 = vpop.f32.mrf.mxu1  ;;  %v15174_v35 = vpop.f32.mrf.mxu0 }
 0x351   :  { %v15176_v46 = vadd.f32 %v1891_v52, %v1601_v60  ;;  %v1611_v60 = vadd.f32 %v15003_v48, %v14959_v11 }
 0x352   :  { %v1893_v8 = vpop.f32.mrf.mxu1  ;;  %v1964_v49 = vpop.f32.mrf.mxu0 }
 0x353   :  { %v15179_v4 = vadd.f32 %v1893_v8, %v14991_v54  ;;  %v15182_v32 = vadd.f32 %v1964_v49, %v14993_v37 }
 0x354   :  { %v1895_v27 = vpop.f32.mrf.mxu1  ;;  %v1966_v13 = vpop.f32.mrf.mxu0 }
 0x355   :  { %v15185_v15 = vadd.f32 %v1895_v27, %v14995_v20  ;;  %v15188_v57 = vadd.f32 %v1966_v13, %v14997_v44 }
 0x356   :  { %v1899_v30 = vpop.f32.mrf.mxu1  ;;  %v1970_v22 = vpop.f32.mrf.mxu0 }
 0x357   :  { %v15193_v52 = vadd.f32 %v1899_v30, %v14999_v63  ;;  %v15196_v54 = vadd.f32 %v1970_v22, %v15001_v33 }
 0x358   :  { %v1901_v37 = vpop.f32.mrf.mxu1  ;;  %v15198_v8 = vpop.f32.mrf.mxu0 }
 0x359   :  { %v15200_v49 = vadd.f32 %v1901_v37, %v1611_v60  ;;  %v21380_v60 = vld [vmem:[#allocation316_spill] sm:$0xff] }
 0x35a   :  { %v1903_v20 = vpop.f32.mrf.mxu1  ;;  %v1974_v27 = vpop.f32.mrf.mxu0  ;;  %v1621_v37 = vadd.f32 %v15019_v38, %v21380_v60 }
 0x35b   :  { %v15203_v44 = vadd.f32 %v1903_v20, %v15007_v12  ;;  %v15206_v13 = vadd.f32 %v1974_v27, %v15009_v34  ;;  %v1692_v12 = vadd.f32 %v15021_v56, %v21381_v7 }
 0x35c   :  { %v1905_v48 = vpop.f32.mrf.mxu1  ;;  %v1976_v11 = vpop.f32.mrf.mxu0 }
 0x35d   :  { %v15209_v63 = vadd.f32 %v1905_v48, %v15011_v62  ;;  %v15212_v33 = vadd.f32 %v1976_v11, %v15013_v45 }
 0x35e   :  { %v1909_v30 = vpop.f32.mrf.mxu1  ;;  %v1980_v22 = vpop.f32.mrf.mxu0 }
 0x35f   :  { %v15219_v20 = vadd.f32 %v1909_v30, %v15015_v6  ;;  %v15222_v34 = vadd.f32 %v1980_v22, %v15017_v58  ;;  %v1040_v22 = vadd.s32 2, %v15053_v55 }
 0x360   :  { %v1911_v27 = vpop.f32.mrf.mxu1  ;;  %v1982_v62 = vpop.f32.mrf.mxu0 }
 0x361   :  { %v15224_v48 = vadd.f32 %v1911_v27, %v1621_v37  ;;  %v15226_v45 = vadd.f32 %v1982_v62, %v1692_v12  ;;  %vm1075_vm5 = vcmp.lt.s32.totalorder %v1040_v22, 28 }
 0x362   :  { %v1913_v11 = vpop.f32.mrf.mxu1  ;;  %v1984_v39 = vpop.f32.mrf.mxu0 }
 0x363   :  { %v1037_v39 = vadd.s32 2, %v14607_v16  ;;  %v1025_v16 = vadd.s32 2, %v14584_v10 }
 0x364   :  { %v1914_v61 = vpop.f32.mrf.mxu1  ;;  %v1985_v17 = vpop.f32.mrf.mxu0 }
 0x365   :  { %vm1044_vm12 = vcmp.ge.s32.totalorder %v1037_v39, 0  ;;  %vm1072_vm13 = vcmp.lt.s32.totalorder %v1037_v39, 28  ;;  %vm1032_vm2 = vcmp.eq.s32.totalorder %v14546_v26, %v1025_v16  ;;  %v12940_v39 = vld [vmem:[%s20352_s1 + $0x100] ss:$16 sps:$4 sm:$0xff]  }
 0x366   :  { %v12851_v38 = vpop.f32.mrf.mxu1  ;;  %vm1065_vm14 = vmand %vm1030_vm9, %vm1044_vm12  ;;  %v1102_v12 = vsel %vm1032_vm2, 1.0, %v21352_v19 }
 0x367   :  { %vm1093_vm4 = vmand %vm1065_vm14, %vm1072_vm13 }
 0x368   :  { %v2061_v60 = vpop.f32.mrf.mxu1  ;;  %v1100_v18 = vsel %vm1093_vm4, 1.0, %v21352_v19 }
 0x369   :  { %v1105_v27 = vpack.c.bf16 %v1100_v18, %v15135_v21 }
 0x36a   :  { %v12852_v25 = vpop.f32.mrf.mxu1 }
 0x36b   :  { %v2092_v61 = vpack.c.bf16 %v12852_v25, %v12851_v38  ;;  %v12931_v38 = vld [vmem:[%s20352_s1 + $0x124] ss:$16 sps:$4 sm:$0x3f]  }
 0x36c   :  { %v2064_v56 = vpop.f32.mrf.mxu1  ;;  %11239 = vmatprep.subr.msk.bf16.mxu1 %vm20690_vm15, %v12931_v38 }
 0x36d   :  { %v2091_v7 = vpack.c.bf16 %v2064_v56, %v2061_v60  ;;  %v12933_v60 = vld [vmem:[%s20352_s1 + $0x120] ss:$16 sps:$4 sm:$0x3f]  }
 0x36e   :  { %v12855_v6 = vpop.f32.mrf.mxu1  ;;  %v2472_v56 = vsel %vm20690_vm15, %v12933_v60, 0  ;;  %v21384_v60 = vld [vmem:[#allocation314_spill] sm:$0xff] }
 0x36f   :  { %11210 = vmatmul.mubr.msk.bf16.vlgmr.msra.gmra.mxu0 %vm20681_vm11, %v2091_v7  ;;  %11215 = vmatmul.mubr.msk.bf16.vlgmr.msra.gmra.mxu1 %vm20681_vm11, %v2091_v7  ;;  %v2094_v25 = vpack.c.bf16 %v12855_v6, %v12855_v6  ;;  %v12934_v7 = vld [vmem:[%s20352_s1 + $0x12c] ss:$16 sps:$4 sm:$0x3f]   ;;  %v12936_v6 = vld [vmem:[%s20352_s1 + $0x128] ss:$16 sps:$4 sm:$0x3f]  }
 0x370   :  { %12858 = vmatpush3.bf16.msra.mxu0 %v14552_v28  ;;  %v2077_v58 = vpop.f32.mrf.mxu1  ;;  %2206 = vmatprep.mubr.bf16.mxu0 %v21348_v3 }
 0x371   :  { %2277 = vmatprep.mubr.bf16.mxu1 %v21348_v3  ;;  %12859 = vmatprep.subr.bf16.mxu0 %v14536_v24 }
 0x372   :  { %v12856_v17 = vpop.f32.mrf.mxu1  ;;  %2496 = vmatpush1.bf16.msra.mxu1 %v2472_v56 }
 0x373   :  { %v12937_v17 = vld [vmem:[%s20352_s1 + $0x108] ss:$16 sps:$4 sm:$0xff]  }
 0x374   :  { %12860 = vmatpush3.bf16.msra.mxu0 %v14536_v24  ;;  %v2080_v28 = vpop.f32.mrf.mxu1 }
 0x375   :  { %12861 = vmatprep.subr.bf16.mxu0 %v14566_v0  ;;  %v2093_v30 = vpack.c.bf16 %v2080_v28, %v2077_v58  ;;  %v2478_v58 = vsel %vm20690_vm15, %v12936_v6, 0  ;;  %v12942_v28 = vld [vmem:[%s20352_s1 + $0x104] ss:$16 sps:$4 sm:$0xff]  }
 0x376   :  { %2497 = vmatprep.subr.bf16.mxu1 %v12942_v28 }
 0x377   :  { %11211 = vmatmul.mubr.msk.bf16.gmra.mxu0 %vm20681_vm11, %v2092_v61  ;;  %11216 = vmatmul.mubr.msk.bf16.gmra.mxu1 %vm20681_vm11, %v2092_v61  ;;  %v12939_v61 = vld [vmem:[%s20352_s1 + $0x10c] ss:$16 sps:$4 sm:$0xff]  }
 0x378   :  { %2216 = vmatprep.mubr.bf16.mxu0 %v21348_v3  ;;  %2287 = vmatprep.mubr.bf16.mxu1 %v21348_v3 }
 0x379   :  { %12862 = vmatpush3.bf16.msra.mxu0 %v14566_v0  ;;  %v1098_v0 = vsel %vm1028_vm3, 1.0, %v21352_v19  ;;  %vm1033_vm3 = vcmp.eq.s32.totalorder %v14546_v26, %v1026_v40  ;;  %2498 = vmatpush1.bf16.msra.mxu1 %v12940_v39 }
 0x37a   :  { %12863 = vmatprep.subr.bf16.mxu0 %v14593_v14  ;;  %v1104_v24 = vpack.c.bf16 %v1098_v0, %v15117_v47  ;;  %vm1096_vm8 = vmand %vm1033_vm3, %vm1075_vm5  ;;  %v21383_v0 = vld [vmem:[#allocation318_spill] sm:$0xff] }
 0x37b   :  { %v1103_v62 = vsel %vm1096_vm8, 1.0, %v21352_v19 }
 0x37c   :  { %v1107_v11 = vpack.c.bf16 %v1103_v62, %v1103_v62 }
 0x37d   :  { %12864 = vmatpush3.bf16.msra.mxu0 %v14593_v14  ;;  %v1024_v14 = vadd.s32 2, %v14575_v5 }
 0x37e   :  { %11244 = vmatprep.subr.msk.bf16.mxu0 %vm20690_vm15, %v12934_v7 }
 0x37f   :  { %11212 = vmatmul.mubr.msk.bf16.gmra.mxu0 %vm20681_vm11, %v2093_v30  ;;  %11217 = vmatmul.mubr.msk.bf16.gmra.mxu1 %vm20681_vm11, %v2093_v30  ;;  %vm1031_vm6 = vcmp.eq.s32.totalorder %v14546_v26, %v1024_v14  ;;  %v21382_v30 = vld [vmem:[#allocation313_spill] sm:$0xff] }
 0x380   :  { %2226 = vmatprep.mubr.bf16.mxu0 %v21348_v3  ;;  %2297 = vmatprep.mubr.bf16.mxu1 %v21348_v3  ;;  %v1101_v37 = vsel %vm1031_vm6, 1.0, %v21352_v19  ;;  %v1662_v14 = vadd.f32 %v21383_v0, %v21382_v30 }
 0x381   :  { %v1106_v55 = vpack.c.bf16 %v1102_v12, %v1101_v37 }
 0x387   :  { %11213 = vmatmul.mubr.msk.bf16.gmra.mxu0 %vm20681_vm11, %v2094_v25  ;;  %11218 = vmatmul.mubr.msk.bf16.gmra.mxu1 %vm20681_vm11, %v2094_v25  ;;  %v1990_v25 = vadd.f32 %v15150_v36, %v1662_v14 }
 0x388   :  { %12865 = vmatprep.mubr.msk.bf16.mxu0 %vm20693_vm1, %v1104_v24  ;;  %2515 = vmatprep.mubr.bf16.mxu1 %v21348_v3 }
 0x38f   :  { %12866 = vmatmul.mubr.msk.bf16.vlgmr.msra.gmra.mxu0 %vm20693_vm1, %v1105_v27 }
 0x390   :  { %12869 = vmatprep.mubr.msk.bf16.mxu0 %vm20693_vm1, %v1106_v55  ;;  %2567 = vmatpush1.bf16.msra.mxu0 %v2478_v58 }
 0x391   :  { %2568 = vmatprep.subr.bf16.mxu0 %v12939_v61 }
 0x394   :  { %2569 = vmatpush1.bf16.msra.mxu0 %v12937_v17 }
 0x395   :  { %3105 = vmatprep.subr.mxu0 %v21352_v19 }
 0x397   :  { %12870 = vmatmul.mubr.msk.bf16.gmra.mxu0 %vm20693_vm1, %v1107_v11 }
 0x398   :  { %2586 = vmatprep.mubr.bf16.mxu0 %v21348_v3 }
 0x42f   :  { %v2198_v16 = vpop.f32.mrf.mxu0  ;;  %v2269_v24 = vpop.f32.mrf.mxu1 }
 0x430   :  { %v15309_v40 = vadd.f32 %v2198_v16, %v15145_v59  ;;  %v15312_v22 = vadd.f32 %v2269_v24, %v15148_v42  ;;  %v21385_v42 = vld [vmem:[#allocation319_spill] sm:$0xff] }
 0x431   :  { %v2200_v18 = vpop.f32.mrf.mxu0  ;;  %v2271_v37 = vpop.f32.mrf.mxu1  ;;  %v1672_v56 = vadd.f32 %v21385_v42, %v21384_v60  ;;  %v21386_v16 = vld [vmem:[#allocation315_spill] sm:$0xff] }
 0x432   :  { %v15315_v12 = vadd.f32 %v2200_v18, %v15152_v41  ;;  %v15317_v27 = vadd.f32 %v2271_v37, %v1990_v25 }
 0x433   :  { %v2202_v55 = vpop.f32.mrf.mxu0  ;;  %v2273_v62 = vpop.f32.mrf.mxu1  ;;  %v1998_v17 = vadd.f32 %v15174_v35, %v1672_v56 }
 0x434   :  { %v15320_v11 = vadd.f32 %v2202_v55, %v15155_v43  ;;  %v15323_v36 = vadd.f32 %v2273_v62, %v15158_v23 }
 0x435   :  { %v2204_v59 = vpop.f32.mrf.mxu0  ;;  %v2275_v38 = vpop.f32.mrf.mxu1 }
 0x436   :  { %v15328_v7 = vadd.f32 %v2204_v59, %v15161_v51  ;;  %v15331_v41 = vadd.f32 %v2275_v38, %v15164_v50 }
 0x437   :  { %v2208_v6 = vpop.f32.mrf.mxu0  ;;  %v2279_v58 = vpop.f32.mrf.mxu1 }
 0x438   :  { %v15335_v43 = vadd.f32 %v2208_v6, %v15169_v31  ;;  %v15338_v23 = vadd.f32 %v2279_v58, %v15172_v53  ;;  %v21387_v53 = vld [vmem:[#allocation320_spill] sm:$0xff] }
 0x439   :  { %v2210_v61 = vpop.f32.mrf.mxu0  ;;  %v2281_v28 = vpop.f32.mrf.mxu1  ;;  %v1682_v24 = vadd.f32 %v21387_v53, %v21386_v16  ;;  %v15396_v16 = vadd.s32 376, %v14544_v2 }
 0x43a   :  { %v15341_v39 = vadd.f32 %v2210_v61, %v15176_v46  ;;  %v15343_v51 = vadd.f32 %v2281_v28, %v1998_v17 }
 0x43b   :  { %v2212_v30 = vpop.f32.mrf.mxu0  ;;  %v2283_v50 = vpop.f32.mrf.mxu1  ;;  %v2006_v55 = vadd.f32 %v15198_v8, %v1682_v24  ;;  %21388 = vst [vmem:[#allocation316_spill] sm:$0xff] %v15396_v16  ;;  %v2749_v24 = vand.u32 15, %v15396_v16  ;;  %v15594_v16 = vadd.s32 96, %v14544_v2 }
 0x43c   :  { %v15346_v0 = vadd.f32 %v2212_v30, %v15179_v4  ;;  %v15349_v35 = vadd.f32 %v2283_v50, %v15182_v32 }
 0x43d   :  { %v2214_v31 = vpop.f32.mrf.mxu0  ;;  %v2285_v14 = vpop.f32.mrf.mxu1  ;;  %vm15404_vm9 = vcmp.eq.s32.totalorder %v2749_v24, %v14546_v26  ;;  %v21402_v24 = vmov 0  ;;  %21438 = vst [vmem:[#allocation340_spill] sm:$0xff] %v15594_v16 }
 0x43e   :  { %v15354_v25 = vadd.f32 %v2214_v31, %v15185_v15  ;;  %v15357_v46 = vadd.f32 %v2285_v14, %v15188_v57 }
 0x43f   :  { %v2218_v18 = vpop.f32.mrf.mxu0  ;;  %v2289_v37 = vpop.f32.mrf.mxu1 }
 0x440   :  { %v15361_v4 = vadd.f32 %v2218_v18, %v15193_v52  ;;  %v15364_v32 = vadd.f32 %v2289_v37, %v15196_v54 }
 0x441   :  { %v2220_v62 = vpop.f32.mrf.mxu0  ;;  %v2291_v59 = vpop.f32.mrf.mxu1 }
 0x442   :  { %v15367_v38 = vadd.f32 %v2220_v62, %v15200_v49  ;;  %v15369_v15 = vadd.f32 %v2291_v59, %v2006_v55 }
 0x443   :  { %v2222_v60 = vpop.f32.mrf.mxu0  ;;  %v2293_v57 = vpop.f32.mrf.mxu1 }
 0x444   :  { %v15372_v42 = vadd.f32 %v2222_v60, %v15203_v44  ;;  %v15375_v8 = vadd.f32 %v2293_v57, %v15206_v13  ;;  %v20665_v60 = vmov 1.0  }
 0x445   :  { %v2224_v52 = vpop.f32.mrf.mxu0  ;;  %v2295_v56 = vpop.f32.mrf.mxu1 }
 0x446   :  { %v15378_v54 = vadd.f32 %v2224_v52, %v15209_v63  ;;  %v15381_v6 = vadd.f32 %v2295_v56, %v15212_v33 }
 0x447   :  { %v2228_v49 = vpop.f32.mrf.mxu0  ;;  %v2299_v58 = vpop.f32.mrf.mxu1 }
 0x448   :  { %v15384_v17 = vadd.f32 %v2228_v49, %v15219_v20  ;;  %v15387_v61 = vadd.f32 %v2299_v58, %v15222_v34  ;;  %v15399_v34 = vadd.s32 368, %v14544_v2 }
 0x449   :  { %v2230_v44 = vpop.f32.mrf.mxu0  ;;  %v2301_v28 = vpop.f32.mrf.mxu1 }
 0x44a   :  { %v15390_v13 = vadd.f32 %v2230_v44, %v15224_v48  ;;  %v15393_v30 = vadd.f32 %v2301_v28, %v15226_v45  ;;  %21389 = vst [vmem:[#allocation317_spill] sm:$0xff] %v15399_v34  ;;  %v2748_v18 = vand.u32 15, %v15399_v34  ;;  %v15436_v44 = vadd.s32 360, %v14544_v2 }
 0x44b   :  { %v2232_v63 = vpop.f32.mrf.mxu0  ;;  %v2303_v50 = vpop.f32.mrf.mxu1 }
 0x44c   :  { %vm15413_vm7 = vcmp.eq.s32.totalorder %v2748_v18, %v14546_v26  ;;  %21394 = vst [vmem:[#allocation313_spill] sm:$0xff] %v15436_v44  ;;  %v2747_v28 = vand.u32 15, %v15436_v44  ;;  %v15440_v63 = vadd.s32 352, %v14544_v2  ;;  %v15475_v18 = vadd.s32 328, %v14544_v2 }
 0x44d   :  { %v2233_v33 = vpop.f32.mrf.mxu0  ;;  %v2304_v31 = vpop.f32.mrf.mxu1  ;;  %v15569_v44 = vadd.s32 224, %v14544_v2 }
 0x44e   :  { %21395 = vst [vmem:[#allocation318_spill] sm:$0xff] %v15440_v63  ;;  %vm15443_vm10 = vcmp.eq.s32.totalorder %v2747_v28, %v14546_v26  ;;  %v2746_v33 = vand.u32 15, %v15440_v63  ;;  %v15452_v31 = vadd.s32 344, %v14544_v2  ;;  %21405 = vst [vmem:[#allocation320_spill] sm:$0xff] %v15475_v18  ;;  %v15511_v28 = vadd.s32 240, %v14544_v2 }
 0x44f   :  { %v12867_v14 = vpop.f32.mrf.mxu0  ;;  %21434 = vst [vmem:[#allocation338_spill] sm:$0xff] %v15569_v44 }
 0x450   :  { %21398 = vst [vmem:[#allocation314_spill] sm:$0xff] %v15452_v31  ;;  %vm15456_vm12 = vcmp.eq.s32.totalorder %v2746_v33, %v14546_v26  ;;  %21415 = vst [vmem:[#allocation330_spill] sm:$0xff] %v15511_v28  ;;  %v15514_v33 = vadd.s32 312, %v14544_v2  ;;  %v2732_v21 = vand.u32 15, %v15511_v28 }
 0x451   :  { %v2380_v20 = vpop.f32.mrf.mxu0 }
 0x452   :  { %21416 = vst [vmem:[#allocation331_spill] sm:$0xff] %v15514_v33  ;;  %v2741_v47 = vand.u32 15, %v15514_v33  ;;  %v15549_v33 = vadd.s32 304, %v14544_v2  ;;  %vm15556_vm5 = vcmp.eq.s32.totalorder %v2732_v21, %v14546_v26 }
 0x453   :  { %v12868_v53 = vpop.f32.mrf.mxu0 }
 0x454   :  { %v2411_v52 = vpack.c.bf16 %v12868_v53, %v12867_v14  ;;  %v21399_v14 = vmov 0  ;;  %v15465_v53 = vadd.s32 336, %v14544_v2  ;;  %21427 = vst [vmem:[#allocation335_spill] sm:$0xff] %v15549_v33  ;;  %vm15561_vm8 = vcmp.eq.s32.totalorder %v2741_v47, %v14546_v26 }
 0x455   :  { %v2383_v48 = vpop.f32.mrf.mxu0  ;;  %v21400_v14 = vsel %vm15456_vm12, 4294967295, %v21399_v14  ;;  %v2740_v63 = vand.u32 15, %v15549_v33  ;;  %v21441_v33 = vmov 0 }
 0x456   :  { %v2410_v45 = vpack.c.bf16 %v2383_v48, %v2380_v20  ;;  %v2745_v20 = vand.u32 15, %v15452_v31  ;;  %21401 = vst [vmem:[#allocation319_spill] sm:$0xff] %v15465_v53  ;;  %v2744_v48 = vand.u32 15, %v15465_v53  ;;  %v21430_v31 = vmov 0 }
 0x457   :  { %v12871_v37 = vpop.f32.mrf.mxu0  ;;  %v21431_v31 = vsel %vm15561_vm8, 4294967295, %v21430_v31  ;;  %v15566_v53 = vadd.s32 104, %v14544_v2  ;;  %vm15602_vm1 = vcmp.eq.s32.totalorder %v2740_v63, %v14546_v26 }
 0x458   :  { %11240 = vmatmul.mubr.msk.bf16.vlgmr.msra.gmra.mxu1 %vm20681_vm11, %v2410_v45  ;;  %11245 = vmatmul.mubr.msk.bf16.vlgmr.msra.gmra.mxu0 %vm20681_vm11, %v2410_v45  ;;  %v2413_v58 = vpack.c.bf16 %v12871_v37, %v12871_v37  ;;  %vm15469_vm14 = vcmp.eq.s32.totalorder %v2745_v20, %v14546_v26  ;;  %vm15482_vm13 = vcmp.eq.s32.totalorder %v2744_v48, %v14546_v26  ;;  %v21406_v45 = vmov 0 }
 0x459   :  { %v2396_v62 = vpop.f32.mrf.mxu0  ;;  %2525 = vmatprep.mubr.bf16.mxu1 %v21348_v3  ;;  %2596 = vmatprep.mubr.bf16.mxu0 %v21348_v3  ;;  %v21403_v24 = vsel %vm15469_vm14, 4294967295, %v21402_v24  ;;  %v21407_v45 = vsel %vm15482_vm13, 4294967295, %v21406_v45  ;;  %v2743_v37 = vand.u32 15, %v15475_v18  ;;  %v15519_v48 = vadd.s32 112, %v14544_v2  ;;  %21432 = vst [vmem:[#allocation336_spill] sm:$0xff] %v21431_v31  ;;  %21433 = vst [vmem:[#allocation337_spill] sm:$0xff] %v15566_v53 }
 0x45a   :  { %11281 = vmatpush1.msk.msra.mxu0 %vm15404_vm9, %v20665_v60  ;;  %21404 = vst [vmem:[#allocation315_spill] sm:$0xff] %v21403_v24  ;;  %21408 = vst [vmem:[#allocation325_spill] sm:$0xff] %v21407_v45  ;;  %v21423_v18 = vmov 1.0   ;;  %v2715_v28 = vand.u32 15, %v15566_v53  ;;  %v21442_v33 = vsel %vm15602_vm1, 4294967295, %v21441_v33  ;;  %v15641_v53 = vadd.s32 88, %v14544_v2 }
 0x45b   :  { %v12872_v57 = vpop.f32.mrf.mxu0  ;;  %3107 = vmatprep.subr.mxu0 %v21352_v19  ;;  %vm15498_vm4 = vcmp.eq.s32.totalorder %v2743_v37, %v14546_v26  ;;  %21417 = vst [vmem:[#allocation332_spill] sm:$0xff] %v15519_v48  ;;  %21443 = vst [vmem:[#allocation341_spill] sm:$0xff] %v21442_v33  ;;  %v15676_v33 = vadd.s32 200, %v14544_v2  ;;  %v21462_v31 = vmov 0  ;;  %v15800_v45 = vadd.s32 176, %v14544_v2 }
 0x45c   :  { %11282 = vmatpush1.msk.msra.mxu0 %vm15413_vm7, %v20665_v60  ;;  %v15494_v57 = vadd.s32 320, %v14544_v2  ;;  %vm15617_vm0 = vcmp.eq.s32.totalorder %v2715_v28, %v14546_v26  ;;  %v21450_v28 = vmov 0  ;;  %21453 = vst [vmem:[#allocation345_spill] sm:$0xff] %v15641_v53 }
 0x45d   :  { %3109 = vmatprep.subr.mxu0 %v21352_v19  ;;  %v2399_v56 = vpop.f32.mrf.mxu0  ;;  %21461 = vst [vmem:[#allocation349_spill] sm:$0xff] %v15676_v33  ;;  %21500 = vst [vmem:[#allocation368_spill] sm:$0xff] %v15800_v45 }
 0x45e   :  { %v2412_v49 = vpack.c.bf16 %v2399_v56, %v2396_v62  ;;  %11283 = vmatpush1.msk.msra.mxu0 %vm15443_vm10, %v20665_v60  ;;  %v15491_v62 = vadd.s32 248, %v14544_v2  ;;  %21410 = vst [vmem:[#allocation327_spill] sm:$0xff] %v15494_v57  ;;  %v15503_v56 = vadd.s32 120, %v14544_v2 }
 0x45f   :  { %3111 = vmatprep.subr.mxu0 %v21352_v19 }
 0x460   :  { %11241 = vmatmul.mubr.msk.bf16.gmra.mxu1 %vm20681_vm11, %v2411_v52  ;;  %11246 = vmatmul.mubr.msk.bf16.gmra.mxu0 %vm20681_vm11, %v2411_v52  ;;  %21409 = vst [vmem:[#allocation326_spill] sm:$0xff] %v15491_v62  ;;  %v21411_v52 = vmov 0  ;;  %21414 = vst [vmem:[#allocation329_spill] sm:$0xff] %v15503_v56  ;;  %v2717_v20 = vand.u32 15, %v15503_v56  ;;  %v15608_v56 = vadd.s32 216, %v14544_v2 }
 0x461   :  { %2535 = vmatprep.mubr.bf16.mxu1 %v21348_v3  ;;  %2606 = vmatprep.mubr.bf16.mxu0 %v21348_v3  ;;  %v21412_v52 = vsel %vm15498_vm4, 4294967295, %v21411_v52  ;;  %v21609_v63 = vld [vmem:[#allocation315_spill] sm:$0xff] }
 0x462   :  { %11284 = vmatpush1.msk.msra.mxu0 %vm15456_vm12, %v20665_v60  ;;  %21413 = vst [vmem:[#allocation328_spill] sm:$0xff] %v21412_v52  ;;  %vm15540_vm3 = vcmp.eq.s32.totalorder %v2717_v20, %v14546_v26  ;;  %21444 = vst [vmem:[#allocation342_spill] sm:$0xff] %v15608_v56 }
 0x463   :  { %3113 = vmatprep.subr.mxu0 %v21352_v19 }
 0x464   :  { %11285 = vmatpush1.msk.msra.mxu0 %vm15469_vm14, %v20665_v60 }
 0x465   :  { %3115 = vmatprep.subr.mxu0 %v21352_v19 }
 0x466   :  { %11286 = vmatpush1.msk.msra.mxu0 %vm15482_vm13, %v20665_v60 }
 0x467   :  { %3117 = vmatprep.subr.mxu0 %v21352_v19 }
 0x468   :  { %11242 = vmatmul.mubr.msk.bf16.gmra.mxu1 %vm20681_vm11, %v2412_v49  ;;  %11247 = vmatmul.mubr.msk.bf16.gmra.mxu0 %vm20681_vm11, %v2412_v49  ;;  %v2733_v49 = vand.u32 15, %v15491_v62  ;;  %v15585_v62 = vadd.s32 296, %v14544_v2 }
 0x469   :  { %2545 = vmatprep.mubr.bf16.mxu1 %v21348_v3  ;;  %2616 = vmatprep.mubr.bf16.mxu0 %v21348_v3  ;;  %v15662_v3 = vadd.s32 80, %v14544_v2 }
 0x46a   :  { %11287 = vmatpush1.msk.msra.mxu0 %vm15498_vm4, %v20665_v60  ;;  %vm15522_vm6 = vcmp.eq.s32.totalorder %v2733_v49, %v14546_v26  ;;  %v21420_v60 = vmov 0  ;;  %21437 = vst [vmem:[#allocation339_spill] sm:$0xff] %v15585_v62  ;;  %v2739_v34 = vand.u32 15, %v15585_v62  ;;  %v2714_v62 = vand.u32 15, %v15594_v16 }
 0x46b   :  { %3119 = vmatprep.subr.mxu0 %v21352_v19  ;;  %12653 = vmatprep.subr.msk.mxu1 %vm15522_vm6, %v21423_v18  ;;  %v15644_v16 = vadd.s32 208, %v14544_v2  ;;  %21458 = vst [vmem:[#allocation348_spill] sm:$0xff] %v15662_v3 }
 0x46c   :  { %12654 = vmatpush3.msk.msra.mxu1 %vm15540_vm3, %v21423_v18 }
 0x46d   :  { %12655 = vmatprep.subr.msk.mxu1 %vm15556_vm5, %v21423_v18  ;;  %21454 = vst [vmem:[#allocation346_spill] sm:$0xff] %v15644_v16 }
 0x470   :  { %11243 = vmatmul.mubr.msk.bf16.gmra.mxu1 %vm20681_vm11, %v2413_v58  ;;  %11248 = vmatmul.mubr.msk.bf16.gmra.mxu0 %vm20681_vm11, %v2413_v58  ;;  %v2742_v58 = vand.u32 15, %v15494_v57  ;;  %v15546_v57 = vadd.s32 232, %v14544_v2 }
 0x472   :  { %vm15527_vm2 = vcmp.eq.s32.totalorder %v2742_v58, %v14546_v26  ;;  %v2716_v58 = vand.u32 15, %v15519_v48  ;;  %21426 = vst [vmem:[#allocation334_spill] sm:$0xff] %v15546_v57  ;;  %v2731_v21 = vand.u32 15, %v15546_v57  ;;  %v15659_v48 = vadd.s32 280, %v14544_v2 }
 0x473   :  { %v21421_v60 = vsel %vm15527_vm2, 4294967295, %v21420_v60  ;;  %11288 = vmatpush1.msk.msra.mxu0 %vm15527_vm2, %v21423_v18  ;;  %vm15653_vm2 = vcmp.eq.s32.totalorder %v2714_v62, %v14546_v26  ;;  %v21459_v62 = vmov 0 }
 0x474   :  { %21422 = vst [vmem:[#allocation333_spill] sm:$0xff] %v21421_v60  ;;  %3121 = vmatprep.subr.mxu0 %v21352_v19  ;;  %vm15578_vm11 = vcmp.eq.s32.totalorder %v2716_v58, %v14546_v26  ;;  %v2730_v58 = vand.u32 15, %v15569_v44  ;;  %vm15597_vm15 = vcmp.eq.s32.totalorder %v2731_v21, %v14546_v26  ;;  %v15628_v44 = vadd.s32 288, %v14544_v2  ;;  %21457 = vst [vmem:[#allocation347_spill] sm:$0xff] %v15659_v48 }
 0x475   :  { %11289 = vmatpush1.msk.msra.mxu0 %vm15561_vm8, %v21423_v18  ;;  %12656 = vmatpush3.msk.msra.mxu1 %vm15578_vm11, %v21423_v18  ;;  %v2712_v60 = vand.u32 15, %v15662_v3  ;;  %v15706_v3 = vadd.s32 72, %v14544_v2 }
 0x476   :  { %3123 = vmatprep.subr.mxu0 %v21352_v19  ;;  %12657 = vmatprep.subr.msk.mxu1 %vm15597_vm15, %v21423_v18  ;;  %vm15622_vm8 = vcmp.eq.s32.totalorder %v2730_v58, %v14546_v26  ;;  %21449 = vst [vmem:[#allocation343_spill] sm:$0xff] %v15628_v44  ;;  %v2729_v58 = vand.u32 15, %v15608_v56  ;;  %v2738_v56 = vand.u32 15, %v15628_v44  ;;  %v2728_v44 = vand.u32 15, %v15644_v16 }
 0x477   :  { %11290 = vmatpush1.msk.msra.mxu0 %vm15602_vm1, %v21423_v18  ;;  %12658 = vmatpush3.msk.msra.mxu1 %vm15617_vm0, %v21423_v18  ;;  %vm15635_vm1 = vcmp.eq.s32.totalorder %v2739_v34, %v14546_v26  ;;  %v21455_v34 = vmov 0  ;;  %v21466_v16 = vmov 0  ;;  %21472 = vst [vmem:[#allocation354_spill] sm:$0xff] %v15706_v3  ;;  %vm15718_vm12 = vcmp.eq.s32.totalorder %v2712_v60, %v14546_v26 }
 0x478   :  { %3125 = vmatprep.subr.mxu0 %v21352_v19  ;;  %v21451_v28 = vsel %vm15635_vm1, 4294967295, %v21450_v28  ;;  %12659 = vmatprep.subr.msk.mxu1 %vm15622_vm8, %v21423_v18  ;;  %v21456_v34 = vsel %vm15653_vm2, 4294967295, %v21455_v34  ;;  %vm15682_vm4 = vcmp.eq.s32.totalorder %v2738_v56, %v14546_v26  ;;  %vm15700_vm14 = vcmp.eq.s32.totalorder %v2728_v44, %v14546_v26 }
 0x479   :  { %21452 = vst [vmem:[#allocation344_spill] sm:$0xff] %v21451_v28  ;;  %11291 = vmatpush1.msk.msra.mxu0 %vm15635_vm1, %v21423_v18  ;;  %12660 = vmatpush3.msk.msra.mxu1 %vm15653_vm2, %v21423_v18  ;;  %vm15669_vm1 = vcmp.eq.s32.totalorder %v2729_v58, %v14546_v26  ;;  %v2713_v28 = vand.u32 15, %v15641_v53  ;;  %v21463_v31 = vsel %vm15682_vm4, 4294967295, %v21462_v31  ;;  %v2737_v58 = vand.u32 15, %v15659_v48 }
 0x47a   :  { %3127 = vmatprep.subr.mxu0 %v21352_v19  ;;  %v21460_v62 = vsel %vm15669_vm1, 4294967295, %v21459_v62  ;;  %12661 = vmatprep.subr.msk.mxu1 %vm15669_vm1, %v21423_v18  ;;  %21464 = vst [vmem:[#allocation350_spill] sm:$0xff] %v21463_v31  ;;  %v15689_v53 = vadd.s32 272, %v14544_v2  ;;  %v21469_v56 = vmov 0  ;;  %v2727_v48 = vand.u32 15, %v15676_v33 }
 0x47b   :  { %11292 = vmatpush1.msk.msra.mxu0 %vm15682_vm4, %v21423_v18  ;;  %vm15695_vm13 = vcmp.eq.s32.totalorder %v2713_v28, %v14546_v26  ;;  %v21470_v56 = vsel %vm15700_vm14, 4294967295, %v21469_v56  ;;  %vm15713_vm4 = vcmp.eq.s32.totalorder %v2737_v58, %v14546_v26  ;;  %v21473_v28 = vmov 0 }
 0x47c   :  { %21465 = vst [vmem:[#allocation351_spill] sm:$0xff] %v15689_v53  ;;  %v21467_v16 = vsel %vm15695_vm13, 4294967295, %v21466_v16  ;;  %21471 = vst [vmem:[#allocation353_spill] sm:$0xff] %v21470_v56  ;;  %12662 = vmatpush3.msk.msra.mxu1 %vm15695_vm13, %v21423_v18  ;;  %3129 = vmatprep.subr.mxu0 %v21352_v19  ;;  %v21474_v28 = vsel %vm15713_vm4, 4294967295, %v21473_v28  ;;  %v21476_v44 = vmov 0  ;;  %v2736_v33 = vand.u32 15, %v15689_v53 }
 0x47d   :  { %21468 = vst [vmem:[#allocation352_spill] sm:$0xff] %v21467_v16  ;;  %21475 = vst [vmem:[#allocation355_spill] sm:$0xff] %v21474_v28  ;;  %v21477_v44 = vsel %vm15718_vm12, 4294967295, %v21476_v44  ;;  %v15724_v31 = vadd.s32 192, %v14544_v2  ;;  %12663 = vmatprep.subr.msk.mxu1 %vm15700_vm14, %v21423_v18  ;;  %11293 = vmatpush1.msk.msra.mxu0 %vm15713_vm4, %v21423_v18  ;;  %vm15733_vm13 = vcmp.eq.s32.totalorder %v2727_v48, %v14546_v26  ;;  %v21480_v58 = vmov 0 }
 0x47e   :  { %21478 = vst [vmem:[#allocation356_spill] sm:$0xff] %v21477_v44  ;;  %v21481_v58 = vsel %vm15733_vm13, 4294967295, %v21480_v58  ;;  %v2711_v60 = vand.u32 15, %v15706_v3  ;;  %v15739_v53 = vadd.s32 264, %v14544_v2  ;;  %12664 = vmatpush3.msk.msra.mxu1 %vm15718_vm12, %v21423_v18  ;;  %3131 = vmatprep.subr.mxu0 %v21352_v19  ;;  %vm15746_vm14 = vcmp.eq.s32.totalorder %v2736_v33, %v14546_v26 }
 0x47f   :  { %21479 = vst [vmem:[#allocation357_spill] sm:$0xff] %v15724_v31  ;;  %21482 = vst [vmem:[#allocation358_spill] sm:$0xff] %v21481_v58  ;;  %v21484_v28 = vmov 0  ;;  %v2726_v48 = vand.u32 15, %v15724_v31  ;;  %12665 = vmatprep.subr.msk.mxu1 %vm15733_vm13, %v21423_v18  ;;  %11294 = vmatpush1.msk.msra.mxu0 %vm15746_vm14, %v21423_v18  ;;  %v21487_v3 = vmov 0  ;;  %v21490_v31 = vmov 0 }
 0x480   :  { %21483 = vst [vmem:[#allocation359_spill] sm:$0xff] %v15739_v53  ;;  %v21485_v28 = vsel %vm15746_vm14, 4294967295, %v21484_v28  ;;  %vm15758_vm4 = vcmp.eq.s32.totalorder %v2711_v60, %v14546_v26  ;;  %v2735_v33 = vand.u32 15, %v15739_v53  ;;  %3133 = vmatprep.subr.mxu0 %v21352_v19  ;;  %v21494_v60 = vmov 0 }
 0x481   :  { %21486 = vst [vmem:[#allocation360_spill] sm:$0xff] %v21485_v28  ;;  %v21488_v3 = vsel %vm15758_vm4, 4294967295, %v21487_v3  ;;  %12666 = vmatpush3.msk.msra.mxu1 %vm15758_vm4, %v21423_v18  ;;  %vm15768_vm12 = vcmp.eq.s32.totalorder %v2726_v48, %v14546_v26  ;;  %v15773_v28 = vadd.s32 64, %v14544_v2  ;;  %v15784_v53 = vadd.s32 184, %v14544_v2 }
 0x482   :  { %21489 = vst [vmem:[#allocation361_spill] sm:$0xff] %v21488_v3  ;;  %v21491_v31 = vsel %vm15768_vm12, 4294967295, %v21490_v31  ;;  %12667 = vmatprep.subr.msk.mxu1 %vm15768_vm12, %v21423_v18  ;;  %vm15779_vm14 = vcmp.eq.s32.totalorder %v2735_v33, %v14546_v26  ;;  %v15787_v48 = vadd.s32 256, %v14544_v2  ;;  %v15803_v58 = vadd.s32 440, %v14544_v2 }
 0x483   :  { %21492 = vst [vmem:[#allocation362_spill] sm:$0xff] %v21491_v31  ;;  %21493 = vst [vmem:[#allocation363_spill] sm:$0xff] %v15773_v28  ;;  %v21495_v60 = vsel %vm15779_vm14, 4294967295, %v21494_v60  ;;  %11295 = vmatpush1.msk.msra.mxu0 %vm15779_vm14, %v21423_v18  ;;  %v2710_v52 = vand.u32 15, %v15773_v28  ;;  %v15794_v31 = vadd.s32 56, %v14544_v2  ;;  %v2725_v33 = vand.u32 15, %v15784_v53 }
 0x484   :  { %21496 = vst [vmem:[#allocation364_spill] sm:$0xff] %v21495_v60  ;;  %21497 = vst [vmem:[#allocation365_spill] sm:$0xff] %v15784_v53  ;;  %3135 = vmatprep.subr.mxu0 %v21352_v19  ;;  %v2734_v3 = vand.u32 15, %v15787_v48  ;;  %v21502_v60 = vmov 0  ;;  %v21508_v53 = vmov 0  ;;  %v2757_v44 = vand.u32 15, %v15803_v58 }
 0x485   :  { %21498 = vst [vmem:[#allocation366_spill] sm:$0xff] %v15787_v48  ;;  %21499 = vst [vmem:[#allocation367_spill] sm:$0xff] %v15794_v31  ;;  %vm15806_vm12 = vcmp.eq.s32.totalorder %v2710_v52, %v14546_v26  ;;  %v2709_v28 = vand.u32 15, %v15794_v31  ;;  %vm15815_vm14 = vcmp.eq.s32.totalorder %v2725_v33, %v14546_v26  ;;  %v21505_v48 = vmov 0  ;;  %v21604_v59 = vld [vmem:[#allocation352_spill] sm:$0xff]  ;;  %v21607_v21 = vld [vmem:[#allocation353_spill] sm:$0xff] }
 0x486   :  { %21501 = vst [vmem:[#allocation369_spill] sm:$0xff] %v15803_v58  ;;  %v21503_v60 = vsel %vm15806_vm12, 4294967295, %v21502_v60  ;;  %12668 = vmatpush3.msk.msra.mxu1 %vm15806_vm12, %v21423_v18  ;;  %v21506_v48 = vsel %vm15815_vm14, 4294967295, %v21505_v48  ;;  %vm15820_vm4 = vcmp.eq.s32.totalorder %v2734_v3, %v14546_v26  ;;  %v2724_v52 = vand.u32 15, %v15800_v45 }
 0x487   :  { %21504 = vst [vmem:[#allocation370_spill] sm:$0xff] %v21503_v60  ;;  %21507 = vst [vmem:[#allocation371_spill] sm:$0xff] %v21506_v48  ;;  %v21509_v53 = vsel %vm15820_vm4, 4294967295, %v21508_v53  ;;  %12669 = vmatprep.subr.msk.mxu1 %vm15815_vm14, %v21423_v18  ;;  %11296 = vmatpush1.msk.msra.mxu0 %vm15820_vm4, %v21423_v18  ;;  %vm15833_vm12 = vcmp.eq.s32.totalorder %v2709_v28, %v14546_v26  ;;  %v21511_v33 = vmov 0  ;;  %v2708_v3 = vand.u32 15, %v14612_v9 }
 0x488   :  { %21510 = vst [vmem:[#allocation372_spill] sm:$0xff] %v21509_v53  ;;  %v21512_v33 = vsel %vm15833_vm12, 4294967295, %v21511_v33  ;;  %v15839_v31 = vadd.s32 168, %v14544_v2  ;;  %v15842_v58 = vadd.s32 432, %v14544_v2  ;;  %12670 = vmatpush3.msk.msra.mxu1 %vm15833_vm12, %v21423_v18  ;;  %3153 = vmatprep.subr.mxu0 %v21352_v19  ;;  %vm15849_vm4 = vcmp.eq.s32.totalorder %v2724_v52, %v14546_v26 }
 0x489   :  { %21513 = vst [vmem:[#allocation373_spill] sm:$0xff] %v21512_v33  ;;  %v21516_v28 = vmov 0  ;;  %vm15854_vm14 = vcmp.eq.s32.totalorder %v2757_v44, %v14546_v26  ;;  %v21519_v45 = vmov 0  ;;  %v15859_v9 = vadd.s32 160, %v14544_v2  ;;  %12671 = vmatprep.subr.msk.mxu1 %vm15849_vm4, %v21423_v18 }
 0x48a   :  { %21514 = vst [vmem:[#allocation374_spill] sm:$0xff] %v15839_v31  ;;  %21515 = vst [vmem:[#allocation375_spill] sm:$0xff] %v15842_v58  ;;  %v21517_v28 = vsel %vm15849_vm4, 4294967295, %v21516_v28  ;;  %v21520_v45 = vsel %vm15854_vm14, 4294967295, %v21519_v45  ;;  %v15862_v53 = vadd.s32 424, %v14544_v2  ;;  %11297 = vmatpush2.msk.msra.mxu0 %vm15854_vm14, %v21423_v18  ;;  %vm15871_vm12 = vcmp.eq.s32.totalorder %v2708_v3, %v14546_v26 }
 0x48b   :  { %21518 = vst [vmem:[#allocation376_spill] sm:$0xff] %v21517_v28  ;;  %21521 = vst [vmem:[#allocation377_spill] sm:$0xff] %v21520_v45  ;;  %v21524_v44 = vmov 0  ;;  %v2723_v52 = vand.u32 15, %v15839_v31  ;;  %v2756_v33 = vand.u32 15, %v15842_v58  ;;  %v2707_v48 = vand.u32 15, %v14584_v10  ;;  %12672 = vmatpush3.msk.msra.mxu1 %vm15871_vm12, %v21423_v18  ;;  %3155 = vmatprep.subr.mxu0 %v21352_v19 }
 0x48c   :  { %21522 = vst [vmem:[#allocation378_spill] sm:$0xff] %v15859_v9  ;;  %21523 = vst [vmem:[#allocation379_spill] sm:$0xff] %v15862_v53  ;;  %v21525_v44 = vsel %vm15871_vm12, 4294967295, %v21524_v44  ;;  %v2722_v45 = vand.u32 15, %v15859_v9  ;;  %v2755_v28 = vand.u32 15, %v15862_v53  ;;  %v15885_v3 = vadd.s32 152, %v14544_v2 }
 0x48d   :  { %21526 = vst [vmem:[#allocation380_spill] sm:$0xff] %v21525_v44  ;;  %v15888_v60 = vadd.s32 416, %v14544_v2  ;;  %vm15891_vm14 = vcmp.eq.s32.totalorder %v2723_v52, %v14546_v26  ;;  %v21529_v58 = vmov 0  ;;  %vm15896_vm4 = vcmp.eq.s32.totalorder %v2756_v33, %v14546_v26 }
 0x48e   :  { %21527 = vst [vmem:[#allocation381_spill] sm:$0xff] %v15885_v3  ;;  %v21530_v58 = vsel %vm15891_vm14, 4294967295, %v21529_v58  ;;  %v21532_v31 = vmov 0  ;;  %vm15901_vm12 = vcmp.eq.s32.totalorder %v2707_v48, %v14546_v26  ;;  %v21535_v9 = vmov 0  ;;  %12673 = vmatprep.subr.msk.mxu1 %vm15891_vm14, %v21423_v18  ;;  %11298 = vmatpush2.msk.msra.mxu0 %vm15896_vm4, %v21423_v18 }
 0x48f   :  { %21528 = vst [vmem:[#allocation382_spill] sm:$0xff] %v15888_v60  ;;  %21531 = vst [vmem:[#allocation383_spill] sm:$0xff] %v21530_v58  ;;  %v21533_v31 = vsel %vm15896_vm4, 4294967295, %v21532_v31  ;;  %v21536_v9 = vsel %vm15901_vm12, 4294967295, %v21535_v9  ;;  %v2706_v53 = vand.u32 15, %v14575_v5  ;;  %vm15913_vm13 = vcmp.eq.s32.totalorder %v2722_v45, %v14546_v26  ;;  %12674 = vmatpush3.msk.msra.mxu1 %vm15901_vm12, %v21423_v18  ;;  %3157 = vmatprep.subr.mxu0 %v21352_v19 }
 0x490   :  { %21534 = vst [vmem:[#allocation384_spill] sm:$0xff] %v21533_v31  ;;  %21537 = vst [vmem:[#allocation385_spill] sm:$0xff] %v21536_v9  ;;  %v21538_v33 = vmov 0  ;;  %vm15918_vm1 = vcmp.eq.s32.totalorder %v2755_v28, %v14546_v26  ;;  %v21541_v48 = vmov 0  ;;  %v2721_v52 = vand.u32 15, %v15885_v3  ;;  %12675 = vmatprep.subr.msk.mxu1 %vm15913_vm13, %v21423_v18  ;;  %v21560_v9 = vld [vmem:[#allocation291_spill] sm:$0xff] }
 0x491   :  { %v21539_v33 = vsel %vm15913_vm13, 4294967295, %v21538_v33  ;;  %v21542_v48 = vsel %vm15918_vm1, 4294967295, %v21541_v48  ;;  %v2754_v10 = vand.u32 15, %v15888_v60  ;;  %vm15929_vm4 = vcmp.eq.s32.totalorder %v2706_v53, %v14546_v26  ;;  %11299 = vmatpush2.msk.msra.mxu0 %vm15918_vm1, %v21423_v18 }
 0x492   :  { %21540 = vst [vmem:[#allocation386_spill] sm:$0xff] %v21539_v33  ;;  %21543 = vst [vmem:[#allocation387_spill] sm:$0xff] %v21542_v48  ;;  %v21544_v45 = vmov 0  ;;  %v2705_v28 = vand.u32 15, %v14563_v29  ;;  %v15935_v5 = vadd.s32 144, %v14544_v2  ;;  %v15938_v3 = vadd.s32 408, %v14544_v2  ;;  %12676 = vmatpush3.msk.msra.mxu1 %vm15929_vm4, %v21423_v18  ;;  %3159 = vmatprep.subr.mxu0 %v21352_v19 }
 0x493   :  { %v21545_v45 = vsel %vm15929_vm4, 4294967295, %v21544_v45  ;;  %vm15947_vm12 = vcmp.eq.s32.totalorder %v2721_v52, %v14546_v26  ;;  %v21549_v53 = vmov 0  ;;  %vm15952_vm14 = vcmp.eq.s32.totalorder %v2754_v10, %v14546_v26 }
 0x494   :  { %21546 = vst [vmem:[#allocation388_spill] sm:$0xff] %v21545_v45  ;;  %21547 = vst [vmem:[#allocation389_spill] sm:$0xff] %v15935_v5  ;;  %v21550_v53 = vsel %vm15947_vm12, 4294967295, %v21549_v53  ;;  %v21552_v60 = vmov 0  ;;  %v15957_v29 = vadd.s32 136, %v14544_v2  ;;  %v15960_v31 = vadd.s32 400, %v14544_v2  ;;  %12677 = vmatprep.subr.msk.mxu1 %vm15947_vm12, %v21423_v18  ;;  %11300 = vmatpush2.msk.msra.mxu0 %vm15952_vm14, %v21423_v18 }
 0x495   :  { %21548 = vst [vmem:[#allocation390_spill] sm:$0xff] %v15938_v3  ;;  %21551 = vst [vmem:[#allocation391_spill] sm:$0xff] %v21550_v53  ;;  %v21553_v60 = vsel %vm15952_vm14, 4294967295, %v21552_v60  ;;  %vm15967_vm1 = vcmp.eq.s32.totalorder %v2705_v28, %v14546_v26  ;;  %v21557_v52 = vmov 0  ;;  %v2720_v10 = vand.u32 15, %v15935_v5  ;;  %3161 = vmatprep.subr.mxu0 %v21352_v19 }
 0x496   :  { %21554 = vst [vmem:[#allocation392_spill] sm:$0xff] %v21553_v60  ;;  %21555 = vst [vmem:[#allocation393_spill] sm:$0xff] %v15957_v29  ;;  %v21558_v52 = vsel %vm15967_vm1, 4294967295, %v21557_v52  ;;  %v2753_v48 = vand.u32 15, %v15938_v3  ;;  %v2704_v33 = vand.u32 15, %v14560_v1  ;;  %v2719_v45 = vand.u32 15, %v15957_v29  ;;  %12678 = vmatpush3.msk.msra.mxu1 %vm15967_vm1, %v21423_v18 }
 0x497   :  { %21556 = vst [vmem:[#allocation394_spill] sm:$0xff] %v15960_v31  ;;  %21559 = vst [vmem:[#allocation395_spill] sm:$0xff] %v21558_v52  ;;  %v2752_v28 = vand.u32 15, %v15960_v31  ;;  %v2703_v58 = vand.u32 15, %v21560_v9  ;;  %v15984_v5 = vadd.s32 128, %v14544_v2  ;;  %vm15991_vm12 = vcmp.eq.s32.totalorder %v2720_v10, %v14546_v26 }
 0x498   :  { %v21562_v3 = vmov 0  ;;  %vm15996_vm14 = vcmp.eq.s32.totalorder %v2753_v48, %v14546_v26  ;;  %v21565_v29 = vmov 0  ;;  %vm16001_vm4 = vcmp.eq.s32.totalorder %v2704_v33, %v14546_v26  ;;  %12679 = vmatprep.subr.msk.mxu1 %vm15991_vm12, %v21423_v18 }
 0x499   :  { %21561 = vst [vmem:[#allocation396_spill] sm:$0xff] %v15984_v5  ;;  %v21563_v3 = vsel %vm15991_vm12, 4294967295, %v21562_v3  ;;  %v21566_v29 = vsel %vm15996_vm14, 4294967295, %v21565_v29  ;;  %v21568_v31 = vmov 0  ;;  %v16006_v1 = vadd.s32 392, %v14544_v2  ;;  %11301 = vmatpush2.msk.msra.mxu0 %vm15996_vm14, %v21423_v18  ;;  %12680 = vmatpush3.msk.msra.mxu1 %vm16001_vm4, %v21423_v18 }
 0x49a   :  { %21564 = vst [vmem:[#allocation397_spill] sm:$0xff] %v21563_v3  ;;  %21567 = vst [vmem:[#allocation398_spill] sm:$0xff] %v21566_v29  ;;  %v21569_v31 = vsel %vm16001_vm4, 4294967295, %v21568_v31  ;;  %vm16015_vm1 = vcmp.eq.s32.totalorder %v2719_v45, %v14546_v26  ;;  %v21572_v48 = vmov 0  ;;  %vm16020_vm13 = vcmp.eq.s32.totalorder %v2752_v28, %v14546_v26  ;;  %3163 = vmatprep.subr.mxu0 %v21352_v19 }
 0x49b   :  { %21570 = vst [vmem:[#allocation399_spill] sm:$0xff] %v21569_v31  ;;  %21571 = vst [vmem:[#allocation400_spill] sm:$0xff] %v16006_v1  ;;  %v21573_v48 = vsel %vm16015_vm1, 4294967295, %v21572_v48  ;;  %v21575_v33 = vmov 0  ;;  %vm16025_vm2 = vcmp.eq.s32.totalorder %v2703_v58, %v14546_v26  ;;  %v21578_v10 = vmov 0  ;;  %12681 = vmatprep.subr.msk.mxu1 %vm16015_vm1, %v21423_v18  ;;  %11302 = vmatpush2.msk.msra.mxu0 %vm16020_vm13, %v21423_v18 }
 0x49c   :  { %21574 = vst [vmem:[#allocation401_spill] sm:$0xff] %v21573_v48  ;;  %v21576_v33 = vsel %vm16020_vm13, 4294967295, %v21575_v33  ;;  %v21579_v10 = vsel %vm16025_vm2, 4294967295, %v21578_v10  ;;  %v2718_v9 = vand.u32 15, %v15984_v5  ;;  %v2751_v45 = vand.u32 15, %v16006_v1  ;;  %12682 = vmatpush3.msk.msra.mxu1 %vm16025_vm2, %v21423_v18  ;;  %3165 = vmatprep.subr.mxu0 %v21352_v19 }
 0x49d   :  { %21577 = vst [vmem:[#allocation402_spill] sm:$0xff] %v21576_v33  ;;  %21580 = vst [vmem:[#allocation403_spill] sm:$0xff] %v21579_v10  ;;  %v2702_v28 = vand.u32 15, %v14544_v2  ;;  %v16037_v29 = vadd.s32 384, %v14544_v2  ;;  %v21582_v58 = vmov 0  ;;  %v21585_v1 = vmov 0 }
 0x49e   :  { %vm16046_vm14 = vcmp.eq.s32.totalorder %v2718_v9, %v14546_v26  ;;  %vm16055_vm4 = vcmp.eq.s32.totalorder %v2751_v45, %v14546_v26  ;;  %v21588_v5 = vmov 0  ;;  %v21591_v45 = vmov 0 }
 0x49f   :  { %21581 = vst [vmem:[#allocation404_spill] sm:$0xff] %v16037_v29  ;;  %v21583_v58 = vsel %vm16046_vm14, 4294967295, %v21582_v58  ;;  %v21586_v1 = vsel %vm16055_vm4, 4294967295, %v21585_v1  ;;  %vm16060_vm1 = vcmp.eq.s32.totalorder %v2702_v28, %v14546_v26  ;;  %v2750_v9 = vand.u32 15, %v16037_v29  ;;  %12683 = vmatprep.subr.msk.mxu1 %vm16046_vm14, %v21423_v18  ;;  %11303 = vmatpush2.msk.msra.mxu0 %vm16055_vm4, %v21423_v18 }
 0x4a0   :  { %21584 = vst [vmem:[#allocation405_spill] sm:$0xff] %v21583_v58  ;;  %21587 = vst [vmem:[#allocation406_spill] sm:$0xff] %v21586_v1  ;;  %v21589_v5 = vsel %vm16060_vm1, 4294967295, %v21588_v5  ;;  %12684 = vmatpush3.msk.msra.mxu1 %vm16060_vm1, %v21423_v18  ;;  %3167 = vmatprep.subr.mxu0 %v21352_v19 }
 0x4a1   :  { %21590 = vst [vmem:[#allocation407_spill] sm:$0xff] %v21589_v5  ;;  %vm16076_vm13 = vcmp.eq.s32.totalorder %v2750_v9, %v14546_v26  ;;  %12688 = vmatprep.subr.msk.mxu1 %vm15522_vm6, %v21423_v18  ;;  %vm20885_vm6 = vcmask 523264  }
 0x4a2   :  { %v21592_v45 = vsel %vm16076_vm13, 4294967295, %v21591_v45  ;;  %11304 = vmatpush2.msk.msra.mxu0 %vm16076_vm13, %v21423_v18 }
 0x4a3   :  { %21593 = vst [vmem:[#allocation408_spill] sm:$0xff] %v21592_v45  ;;  %3250 = vmatprep.subr.mxu0 %v21352_v19 }
 0x518   :  { %v2517_v28 = vpop.f32.mrf.mxu1  ;;  %v2588_v29 = vpop.f32.mrf.mxu0 }
 0x51a   :  { %v2519_v2 = vpop.f32.mrf.mxu1  ;;  %v2590_v1 = vpop.f32.mrf.mxu0 }
 0x51b   :  { %v16088_v5 = vadd.f32 %v2590_v1, %v15317_v27  ;;  %v16097_v3 = vadd.f32 %v2519_v2, %v15315_v12  ;;  %v16113_v2 = vadd.f32 %v2517_v28, %v15309_v40 }
 0x51c   :  { %v2521_v33 = vpop.f32.mrf.mxu1  ;;  %v2592_v60 = vpop.f32.mrf.mxu0 }
 0x51d   :  { %21594 = vst [vmem:[#allocation409_spill] sm:$0xff] %v16088_v5  ;;  %v2952_v52 = vmul.f32 %v16088_v5, %v16088_v5  ;;  %v16102_v27 = vadd.f32 %v2521_v33, %v15320_v11  ;;  %v16118_v11 = vadd.f32 %v2588_v29, %v15312_v22  ;;  %v2930_v40 = vsel %vm20885_vm6, %v16088_v5, 0.0 }
 0x51e   :  { %v2523_v9 = vpop.f32.mrf.mxu1  ;;  %v2594_v26 = vpop.f32.mrf.mxu0 }
 0x51f   :  { %v16091_v10 = vadd.f32 %v2594_v26, %v15331_v41  ;;  %v16094_v37 = vadd.f32 %v2523_v9, %v15328_v7  ;;  %v16105_v26 = vadd.f32 %v2592_v60, %v15323_v36  ;;  %21598 = vst [vmem:[#allocation413_spill] sm:$0xff] %v16118_v11  ;;  %v2950_v36 = vmul.f32 %v16097_v3, %v16097_v3 }
 0x520   :  { %v2527_v58 = vpop.f32.mrf.mxu1  ;;  %v2598_v45 = vpop.f32.mrf.mxu0 }
 0x521   :  { %21595 = vst [vmem:[#allocation410_spill] sm:$0xff] %v16091_v10  ;;  %21596 = vst [vmem:[#allocation411_spill] sm:$0xff] %v16105_v26  ;;  %v2956_v7 = vmul.f32 %v16091_v10, %v16091_v10  ;;  %v2954_v12 = vmul.f32 %v16094_v37, %v16094_v37  ;;  %v16123_v60 = vadd.f32 %v2527_v58, %v15335_v43  ;;  %v2931_v33 = vsel %vm20885_vm6, %v16091_v10, 0.0 }
 0x522   :  { %v2529_v48 = vpop.f32.mrf.mxu1  ;;  %v2600_v31 = vpop.f32.mrf.mxu0  ;;  %v16134_v29 = vadd.f32 %v2598_v45, %v15338_v23  ;;  %v2893_v43 = vadd.f32 %v16102_v27, %v16113_v2  ;;  %v2932_v56 = vadd.f32 %v2931_v33, %v2930_v40 }
 0x523   :  { %v16110_v41 = vadd.f32 %v2600_v31, %v15343_v51  ;;  %v16126_v51 = vadd.f32 %v2529_v48, %v15341_v39  ;;  %v3013_v31 = vsel %vm20885_vm6, %v2952_v52, 0.0  ;;  %v2917_v39 = vadd.f32 %v16105_v26, %v16118_v11 }
 0x524   :  { %v2531_v53 = vpop.f32.mrf.mxu1  ;;  %v2602_v1 = vpop.f32.mrf.mxu0  ;;  %v3014_v48 = vsel %vm20885_vm6, %v2956_v7, 0.0  ;;  %v2905_v52 = vadd.f32 %v16094_v37, %v16097_v3  ;;  %v2989_v10 = vadd.f32 %v2954_v12, %v2950_v36  ;;  %v2894_v11 = vadd.f32 %v2893_v43, %v16123_v60 }
 0x525   :  { %21597 = vst [vmem:[#allocation412_spill] sm:$0xff] %v16110_v41  ;;  %v2960_v58 = vmul.f32 %v16110_v41, %v16110_v41  ;;  %v16146_v23 = vadd.f32 %v2531_v53, %v15346_v0  ;;  %v2958_v7 = vmul.f32 %v16126_v51, %v16126_v51  ;;  %v16155_v26 = vadd.f32 %v2602_v1, %v15349_v35 }
 0x526   :  { %v2533_v9 = vpop.f32.mrf.mxu1  ;;  %v2604_v44 = vpop.f32.mrf.mxu0  ;;  %v3015_v16 = vadd.f32 %v3014_v48, %v3013_v31  ;;  %v2918_v12 = vadd.f32 %v2917_v39, %v16134_v29  ;;  %v2933_v0 = vsel %vm20885_vm6, %v16110_v41, 0.0  ;;  %v2906_v1 = vadd.f32 %v2905_v52, %v16126_v51 }
 0x527   :  { %v16149_v45 = vadd.f32 %v2533_v9, %v15354_v25  ;;  %v16161_v25 = vadd.f32 %v2604_v44, %v15357_v46  ;;  %v3016_v36 = vsel %vm20885_vm6, %v2960_v58, 0.0  ;;  %v2895_v31 = vadd.f32 %v2894_v11, %v16146_v23 }
 0x528   :  { %v2537_v22 = vpop.f32.mrf.mxu1  ;;  %v2608_v28 = vpop.f32.mrf.mxu0  ;;  %v21606_v50 = vld [vmem:[#allocation411_spill] sm:$0xff] }
 0x529   :  { %21599 = vst [vmem:[#allocation414_spill] sm:$0xff] %v16161_v25  ;;  %v16165_v40 = vadd.f32 %v2537_v22, %v15361_v4  ;;  %v16168_v33 = vadd.f32 %v2608_v28, %v15364_v32  ;;  %v2962_v46 = vmul.f32 %v16149_v45, %v16149_v45  ;;  %v2990_v4 = vadd.f32 %v2989_v10, %v2958_v7 }
 0x52a   :  { %v2539_v5 = vpop.f32.mrf.mxu1  ;;  %v2610_v24 = vpop.f32.mrf.mxu0  ;;  %v2919_v22 = vadd.f32 %v2918_v12, %v16155_v26  ;;  %v3017_v28 = vadd.f32 %v3016_v36, %v3015_v16  ;;  %v2907_v11 = vadd.f32 %v2906_v1, %v16149_v45  ;;  %v2935_v48 = vsel %vm20885_vm6, %v16161_v25, 0.0 }
 0x52b   :  { %v16171_v35 = vadd.f32 %v2539_v5, %v15367_v38  ;;  %v16178_v44 = vadd.f32 %v2610_v24, %v15369_v15  ;;  %v2934_v38 = vadd.f32 %v2933_v0, %v2932_v56  ;;  %v2964_v10 = vmul.f32 %v16161_v25, %v16161_v25 }
 0x52c   :  { %v2541_v53 = vpop.f32.mrf.mxu1  ;;  %v2612_v9 = vpop.f32.mrf.mxu0  ;;  %v2896_v58 = vadd.f32 %v2895_v31, %v16165_v40  ;;  %v2991_v52 = vadd.f32 %v2990_v4, %v2962_v46  ;;  %v2955_v57 = vmul.f32 %v21606_v50, %v21606_v50 }
 0x52d   :  { %v16182_v32 = vadd.f32 %v2541_v53, %v15372_v42  ;;  %v16185_v5 = vadd.f32 %v2612_v9, %v15375_v8  ;;  %v2920_v42 = vadd.f32 %v2919_v22, %v16168_v33  ;;  %v2966_v8 = vmul.f32 %v16171_v35, %v16171_v35 }
 0x52e   :  { %v2543_v43 = vpop.f32.mrf.mxu1  ;;  %v2614_v39 = vpop.f32.mrf.mxu0  ;;  %v2968_v16 = vmul.f32 %v16178_v44, %v16178_v44  ;;  %v2936_v31 = vadd.f32 %v2935_v48, %v2934_v38  ;;  %v2908_v46 = vadd.f32 %v2907_v11, %v16171_v35  ;;  %v3018_v4 = vsel %vm20885_vm6, %v2964_v10, 0.0 }
 0x52f   :  { %v16199_v56 = vadd.f32 %v2543_v43, %v15378_v54  ;;  %v16202_v7 = vadd.f32 %v2614_v39, %v15381_v6  ;;  %v2897_v53 = vadd.f32 %v2896_v58, %v16182_v32  ;;  %v2921_v9 = vadd.f32 %v2920_v42, %v16185_v5 }
 0x530   :  { %v2547_v15 = vpop.f32.mrf.mxu1  ;;  %v2618_v24 = vpop.f32.mrf.mxu0  ;;  %v2937_v54 = vsel %vm20885_vm6, %v16178_v44, 0.0  ;;  %v2992_v22 = vadd.f32 %v2991_v52, %v2966_v8  ;;  %v3020_v10 = vsel %vm20885_vm6, %v2968_v16, 0.0 }
 0x531   :  { %21600 = vst [vmem:[#allocation415_spill] sm:$0xff] %v16202_v7  ;;  %v16207_v36 = vadd.f32 %v2547_v15, %v15384_v17  ;;  %v16210_v1 = vadd.f32 %v2618_v24, %v15387_v61  ;;  %v2970_v6 = vmul.f32 %v16199_v56, %v16199_v56  ;;  %v2909_v61 = vadd.f32 %v2908_v46, %v16199_v56 }
 0x532   :  { %v2549_v12 = vpop.f32.mrf.mxu1  ;;  %v2620_v0 = vpop.f32.mrf.mxu0  ;;  %v2939_v38 = vsel %vm20885_vm6, %v16202_v7, 0.0  ;;  %v2972_v11 = vmul.f32 %v16202_v7, %v16202_v7  ;;  %v2938_v42 = vadd.f32 %v2937_v54, %v2936_v31 }
 0x533   :  { %v2898_v17 = vadd.f32 %v2897_v53, %v16207_v36  ;;  %v2922_v15 = vadd.f32 %v2921_v9, %v16210_v1  ;;  %v16226_v48 = vadd.f32 %v2549_v12, %v15390_v13  ;;  %v2993_v53 = vadd.f32 %v2992_v22, %v2970_v6 }
 0x534   :  { %v2551_v43 = vpop.f32.mrf.mxu1  ;;  %v2622_v39 = vpop.f32.mrf.mxu0  ;;  %v2940_v25 = vadd.f32 %v2939_v38, %v2938_v42 }
 0x535   :  { %v2899_v8 = vrot.slane %v2898_v17, 4  ;;  %v2923_v52 = vrot.slane %v2922_v15, 4  ;;  %v2910_v9 = vadd.f32 %v2909_v61, %v16226_v48  ;;  %v2974_v46 = vmul.f32 %v16226_v48, %v16226_v48 }
 0x536   :  { %v2552_v24 = vpop.f32.mrf.mxu1  ;;  %v2623_v58 = vpop.f32.mrf.mxu0  ;;  %v16233_v43 = vadd.f32 %v2620_v0, %v15393_v30  ;;  %v3019_v39 = vadd.f32 %v3018_v4, %v3017_v28 }
 0x537   :  { %v2900_v13 = vadd.f32 %v2899_v8, %v2898_v17  ;;  %v2924_v12 = vadd.f32 %v2923_v52, %v2922_v15  ;;  %v3022_v24 = vsel %vm20885_vm6, %v2972_v11, 0.0  ;;  %v2911_v31 = vrot.slane %v2910_v9, 4 }
 0x538   :  { %v2994_v54 = vadd.f32 %v2993_v53, %v2974_v46  ;;  %v2941_v16 = vsel %vm20885_vm6, %v16233_v43, 0.0  ;;  %v3021_v6 = vadd.f32 %v3020_v10, %v3019_v39  ;;  %v2976_v30 = vmul.f32 %v16233_v43, %v16233_v43 }
 0x539   :  { %v2901_v22 = vrot.slane %v2900_v13, 2  ;;  %v2942_v61 = vadd.f32 %v2941_v16, %v2940_v25  ;;  %v2925_v58 = vrot.slane %v2924_v12, 2  ;;  %v2912_v41 = vadd.f32 %v2911_v31, %v2910_v9 }
 0x53a   :  { %v2995_v7 = vrot.slane %v2994_v54, 4  ;;  %v3023_v28 = vadd.f32 %v3022_v24, %v3021_v6  ;;  %v3024_v17 = vsel %vm20885_vm6, %v2976_v30, 0.0  ;;  %v2953_v11 = vmul.f32 %v16102_v27, %v16102_v27 }
 0x53b   :  { %v2902_v0 = vadd.f32 %v2901_v22, %v2900_v13  ;;  %v2943_v4 = vrot.slane %v2942_v61, 4  ;;  %v2913_v15 = vrot.slane %v2912_v41, 2  ;;  %v2926_v8 = vadd.f32 %v2925_v58, %v2924_v12 }
 0x53c   :  { %v2996_v38 = vadd.f32 %v2995_v7, %v2994_v54  ;;  %v3025_v10 = vadd.f32 %v3024_v17, %v3023_v28  ;;  %v2949_v53 = vmul.f32 %v16113_v2, %v16113_v2  ;;  %v2957_v13 = vmul.f32 %v16123_v60, %v16123_v60 }
 0x53d   :  { %v2944_v42 = vadd.f32 %v2943_v4, %v2942_v61  ;;  %v2914_v25 = vadd.f32 %v2913_v15, %v2912_v41  ;;  %v2903_v9 = vrot.slane %v2902_v0, 1  ;;  %v2961_v6 = vmul.f32 %v16146_v23, %v16146_v23 }
 0x53e   :  { %v2997_v52 = vrot.slane %v2996_v38, 2  ;;  %v3026_v39 = vrot.slane %v3025_v10, 4  ;;  %v2977_v7 = vadd.f32 %v2953_v11, %v2949_v53  ;;  %v2927_v12 = vrot.slane %v2926_v8, 1  ;;  %v21614_v53 = vld [vmem:[#allocation358_spill] sm:$0xff] }
 0x53f   :  { %v2945_v46 = vrot.slane %v2944_v42, 2  ;;  %v2915_v24 = vrot.slane %v2914_v25, 1  ;;  %v2904_v61 = vadd.f32 %v2903_v9, %v2902_v0  ;;  %v2965_v4 = vmul.f32 %v16165_v40, %v16165_v40  ;;  %v21616_v9 = vld [vmem:[#allocation325_spill] sm:$0xff] }
 0x540   :  { %v2998_v31 = vadd.f32 %v2997_v52, %v2996_v38  ;;  %v3027_v54 = vadd.f32 %v3026_v39, %v3025_v10  ;;  %v2978_v28 = vadd.f32 %v2977_v7, %v2957_v13  ;;  %v2928_v10 = vadd.f32 %v2927_v12, %v2926_v8  ;;  %v21622_v7 = vld [vmem:[#allocation328_spill] sm:$0xff]  ;;  %v21626_v12 = vld [vmem:[#allocation371_spill] sm:$0xff] }
 0x541   :  { %v2946_v16 = vadd.f32 %v2945_v46, %v2944_v42  ;;  %v2916_v41 = vadd.f32 %v2915_v24, %v2914_v25  ;;  %v2969_v42 = vmul.f32 %v16182_v32, %v16182_v32  ;;  %v2973_v52 = vmul.f32 %v16207_v36, %v16207_v36  ;;  %v21618_v46 = vld [vmem:[#allocation361_spill] sm:$0xff] }
 0x542   :  { %v2999_v22 = vrot.slane %v2998_v31, 1  ;;  %v3028_v30 = vrot.slane %v3027_v54, 2  ;;  %v2979_v11 = vadd.f32 %v2978_v28, %v2961_v6  ;;  %v2959_v8 = vmul.f32 %v16134_v29, %v16134_v29  ;;  %v21632_v28 = vld [vmem:[#allocation376_spill] sm:$0xff] }
 0x543   :  { %v2947_v58 = vrot.slane %v2946_v16, 1  ;;  %3099 = vmatprep.mubr.f32.mxu1 %v2916_v41  ;;  %v2963_v13 = vmul.f32 %v16155_v26, %v16155_v26  ;;  %v2967_v6 = vmul.f32 %v16168_v33, %v16168_v33  ;;  %v21628_v41 = vld [vmem:[#allocation333_spill] sm:$0xff] }
 0x544   :  { %v3000_v17 = vadd.f32 %v2999_v22, %v2998_v31  ;;  %3100 = vmatmul.mubr.f32.vlgmr.msra.gmra.mxu1 %v2904_v61  ;;  %v3029_v38 = vadd.f32 %v3028_v30, %v3027_v54  ;;  %v2980_v25 = vadd.f32 %v2979_v11, %v2965_v4  ;;  %v21620_v31 = vld [vmem:[#allocation362_spill] sm:$0xff]  ;;  %v21630_v22 = vld [vmem:[#allocation373_spill] sm:$0xff]  ;;  %v21634_v4 = vld [vmem:[#allocation336_spill] sm:$0xff] }
 0x545   :  { %v2948_v15 = vadd.f32 %v2947_v58, %v2946_v16  ;;  %12689 = vmatpush3.msk.msra.mxu1 %vm15540_vm3, %v21423_v18  ;;  %v21624_v54 = vld [vmem:[#allocation370_spill] sm:$0xff]  ;;  %v2971_v58 = vmul.f32 %v16185_v5, %v16185_v5  ;;  %v21638_v11 = vld [vmem:[#allocation383_spill] sm:$0xff] }
 0x546   :  { %3244 = vmatprep.mubr.f32.mxu1 %v3000_v17  ;;  %12690 = vmatprep.subr.msk.mxu1 %vm15556_vm5, %v21423_v18  ;;  %v3030_v0 = vrot.slane %v3029_v38, 1  ;;  %v2981_v20 = vadd.f32 %v2980_v25, %v2969_v42  ;;  %vm21615_vm5 = vnez %v21614_v53  ;;  %v21636_v17 = vld [vmem:[#allocation380_spill] sm:$0xff]  ;;  %v21640_v42 = vld [vmem:[#allocation341_spill] sm:$0xff]  ;;  %v21644_v25 = vld [vmem:[#allocation386_spill] sm:$0xff] }
 0x547   :  { %11305 = vmatprep.mubr.msk.f32.mxu0 %vm20885_vm6, %v2948_v15  ;;  %12691 = vmatpush3.msk.msra.mxu1 %vm15578_vm11, %v21423_v18  ;;  %vm21603_vm11 = vnez %v21400_v14  ;;  %v21611_v14 = vld [vmem:[#allocation356_spill] sm:$0xff]  ;;  %v21661_v53 = vld [vmem:[#allocation401_spill] sm:$0xff] }
 0x548   :  { %3170 = vmatmul.mubr.f32.vlgmr.msra.gmra.mxu0 %v2928_v10  ;;  %v3031_v49 = vadd.f32 %v3030_v0, %v3029_v38  ;;  %12692 = vmatprep.subr.msk.mxu1 %vm15597_vm15, %v21423_v18  ;;  %v2982_v55 = vadd.f32 %v2981_v20, %v2973_v52  ;;  %vm21602_vm15 = vnez %v21460_v62  ;;  %vm21612_vm3 = vnez %v21611_v14  ;;  %v21642_v10 = vld [vmem:[#allocation385_spill] sm:$0xff]  ;;  %v21648_v20 = vld [vmem:[#allocation388_spill] sm:$0xff]  ;;  %v21657_v14 = vld [vmem:[#allocation355_spill] sm:$0xff] }
 0x549   :  { %11338 = vmatpush1.msk.msra.mxu0 %vm15404_vm9, %v21423_v18  ;;  %12693 = vmatpush3.msk.msra.mxu1 %vm15617_vm0, %v21423_v18  ;;  %vm21601_vm0 = vnez %v21456_v34  ;;  %vm21605_vm9 = vnez %v21604_v59  ;;  %v21613_v34 = vld [vmem:[#allocation413_spill] sm:$0xff]  ;;  %v2975_v38 = vmul.f32 %v16210_v1, %v16210_v1  ;;  %v21650_v59 = vld [vmem:[#allocation391_spill] sm:$0xff] }
 0x54a   :  { %3252 = vmatprep.subr.mxu0 %v21352_v19  ;;  %11362 = vmatprep.mubr.msk.f32.mxu0 %vm20885_vm6, %v3031_v49  ;;  %v2983_v47 = vrot.slane %v2982_v55, 4  ;;  %v2951_v62 = vmul.f32 %v21613_v34, %v21613_v34  ;;  %v21646_v49 = vld [vmem:[#allocation344_spill] sm:$0xff] }
 0x54b   :  { %11339 = vmatpush1.msk.msra.mxu0 %vm15413_vm7, %v21423_v18  ;;  %12694 = vmatprep.subr.msk.mxu1 %vm15622_vm8, %v21423_v18  ;;  %vm21608_vm7 = vnez %v21607_v21  ;;  %vm21617_vm8 = vnez %v21616_v9  ;;  %v21663_v9 = vld [vmem:[#allocation360_spill] sm:$0xff] }
 0x54c   :  { %3254 = vmatprep.subr.mxu0 %v21352_v19  ;;  %12695 = vmatpush3.msk.msra.mxu1 %vm21601_vm0, %v21423_v18  ;;  %vm21619_vm0 = vnez %v21618_v46  ;;  %v3001_v39 = vadd.f32 %v2955_v57, %v2951_v62  ;;  %v2984_v24 = vadd.f32 %v2983_v47, %v2982_v55  ;;  %v21652_v57 = vld [vmem:[#allocation350_spill] sm:$0xff]  ;;  %v21654_v47 = vld [vmem:[#allocation395_spill] sm:$0xff] }
 0x54d   :  { %11340 = vmatpush1.msk.msra.mxu0 %vm15443_vm10, %v21423_v18  ;;  %12696 = vmatprep.subr.msk.mxu1 %vm21602_vm15, %v21423_v18  ;;  %vm21610_vm10 = vnez %v21609_v63  ;;  %vm21621_vm15 = vnez %v21620_v31  ;;  %v21659_v62 = vld [vmem:[#allocation399_spill] sm:$0xff] }
 0x54e   :  { %3256 = vmatprep.subr.mxu0 %v21352_v19  ;;  %12697 = vmatpush3.msk.msra.mxu1 %vm21605_vm9, %v21423_v18  ;;  %vm21625_vm9 = vnez %v21624_v54  ;;  %v3002_v16 = vadd.f32 %v3001_v39, %v2959_v8  ;;  %v2985_v30 = vrot.slane %v2984_v24, 2  ;;  %v21670_v54 = vld [vmem:[#allocation372_spill] sm:$0xff] }
 0x54f   :  { %11341 = vmatpush1.msk.msra.mxu0 %vm21603_vm11, %v21423_v18  ;;  %12698 = vmatprep.subr.msk.mxu1 %vm21608_vm7, %v21423_v18  ;;  %vm21623_vm11 = vnez %v21622_v7  ;;  %vm21627_vm7 = vnez %v21626_v12  ;;  %v21674_v12 = vld [vmem:[#allocation384_spill] sm:$0xff] }
 0x550   :  { %3258 = vmatprep.subr.mxu0 %v21352_v19  ;;  %12699 = vmatpush3.msk.msra.mxu1 %vm21612_vm3, %v21423_v18  ;;  %vm21631_vm3 = vnez %v21630_v22  ;;  %v3003_v61 = vadd.f32 %v3002_v16, %v2963_v13  ;;  %v2986_v52 = vadd.f32 %v2985_v30, %v2984_v24  ;;  %v21667_v24 = vld [vmem:[#allocation364_spill] sm:$0xff]  ;;  %v21672_v16 = vld [vmem:[#allocation377_spill] sm:$0xff] }
 0x551   :  { %11342 = vmatpush1.msk.msra.mxu0 %vm21610_vm10, %v21423_v18  ;;  %12700 = vmatprep.subr.msk.mxu1 %vm21615_vm5, %v21423_v18  ;;  %vm21629_vm10 = vnez %v21628_v41  ;;  %vm21633_vm5 = vnez %v21632_v28  ;;  %v21676_v41 = vld [vmem:[#allocation387_spill] sm:$0xff]  ;;  %v21682_v28 = vld [vmem:[#allocation402_spill] sm:$0xff] }
 0x552   :  { %3260 = vmatprep.subr.mxu0 %v21352_v19  ;;  %12701 = vmatpush3.msk.msra.mxu1 %vm21619_vm0, %v21423_v18  ;;  %vm21637_vm0 = vnez %v21636_v17  ;;  %v3004_v15 = vadd.f32 %v3003_v61, %v2967_v6  ;;  %v2987_v63 = vrot.slane %v2986_v52, 1  ;;  %v21678_v61 = vld [vmem:[#allocation392_spill] sm:$0xff] }
 0x553   :  { %11343 = vmatpush1.msk.msra.mxu0 %vm21617_vm8, %v21423_v18  ;;  %12702 = vmatprep.subr.msk.mxu1 %vm21621_vm15, %v21423_v18  ;;  %vm21635_vm8 = vnez %v21634_v4  ;;  %vm21639_vm15 = vnez %v21638_v11 }
 0x554   :  { %3262 = vmatprep.subr.mxu0 %v21352_v19  ;;  %12703 = vmatpush3.msk.msra.mxu1 %vm21625_vm9, %v21423_v18  ;;  %vm21643_vm9 = vnez %v21642_v10  ;;  %v3005_v0 = vadd.f32 %v3004_v15, %v2971_v58  ;;  %v2988_v13 = vadd.f32 %v2987_v63, %v2986_v52  ;;  %v21680_v58 = vld [vmem:[#allocation398_spill] sm:$0xff] }
 0x555   :  { %11344 = vmatpush1.msk.msra.mxu0 %vm21623_vm11, %v21423_v18  ;;  %12704 = vmatprep.subr.msk.mxu1 %vm21627_vm7, %v21423_v18  ;;  %vm21641_vm11 = vnez %v21640_v42  ;;  %vm21645_vm7 = vnez %v21644_v25 }
 0x556   :  { %3264 = vmatprep.subr.mxu0 %v21352_v19  ;;  %12705 = vmatpush3.msk.msra.mxu1 %vm21631_vm3, %v21423_v18  ;;  %vm21649_vm3 = vnez %v21648_v20  ;;  %v3006_v55 = vadd.f32 %v3005_v0, %v2975_v38  ;;  %v21686_v38 = vld [vmem:[#allocation290_spill] sm:$0xff]  ;;  %v21690_v20 = vld [vmem:[#allocation291_spill] sm:$0xff] }
 0x557   :  { %11345 = vmatpush1.msk.msra.mxu0 %vm21629_vm10, %v21423_v18  ;;  %12706 = vmatprep.subr.msk.mxu1 %vm21633_vm5, %v21423_v18  ;;  %vm21647_vm10 = vnez %v21646_v49  ;;  %vm21651_vm5 = vnez %v21650_v59  ;;  %v16462_v11 = vadd.s32 128, %v21686_v38  ;;  %v16465_v42 = vadd.s32 384, %v21686_v38  ;;  %v21691_v59 = vld [vmem:[#allocation289_spill] sm:$0xff] }
 0x558   :  { %3266 = vmatprep.subr.mxu0 %v21352_v19  ;;  %12707 = vmatpush3.msk.msra.mxu1 %vm21637_vm0, %v21423_v18  ;;  %vm21655_vm0 = vnez %v21654_v47  ;;  %v3007_v8 = vrot.slane %v3006_v55, 4  ;;  %v16468_v10 = vand.u32 15, %v21686_v38  ;;  %v16471_v0 = vadd.s32 256, %v21686_v38 }
 0x559   :  { %11346 = vmatpush1.msk.msra.mxu0 %vm21635_vm8, %v21423_v18  ;;  %12708 = vmatprep.subr.msk.mxu1 %vm21639_vm15, %v21423_v18  ;;  %vm21653_vm8 = vnez %v21652_v57  ;;  %vm21658_vm15 = vnez %v21657_v14  ;;  %21687 = vst [vmem:[#allocation352_spill] sm:$0xff] %v16462_v11  ;;  %21688 = vst [vmem:[#allocation411_spill] sm:$0xff] %v16465_v42  ;;  %v2874_v25 = vand.u32 15, %v16462_v11  ;;  %v20879_v52 = vmul.u32 2, %v16462_v11  ;;  %v21702_v14 = vld [vmem:[#allocation292_spill] sm:$0xff] }
 0x55a   :  { %3268 = vmatprep.subr.mxu0 %v21352_v19  ;;  %12709 = vmatpush3.msk.msra.mxu1 %vm21643_vm9, %v21423_v18  ;;  %vm21662_vm9 = vnez %v21661_v53  ;;  %v3008_v7 = vadd.f32 %v3007_v8, %v3006_v55  ;;  %21689 = vst [vmem:[#allocation353_spill] sm:$0xff] %v16471_v0  ;;  %v2876_v49 = vand.u32 15, %v16465_v42  ;;  %v2875_v55 = vand.u32 15, %v16471_v0 }
 0x55b   :  { %11347 = vmatpush1.msk.msra.mxu0 %vm21641_vm11, %v21423_v18  ;;  %12710 = vmatprep.subr.msk.mxu1 %vm21645_vm7, %v21423_v18  ;;  %vm21660_vm11 = vnez %v21659_v62  ;;  %vm21664_vm7 = vnez %v21663_v9  ;;  %v16484_v57 = vsub.s32 %v20879_v52, %v2874_v25  ;;  %v3739_v47 = vmul.u32 2, %v21690_v20 }
 0x55c   :  { %3270 = vmatprep.subr.mxu0 %v21352_v19  ;;  %12711 = vmatpush3.msk.msra.mxu1 %vm21649_vm3, %v21423_v18  ;;  %v3009_v6 = vrot.slane %v3008_v7, 2  ;;  %vm21679_vm3 = vnez %v21678_v61  ;;  %v20878_v63 = vmul.u32 2, %v21686_v38 }
 0x55d   :  { %11348 = vmatpush1.msk.msra.mxu0 %vm21647_vm10, %v21423_v18  ;;  %12712 = vmatprep.subr.msk.mxu1 %vm21651_vm5, %v21423_v18  ;;  %vm21677_vm10 = vnez %v21676_v41  ;;  %vm21681_vm5 = vnez %v21680_v58 }
 0x55e   :  { %3272 = vmatprep.subr.mxu0 %v21352_v19  ;;  %12713 = vmatpush3.msk.msra.mxu1 %vm21655_vm0, %v21423_v18  ;;  %v3010_v22 = vadd.f32 %v3009_v6, %v3008_v7  ;;  %vm2882_vm0 = vcmp.eq.s32.totalorder %v2874_v25, %v21690_v20 }
 0x55f   :  { %11349 = vmatpush1.msk.msra.mxu0 %vm21653_vm8, %v21423_v18  ;;  %12714 = vmatprep.subr.msk.mxu1 %vm15991_vm12, %v21423_v18  ;;  %vm21668_vm12 = vnez %v21667_v24  ;;  %vm21683_vm8 = vnez %v21682_v28 }
 0x560   :  { %3274 = vmatprep.subr.mxu0 %v21352_v19  ;;  %12715 = vmatpush3.msk.msra.mxu1 %vm21660_vm11, %v21423_v18  ;;  %v3011_v30 = vrot.slane %v3010_v22, 1  ;;  %vm2878_vm11 = vcmp.eq.s32.totalorder %v2874_v25, %v21691_v59  ;;  %v3738_v25 = vmul.u32 2, %v21691_v59 }
 0x561   :  { %11350 = vmatpush1.msk.msra.mxu0 %vm21658_vm15, %v21423_v18  ;;  %12716 = vmatprep.subr.msk.mxu1 %vm21662_vm9, %v21423_v18  ;;  %vm16487_vm15 = vcmp.eq.s32.totalorder %v2876_v49, %v21690_v20  ;;  %vm16497_vm9 = vcmp.eq.s32.totalorder %v2875_v55, %v21690_v20 }
 0x562   :  { %3276 = vmatprep.subr.mxu0 %v21352_v19  ;;  %12717 = vmatpush3.msk.msra.mxu1 %vm16025_vm2, %v21423_v18  ;;  %vm21671_vm2 = vnez %v21670_v54  ;;  %v3012_v17 = vadd.f32 %v3011_v30, %v3010_v22  ;;  %v3324_v30 = vld [vmem:[%s20354_s3] sm:$0x1]  ;;  %v3752_v21 = vadd.s32 1, %v3738_v25 }
 0x563   :  { %11351 = vmatpush1.msk.msra.mxu0 %vm21664_vm7, %v21423_v18  ;;  %12718 = vmatprep.subr.msk.mxu1 %vm16046_vm14, %v21423_v18  ;;  %vm21673_vm14 = vnez %v21672_v16  ;;  %vm16502_vm7 = vcmp.eq.s32.totalorder %v2876_v49, %v21691_v59 }
 0x564   :  { %3278 = vmatprep.subr.mxu0 %v21352_v19  ;;  %12719 = vmatpush3.msk.msra.mxu1 %vm16060_vm1, %v21423_v18  ;;  %vm21675_vm1 = vnez %v21674_v12 }
 0x565   :  { %11352 = vmatpush1.msk.msra.mxu0 %vm21668_vm12, %v21423_v18  ;;  %3245 = vmatmul.mubr.f32.vlgmr.msra.gmra.mxu1 %v2988_v13  ;;  %vm16507_vm12 = vcmp.eq.s32.totalorder %v2875_v55, %v21691_v59  ;;  %v21700_v55 = vmov 0  }
 0x566   :  { %3280 = vmatprep.subr.mxu0 %v21352_v19  ;;  %3470 = vmatprep.mubr.f32.mxu1 %v21352_v19 }
 0x567   :  { %11353 = vmatpush1.msk.msra.mxu0 %vm21671_vm2, %v21423_v18  ;;  %11368 = vmatprep.subr.msk.mxu1 %vm16487_vm15, %v21423_v18  ;;  %vm3331_vm2 = vcmask 130048  }
 0x568   :  { %3298 = vmatprep.subr.mxu0 %v21352_v19  ;;  %11369 = vmatpush1.msk.msra.mxu1 %vm16497_vm9, %v21423_v18 }
 0x569   :  { %11354 = vmatpush2.msk.msra.mxu0 %vm21673_vm14, %v21423_v18  ;;  %11370 = vmatprep.subr.msk.mxu1 %vm16502_vm7, %v21423_v18  ;;  %vm3742_vm14 = vcmp.eq.s32.totalorder %v21686_v38, %v3738_v25 }
 0x56a   :  { %3300 = vmatprep.subr.mxu0 %v21352_v19  ;;  %11371 = vmatpush1.msk.msra.mxu1 %vm16507_vm12, %v21423_v18 }
 0x56b   :  { %11355 = vmatpush2.msk.msra.mxu0 %vm21675_vm1, %v21423_v18  ;;  %11373 = vmatprep.subr.msk.mxu1 %vm2882_vm0, %v21423_v18  ;;  %vm3743_vm1 = vcmp.eq.s32.totalorder %v21686_v38, %v3739_v47 }
 0x56c   :  { %3302 = vmatprep.subr.mxu0 %v21352_v19 }
 0x56d   :  { %11356 = vmatpush2.msk.msra.mxu0 %vm21677_vm10, %v21423_v18  ;;  %vm3756_vm10 = vcmp.eq.s32.totalorder %v21686_v38, %v3752_v21 }
 0x56e   :  { %3304 = vmatprep.subr.mxu0 %v21352_v19 }
 0x56f   :  { %11357 = vmatpush2.msk.msra.mxu0 %vm21679_vm3, %v21423_v18 }
 0x570   :  { %3306 = vmatprep.subr.mxu0 %v21352_v19 }
 0x571   :  { %11358 = vmatpush2.msk.msra.mxu0 %vm21681_vm5, %v21423_v18 }
 0x572   :  { %3308 = vmatprep.subr.mxu0 %v21352_v19 }
 0x573   :  { %11359 = vmatpush2.msk.msra.mxu0 %vm21683_vm8, %v21423_v18 }
 0x574   :  { %3310 = vmatprep.subr.mxu0 %v21352_v19 }
 0x575   :  { %11360 = vmatpush2.msk.msra.mxu0 %vm16055_vm4, %v21423_v18  ;;  %vm2877_vm4 = vcmp.eq.s32.totalorder %v16468_v10, %v21691_v59 }
 0x576   :  { %3312 = vmatprep.subr.mxu0 %v21352_v19 }
 0x577   :  { %11361 = vmatpush2.msk.msra.mxu0 %vm16076_vm13, %v21423_v18  ;;  %vm2881_vm13 = vcmp.eq.s32.totalorder %v16468_v10, %v21690_v20 }
 0x578   :  { %3315 = vmatmul.mubr.f32.vlgmr.msra.gmra.mxu0 %v3012_v17  ;;  %11363 = vmatprep.subr.msk.mxu0 %vm2882_vm0, %v21423_v18  ;;  %v3328_v17 = vld [vmem:[%s20355_s4] sm:$0x1] }
 0x579   :  { %3399 = vmatprep.mubr.f32.mxu0 %v21352_v19  ;;  %11364 = vmatpush1.msk.msra.mxu0 %vm2881_vm13, %v21423_v18 }
 0x57a   :  { %11365 = vmatprep.subr.msk.mxu0 %vm2878_vm11, %v21423_v18 }
 0x57b   :  { %11366 = vmatpush1.msk.msra.mxu0 %vm2877_vm4, %v21423_v18 }
 0x604   :  { %v12685_v53 = vpop.f32.mrf.mxu1 }
 0x606   :  { %v12686_v9 = vpop.f32.mrf.mxu1 }
 0x607   :  { %v12687_v46 = vadd.f32 %v12686_v9, %v12685_v53  ;;  %v3740_v53 = vmul.u32 2, %v21702_v14  ;;  %v21703_v9 = vld [vmem:[#allocation293_spill] sm:$0xff] }
 0x608   :  { %v3171_v62 = vpop.f32.mrf.mxu0 }
 0x609   :  { %v3172_v13 = vadd.f32 %v12687_v46, %v3171_v62  ;;  %v3753_v62 = vadd.s32 1, %v3739_v47  ;;  %v3741_v46 = vmul.u32 2, %v21703_v9  ;;  %vm3744_vm5 = vcmp.eq.s32.totalorder %v21686_v38, %v3740_v53 }
 0x60a   :  { %v3173_v8 = vpop.f32.mrf.mxu0 }
 0x60b   :  { %v3176_v31 = vmul.f32 0.0006377551, %v3172_v13  ;;  %v16572_v8 = vsub.s32 0, %v21691_v59  ;;  %vm3757_vm3 = vcmp.eq.s32.totalorder %v21686_v38, %v3753_v62  ;;  %vm3745_vm8 = vcmp.eq.s32.totalorder %v21686_v38, %v3741_v46 }
 0x60d   :  { %v3321_v41 = vmul.f32 %v3176_v31, %v3176_v31  ;;  %21701 = vst [vmem:[#allocation315_spill] sm:$0xff] %v16572_v8 }
 0x625   :  { %v12720_v39 = vpop.f32.mrf.mxu1 }
 0x627   :  { %v12721_v24 = vpop.f32.mrf.mxu1 }
 0x628   :  { %v12722_v7 = vadd.f32 %v12721_v24, %v12720_v39  ;;  %v3746_v24 = vsel %vm3742_vm14, 1.0, %v21352_v19 }
 0x638   :  { %v3316_v54 = vpop.f32.mrf.mxu0 }
 0x639   :  { %v3317_v16 = vadd.f32 %v12722_v7, %v3316_v54  ;;  %v3760_v7 = vsel %vm3756_vm10, 1.0, %v21352_v19  ;;  %v3761_v54 = vsel %vm3757_vm3, 1.0, %v21352_v19 }
 0x63a   :  { %v3318_v6 = vpop.f32.mrf.mxu0 }
 0x63b   :  { %v3320_v12 = vmul.f32 0.0006377551, %v3317_v16 }
 0x63d   :  { %v3322_v22 = vsub.f32 %v3320_v12, %v3321_v41  ;;  %v16591_v41 = vsub.s32 %v20878_v63, %v16468_v10 }
 0x63f   :  { %v3323_v61 = vmax.f32 %v3322_v22, 0.0 }
 0x641   :  { %v3325_v58 = vadd.f32 1e-05, %v3323_v61 }
 0x643   :  { %12943 = vrsqrt.f32 %v3325_v58  ;;  %v16596_v58 = vpack.c.bf16 %v3761_v54, %v3760_v7 }
 0x645   :  { %21705 = vst [vmem:[#allocation413_spill] sm:$0xff] %v16596_v58 }
 0x650   :  { %v12944_v28 = vpop.eup %12943 }
 0x651   :  { %v3327_v4 = vmul.f32 %v12944_v28, %v3324_v30  ;;  %v3748_v28 = vsel %vm3744_vm5, 1.0, %v21352_v19 }
 0x653   :  { %11367 = vmatmul.mubr.msk.f32.vlgmr.msra.gmra.mxu0 %vm3331_vm2, %v3327_v4  ;;  %11372 = vmatmul.mubr.msk.f32.vlgmr.msra.gmra.mxu1 %vm3331_vm2, %v3327_v4  ;;  %v3329_v15 = vmul.f32 %v3327_v4, %v3176_v31  ;;  %v3747_v31 = vsel %vm3743_vm1, 1.0, %v21352_v19  ;;  %v3749_v4 = vsel %vm3745_vm8, 1.0, %v21352_v19 }
 0x654   :  { %11374 = vmatpush1.msk.msra.mxu1 %vm2881_vm13, %v21423_v18  ;;  %3544 = vmatprep.mubr.f32.mxu1 %v21352_v19  ;;  %v16594_v61 = vpack.c.bf16 %v3747_v31, %v3746_v24  ;;  %vm21706_vm13 = vcmask 1043456  }
 0x655   :  { %11375 = vmatprep.subr.msk.mxu1 %vm2878_vm11, %v21423_v18  ;;  %v3330_v49 = vsub.f32 %v3328_v17, %v3329_v15  ;;  %4510 = vmatprep.mubr.bf16.mxu0 %v21700_v55  ;;  %v16600_v17 = vadd.s32 1, %v3740_v53  ;;  %v16602_v15 = vadd.s32 1, %v3741_v46 }
 0x656   :  { %11376 = vmatpush1.msk.msra.mxu1 %vm2877_vm4, %v21423_v18  ;;  %21704 = vst [vmem:[#allocation356_spill] sm:$0xff] %v16594_v61  ;;  %vm21707_vm4 = vmmov %vm21706_vm13 }
 0x657   :  { %11377 = vmatmul.mubr.msk.f32.vlgmr.msra.gmra.mxu1 %vm3331_vm2, %v3330_v49  ;;  %11378 = vmatprep.subr.msk.mxu1 %vm16487_vm15, %v21423_v18  ;;  %vm21708_vm0 = vmmov %vm21707_vm4  ;;  %vm3758_vm15 = vcmp.eq.s32.totalorder %v21686_v38, %v16600_v17  ;;  %vm3759_vm11 = vcmp.eq.s32.totalorder %v21686_v38, %v16602_v15 }
 0x658   :  { %11379 = vmatpush1.msk.msra.mxu1 %vm16497_vm9, %v21423_v18  ;;  %3615 = vmatprep.mubr.f32.mxu1 %v21352_v19  ;;  %vm21718_vm5 = vmmov %vm21708_vm0 }
 0x659   :  { %11380 = vmatprep.subr.msk.mxu1 %vm16502_vm7, %v21423_v18  ;;  %vm21721_vm8 = vmmov %vm21708_vm0 }
 0x65a   :  { %11381 = vmatpush1.msk.msra.mxu1 %vm16507_vm12, %v21423_v18 }
 0x65b   :  { %11382 = vmatmul.mubr.msk.f32.vlgmr.msra.gmra.mxu1 %vm3331_vm2, %v3330_v49 }
 0x65c   :  { %4398 = vmatprep.mubr.bf16.mxu1 %v21700_v55 }
 0x713   :  { %v3401_v39 = vpop.f32.mrf.mxu0  ;;  %v3472_v13 = vpop.f32.mrf.mxu1 }
 0x714   :  { %v3625_v16 = vrot.slane %v3401_v39, %v16572_v8  ;;  %v16605_v49 = vrot.slane %v3472_v13, %v16572_v8 }
 0x715   :  { %v3403_v6 = vpop.f32.mrf.mxu0  ;;  %v3474_v12 = vpop.f32.mrf.mxu1 }
 0x716   :  { %v3629_v22 = vrot.slane %v3403_v6, %v16572_v8  ;;  %v16608_v10 = vrot.slane %v3474_v12, %v16572_v8  ;;  %v3662_v47 = vmul.f32 %v3625_v16, %v16207_v36  ;;  %v3654_v62 = vmul.f32 %v3625_v16, %v16165_v40 }
 0x717   :  { %v3546_v30 = vpop.f32.mrf.mxu1  ;;  %v3658_v39 = vmul.f32 %v3625_v16, %v16182_v32  ;;  %v3646_v53 = vmul.f32 %v3625_v16, %v16123_v60  ;;  %v3650_v46 = vmul.f32 %v3625_v16, %v16146_v23  ;;  %v3638_v32 = vmul.f32 %v3625_v16, %v16113_v2 }
 0x718   :  { %v3669_v25 = vrot.slane %v3546_v30, %v16572_v8  ;;  %v3663_v13 = vmul.f32 %v3629_v22, %v16226_v48  ;;  %v3655_v7 = vmul.f32 %v3629_v22, %v16171_v35  ;;  %v3659_v6 = vmul.f32 %v3629_v22, %v16199_v56 }
 0x719   :  { %v3548_v21 = vpop.f32.mrf.mxu1  ;;  %v3647_v36 = vmul.f32 %v3629_v22, %v16126_v51  ;;  %v3651_v40 = vmul.f32 %v3629_v22, %v16149_v45  ;;  %v3639_v48 = vmul.f32 %v3629_v22, %v16097_v3  ;;  %v3643_v56 = vmul.f32 %v3629_v22, %v16094_v37 }
 0x71a   :  { %v3673_v24 = vrot.slane %v3548_v21, %v16572_v8  ;;  %v3706_v31 = vadd.f32 %v3669_v25, %v3662_v47  ;;  %v3698_v23 = vadd.f32 %v3669_v25, %v3654_v62  ;;  %v3702_v21 = vadd.f32 %v3669_v25, %v3658_v39 }
 0x71b   :  { %v3617_v54 = vpop.f32.mrf.mxu1  ;;  %v3690_v45 = vadd.f32 %v3669_v25, %v3646_v53  ;;  %v3694_v18 = vadd.f32 %v3669_v25, %v3650_v46  ;;  %v3642_v39 = vmul.f32 %v3625_v16, %v16102_v27  ;;  %v3682_v46 = vadd.f32 %v3669_v25, %v3638_v32 }
 0x71c   :  { %v3707_v12 = vadd.f32 %v3673_v24, %v3663_v13  ;;  %v3734_v60 = vmax.f32 %v3706_v31, 0.0  ;;  %v3699_v30 = vadd.f32 %v3673_v24, %v3655_v7  ;;  %v3703_v63 = vadd.f32 %v3673_v24, %v3659_v6 }
 0x71d   :  { %v3691_v52 = vadd.f32 %v3673_v24, %v3647_v36  ;;  %v3619_v47 = vpop.f32.mrf.mxu1  ;;  %v3695_v11 = vadd.f32 %v3673_v24, %v3651_v40  ;;  %v16626_v2 = vrot.slane %v3617_v54, %v16572_v8  ;;  %v3726_v62 = vmax.f32 %v3698_v23, 0.0  ;;  %v21710_v40 = vld [vmem:[#allocation332_spill] sm:$0xff] }
 0x71e   :  { %v3735_v35 = vmax.f32 %v3707_v12, 0.0  ;;  %v4344_v0 = vpack.c.bf16 %v3734_v60, %v3734_v60  ;;  %v3727_v42 = vmax.f32 %v3699_v30, 0.0  ;;  %v3731_v51 = vmax.f32 %v3703_v63, 0.0  ;;  %v21711_v30 = vld [vmem:[#allocation329_spill] sm:$0xff] }
 0x71f   :  { %v16630_v31 = vrot.slane %v3619_v47, %v16572_v8  ;;  %v3730_v7 = vmax.f32 %v3702_v21, 0.0  ;;  %v3719_v6 = vmax.f32 %v3691_v52, 0.0  ;;  %v3723_v63 = vmax.f32 %v3695_v11, 0.0 }
 0x720   :  { %v4345_v13 = vpack.c.bf16 %v3735_v35, %v3735_v35  ;;  %v4355_v3 = vsel %vm21706_vm13, %v4344_v0, 0  ;;  %v4341_v37 = vpack.c.bf16 %v3731_v51, %v3727_v42  ;;  %v3683_v22 = vadd.f32 %v3673_v24, %v3639_v48 }
 0x721   :  { %v3687_v53 = vadd.f32 %v3673_v24, %v3643_v56  ;;  %v3664_v27 = vmul.f32 %v16605_v49, %v16210_v1  ;;  %v16637_v16 = vpack.c.bf16 %v3749_v4, %v3748_v28  ;;  %v3718_v0 = vmax.f32 %v3690_v45, 0.0 }
 0x722   :  { %11383 = vmatprep.subr.msk.bf16.mxu1 %vm21707_vm4, %v4345_v13  ;;  %11389 = vmatprep.subr.msk.bf16.mxu0 %vm21708_vm0, %v4345_v13  ;;  %v3722_v52 = vmax.f32 %v3694_v18, 0.0  ;;  %v3686_v54 = vadd.f32 %v3669_v25, %v3642_v39  ;;  %v3665_v36 = vmul.f32 %v16608_v10, %v16233_v43  ;;  %v4340_v42 = vpack.c.bf16 %v3730_v7, %v3726_v62  ;;  %v21709_v43 = vld [vmem:[#allocation415_spill] sm:$0xff]  ;;  %v21713_v13 = vld [vmem:[#allocation412_spill] sm:$0xff]  ;;  %v21714_v39 = vld [vmem:[#allocation414_spill] sm:$0xff] }
 0x723   :  { %4375 = vmatpush1.bf16.msra.mxu1 %v4355_v3  ;;  %4487 = vmatpush1.bf16.msra.mxu0 %v4355_v3  ;;  %v3708_v11 = vadd.f32 %v16626_v2, %v3664_v27  ;;  %v4337_v1 = vpack.c.bf16 %v3723_v63, %v3719_v6  ;;  %v3711_v28 = vmax.f32 %v3683_v22, 0.0  ;;  %v3715_v4 = vmax.f32 %v3687_v53, 0.0  ;;  %v21717_v27 = vld [vmem:[#allocation337_spill] sm:$0xff] }
 0x724   :  { %4376 = vmatprep.subr.bf16.mxu1 %v4341_v37  ;;  %4488 = vmatprep.subr.bf16.mxu0 %v4341_v37  ;;  %v3709_v24 = vadd.f32 %v16630_v31, %v3665_v36  ;;  %v3657_v18 = vmul.f32 %v16608_v10, %v16178_v44  ;;  %v3661_v25 = vmul.f32 %v16608_v10, %v21709_v43  ;;  %v3710_v12 = vmax.f32 %v3682_v46, 0.0  ;;  %v21738_v63 = vld [vmem:[#allocation317_spill] sm:$0xff] }
 0x725   :  { %vm3799_vm9 = vcmp.eq.s32.totalorder %v21710_v40, %v16484_v57  ;;  %v4336_v32 = vpack.c.bf16 %v3722_v52, %v3718_v0  ;;  %v3714_v60 = vmax.f32 %v3686_v54, 0.0  ;;  %vm3801_vm7 = vcmp.eq.s32.totalorder %v21711_v30, %v16484_v57 }
 0x726   :  { %v3736_v23 = vmax.f32 %v3708_v11, 0.0  ;;  %v3701_v21 = vadd.f32 %v16630_v31, %v3657_v18  ;;  %v3705_v48 = vadd.f32 %v16630_v31, %v3661_v25  ;;  %v3656_v44 = vmul.f32 %v16605_v49, %v16168_v33  ;;  %v21712_v33 = vld [vmem:[#allocation340_spill] sm:$0xff]  ;;  %vm16683_vm1 = vmpackc.low %vm3801_vm7, %vm3799_vm9  ;;  %v21719_v11 = vld [vmem:[#allocation409_spill] sm:$0xff] }
 0x727   :  { %4377 = vmatpush1.bf16.msra.mxu1 %v4340_v42  ;;  %4489 = vmatpush1.bf16.msra.mxu0 %v4340_v42  ;;  %v4333_v47 = vpack.c.bf16 %v3715_v4, %v3711_v28  ;;  %v3737_v35 = vmax.f32 %v3709_v24, 0.0  ;;  %v3660_v56 = vmul.f32 %v16605_v49, %v16185_v5  ;;  %vm3798_vm12 = vcmp.eq.s32.totalorder %v21710_v40, %v16591_v41  ;;  %v21720_v28 = vld [vmem:[#allocation410_spill] sm:$0xff] }
 0x728   :  { %4378 = vmatprep.subr.bf16.mxu1 %v4337_v1  ;;  %4490 = vmatprep.subr.bf16.mxu0 %v4337_v1  ;;  %v3700_v51 = vadd.f32 %v16626_v2, %v3656_v44  ;;  %v3762_v45 = vsel %vm3758_vm15, 1.0, %v21352_v19  ;;  %vm3800_vm2 = vcmp.eq.s32.totalorder %v21711_v30, %v16591_v41  ;;  %vm3795_vm14 = vcmp.eq.s32.totalorder %v21712_v33, %v16484_v57 }
 0x729   :  { %v3704_v5 = vadd.f32 %v16626_v2, %v3660_v56  ;;  %v3649_v62 = vmul.f32 %v16608_v10, %v21713_v13  ;;  %v3653_v3 = vmul.f32 %v16608_v10, %v21714_v39  ;;  %v4332_v7 = vpack.c.bf16 %v3714_v60, %v3710_v12  ;;  %vm16731_vm0 = vmpackc.low %vm3800_vm2, %vm3798_vm12  ;;  %v21762_v12 = vld [vmem:[#allocation327_spill] sm:$0xff] }
 0x72a   :  { %v4346_v6 = vpack.c.bf16 %v3736_v23, %v3736_v23  ;;  %v3729_v17 = vmax.f32 %v3701_v21, 0.0  ;;  %v3733_v37 = vmax.f32 %v3705_v48, 0.0  ;;  %v16687_v22 = vpack.c.bf16 %v3737_v35, %v3737_v35 }
 0x72b   :  { %4379 = vmatpush1.bf16.msra.mxu1 %v4336_v32  ;;  %4491 = vmatpush1.bf16.msra.mxu0 %v4336_v32  ;;  %v3693_v53 = vadd.f32 %v16630_v31, %v3649_v62  ;;  %v3697_v46 = vadd.f32 %v16630_v31, %v3653_v3  ;;  %vm3797_vm10 = vcmp.eq.s32.totalorder %v21717_v27, %v16484_v57  ;;  %v3763_v0 = vsel %vm3759_vm11, 1.0, %v21352_v19  ;;  %v21732_v3 = vld [vmem:[#allocation297_spill] sm:$0xff] }
 0x72c   :  { %4380 = vmatprep.subr.bf16.mxu1 %v4333_v47  ;;  %4492 = vmatprep.subr.bf16.mxu0 %v4333_v47  ;;  %v3648_v52 = vmul.f32 %v16605_v49, %v16134_v29  ;;  %v3652_v54 = vmul.f32 %v16605_v49, %v16155_v26  ;;  %vm3794_vm3 = vcmp.eq.s32.totalorder %v21712_v33, %v16591_v41  ;;  %v3728_v36 = vmax.f32 %v3700_v51, 0.0  ;;  %vm11399_vm15 = vmpackc.low %vm3797_vm10, %vm3795_vm14  ;;  %v21727_v51 = vld [vmem:[#allocation345_spill] sm:$0xff] }
 0x72d   :  { %v3732_v42 = vmax.f32 %v3704_v5, 0.0  ;;  %v3641_v1 = vmul.f32 %v16608_v10, %v21719_v11  ;;  %v3645_v15 = vmul.f32 %v16608_v10, %v21720_v28  ;;  %v20902_v4 = vmov 1.0|1.0   ;;  %v21749_v11 = vld [vmem:[#allocation357_spill] sm:$0xff]  ;;  %v21752_v28 = vld [vmem:[#allocation368_spill] sm:$0xff] }
 0x72e   :  { %v16713_v26 = vsel %vm21721_vm8, %v4346_v6, 0  ;;  %v16715_v29 = vpack.c.bf16 %v3733_v37, %v3729_v17  ;;  %v3692_v24 = vadd.f32 %v16626_v2, %v3648_v52  ;;  %v3696_v18 = vadd.f32 %v16626_v2, %v3652_v54  ;;  %v21735_v17 = vld [vmem:[#allocation294_spill] sm:$0xff]  ;;  %v21736_v37 = vld [vmem:[#allocation295_spill] sm:$0xff] }
 0x72f   :  { %4381 = vmatpush1.bf16.msra.mxu1 %v4332_v7  ;;  %4493 = vmatpush1.bf16.msra.mxu0 %v4332_v7  ;;  %vm21722_vm13 = vcmask 457728   ;;  %v3721_v10 = vmax.f32 %v3693_v53, 0.0  ;;  %v3725_v43 = vmax.f32 %v3697_v46, 0.0  ;;  %v3685_v25 = vadd.f32 %v16630_v31, %v3641_v1  ;;  %v21733_v7 = vld [vmem:[#allocation367_spill] sm:$0xff]  ;;  %v21741_v53 = vld [vmem:[#allocation326_spill] sm:$0xff]  ;;  %v21750_v1 = vld [vmem:[#allocation349_spill] sm:$0xff] }
 0x730   :  { %11386 = vmatprep.subr.msk.bf16.mxu1 %vm21718_vm5, %v16687_v22  ;;  %11396 = vmatprep.subr.msk.bf16.mxu0 %vm16683_vm1, %v20902_v4  ;;  %vm21723_vm4 = vmmov %vm21722_vm13  ;;  %v3689_v32 = vadd.f32 %v16630_v31, %v3645_v15  ;;  %v3640_v60 = vmul.f32 %v16605_v49, %v21613_v34  ;;  %v3644_v31 = vmul.f32 %v16605_v49, %v21606_v50  ;;  %v21726_v50 = vld [vmem:[#allocation348_spill] sm:$0xff]  ;;  %v3720_v49 = vmax.f32 %v3692_v24, 0.0  ;;  %v21742_v46 = vld [vmem:[#allocation318_spill] sm:$0xff] }
 0x731   :  { %vm3796_vm11 = vcmp.eq.s32.totalorder %v21717_v27, %v16591_v41  ;;  %v16750_v23 = vpack.c.bf16 %v3732_v42, %v3728_v36  ;;  %v16753_v34 = vpack.c.bf16 %v3763_v0, %v3762_v45  ;;  %vm3791_vm9 = vcmp.eq.s32.totalorder %v21726_v50, %v16484_v57  ;;  %v21729_v45 = vld [vmem:[#allocation354_spill] sm:$0xff]  ;;  %vm21730_vm5 = vmmov %vm21723_vm4  ;;  %v21743_v0 = vld [vmem:[#allocation313_spill] sm:$0xff] }
 0x732   :  { %11384 = vmatmul.mubr.msk.bf16.vlgmr.msra.gmra.mxu1 %vm21722_vm13, %v16594_v61  ;;  %11390 = vmatmul.mubr.msk.bf16.vlgmr.msra.gmra.mxu0 %vm21723_vm4, %v16596_v58  ;;  %v3724_v21 = vmax.f32 %v3696_v18, 0.0  ;;  %v3684_v48 = vadd.f32 %v16626_v2, %v3640_v60  ;;  %v3688_v44 = vadd.f32 %v16626_v2, %v3644_v31  ;;  %v4339_v47 = vpack.c.bf16 %v3725_v43, %v3721_v10  ;;  %vm11401_vm7 = vmpackc.low %vm3796_vm11, %vm3794_vm3  ;;  %v21728_v2 = vld [vmem:[#allocation363_spill] sm:$0xff]  ;;  %v21744_v52 = vld [vmem:[#allocation338_spill] sm:$0xff] }
 0x733   :  { %4428 = vmatpush1.bf16.msra.mxu1 %v16713_v26  ;;  %4408 = vmatprep.mubr.bf16.mxu1 %v21700_v55  ;;  %v3713_v35 = vmax.f32 %v3685_v25, 0.0  ;;  %v3717_v56 = vmax.f32 %v3689_v32, 0.0  ;;  %vm3793_vm12 = vcmp.eq.s32.totalorder %v21727_v51, %v16484_v57  ;;  %vm3790_vm2 = vcmp.eq.s32.totalorder %v21726_v50, %v16591_v41  ;;  %vm21731_vm8 = vmmov %vm21723_vm4  ;;  %v21745_v54 = vld [vmem:[#allocation334_spill] sm:$0xff]  ;;  %v21753_v15 = vld [vmem:[#allocation365_spill] sm:$0xff] }
 0x734   :  { %4429 = vmatprep.subr.bf16.mxu1 %v16715_v29  ;;  %4520 = vmatprep.mubr.bf16.mxu0 %v21700_v55  ;;  %vm3792_vm14 = vcmp.eq.s32.totalorder %v21727_v51, %v16591_v41  ;;  %vm3787_vm1 = vcmp.eq.s32.totalorder %v21728_v2, %v16484_v57  ;;  %vm3789_vm10 = vcmp.eq.s32.totalorder %v21729_v45, %v16484_v57  ;;  %v3712_v13 = vmax.f32 %v3684_v48, 0.0  ;;  %vm11403_vm3 = vmpackc.low %vm3793_vm12, %vm3791_vm9  ;;  %v21747_v36 = vld [vmem:[#allocation346_spill] sm:$0xff]  ;;  %v21756_v24 = vld [vmem:[#allocation389_spill] sm:$0xff] }
 0x735   :  { %11398 = vmatpush1.bf16.msk.msra.mxu0 %vm16731_vm0, %v20902_v4  ;;  %v4338_v5 = vpack.c.bf16 %v3724_v21, %v3720_v49  ;;  %v3716_v62 = vmax.f32 %v3688_v44, 0.0  ;;  %v4335_v39 = vpack.c.bf16 %v3717_v56, %v3713_v35  ;;  %vm11405_vm13 = vmpackc.low %vm3792_vm14, %vm3790_vm2  ;;  %vm3786_vm0 = vcmp.eq.s32.totalorder %v21728_v2, %v16591_v41  ;;  %v21748_v42 = vld [vmem:[#allocation342_spill] sm:$0xff]  ;;  %v21757_v18 = vld [vmem:[#allocation381_spill] sm:$0xff] }
 0x736   :  { %11400 = vmatprep.subr.msk.bf16.mxu0 %vm11399_vm15, %v20902_v4  ;;  %vm11407_vm4 = vmpackc.low %vm3789_vm10, %vm3787_vm1  ;;  %vm3788_vm15 = vcmp.eq.s32.totalorder %v21729_v45, %v16591_v41  ;;  %vm3783_vm11 = vcmp.eq.s32.totalorder %v21732_v3, %v16484_v57  ;;  %vm3785_vm9 = vcmp.eq.s32.totalorder %v21733_v7, %v16484_v57  ;;  %vm3782_vm2 = vcmp.eq.s32.totalorder %v21732_v3, %v16591_v41  ;;  %v21758_v10 = vld [vmem:[#allocation319_spill] sm:$0xff]  ;;  %v21759_v43 = vld [vmem:[#allocation314_spill] sm:$0xff] }
 0x737   :  { %4430 = vmatpush1.bf16.msra.mxu1 %v16750_v23  ;;  %v4334_v6 = vpack.c.bf16 %v3716_v62, %v3712_v13  ;;  %vm11411_vm12 = vmpackc.low %vm3785_vm9, %vm3783_vm11  ;;  %vm3784_vm14 = vcmp.eq.s32.totalorder %v21733_v7, %v16591_v41  ;;  %vm21734_vm1 = vcmask 1043456   ;;  %vm3779_vm10 = vcmp.eq.s32.totalorder %v21735_v17, %v16484_v57  ;;  %v21760_v25 = vld [vmem:[#allocation396_spill] sm:$0xff]  ;;  %v21761_v32 = vld [vmem:[#allocation393_spill] sm:$0xff] }
 0x738   :  { %4431 = vmatprep.subr.bf16.mxu1 %v4339_v47  ;;  %vm3777_vm11 = vcmp.eq.s32.totalorder %v21703_v9, %v16484_v57  ;;  %v21763_v60 = vld [vmem:[#allocation320_spill] sm:$0xff]  ;;  %v21764_v31 = vld [vmem:[#allocation335_spill] sm:$0xff]  ;;  %v21774_v13 = vld [vmem:[#allocation382_spill] sm:$0xff] }
 0x739   :  { %11402 = vmatpush1.bf16.msk.msra.mxu0 %vm11401_vm7, %v20902_v4  ;;  %vm11409_vm7 = vmpackc.low %vm3788_vm15, %vm3786_vm0  ;;  %vm3780_vm0 = vcmp.eq.s32.totalorder %v21736_v37, %v16591_v41  ;;  %vm3775_vm15 = vcmp.eq.s32.totalorder %v21702_v14, %v16484_v57  ;;  %v21766_v49 = vld [vmem:[#allocation343_spill] sm:$0xff] }
 0x73a   :  { %11385 = vmatmul.mubr.msk.bf16.gmra.mxu1 %vm21730_vm5, %v16637_v16  ;;  %11391 = vmatmul.mubr.msk.bf16.gmra.mxu0 %vm21731_vm8, %v16753_v34  ;;  %vm11413_vm8 = vmpackc.low %vm3784_vm14, %vm3782_vm2  ;;  %vm3776_vm2 = vcmp.eq.s32.totalorder %v21703_v9, %v16591_v41  ;;  %vm3771_vm14 = vcmp.eq.s32.totalorder %v21691_v59, %v16484_v57  ;;  %v21767_v21 = vld [vmem:[#allocation339_spill] sm:$0xff] }
 0x73b   :  { %4432 = vmatpush1.bf16.msra.mxu1 %v4338_v5  ;;  %4451 = vmatprep.mubr.bf16.mxu1 %v21700_v55  ;;  %v21768_v48 = vld [vmem:[#allocation351_spill] sm:$0xff] }
 0x73c   :  { %4433 = vmatprep.subr.bf16.mxu1 %v4335_v39  ;;  %11404 = vmatprep.subr.msk.bf16.mxu0 %vm11403_vm3, %v20902_v4  ;;  %vm3781_vm3 = vcmp.eq.s32.totalorder %v21736_v37, %v16484_v57  ;;  %v21769_v44 = vld [vmem:[#allocation347_spill] sm:$0xff] }
 0x73d   :  { %11406 = vmatpush1.bf16.msk.msra.mxu0 %vm11405_vm13, %v20902_v4  ;;  %vm11415_vm13 = vmpackc.low %vm3781_vm3, %vm3779_vm10  ;;  %v21771_v35 = vld [vmem:[#allocation359_spill] sm:$0xff] }
 0x73e   :  { %11408 = vmatprep.subr.msk.bf16.mxu0 %vm11407_vm4, %v20902_v4  ;;  %vm3778_vm4 = vcmp.eq.s32.totalorder %v21735_v17, %v16591_v41  ;;  %vm21737_vm10 = vmmov %vm21730_vm5  ;;  %v21772_v56 = vld [vmem:[#allocation375_spill] sm:$0xff] }
 0x73f   :  { %4434 = vmatpush1.bf16.msra.mxu1 %v4334_v6  ;;  %vm11417_vm9 = vmpackc.low %vm3780_vm0, %vm3778_vm4  ;;  %vm3770_vm4 = vcmp.eq.s32.totalorder %v21691_v59, %v16591_v41  ;;  %vm3772_vm0 = vcmp.eq.s32.totalorder %v21690_v20, %v16591_v41  ;;  %v21775_v62 = vld [vmem:[#allocation379_spill] sm:$0xff] }
 0x740   :  { %11392 = vmatprep.subr.msk.bf16.mxu1 %vm21734_vm1, %v16687_v22  ;;  %vm3773_vm1 = vcmp.eq.s32.totalorder %v21690_v20, %v16484_v57  ;;  %v21739_v22 = vld [vmem:[#allocation316_spill] sm:$0xff] }
 0x741   :  { %11410 = vmatpush1.bf16.msk.msra.mxu0 %vm11409_vm7, %v20902_v4  ;;  %vm11419_vm7 = vmpackc.low %vm3777_vm11, %vm3775_vm15  ;;  %vm3833_vm11 = vcmp.eq.s32.totalorder %v21741_v53, %v16484_v57 }
 0x742   :  { %11387 = vmatmul.mubr.msk.bf16.vlgmr.msra.gmra.mxu1 %vm21730_vm5, %v16594_v61  ;;  %11412 = vmatprep.subr.msk.bf16.mxu0 %vm11411_vm12, %v20902_v4  ;;  %vm3774_vm12 = vcmp.eq.s32.totalorder %v21702_v14, %v16591_v41  ;;  %vm3863_vm5 = vcmp.eq.s32.totalorder %v21738_v63, %v16484_v57  ;;  %v21779_v61 = vld [vmem:[#allocation400_spill] sm:$0xff] }
 0x743   :  { %4540 = vmatpush1.bf16.msra.mxu1 %v16713_v26  ;;  %4461 = vmatprep.mubr.bf16.mxu1 %v21700_v55  ;;  %vm11421_vm3 = vmpackc.low %vm3776_vm2, %vm3774_vm12  ;;  %vm3864_vm12 = vcmp.eq.s32.totalorder %v21739_v22, %v16591_v41  ;;  %v21754_v26 = vld [vmem:[#allocation378_spill] sm:$0xff] }
 0x744   :  { %4541 = vmatprep.subr.bf16.mxu1 %v16715_v29  ;;  %vm11425_vm2 = vmpackc.low %vm3772_vm0, %vm3770_vm4  ;;  %v21755_v29 = vld [vmem:[#allocation374_spill] sm:$0xff] }
 0x745   :  { %11414 = vmatpush1.bf16.msk.msra.mxu0 %vm11413_vm8, %v20902_v4  ;;  %vm3865_vm8 = vcmp.eq.s32.totalorder %v21739_v22, %v16484_v57 }
 0x746   :  { %11416 = vmatprep.subr.msk.bf16.mxu0 %vm11415_vm13, %v20902_v4  ;;  %vm11423_vm13 = vmpackc.low %vm3773_vm1, %vm3771_vm14  ;;  %vm3859_vm14 = vcmp.eq.s32.totalorder %v21742_v46, %v16484_v57  ;;  %vm3861_vm1 = vcmp.eq.s32.totalorder %v21743_v0, %v16484_v57 }
 0x747   :  { %4542 = vmatpush1.bf16.msra.mxu1 %v16750_v23  ;;  %vm11463_vm0 = vmpackc.low %vm3861_vm1, %vm3859_vm14  ;;  %v21765_v23 = vld [vmem:[#allocation331_spill] sm:$0xff] }
 0x748   :  { %4543 = vmatprep.subr.bf16.mxu1 %v4339_v47  ;;  %v21770_v47 = vld [vmem:[#allocation366_spill] sm:$0xff] }
 0x749   :  { %11418 = vmatpush1.bf16.msk.msra.mxu0 %vm11417_vm9, %v20902_v4  ;;  %vm11459_vm9 = vmpackc.low %vm3865_vm8, %vm3863_vm5  ;;  %vm3832_vm5 = vcmp.eq.s32.totalorder %v21741_v53, %v16591_v41  ;;  %vm3827_vm8 = vcmp.eq.s32.totalorder %v21744_v52, %v16484_v57 }
 0x74a   :  { %11388 = vmatmul.mubr.msk.bf16.gmra.mxu1 %vm21737_vm10, %v16637_v16  ;;  %11420 = vmatprep.subr.msk.bf16.mxu0 %vm11419_vm7, %v20902_v4  ;;  %v21740_v16 = vld [vmem:[#allocation330_spill] sm:$0xff]  ;;  %vm3862_vm7 = vcmp.eq.s32.totalorder %v21738_v63, %v16591_v41 }
 0x74b   :  { %4544 = vmatpush1.bf16.msra.mxu1 %v4338_v5  ;;  %4563 = vmatprep.mubr.bf16.mxu1 %v21700_v55  ;;  %vm3831_vm15 = vcmp.eq.s32.totalorder %v21740_v16, %v16484_v57  ;;  %vm11461_vm4 = vmpackc.low %vm3864_vm12, %vm3862_vm7  ;;  %vm3828_vm7 = vcmp.eq.s32.totalorder %v21745_v54, %v16591_v41  ;;  %vm3823_vm12 = vcmp.eq.s32.totalorder %v21747_v36, %v16484_v57  ;;  %v21773_v5 = vld [vmem:[#allocation369_spill] sm:$0xff] }
 0x74c   :  { %4545 = vmatprep.subr.bf16.mxu1 %v4335_v39  ;;  %vm11427_vm10 = vmpackc.low %vm3833_vm11, %vm3831_vm15  ;;  %vm21746_vm15 = vcmask 457728   ;;  %v21776_v39 = vld [vmem:[#allocation394_spill] sm:$0xff] }
 0x74d   :  { %11422 = vmatpush1.bf16.msk.msra.mxu0 %vm11421_vm3, %v20902_v4  ;;  %vm3830_vm3 = vcmp.eq.s32.totalorder %v21740_v16, %v16591_v41 }
 0x74e   :  { %11424 = vmatprep.subr.msk.bf16.mxu0 %vm11423_vm13, %v20902_v4  ;;  %vm3829_vm13 = vcmp.eq.s32.totalorder %v21745_v54, %v16484_v57  ;;  %vm11429_vm11 = vmpackc.low %vm3832_vm5, %vm3830_vm3  ;;  %vm3824_vm3 = vcmp.eq.s32.totalorder %v21748_v42, %v16591_v41  ;;  %vm3819_vm5 = vcmp.eq.s32.totalorder %v21749_v11, %v16484_v57 }
 0x74f   :  { %4546 = vmatpush1.bf16.msra.mxu1 %v4334_v6  ;;  %vm11431_vm6 = vmpackc.low %vm3829_vm13, %vm3827_vm8  ;;  %vm3821_vm8 = vcmp.eq.s32.totalorder %v21750_v1, %v16484_v57  ;;  %v21777_v6 = vld [vmem:[#allocation390_spill] sm:$0xff] }
 0x750   :  { %11460 = vmatprep.subr.msk.bf16.mxu1 %vm11459_vm9, %v20902_v4  ;;  %vm3826_vm9 = vcmp.eq.s32.totalorder %v21744_v52, %v16591_v41  ;;  %vm21751_vm13 = vmmov %vm21746_vm15 }
 0x751   :  { %11426 = vmatpush1.bf16.msk.msra.mxu0 %vm11425_vm2, %v20902_v4  ;;  %vm3825_vm2 = vcmp.eq.s32.totalorder %v21748_v42, %v16484_v57  ;;  %vm11433_vm14 = vmpackc.low %vm3828_vm7, %vm3826_vm9  ;;  %vm3817_vm9 = vcmp.eq.s32.totalorder %v21753_v15, %v16484_v57 }
 0x752   :  { %11393 = vmatmul.mubr.msk.bf16.vlgmr.msra.gmra.mxu1 %vm21746_vm15, %v16596_v58  ;;  %11428 = vmatprep.subr.msk.bf16.mxu0 %vm11427_vm10, %v20902_v4  ;;  %vm11435_vm1 = vmpackc.low %vm3825_vm2, %vm3823_vm12  ;;  %vm3822_vm10 = vcmp.eq.s32.totalorder %v21747_v36, %v16591_v41  ;;  %vm3820_vm15 = vcmp.eq.s32.totalorder %v21750_v1, %v16591_v41  ;;  %vm3814_vm2 = vcmp.eq.s32.totalorder %v21752_v28, %v16591_v41  ;;  %v21778_v58 = vld [vmem:[#allocation404_spill] sm:$0xff] }
 0x753   :  { %4573 = vmatprep.mubr.bf16.mxu1 %v21700_v55  ;;  %11462 = vmatpush1.bf16.msk.msra.mxu1 %vm11461_vm4, %v20902_v4  ;;  %vm11439_vm4 = vmpackc.low %vm3821_vm8, %vm3819_vm5  ;;  %vm3810_vm8 = vcmp.eq.s32.totalorder %v21754_v26, %v16591_v41  ;;  %v17067_v55 = vadd.s32 16, %v16591_v41 }
 0x754   :  { %11464 = vmatprep.subr.msk.bf16.mxu1 %vm11463_vm0, %v20902_v4  ;;  %vm3818_vm0 = vcmp.eq.s32.totalorder %v21749_v11, %v16591_v41 }
 0x755   :  { %11430 = vmatpush2.bf16.msk.msra.mxu0 %vm11429_vm11, %v20902_v4  ;;  %vm3815_vm11 = vcmp.eq.s32.totalorder %v21752_v28, %v16484_v57  ;;  %vm11441_vm7 = vmpackc.low %vm3820_vm15, %vm3818_vm0 }
 0x756   :  { %11432 = vmatprep.subr.msk.bf16.mxu0 %vm11431_vm6, %v20902_v4  ;;  %vm11437_vm6 = vmpackc.low %vm3824_vm3, %vm3822_vm10  ;;  %vm3813_vm10 = vcmp.eq.s32.totalorder %v21755_v29, %v16484_v57 }
 0x757   :  { %vm11443_vm12 = vmpackc.low %vm3817_vm9, %vm3815_vm11  ;;  %vm3807_vm11 = vcmp.eq.s32.totalorder %v21756_v24, %v16484_v57  ;;  %vm3809_vm9 = vcmp.eq.s32.totalorder %v21757_v18, %v16484_v57 }
 0x759   :  { %11434 = vmatpush2.bf16.msk.msra.mxu0 %vm11433_vm14, %v20902_v4  ;;  %vm3816_vm14 = vcmp.eq.s32.totalorder %v21753_v15, %v16591_v41 }
 0x75a   :  { %11394 = vmatmul.mubr.msk.bf16.gmra.mxu1 %vm21751_vm13, %v16753_v34  ;;  %11436 = vmatprep.subr.msk.bf16.mxu0 %vm11435_vm1, %v20902_v4  ;;  %vm3811_vm1 = vcmp.eq.s32.totalorder %v21754_v26, %v16484_v57  ;;  %vm11445_vm3 = vmpackc.low %vm3816_vm14, %vm3814_vm2  ;;  %vm3812_vm13 = vcmp.eq.s32.totalorder %v21755_v29, %v16591_v41  ;;  %v16975_v34 = vadd.s32 16, %v16484_v57 }
 0x75b   :  { %vm11447_vm5 = vmpackc.low %vm3813_vm10, %vm3811_vm1  ;;  %vm3806_vm1 = vcmp.eq.s32.totalorder %v21756_v24, %v16591_v41  ;;  %vm3808_vm10 = vcmp.eq.s32.totalorder %v21757_v18, %v16591_v41 }
 0x75c   :  { %vm11449_vm0 = vmpackc.low %vm3812_vm13, %vm3810_vm8 }
 0x75d   :  { %11438 = vmatpush2.bf16.msk.msra.mxu0 %vm11437_vm6, %v20902_v4  ;;  %vm3858_vm6 = vcmp.eq.s32.totalorder %v21742_v46, %v16591_v41  ;;  %vm11451_vm2 = vmpackc.low %vm3809_vm9, %vm3807_vm11  ;;  %vm3802_vm9 = vcmp.eq.s32.totalorder %v21760_v25, %v16591_v41 }
 0x75e   :  { %11440 = vmatprep.subr.msk.bf16.mxu0 %vm11439_vm4, %v20902_v4  ;;  %vm3860_vm4 = vcmp.eq.s32.totalorder %v21743_v0, %v16591_v41  ;;  %vm11453_vm8 = vmpackc.low %vm3808_vm10, %vm3806_vm1  ;;  %vm3847_vm1 = vcmp.eq.s32.totalorder %v21764_v31, %v16484_v57  ;;  %vm3849_vm10 = vcmp.eq.s32.totalorder %v21765_v23, %v16484_v57 }
 0x75f   :  { %vm11465_vm15 = vmpackc.low %vm3860_vm4, %vm3858_vm6  ;;  %vm3803_vm6 = vcmp.eq.s32.totalorder %v21760_v25, %v16484_v57  ;;  %vm3805_vm4 = vcmp.eq.s32.totalorder %v21761_v32, %v16484_v57 }
 0x760   :  { %11466 = vmatpush1.bf16.msk.msra.mxu1 %vm11465_vm15, %v20902_v4  ;;  %vm3853_vm15 = vcmp.eq.s32.totalorder %v21763_v60, %v16484_v57  ;;  %vm11455_vm11 = vmpackc.low %vm3805_vm4, %vm3803_vm6 }
 0x761   :  { %11442 = vmatpush2.bf16.msk.msra.mxu0 %vm11441_vm7, %v20902_v4  ;;  %vm3855_vm7 = vcmp.eq.s32.totalorder %v21758_v10, %v16484_v57  ;;  %vm11475_vm6 = vmpackc.low %vm3849_vm10, %vm3847_vm1  ;;  %vm3839_vm1 = vcmp.eq.s32.totalorder %v21768_v48, %v16484_v57  ;;  %vm3841_vm10 = vcmp.eq.s32.totalorder %v21769_v44, %v16484_v57 }
 0x762   :  { %11444 = vmatprep.subr.msk.bf16.mxu0 %vm11443_vm12, %v20902_v4  ;;  %vm3857_vm12 = vcmp.eq.s32.totalorder %v21759_v43, %v16484_v57 }
 0x763   :  { %vm11467_vm14 = vmpackc.low %vm3857_vm12, %vm3855_vm7  ;;  %vm3804_vm7 = vcmp.eq.s32.totalorder %v21761_v32, %v16591_v41  ;;  %vm3850_vm12 = vcmp.eq.s32.totalorder %v21762_v12, %v16591_v41 }
 0x764   :  { %11468 = vmatprep.subr.msk.bf16.mxu1 %vm11467_vm14, %v20902_v4 }
 0x765   :  { %11446 = vmatpush2.bf16.msk.msra.mxu0 %vm11445_vm3, %v20902_v4  ;;  %vm3854_vm3 = vcmp.eq.s32.totalorder %v21758_v10, %v16591_v41 }
 0x766   :  { %11448 = vmatprep.subr.msk.bf16.mxu0 %vm11447_vm5, %v20902_v4  ;;  %vm3856_vm5 = vcmp.eq.s32.totalorder %v21759_v43, %v16591_v41 }
 0x767   :  { %vm11469_vm13 = vmpackc.low %vm3856_vm5, %vm3854_vm3 }
 0x768   :  { %11470 = vmatpush1.bf16.msk.msra.mxu1 %vm11469_vm13, %v20902_v4  ;;  %vm11457_vm3 = vmpackc.low %vm3804_vm7, %vm3802_vm9  ;;  %vm4147_vm13 = vcmp.eq.s32.totalorder %v21739_v22, %v16975_v34  ;;  %vm3843_vm9 = vcmp.eq.s32.totalorder %v21766_v49, %v16484_v57  ;;  %vm3845_vm7 = vcmp.eq.s32.totalorder %v21767_v21, %v16484_v57 }
 0x769   :  { %11450 = vmatpush2.bf16.msk.msra.mxu0 %vm11449_vm0, %v20902_v4  ;;  %vm3851_vm0 = vcmp.eq.s32.totalorder %v21762_v12, %v16484_v57 }
 0x76a   :  { %11452 = vmatprep.subr.msk.bf16.mxu0 %vm11451_vm2, %v20902_v4  ;;  %vm3852_vm2 = vcmp.eq.s32.totalorder %v21763_v60, %v16591_v41  ;;  %vm11471_vm14 = vmpackc.low %vm3853_vm15, %vm3851_vm0  ;;  %vm3846_vm0 = vcmp.eq.s32.totalorder %v21764_v31, %v16591_v41  ;;  %vm3848_vm15 = vcmp.eq.s32.totalorder %v21765_v23, %v16591_v41 }
 0x76b   :  { %11472 = vmatprep.subr.msk.bf16.mxu1 %vm11471_vm14, %v20902_v4  ;;  %vm11473_vm5 = vmpackc.low %vm3852_vm2, %vm3850_vm12  ;;  %vm3842_vm12 = vcmp.eq.s32.totalorder %v21766_v49, %v16591_v41  ;;  %vm3844_vm2 = vcmp.eq.s32.totalorder %v21767_v21, %v16591_v41 }
 0x76c   :  { %11474 = vmatpush1.bf16.msk.msra.mxu1 %vm11473_vm5, %v20902_v4  ;;  %vm11479_vm14 = vmpackc.low %vm3845_vm7, %vm3843_vm9  ;;  %vm3838_vm5 = vcmp.eq.s32.totalorder %v21768_v48, %v16591_v41  ;;  %vm3879_vm7 = vcmp.eq.s32.totalorder %v21772_v56, %v16484_v57 }
 0x76d   :  { %11454 = vmatpush2.bf16.msk.msra.mxu0 %vm11453_vm8, %v20902_v4  ;;  %vm4145_vm8 = vcmp.eq.s32.totalorder %v21738_v63, %v16975_v34  ;;  %11476 = vmatprep.subr.msk.bf16.mxu1 %vm11475_vm6, %v20902_v4  ;;  %vm3835_vm6 = vcmp.eq.s32.totalorder %v21770_v47, %v16484_v57 }
 0x76e   :  { %11456 = vmatprep.subr.msk.bf16.mxu0 %vm11455_vm11, %v20902_v4  ;;  %vm11573_vm4 = vmpackc.low %vm4147_vm13, %vm4145_vm8  ;;  %vm3840_vm8 = vcmp.eq.s32.totalorder %v21769_v44, %v16591_v41 }
 0x76f   :  { %vm11477_vm11 = vmpackc.low %vm3848_vm15, %vm3846_vm0  ;;  %vm3834_vm15 = vcmp.eq.s32.totalorder %v21770_v47, %v16591_v41 }
 0x770   :  { %11478 = vmatpush1.bf16.msk.msra.mxu1 %vm11477_vm11, %v20902_v4  ;;  %vm11483_vm13 = vmpackc.low %vm3841_vm10, %vm3839_vm1  ;;  %vm3836_vm11 = vcmp.eq.s32.totalorder %v21771_v35, %v16591_v41  ;;  %vm3880_vm1 = vcmp.eq.s32.totalorder %v21773_v5, %v16591_v41 }
 0x771   :  { %11458 = vmatpush2.bf16.msk.msra.mxu0 %vm11457_vm3, %v20902_v4  ;;  %11480 = vmatprep.subr.msk.bf16.mxu1 %vm11479_vm14, %v20902_v4  ;;  %vm11481_vm3 = vmpackc.low %vm3844_vm2, %vm3842_vm12  ;;  %vm3881_vm12 = vcmp.eq.s32.totalorder %v21773_v5, %v16484_v57  ;;  %vm3878_vm14 = vcmp.eq.s32.totalorder %v21772_v56, %v16591_v41 }
 0x772   :  { %11574 = vmatprep.subr.msk.bf16.mxu0 %vm11573_vm4, %v20902_v4  ;;  %vm3837_vm4 = vcmp.eq.s32.totalorder %v21771_v35, %v16484_v57  ;;  %vm11485_vm0 = vmpackc.low %vm3840_vm8, %vm3838_vm5  ;;  %vm3877_vm5 = vcmp.eq.s32.totalorder %v21775_v62, %v16484_v57 }
 0x773   :  { %vm11487_vm9 = vmpackc.low %vm3837_vm4, %vm3835_vm6  ;;  %vm3876_vm6 = vcmp.eq.s32.totalorder %v21775_v62, %v16591_v41 }
 0x774   :  { %11482 = vmatpush1.bf16.msk.msra.mxu1 %vm11481_vm3, %v20902_v4  ;;  %vm11489_vm2 = vmpackc.low %vm3836_vm11, %vm3834_vm15  ;;  %vm3875_vm3 = vcmp.eq.s32.totalorder %v21774_v13, %v16484_v57  ;;  %vm3873_vm15 = vcmp.eq.s32.totalorder %v21777_v6, %v16484_v57 }
 0x775   :  { %11484 = vmatprep.subr.msk.bf16.mxu1 %vm11483_vm13, %v20902_v4  ;;  %vm11491_vm10 = vmpackc.low %vm3881_vm12, %vm3879_vm7  ;;  %vm3874_vm13 = vcmp.eq.s32.totalorder %v21774_v13, %v16591_v41  ;;  %vm3870_vm7 = vcmp.eq.s32.totalorder %v21776_v39, %v16591_v41  ;;  %vm3872_vm12 = vcmp.eq.s32.totalorder %v21777_v6, %v16591_v41 }
 0x776   :  { %vm11493_vm8 = vmpackc.low %vm3880_vm1, %vm3878_vm14  ;;  %vm3867_vm14 = vcmp.eq.s32.totalorder %v21778_v58, %v16484_v57  ;;  %vm3869_vm1 = vcmp.eq.s32.totalorder %v21779_v61, %v16484_v57 }
 0x777   :  { %vm11495_vm4 = vmpackc.low %vm3877_vm5, %vm3875_vm3  ;;  %vm3868_vm3 = vcmp.eq.s32.totalorder %v21779_v61, %v16591_v41 }
 0x778   :  { %11486 = vmatpush1.bf16.msk.msra.mxu1 %vm11485_vm0, %v20902_v4  ;;  %vm3871_vm0 = vcmp.eq.s32.totalorder %v21776_v39, %v16484_v57  ;;  %vm11497_vm11 = vmpackc.low %vm3876_vm6, %vm3874_vm13  ;;  %vm4083_vm13 = vcmp.eq.s32.totalorder %v21711_v30, %v16975_v34 }
 0x779   :  { %11488 = vmatprep.subr.msk.bf16.mxu1 %vm11487_vm9, %v20902_v4  ;;  %vm11499_vm9 = vmpackc.low %vm3873_vm15, %vm3871_vm0  ;;  %vm4144_vm0 = vcmp.eq.s32.totalorder %v21738_v63, %v17067_v55  ;;  %vm4146_vm15 = vcmp.eq.s32.totalorder %v21739_v22, %v17067_v55 }
 0x77a   :  { %vm11503_vm5 = vmpackc.low %vm3869_vm1, %vm3867_vm14  ;;  %vm4142_vm14 = vcmp.eq.s32.totalorder %v21743_v0, %v17067_v55  ;;  %vm4137_vm1 = vcmp.eq.s32.totalorder %v21758_v10, %v16975_v34 }
 0x77c   :  { %11490 = vmatpush1.bf16.msk.msra.mxu1 %vm11489_vm2, %v20902_v4  ;;  %vm11501_vm2 = vmpackc.low %vm3872_vm12, %vm3870_vm7 }
 0x77d   :  { %11492 = vmatprep.subr.msk.bf16.mxu1 %vm11491_vm10, %v20902_v4  ;;  %vm3866_vm10 = vcmp.eq.s32.totalorder %v21778_v58, %v16591_v41  ;;  %vm11575_vm7 = vmpackc.low %vm4146_vm15, %vm4144_vm0 }
 0x77e   :  { %vm11505_vm6 = vmpackc.low %vm3868_vm3, %vm3866_vm10  ;;  %vm4139_vm10 = vcmp.eq.s32.totalorder %v21759_v43, %v16975_v34 }
 0x780   :  { %11494 = vmatpush2.bf16.msk.msra.mxu1 %vm11493_vm8, %v20902_v4  ;;  %vm4081_vm8 = vcmp.eq.s32.totalorder %v21710_v40, %v16975_v34 }
 0x781   :  { %11496 = vmatprep.subr.msk.bf16.mxu1 %vm11495_vm4, %v20902_v4  ;;  %vm11509_vm4 = vmpackc.low %vm4083_vm13, %vm4081_vm8  ;;  %vm4136_vm8 = vcmp.eq.s32.totalorder %v21758_v10, %v17067_v55  ;;  %vm4138_vm13 = vcmp.eq.s32.totalorder %v21759_v43, %v17067_v55 }
 0x782   :  { %vm11583_vm0 = vmpackc.low %vm4138_vm13, %vm4136_vm8 }
 0x784   :  { %11498 = vmatpush2.bf16.msk.msra.mxu1 %vm11497_vm11, %v20902_v4  ;;  %vm4141_vm11 = vcmp.eq.s32.totalorder %v21742_v46, %v16975_v34 }
 0x785   :  { %11500 = vmatprep.subr.msk.bf16.mxu1 %vm11499_vm9, %v20902_v4  ;;  %vm4143_vm9 = vcmp.eq.s32.totalorder %v21743_v0, %v16975_v34 }
 0x786   :  { %vm11577_vm12 = vmpackc.low %vm4143_vm9, %vm4141_vm11  ;;  %vm4132_vm11 = vcmp.eq.s32.totalorder %v21762_v12, %v17067_v55  ;;  %vm4134_vm9 = vcmp.eq.s32.totalorder %v21763_v60, %v17067_v55 }
 0x788   :  { %11502 = vmatpush2.bf16.msk.msra.mxu1 %vm11501_vm2, %v20902_v4  ;;  %vm4140_vm2 = vcmp.eq.s32.totalorder %v21742_v46, %v17067_v55 }
 0x789   :  { %11504 = vmatprep.subr.msk.bf16.mxu1 %vm11503_vm5, %v20902_v4  ;;  %vm11579_vm3 = vmpackc.low %vm4142_vm14, %vm4140_vm2 }
 0x78a   :  { %vm11581_vm5 = vmpackc.low %vm4139_vm10, %vm4137_vm1  ;;  %vm4128_vm1 = vcmp.eq.s32.totalorder %v21764_v31, %v17067_v55  ;;  %vm4130_vm10 = vcmp.eq.s32.totalorder %v21765_v23, %v17067_v55 }
 0x78b   :  { %vm11587_vm2 = vmpackc.low %vm4134_vm9, %vm4132_vm11 }
 0x78c   :  { %11506 = vmatpush2.bf16.msk.msra.mxu1 %vm11505_vm6, %v20902_v4  ;;  %vm4133_vm6 = vcmp.eq.s32.totalorder %v21762_v12, %v16975_v34  ;;  %vm11591_vm8 = vmpackc.low %vm4130_vm10, %vm4128_vm1 }
 0x78d   :  { %11510 = vmatprep.subr.msk.bf16.mxu1 %vm11509_vm4, %v20902_v4  ;;  %vm4135_vm4 = vcmp.eq.s32.totalorder %v21763_v60, %v16975_v34 }
 0x78e   :  { %vm11585_vm15 = vmpackc.low %vm4135_vm4, %vm4133_vm6  ;;  %vm4124_vm6 = vcmp.eq.s32.totalorder %v21766_v49, %v17067_v55  ;;  %vm4126_vm4 = vcmp.eq.s32.totalorder %v21767_v21, %v17067_v55 }
 0x78f   :  { %vm11595_vm11 = vmpackc.low %vm4126_vm4, %vm4124_vm6  ;;  %vm4080_vm6 = vcmp.eq.s32.totalorder %v21710_v40, %v17067_v55  ;;  %vm4082_vm4 = vcmp.eq.s32.totalorder %v21711_v30, %v17067_v55 }
 0x7f2   :  { %v4400_v57 = vpop.f32.mrf.mxu1  ;;  %v4512_v8 = vpop.f32.mrf.mxu0 }
 0x7f3   :  { %v4584_v4 = vmax.f32 %v4400_v57, %v4512_v8 }
 0x7f4   :  { %v4402_v38 = vpop.f32.mrf.mxu1  ;;  %v4514_v19 = vpop.f32.mrf.mxu0 }
 0x7f5   :  { %v4585_v26 = vmax.f32 %v4402_v38, %v4514_v19 }
 0x7f6   :  { %v4404_v32 = vpop.f32.mrf.mxu1  ;;  %v4516_v25 = vpop.f32.mrf.mxu0 }
 0x7f7   :  { %v4588_v18 = vmax.f32 %v4404_v32, %v4516_v25 }
 0x7f8   :  { %v4406_v24 = vpop.f32.mrf.mxu1  ;;  %v4518_v29 = vpop.f32.mrf.mxu0 }
 0x7f9   :  { %v4589_v15 = vmax.f32 %v4406_v24, %v4518_v29  ;;  %v17079_v25 = vpack.c.bf16 %v4588_v18, %v4584_v4  ;;  %v21780_v4 = vmov 1.0|1.0  }
 0x7fa   :  { %v4410_v28 = vpop.f32.mrf.mxu1  ;;  %v4522_v1 = vpop.f32.mrf.mxu0 }
 0x7fb   :  { %v17077_v41 = vpack.c.bf16 %v4589_v15, %v4585_v26  ;;  %v4592_v57 = vmax.f32 %v4410_v28, %v4522_v1 }
 0x7fc   :  { %v4412_v19 = vpop.f32.mrf.mxu1  ;;  %v4524_v38 = vpop.f32.mrf.mxu0 }
 0x7fd   :  { %4646 = vmatprep.mubr.bf16.mxu0 %v17077_v41  ;;  %v4593_v18 = vmax.f32 %v4412_v19, %v4524_v38 }
 0x7fe   :  { %v4414_v8 = vpop.f32.mrf.mxu1  ;;  %v4526_v29 = vpop.f32.mrf.mxu0  ;;  %4647 = vmatmul.mubr.bf16.vlgmr.msra.gmra.mxu0 %v17079_v25 }
 0x7ff   :  { %11576 = vmatpush1.bf16.msk.msra.mxu0 %vm11575_vm7, %v21780_v4  ;;  %v4596_v15 = vmax.f32 %v4414_v8, %v4526_v29  ;;  %vm4129_vm7 = vcmp.eq.s32.totalorder %v21764_v31, %v16975_v34 }
 0x800   :  { %v4416_v26 = vpop.f32.mrf.mxu1  ;;  %v4528_v24 = vpop.f32.mrf.mxu0  ;;  %11578 = vmatprep.subr.msk.bf16.mxu0 %vm11577_vm12, %v21780_v4  ;;  %vm4131_vm12 = vcmp.eq.s32.totalorder %v21765_v23, %v16975_v34 }
 0x801   :  { %v4597_v32 = vmax.f32 %v4416_v26, %v4528_v24  ;;  %v17106_v19 = vpack.c.bf16 %v4596_v15, %v4592_v57  ;;  %vm11589_vm14 = vmpackc.low %vm4131_vm12, %vm4129_vm7  ;;  %vm4120_vm7 = vcmp.eq.s32.totalorder %v21768_v48, %v17067_v55  ;;  %vm4122_vm12 = vcmp.eq.s32.totalorder %v21769_v44, %v17067_v55 }
 0x802   :  { %v17097_v46 = vpop.f32.mrf.mxu1  ;;  %vm11599_vm1 = vmpackc.low %vm4122_vm12, %vm4120_vm7  ;;  %vm4077_vm7 = vcmp.eq.s32.totalorder %v21712_v33, %v16975_v34  ;;  %vm4079_vm12 = vcmp.eq.s32.totalorder %v21717_v27, %v16975_v34 }
 0x803   :  { %v17103_v8 = vpack.c.bf16 %v4597_v32, %v4593_v18  ;;  %11580 = vmatpush1.bf16.msk.msra.mxu0 %vm11579_vm3, %v21780_v4  ;;  %vm4125_vm3 = vcmp.eq.s32.totalorder %v21766_v49, %v16975_v34 }
 0x804   :  { %v17108_v38 = vpop.f32.mrf.mxu1  ;;  %11582 = vmatprep.subr.msk.bf16.mxu0 %vm11581_vm5, %v21780_v4  ;;  %vm4127_vm5 = vcmp.eq.s32.totalorder %v21767_v21, %v16975_v34 }
 0x805   :  { %4656 = vmatprep.mubr.bf16.mxu0 %v17103_v8  ;;  %vm11593_vm13 = vmpackc.low %vm4127_vm5, %vm4125_vm3  ;;  %vm4116_vm3 = vcmp.eq.s32.totalorder %v21770_v47, %v17067_v55  ;;  %vm4118_vm5 = vcmp.eq.s32.totalorder %v21771_v35, %v17067_v55 }
 0x806   :  { %v17116_v1 = vpop.f32.mrf.mxu1  ;;  %4657 = vmatmul.mubr.bf16.gmra.mxu0 %v17106_v19 }
 0x807   :  { %11584 = vmatpush1.bf16.msk.msra.mxu0 %vm11583_vm0, %v21780_v4  ;;  %vm4121_vm0 = vcmp.eq.s32.totalorder %v21768_v48, %v16975_v34 }
 0x808   :  { %v4459_v28 = vpop.f32.mrf.mxu1  ;;  %11586 = vmatprep.subr.msk.bf16.mxu0 %vm11585_vm15, %v21780_v4  ;;  %vm4123_vm15 = vcmp.eq.s32.totalorder %v21769_v44, %v16975_v34 }
 0x809   :  { %vm11597_vm9 = vmpackc.low %vm4123_vm15, %vm4121_vm0  ;;  %vm4160_vm15 = vcmp.eq.s32.totalorder %v21772_v56, %v17067_v55 }
 0x80a   :  { %v17129_v29 = vpop.f32.mrf.mxu1  ;;  %vm11603_vm0 = vmpackc.low %vm4118_vm5, %vm4116_vm3  ;;  %vm4076_vm3 = vcmp.eq.s32.totalorder %v21712_v33, %v17067_v55  ;;  %vm4078_vm5 = vcmp.eq.s32.totalorder %v21717_v27, %v17067_v55 }
 0x80b   :  { %11588 = vmatpush1.bf16.msk.msra.mxu0 %vm11587_vm2, %v21780_v4  ;;  %vm4117_vm2 = vcmp.eq.s32.totalorder %v21770_v47, %v16975_v34 }
 0x80c   :  { %v17136_v15 = vpop.f32.mrf.mxu1  ;;  %11590 = vmatprep.subr.msk.bf16.mxu0 %vm11589_vm14, %v21780_v4  ;;  %vm4119_vm14 = vcmp.eq.s32.totalorder %v21771_v35, %v16975_v34 }
 0x80d   :  { %vm11601_vm10 = vmpackc.low %vm4119_vm14, %vm4117_vm2  ;;  %vm4157_vm14 = vcmp.eq.s32.totalorder %v21774_v13, %v16975_v34 }
 0x80e   :  { %v17143_v26 = vpop.f32.mrf.mxu1  ;;  %vm17191_vm2 = vmpackc.low %vm4082_vm4, %vm4080_vm6  ;;  %vm4158_vm6 = vcmp.eq.s32.totalorder %v21775_v62, %v17067_v55  ;;  %vm21787_vm4 = vcmask 523264  }
 0x80f   :  { %11592 = vmatpush1.bf16.msk.msra.mxu0 %vm11591_vm8, %v21780_v4  ;;  %vm4161_vm8 = vcmp.eq.s32.totalorder %v21772_v56, %v16975_v34 }
 0x810   :  { %v17150_v24 = vpop.f32.mrf.mxu1  ;;  %11594 = vmatprep.subr.msk.bf16.mxu0 %vm11593_vm13, %v21780_v4  ;;  %vm4163_vm13 = vcmp.eq.s32.totalorder %v21773_v5, %v16975_v34 }
 0x812   :  { %v4565_v18 = vpop.f32.mrf.mxu1 }
 0x813   :  { %11596 = vmatpush1.bf16.msk.msra.mxu0 %vm11595_vm11, %v21780_v4  ;;  %vm4162_vm11 = vcmp.eq.s32.totalorder %v21773_v5, %v17067_v55 }
 0x814   :  { %v4567_v32 = vpop.f32.mrf.mxu1  ;;  %11598 = vmatprep.subr.msk.bf16.mxu0 %vm11597_vm9, %v21780_v4  ;;  %vm11605_vm9 = vmpackc.low %vm4163_vm13, %vm4161_vm8  ;;  %vm4156_vm13 = vcmp.eq.s32.totalorder %v21774_v13, %v17067_v55 }
 0x815   :  { %v4587_v35 = vmax.f32 %v17108_v38, %v4567_v32  ;;  %vm17214_vm8 = vmpackc.low %vm4079_vm12, %vm4077_vm7  ;;  %vm4153_vm12 = vcmp.eq.s32.totalorder %v21776_v39, %v16975_v34 }
 0x816   :  { %v4569_v57 = vpop.f32.mrf.mxu1  ;;  %vm17235_vm7 = vmpackc.low %vm4078_vm5, %vm4076_vm3 }
 0x817   :  { %11600 = vmatpush1.bf16.msk.msra.mxu0 %vm11599_vm1, %v21780_v4  ;;  %v4590_v47 = vmax.f32 %v17116_v1, %v4569_v57  ;;  %v4586_v1 = vmax.f32 %v17097_v46, %v4565_v18  ;;  %vm4159_vm1 = vcmp.eq.s32.totalorder %v21775_v62, %v16975_v34  ;;  %v21806_v18 = vld [vmem:[#allocation396_spill] sm:$0xff] }
 0x818   :  { %v4571_v48 = vpop.f32.mrf.mxu1  ;;  %11602 = vmatprep.subr.msk.bf16.mxu0 %vm11601_vm10, %v21780_v4  ;;  %vm17200_vm10 = vmpackc.low %vm4162_vm11, %vm4160_vm15  ;;  %vm4073_vm11 = vcmp.eq.s32.totalorder %v21726_v50, %v16975_v34 }
 0x819   :  { %v4591_v44 = vmax.f32 %v4459_v28, %v4571_v48  ;;  %v17208_v46 = vpack.c.bf16 %v4590_v47, %v4586_v1  ;;  %vm11609_vm15 = vmpackc.low %vm4159_vm1, %vm4157_vm14  ;;  %vm4155_vm14 = vcmp.eq.s32.totalorder %v21777_v6, %v16975_v34 }
 0x81a   :  { %v4575_v57 = vpop.f32.mrf.mxu1  ;;  %vm17249_vm1 = vmpackc.low %vm4158_vm6, %vm4156_vm13  ;;  %vm4154_vm13 = vcmp.eq.s32.totalorder %v21777_v6, %v17067_v55  ;;  %vm4069_vm6 = vcmp.eq.s32.totalorder %v21728_v2, %v16975_v34 }
 0x81b   :  { %v4603_v48 = vpack.c.bf16 %v4591_v44, %v4587_v35  ;;  %11604 = vmatpush1.bf16.msk.msra.mxu0 %vm11603_vm0, %v21780_v4  ;;  %vm21788_vm0 = vmmov %vm21787_vm4  ;;  %v4594_v38 = vmax.f32 %v17129_v29, %v4575_v57  ;;  %v21801_v57 = vld [vmem:[#allocation365_spill] sm:$0xff] }
 0x81c   :  { %v4577_v28 = vpop.f32.mrf.mxu1  ;;  %11606 = vmatprep.subr.msk.bf16.mxu0 %vm11605_vm9, %v21780_v4  ;;  %vm4075_vm9 = vcmp.eq.s32.totalorder %v21727_v51, %v16975_v34  ;;  %vm11613_vm5 = vmpackc.low %vm4155_vm14, %vm4153_vm12  ;;  %vm4070_vm12 = vcmp.eq.s32.totalorder %v21729_v45, %v17067_v55  ;;  %vm21797_vm14 = vcmask 523264   ;;  %v21805_v35 = vld [vmem:[#allocation381_spill] sm:$0xff] }
 0x81d   :  { %11507 = vmatprep.mubr.msk.bf16.mxu1 %vm21787_vm4, %v4603_v48  ;;  %11621 = vmatprep.mubr.msk.bf16.mxu0 %vm21788_vm0, %v4603_v48  ;;  %vm17258_vm3 = vmpackc.low %vm4075_vm9, %vm4073_vm11  ;;  %v4595_v48 = vmax.f32 %v17136_v15, %v4577_v28  ;;  %vm4071_vm4 = vcmp.eq.s32.totalorder %v21729_v45, %v16975_v34  ;;  %vm4151_vm11 = vcmp.eq.s32.totalorder %v21779_v61, %v16975_v34  ;;  %v21803_v28 = vld [vmem:[#allocation374_spill] sm:$0xff] }
 0x81e   :  { %v4579_v47 = vpop.f32.mrf.mxu1  ;;  %4700 = vmatmul.mubr.bf16.vlgmr.msra.gmra.mxu1 %v17208_v46 }
 0x81f   :  { %11512 = vmatpush1.bf16.msk.msra.mxu1 %vm17191_vm2, %v21780_v4  ;;  %11608 = vmatpush2.bf16.msk.msra.mxu0 %vm17200_vm10, %v21780_v4  ;;  %v4598_v32 = vmax.f32 %v17143_v26, %v4579_v47  ;;  %vm4072_vm2 = vcmp.eq.s32.totalorder %v21726_v50, %v17067_v55  ;;  %vm4074_vm10 = vcmp.eq.s32.totalorder %v21727_v51, %v17067_v55  ;;  %v21804_v47 = vld [vmem:[#allocation389_spill] sm:$0xff] }
 0x820   :  { %v4581_v1 = vpop.f32.mrf.mxu1  ;;  %11514 = vmatprep.subr.msk.bf16.mxu1 %vm17214_vm8, %v21780_v4  ;;  %11610 = vmatprep.subr.msk.bf16.mxu0 %vm11609_vm15, %v21780_v4  ;;  %vm4152_vm8 = vcmp.eq.s32.totalorder %v21776_v39, %v17067_v55  ;;  %vm17283_vm0 = vmpackc.low %vm4074_vm10, %vm4072_vm2  ;;  %vm4149_vm15 = vcmp.eq.s32.totalorder %v21778_v58, %v16975_v34  ;;  %vm4148_vm2 = vcmp.eq.s32.totalorder %v21778_v58, %v17067_v55 }
 0x821   :  { %v4599_v26 = vmax.f32 %v17150_v24, %v4581_v1  ;;  %v4606_v29 = vpack.c.bf16 %v4598_v32, %v4594_v38  ;;  %vm11615_vm9 = vmpackc.low %vm4154_vm13, %vm4152_vm8  ;;  %vm4067_vm8 = vcmp.eq.s32.totalorder %v21733_v7, %v16975_v34  ;;  %v21800_v24 = vld [vmem:[#allocation368_spill] sm:$0xff]  ;;  %v21807_v32 = vld [vmem:[#allocation393_spill] sm:$0xff] }
 0x822   :  { %vm11617_vm10 = vmpackc.low %vm4151_vm11, %vm4149_vm15  ;;  %vm4064_vm15 = vcmp.eq.s32.totalorder %v21732_v3, %v17067_v55  ;;  %vm4066_vm11 = vcmp.eq.s32.totalorder %v21733_v7, %v17067_v55 }
 0x823   :  { %v4607_v44 = vpack.c.bf16 %v4599_v26, %v4595_v48  ;;  %11516 = vmatpush1.bf16.msk.msra.mxu1 %vm17235_vm7, %v21780_v4  ;;  %11612 = vmatpush2.bf16.msk.msra.mxu0 %vm17249_vm1, %v21780_v4  ;;  %vm4068_vm7 = vcmp.eq.s32.totalorder %v21728_v2, %v17067_v55  ;;  %vm11521_vm1 = vmpackc.low %vm4071_vm4, %vm4069_vm6 }
 0x824   :  { %11518 = vmatprep.subr.msk.bf16.mxu1 %vm17258_vm3, %v21780_v4  ;;  %11614 = vmatprep.subr.msk.bf16.mxu0 %vm11613_vm5, %v21780_v4  ;;  %vm4150_vm3 = vcmp.eq.s32.totalorder %v21779_v61, %v17067_v55  ;;  %vm4065_vm5 = vcmp.eq.s32.totalorder %v21732_v3, %v16975_v34  ;;  %vm11523_vm13 = vmpackc.low %vm4070_vm12, %vm4068_vm7 }
 0x825   :  { %11508 = vmatprep.mubr.msk.bf16.mxu1 %vm21797_vm14, %v4607_v44  ;;  %vm11619_vm6 = vmpackc.low %vm4150_vm3, %vm4148_vm2  ;;  %vm4060_vm14 = vcmp.eq.s32.totalorder %v21735_v17, %v17067_v55  ;;  %vm4057_vm2 = vcmp.eq.s32.totalorder %v21702_v14, %v16975_v34  ;;  %vm4059_vm3 = vcmp.eq.s32.totalorder %v21703_v9, %v16975_v34 }
 0x826   :  { %4710 = vmatmul.mubr.bf16.gmra.mxu1 %v4606_v29  ;;  %vm11525_vm4 = vmpackc.low %vm4067_vm8, %vm4065_vm5 }
 0x827   :  { %11520 = vmatpush1.bf16.msk.msra.mxu1 %vm17283_vm0, %v21780_v4  ;;  %11616 = vmatpush2.bf16.msk.msra.mxu0 %vm11615_vm9, %v21780_v4  ;;  %vm4061_vm0 = vcmp.eq.s32.totalorder %v21735_v17, %v16975_v34  ;;  %vm4063_vm9 = vcmp.eq.s32.totalorder %v21736_v37, %v16975_v34  ;;  %vm11527_vm7 = vmpackc.low %vm4066_vm11, %vm4064_vm15  ;;  %vm4055_vm15 = vcmp.eq.s32.totalorder %v21690_v20, %v16975_v34 }
 0x828   :  { %4752 = vmatprep.mubr.bf16.mxu1 %v17077_v41  ;;  %11522 = vmatprep.subr.msk.bf16.mxu1 %vm11521_vm1, %v21780_v4  ;;  %vm11529_vm12 = vmpackc.low %vm4063_vm9, %vm4061_vm0  ;;  %vm4062_vm1 = vcmp.eq.s32.totalorder %v21736_v37, %v17067_v55  ;;  %vm4052_vm9 = vcmp.eq.s32.totalorder %v21691_v59, %v17067_v55  ;;  %v21799_v41 = vld [vmem:[#allocation349_spill] sm:$0xff] }
 0x829   :  { %11618 = vmatprep.subr.msk.bf16.mxu0 %vm11617_vm10, %v21780_v4  ;;  %vm21798_vm10 = vcmask 523264   ;;  %vm11531_vm5 = vmpackc.low %vm4062_vm1, %vm4060_vm14  ;;  %vm4115_vm14 = vcmp.eq.s32.totalorder %v21741_v53, %v16975_v34 }
 0x82a   :  { %vm11533_vm8 = vmpackc.low %vm4059_vm3, %vm4057_vm2  ;;  %vm4112_vm3 = vcmp.eq.s32.totalorder %v21740_v16, %v17067_v55 }
 0x82b   :  { %11524 = vmatpush1.bf16.msk.msra.mxu1 %vm11523_vm13, %v21780_v4  ;;  %11620 = vmatpush2.bf16.msk.msra.mxu0 %vm11619_vm6, %v21780_v4  ;;  %vm4056_vm13 = vcmp.eq.s32.totalorder %v21702_v14, %v17067_v55  ;;  %vm4058_vm6 = vcmp.eq.s32.totalorder %v21703_v9, %v17067_v55 }
 0x82c   :  { %11526 = vmatprep.subr.msk.bf16.mxu1 %vm11525_vm4, %v21780_v4  ;;  %vm4053_vm4 = vcmp.eq.s32.totalorder %v21691_v59, %v16975_v34  ;;  %vm11535_vm11 = vmpackc.low %vm4058_vm6, %vm4056_vm13 }
 0x82d   :  { %vm11537_vm0 = vmpackc.low %vm4055_vm15, %vm4053_vm4  ;;  %vm4108_vm4 = vcmp.eq.s32.totalorder %v21744_v52, %v17067_v55  ;;  %vm4110_vm15 = vcmp.eq.s32.totalorder %v21745_v54, %v17067_v55 }
 0x82e   :  { %4806 = vmatmul.mubr.bf16.vlgmr.msra.gmra.mxu0 %v17208_v46  ;;  %v21802_v46 = vld [vmem:[#allocation378_spill] sm:$0xff] }
 0x82f   :  { %11528 = vmatpush1.bf16.msk.msra.mxu1 %vm11527_vm7, %v21780_v4  ;;  %11622 = vmatprep.mubr.msk.bf16.mxu0 %vm21798_vm10, %v4607_v44  ;;  %vm4054_vm7 = vcmp.eq.s32.totalorder %v21690_v20, %v17067_v55  ;;  %vm4114_vm10 = vcmp.eq.s32.totalorder %v21741_v53, %v17067_v55 }
 0x830   :  { %11530 = vmatprep.subr.msk.bf16.mxu1 %vm11529_vm12, %v21780_v4  ;;  %vm4113_vm12 = vcmp.eq.s32.totalorder %v21740_v16, %v16975_v34  ;;  %vm11539_vm1 = vmpackc.low %vm4054_vm7, %vm4052_vm9 }
 0x831   :  { %vm11541_vm2 = vmpackc.low %vm4115_vm14, %vm4113_vm12  ;;  %vm4104_vm12 = vcmp.eq.s32.totalorder %v21747_v36, %v17067_v55  ;;  %vm4106_vm14 = vcmp.eq.s32.totalorder %v21748_v42, %v17067_v55 }
 0x832   :  { %vm11543_vm13 = vmpackc.low %vm4114_vm10, %vm4112_vm3 }
 0x833   :  { %11532 = vmatpush1.bf16.msk.msra.mxu1 %vm11531_vm5, %v21780_v4  ;;  %vm4109_vm5 = vcmp.eq.s32.totalorder %v21744_v52, %v16975_v34  ;;  %vm11547_vm9 = vmpackc.low %vm4110_vm15, %vm4108_vm4 }
 0x834   :  { %11534 = vmatprep.subr.msk.bf16.mxu1 %vm11533_vm8, %v21780_v4  ;;  %vm4111_vm8 = vcmp.eq.s32.totalorder %v21745_v54, %v16975_v34  ;;  %vm11551_vm3 = vmpackc.low %vm4106_vm14, %vm4104_vm12 }
 0x835   :  { %vm11545_vm6 = vmpackc.low %vm4111_vm8, %vm4109_vm5  ;;  %vm4100_vm5 = vcmp.eq.s32.totalorder %v21749_v11, %v17067_v55  ;;  %vm4102_vm8 = vcmp.eq.s32.totalorder %v21799_v41, %v17067_v55 }
 0x836   :  { %4816 = vmatmul.mubr.bf16.gmra.mxu0 %v4606_v29  ;;  %vm11555_vm4 = vmpackc.low %vm4102_vm8, %vm4100_vm5 }
 0x837   :  { %11536 = vmatpush1.bf16.msk.msra.mxu1 %vm11535_vm11, %v21780_v4  ;;  %vm4105_vm11 = vcmp.eq.s32.totalorder %v21747_v36, %v16975_v34 }
 0x838   :  { %11538 = vmatprep.subr.msk.bf16.mxu1 %vm11537_vm0, %v21780_v4  ;;  %vm4107_vm0 = vcmp.eq.s32.totalorder %v21748_v42, %v16975_v34 }
 0x839   :  { %vm11549_vm7 = vmpackc.low %vm4107_vm0, %vm4105_vm11  ;;  %vm4096_vm11 = vcmp.eq.s32.totalorder %v21800_v24, %v17067_v55  ;;  %vm4098_vm0 = vcmp.eq.s32.totalorder %v21801_v57, %v17067_v55 }
 0x83a   :  { %vm11559_vm12 = vmpackc.low %vm4098_vm0, %vm4096_vm11 }
 0x83b   :  { %11540 = vmatpush1.bf16.msk.msra.mxu1 %vm11539_vm1, %v21780_v4  ;;  %vm4101_vm1 = vcmp.eq.s32.totalorder %v21749_v11, %v16975_v34 }
 0x83c   :  { %11542 = vmatprep.subr.msk.bf16.mxu1 %vm11541_vm2, %v21780_v4  ;;  %vm4103_vm2 = vcmp.eq.s32.totalorder %v21799_v41, %v16975_v34 }
 0x83d   :  { %vm11553_vm10 = vmpackc.low %vm4103_vm2, %vm4101_vm1  ;;  %vm4092_vm1 = vcmp.eq.s32.totalorder %v21802_v46, %v17067_v55  ;;  %vm4094_vm2 = vcmp.eq.s32.totalorder %v21803_v28, %v17067_v55 }
 0x83e   :  { %vm11563_vm5 = vmpackc.low %vm4094_vm2, %vm4092_vm1 }
 0x83f   :  { %11544 = vmatpush2.bf16.msk.msra.mxu1 %vm11543_vm13, %v21780_v4  ;;  %vm4097_vm13 = vcmp.eq.s32.totalorder %v21800_v24, %v16975_v34 }
 0x840   :  { %11546 = vmatprep.subr.msk.bf16.mxu1 %vm11545_vm6, %v21780_v4  ;;  %vm4099_vm6 = vcmp.eq.s32.totalorder %v21801_v57, %v16975_v34 }
 0x841   :  { %vm11557_vm15 = vmpackc.low %vm4099_vm6, %vm4097_vm13  ;;  %vm4088_vm13 = vcmp.eq.s32.totalorder %v21804_v47, %v17067_v55  ;;  %vm4090_vm6 = vcmp.eq.s32.totalorder %v21805_v35, %v17067_v55 }
 0x842   :  { %vm11567_vm11 = vmpackc.low %vm4090_vm6, %vm4088_vm13 }
 0x843   :  { %11548 = vmatpush2.bf16.msk.msra.mxu1 %vm11547_vm9, %v21780_v4  ;;  %vm4093_vm9 = vcmp.eq.s32.totalorder %v21802_v46, %v16975_v34 }
 0x844   :  { %11550 = vmatprep.subr.msk.bf16.mxu1 %vm11549_vm7, %v21780_v4  ;;  %vm4095_vm7 = vcmp.eq.s32.totalorder %v21803_v28, %v16975_v34 }
 0x845   :  { %vm11561_vm14 = vmpackc.low %vm4095_vm7, %vm4093_vm9  ;;  %vm4084_vm9 = vcmp.eq.s32.totalorder %v21806_v18, %v17067_v55  ;;  %vm4086_vm7 = vcmp.eq.s32.totalorder %v21807_v32, %v17067_v55 }
 0x847   :  { %11552 = vmatpush2.bf16.msk.msra.mxu1 %vm11551_vm3, %v21780_v4  ;;  %vm4089_vm3 = vcmp.eq.s32.totalorder %v21804_v47, %v16975_v34 }
 0x848   :  { %11554 = vmatprep.subr.msk.bf16.mxu1 %vm11553_vm10, %v21780_v4  ;;  %vm4091_vm10 = vcmp.eq.s32.totalorder %v21805_v35, %v16975_v34 }
 0x849   :  { %vm11565_vm8 = vmpackc.low %vm4091_vm10, %vm4089_vm3 }
 0x84b   :  { %11556 = vmatpush2.bf16.msk.msra.mxu1 %vm11555_vm4, %v21780_v4  ;;  %vm4085_vm4 = vcmp.eq.s32.totalorder %v21806_v18, %v16975_v34 }
 0x84c   :  { %11558 = vmatprep.subr.msk.bf16.mxu1 %vm11557_vm15, %v21780_v4  ;;  %vm4087_vm15 = vcmp.eq.s32.totalorder %v21807_v32, %v16975_v34 }
 0x84d   :  { %vm11569_vm0 = vmpackc.low %vm4087_vm15, %vm4085_vm4 }
 0x84f   :  { %11560 = vmatpush2.bf16.msk.msra.mxu1 %vm11559_vm12, %v21780_v4  ;;  %vm11571_vm12 = vmpackc.low %vm4086_vm7, %vm4084_vm9 }
 0x850   :  { %11562 = vmatprep.subr.msk.bf16.mxu1 %vm11561_vm14, %v21780_v4 }
 0x853   :  { %11564 = vmatpush2.bf16.msk.msra.mxu1 %vm11563_vm5, %v21780_v4 }
 0x854   :  { %11566 = vmatprep.subr.msk.bf16.mxu1 %vm11565_vm8, %v21780_v4 }
 0x857   :  { %11568 = vmatpush2.bf16.msk.msra.mxu1 %vm11567_vm11, %v21780_v4 }
 0x858   :  { %11570 = vmatprep.subr.msk.bf16.mxu1 %vm11569_vm0, %v21780_v4 }
 0x85b   :  { %11572 = vmatpush2.bf16.msk.msra.mxu1 %vm11571_vm12, %v21780_v4 }
 0x85e   :  { %4753 = vmatmul.mubr.bf16.vlgmr.msra.gmra.mxu1 %v17079_v25 }
 0x85f   :  { %4762 = vmatprep.mubr.bf16.mxu1 %v17103_v8 }
 0x866   :  { %4763 = vmatmul.mubr.bf16.gmra.mxu1 %v17106_v19 }
 0x8be   :  { %v4648_v34 = vpop.f32.mrf.mxu0 }
 0x8c0   :  { %v4650_v1 = vpop.f32.mrf.mxu0 }
 0x8c2   :  { %v4652_v56 = vpop.f32.mrf.mxu0 }
 0x8c4   :  { %v4654_v48 = vpop.f32.mrf.mxu0 }
 0x8c6   :  { %v4658_v38 = vpop.f32.mrf.mxu0 }
 0x8c8   :  { %v4660_v44 = vpop.f32.mrf.mxu0 }
 0x8ca   :  { %v4662_v29 = vpop.f32.mrf.mxu0 }
 0x8cc   :  { %v4664_v59 = vpop.f32.mrf.mxu0 }
 0x8de   :  { %v4701_v26 = vpop.f32.mrf.mxu1 }
 0x8df   :  { %v4702_v14 = vadd.f32 %v4701_v26, %v4648_v34 }
 0x8e0   :  { %v4703_v55 = vpop.f32.mrf.mxu1 }
 0x8e1   :  { %v4704_v35 = vadd.f32 %v4703_v55, %v4650_v1 }
 0x8e2   :  { %v4705_v15 = vpop.f32.mrf.mxu1 }
 0x8e3   :  { %v4706_v62 = vadd.f32 %v4705_v15, %v4652_v56 }
 0x8e4   :  { %v4707_v58 = vpop.f32.mrf.mxu1 }
 0x8e5   :  { %v4708_v5 = vadd.f32 %v4707_v58, %v4654_v48 }
 0x8e6   :  { %v4711_v18 = vpop.f32.mrf.mxu1 }
 0x8e7   :  { %v4712_v11 = vadd.f32 %v4711_v18, %v4658_v38 }
 0x8e8   :  { %v4713_v61 = vpop.f32.mrf.mxu1 }
 0x8ea   :  { %v4715_v20 = vpop.f32.mrf.mxu1 }
 0x8ec   :  { %v4717_v32 = vpop.f32.mrf.mxu1 }
 0x8ee   :  { %v4807_v4 = vpop.f32.mrf.mxu0 }
 0x8f0   :  { %v4809_v25 = vpop.f32.mrf.mxu0 }
 0x8f2   :  { %v4811_v8 = vpop.f32.mrf.mxu0 }
 0x8f4   :  { %v4813_v19 = vpop.f32.mrf.mxu0 }
 0x8f6   :  { %v4817_v6 = vpop.f32.mrf.mxu0 }
 0x8f8   :  { %v4819_v3 = vpop.f32.mrf.mxu0 }
 0x8fa   :  { %v4821_v34 = vpop.f32.mrf.mxu0 }
 0x91e   :  { %v4754_v39 = vpop.f32.mrf.mxu1 }
 0x91f   :  { %v4808_v47 = vadd.f32 %v4807_v4, %v4754_v39  ;;  %v4714_v4 = vadd.f32 %v4713_v61, %v4660_v44 }
 0x920   :  { %v4756_v9 = vpop.f32.mrf.mxu1 }
 0x921   :  { %v4826_v13 = vmax.f32 %v4702_v14, %v4808_v47  ;;  %v4810_v17 = vadd.f32 %v4809_v25, %v4756_v9  ;;  %v4716_v9 = vadd.f32 %v4715_v20, %v4662_v29 }
 0x922   :  { %v4758_v46 = vpop.f32.mrf.mxu1 }
 0x923   :  { %v4827_v37 = vmax.f32 %v4704_v35, %v4810_v17  ;;  %v4812_v28 = vadd.f32 %v4811_v8, %v4758_v46  ;;  %v4823_v17 = vpop.f32.mrf.mxu0  ;;  %v4718_v35 = vadd.f32 %v4717_v32, %v4664_v59 }
 0x924   :  { %v4760_v24 = vpop.f32.mrf.mxu1 }
 0x925   :  { %v4828_v7 = vmax.f32 %v4706_v62, %v4812_v28  ;;  %v4814_v57 = vadd.f32 %v4813_v19, %v4760_v24 }
 0x926   :  { %v4764_v2 = vpop.f32.mrf.mxu1 }
 0x927   :  { %v4829_v45 = vmax.f32 %v4708_v5, %v4814_v57  ;;  %v4818_v41 = vadd.f32 %v4817_v6, %v4764_v2  ;;  %v21808_v2 = vmov 0  }
 0x928   :  { %v4766_v39 = vpop.f32.mrf.mxu1  ;;  %5228 = vmatprep.mubr.bf16.mxu1 %v21808_v2 }
 0x929   :  { %v4830_v26 = vmax.f32 %v4712_v11, %v4818_v41  ;;  %v4820_v1 = vadd.f32 %v4819_v3, %v4766_v39  ;;  %v17443_v5 = vpack.c.bf16 %v4829_v45, %v4827_v37 }
 0x92a   :  { %v4768_v14 = vpop.f32.mrf.mxu1 }
 0x92b   :  { %v4831_v47 = vmax.f32 %v4714_v4, %v4820_v1  ;;  %v4822_v56 = vadd.f32 %v4821_v34, %v4768_v14 }
 0x92c   :  { %v4770_v46 = vpop.f32.mrf.mxu1 }
 0x92d   :  { %v4832_v55 = vmax.f32 %v4716_v9, %v4822_v56  ;;  %v4824_v58 = vadd.f32 %v4823_v17, %v4770_v46 }
 0x92f   :  { %v4833_v62 = vmax.f32 %v4718_v35, %v4824_v58  ;;  %v5063_v28 = vpack.c.bf16 %v4832_v55, %v4830_v26 }
 0x931   :  { %v17441_v24 = vpack.c.bf16 %v4833_v62, %v4831_v47 }
 0x932   :  { %13065 = dma.done.wait [#allocation3], 35840 }
 0x933   :  { %13066 = vsyncadd [#allocation3], 4294931456  ;;  %5109 = vmatprep.mubr.bf16.mxu0 %v21808_v2  ;;  %v21809_v20 = vmov 0.0   ;;  %vm21810_vm14 = vcmask 1045504   ;;  %v17456_v61 = vpack.c.bf16 %v4828_v7, %v4826_v13  ;;  %v21813_v45 = vld [vmem:[#allocation95_spill] sm:$0xff]  ;;  %v21814_v3 = vld [vmem:[#allocation93_spill] sm:$0xff] }
 0x934   :  { %11073 = vst [vmem:[#allocation4] sm:$0x3] %v21809_v20  ;;  %11628 = vmatprep.subr.msk.bf16.mxu1 %vm21810_vm14, %v17441_v24  ;;  %vm21811_vm1 = vmmov %vm21810_vm14  ;;  %v11660_v37 = vcombine.high %v21814_v3, %v21813_v45  ;;  %v21815_v11 = vld [vmem:[#allocation96_spill] sm:$0xff]  ;;  %v21816_v6 = vld [vmem:[#allocation94_spill] sm:$0xff]  ;;  %v11659_v7 = vcombine.low %v21814_v3, %v21813_v45  ;;  %vm21824_vm3 = vcmask 228352   ;;  %vm20941_vm13 = vcmask 785408  }
 0x935   :  { %v17451_v59 = vsel %vm21811_vm1, %v5063_v28, 0  ;;  %vm21812_vm2 = vmmov %vm21811_vm1  ;;  %v11662_v41 = vcombine.high %v21816_v6, %v21815_v11  ;;  %v11661_v13 = vcombine.low %v21816_v6, %v21815_v11  ;;  %v21817_v57 = vld [vmem:[#allocation91_spill] sm:$0xff]  ;;  %v21818_v18 = vld [vmem:[#allocation89_spill] sm:$0xff] }
 0x936   :  { %11625 = vmatprep.subr.msk.bf16.mxu0 %vm21812_vm2, %v17441_v24  ;;  %5209 = vmatpush1.bf16.msra.mxu1 %v17451_v59  ;;  %v11656_v32 = vcombine.high %v21818_v18, %v21817_v57  ;;  %v21819_v48 = vld [vmem:[#allocation92_spill] sm:$0xff]  ;;  %v21820_v38 = vld [vmem:[#allocation90_spill] sm:$0xff]  ;;  %v21822_v29 = vld [vmem:[#allocation301_spill] sm:$0xff]  ;;  %v11655_v39 = vcombine.low %v21818_v18, %v21817_v57 }
 0x937   :  { %5090 = vmatpush1.bf16.msra.mxu0 %v17451_v59  ;;  %5210 = vmatprep.subr.bf16.mxu1 %v17443_v5  ;;  %v11658_v44 = vcombine.high %v21820_v38, %v21819_v48  ;;  %v21821_v15 = vld [vmem:[#allocation302_spill] sm:$0xff]  ;;  %v21825_v8 = vld [vmem:[#allocation299_spill] sm:$0xff]  ;;  %v21826_v19 = vld [vmem:[#allocation296_spill] sm:$0xff]  ;;  %v11657_v4 = vcombine.low %v21820_v38, %v21819_v48 }
 0x938   :  { %5091 = vmatprep.subr.bf16.mxu0 %v17443_v5  ;;  %v21823_v25 = vpack.c.bf16 %v21821_v15, %v21822_v29  ;;  %v21827_v34 = vpack.c.bf16 %v21825_v8, %v21826_v19  ;;  %vm21828_vm10 = vmmov %vm21824_vm3  ;;  %v21829_v26 = vld [vmem:[#allocation87_spill] sm:$0xff]  ;;  %v21830_v1 = vld [vmem:[#allocation85_spill] sm:$0xff] }
 0x939   :  { %v11652_v14 = vcombine.high %v21830_v1, %v21829_v26  ;;  %v21831_v9 = vld [vmem:[#allocation88_spill] sm:$0xff]  ;;  %v21832_v47 = vld [vmem:[#allocation86_spill] sm:$0xff]  ;;  %v11651_v17 = vcombine.low %v21830_v1, %v21829_v26  ;;  %v21833_v35 = vld [vmem:[#allocation83_spill] sm:$0xff] }
 0x93a   :  { %5211 = vmatpush1.bf16.msra.mxu1 %v17456_v61  ;;  %v11654_v56 = vcombine.high %v21832_v47, %v21831_v9  ;;  %v11653_v46 = vcombine.low %v21832_v47, %v21831_v9  ;;  %v21834_v55 = vld [vmem:[#allocation81_spill] sm:$0xff]  ;;  %v21835_v62 = vld [vmem:[#allocation84_spill] sm:$0xff]  ;;  %v21836_v28 = vld [vmem:[#allocation82_spill] sm:$0xff] }
 0x93b   :  { %5092 = vmatpush1.bf16.msra.mxu0 %v17456_v61  ;;  %5650 = vmatprep.subr.bf16.mxu1 %v11662_v41  ;;  %v11648_v58 = vcombine.high %v21834_v55, %v21833_v35  ;;  %v11650_v45 = vcombine.high %v21836_v28, %v21835_v62  ;;  %v21837_v3 = vld [vmem:[#allocation304_spill] sm:$0xff]  ;;  %vm21840_vm5 = vmmov %vm21824_vm3  ;;  %v21842_v41 = vld [vmem:[#allocation298_spill] sm:$0xff]  ;;  %v11649_v57 = vcombine.low %v21836_v28, %v21835_v62 }
 0x93c   :  { %5597 = vmatprep.subr.bf16.mxu0 %v11660_v37  ;;  %v21838_v37 = vld [vmem:[#allocation303_spill] sm:$0xff]  ;;  %v21841_v6 = vld [vmem:[#allocation300_spill] sm:$0xff]  ;;  %vm21844_vm8 = vmmov %vm21824_vm3 }
 0x93d   :  { %11629 = vmatmul.mubr.msk.bf16.vlgmr.msra.gmra.mxu1 %vm21824_vm3, %v21823_v25  ;;  %v21839_v11 = vpack.c.bf16 %v21837_v3, %v21838_v37  ;;  %v21845_v18 = vld [vmem:[#allocation79_spill] sm:$0xff]  ;;  %v21847_v38 = vld [vmem:[#allocation80_spill] sm:$0xff]  ;;  %v21850_v19 = vld [vmem:[#allocation73_spill] sm:$0xff] }
 0x93e   :  { %11626 = vmatmul.mubr.msk.bf16.vlgmr.msra.gmra.mxu0 %vm21828_vm10, %v21827_v34  ;;  %5238 = vmatprep.mubr.bf16.mxu1 %v21808_v2  ;;  %v21849_v8 = vld [vmem:[#allocation75_spill] sm:$0xff]  ;;  %v21854_v47 = vld [vmem:[#allocation69_spill] sm:$0xff]  ;;  %v21859_v3 = vld [vmem:[#allocation68_spill] sm:$0xff] }
 0x93f   :  { %5119 = vmatprep.mubr.bf16.mxu0 %v21808_v2  ;;  %5598 = vmatpush1.bf16.msra.mxu0 %v11659_v7  ;;  %v21843_v7 = vpack.c.bf16 %v21841_v6, %v21842_v41  ;;  %v11640_v34 = vcombine.high %v21850_v19, %v21849_v8  ;;  %v11639_v1 = vcombine.low %v21850_v19, %v21849_v8  ;;  %v21853_v9 = vld [vmem:[#allocation71_spill] sm:$0xff]  ;;  %v21858_v28 = vld [vmem:[#allocation65_spill] sm:$0xff]  ;;  %v21860_v37 = vld [vmem:[#allocation66_spill] sm:$0xff] }
 0x940   :  { %5651 = vmatpush1.bf16.msra.mxu1 %v11661_v13  ;;  %5599 = vmatprep.subr.bf16.mxu0 %v11656_v32  ;;  %v11647_v13 = vcombine.low %v21834_v55, %v21833_v35  ;;  %v21846_v32 = vld [vmem:[#allocation77_spill] sm:$0xff]  ;;  %v11635_v55 = vcombine.low %v21854_v47, %v21853_v9  ;;  %v21857_v62 = vld [vmem:[#allocation67_spill] sm:$0xff]  ;;  %v11633_v41 = vcombine.low %v21860_v37, %v21859_v3  ;;  %v21867_v8 = vld [vmem:[#allocation116_spill] sm:$0xff] }
 0x941   :  { %5652 = vmatprep.subr.bf16.mxu1 %v11658_v44  ;;  %v11644_v48 = vcombine.high %v21846_v32, %v21845_v18  ;;  %v21848_v44 = vld [vmem:[#allocation78_spill] sm:$0xff]  ;;  %v11643_v29 = vcombine.low %v21846_v32, %v21845_v18  ;;  %v11631_v6 = vcombine.low %v21858_v28, %v21857_v62  ;;  %v21863_v18 = vld [vmem:[#allocation120_spill] sm:$0xff]  ;;  %vm21941_vm6 = vmmov %vm21811_vm1 }
 0x942   :  { %v11646_v15 = vcombine.high %v21848_v44, %v21847_v38  ;;  %v11645_v25 = vcombine.low %v21848_v44, %v21847_v38  ;;  %v21864_v32 = vld [vmem:[#allocation118_spill] sm:$0xff]  ;;  %vm21953_vm4 = vmmov %vm21824_vm3 }
 0x943   :  { %5600 = vmatpush1.bf16.msra.mxu0 %v11655_v39  ;;  %v21851_v39 = vld [vmem:[#allocation76_spill] sm:$0xff]  ;;  %v11685_v44 = vcombine.low %v21864_v32, %v21863_v18  ;;  %v21868_v19 = vld [vmem:[#allocation114_spill] sm:$0xff]  ;;  %vm21965_vm15 = vmmov %vm21824_vm3 }
 0x944   :  { %5653 = vmatpush1.bf16.msra.mxu1 %v11657_v4  ;;  %5601 = vmatprep.subr.bf16.mxu0 %v11652_v14  ;;  %v21852_v4 = vld [vmem:[#allocation74_spill] sm:$0xff]  ;;  %vm22006_vm11 = vmmov %vm21811_vm1 }
 0x945   :  { %5654 = vmatprep.subr.bf16.mxu1 %v11654_v56  ;;  %11630 = vmatmul.mubr.msk.bf16.gmra.mxu1 %vm21840_vm5, %v21839_v11  ;;  %v11642_v26 = vcombine.high %v21852_v4, %v21851_v39  ;;  %v11641_v14 = vcombine.low %v21852_v4, %v21851_v39  ;;  %v11636_v56 = vcombine.high %v21854_v47, %v21853_v9  ;;  %v21871_v9 = vld [vmem:[#allocation112_spill] sm:$0xff]  ;;  %v21872_v47 = vld [vmem:[#allocation110_spill] sm:$0xff]  ;;  %vm22026_vm0 = vmmov %vm21824_vm3 }
 0x946   :  { %11627 = vmatmul.mubr.msk.bf16.gmra.mxu0 %vm21844_vm8, %v21843_v7  ;;  %v11634_v11 = vcombine.high %v21860_v37, %v21859_v3  ;;  %v21861_v7 = vld [vmem:[#allocation119_spill] sm:$0xff]  ;;  %v11681_v4 = vcombine.low %v21868_v19, %v21867_v8  ;;  %vm22038_vm9 = vmmov %vm22026_vm0 }
 0x947   :  { %5602 = vmatpush1.bf16.msra.mxu0 %v11651_v17  ;;  %v21855_v17 = vld [vmem:[#allocation72_spill] sm:$0xff]  ;;  %vm22071_vm7 = vmmov %vm21811_vm1 }
 0x948   :  { %5655 = vmatpush1.bf16.msra.mxu1 %v11653_v46  ;;  %5603 = vmatprep.subr.bf16.mxu0 %v11648_v58  ;;  %v21856_v46 = vld [vmem:[#allocation70_spill] sm:$0xff]  ;;  %vm22091_vm12 = vmmov %vm22026_vm0 }
 0x949   :  { %5656 = vmatprep.subr.bf16.mxu1 %v11650_v45  ;;  %v11638_v35 = vcombine.high %v21856_v46, %v21855_v17  ;;  %v11637_v58 = vcombine.low %v21856_v46, %v21855_v17  ;;  %v11632_v45 = vcombine.high %v21858_v28, %v21857_v62  ;;  %v11677_v46 = vcombine.low %v21872_v47, %v21871_v9  ;;  %v21875_v62 = vld [vmem:[#allocation108_spill] sm:$0xff]  ;;  %v21876_v28 = vld [vmem:[#allocation106_spill] sm:$0xff]  ;;  %vm22103_vm14 = vmmov %vm22026_vm0 }
 0x94a   :  { %v11673_v37 = vcombine.low %v21876_v28, %v21875_v62 }
 0x94b   :  { %5604 = vmatpush1.bf16.msra.mxu0 %v11647_v13  ;;  %v21862_v13 = vld [vmem:[#allocation117_spill] sm:$0xff] }
 0x94c   :  { %5657 = vmatpush1.bf16.msra.mxu1 %v11649_v57  ;;  %5605 = vmatprep.subr.bf16.mxu0 %v11644_v48  ;;  %v11684_v57 = vcombine.high %v21862_v13, %v21861_v7  ;;  %v11686_v48 = vcombine.high %v21864_v32, %v21863_v18  ;;  %v11683_v38 = vcombine.low %v21862_v13, %v21861_v7  ;;  %v21879_v7 = vld [vmem:[#allocation104_spill] sm:$0xff]  ;;  %v21880_v13 = vld [vmem:[#allocation102_spill] sm:$0xff] }
 0x94d   :  { %5658 = vmatprep.subr.bf16.mxu1 %v11646_v15  ;;  %v21865_v15 = vld [vmem:[#allocation115_spill] sm:$0xff]  ;;  %v11669_v32 = vcombine.low %v21880_v13, %v21879_v7 }
 0x94f   :  { %5606 = vmatpush1.bf16.msra.mxu0 %v11643_v29  ;;  %v21866_v29 = vld [vmem:[#allocation113_spill] sm:$0xff] }
 0x950   :  { %5659 = vmatpush1.bf16.msra.mxu1 %v11645_v25  ;;  %5607 = vmatprep.subr.bf16.mxu0 %v11640_v34  ;;  %v11680_v25 = vcombine.high %v21866_v29, %v21865_v15  ;;  %v11682_v34 = vcombine.high %v21868_v19, %v21867_v8  ;;  %v11679_v39 = vcombine.low %v21866_v29, %v21865_v15  ;;  %v21883_v15 = vld [vmem:[#allocation100_spill] sm:$0xff]  ;;  %v21884_v29 = vld [vmem:[#allocation98_spill] sm:$0xff] }
 0x951   :  { %5660 = vmatprep.subr.bf16.mxu1 %v11642_v26  ;;  %v21869_v26 = vld [vmem:[#allocation111_spill] sm:$0xff]  ;;  %v11665_v19 = vcombine.low %v21884_v29, %v21883_v15 }
 0x953   :  { %5608 = vmatpush1.bf16.msra.mxu0 %v11639_v1  ;;  %v21870_v1 = vld [vmem:[#allocation109_spill] sm:$0xff] }
 0x954   :  { %5661 = vmatpush1.bf16.msra.mxu1 %v11641_v14  ;;  %5609 = vmatprep.subr.bf16.mxu0 %v11636_v56  ;;  %v11676_v14 = vcombine.high %v21870_v1, %v21869_v26  ;;  %v11678_v56 = vcombine.high %v21872_v47, %v21871_v9  ;;  %v11675_v17 = vcombine.low %v21870_v1, %v21869_v26  ;;  %v21887_v26 = vld [vmem:[#allocation40_spill] sm:$0xff]  ;;  %v21888_v1 = vld [vmem:[#allocation38_spill] sm:$0xff] }
 0x955   :  { %5662 = vmatprep.subr.bf16.mxu1 %v11638_v35  ;;  %v21873_v35 = vld [vmem:[#allocation107_spill] sm:$0xff] }
 0x957   :  { %5610 = vmatpush1.bf16.msra.mxu0 %v11635_v55  ;;  %v21874_v55 = vld [vmem:[#allocation105_spill] sm:$0xff] }
 0x958   :  { %5663 = vmatpush1.bf16.msra.mxu1 %v11637_v58  ;;  %5611 = vmatprep.subr.bf16.mxu0 %v11632_v45  ;;  %v11672_v58 = vcombine.high %v21874_v55, %v21873_v35  ;;  %v11674_v45 = vcombine.high %v21876_v28, %v21875_v62  ;;  %v11671_v3 = vcombine.low %v21874_v55, %v21873_v35 }
 0x959   :  { %5664 = vmatprep.subr.bf16.mxu1 %v11634_v11  ;;  %v21877_v11 = vld [vmem:[#allocation103_spill] sm:$0xff]  ;;  %v11721_v62 = vcombine.low %v21888_v1, %v21887_v26 }
 0x95b   :  { %5612 = vmatpush1.bf16.msra.mxu0 %v11631_v6  ;;  %v21878_v6 = vld [vmem:[#allocation101_spill] sm:$0xff] }
 0x95c   :  { %5665 = vmatpush1.bf16.msra.mxu1 %v11633_v41  ;;  %5617 = vmatprep.subr.bf16.mxu0 %v11684_v57  ;;  %v11668_v41 = vcombine.high %v21878_v6, %v21877_v11  ;;  %v11670_v57 = vcombine.high %v21880_v13, %v21879_v7  ;;  %v11667_v18 = vcombine.low %v21878_v6, %v21877_v11  ;;  %v21891_v11 = vld [vmem:[#allocation36_spill] sm:$0xff]  ;;  %v21892_v6 = vld [vmem:[#allocation34_spill] sm:$0xff] }
 0x95d   :  { %5670 = vmatprep.subr.bf16.mxu1 %v11686_v48  ;;  %v21881_v48 = vld [vmem:[#allocation99_spill] sm:$0xff] }
 0x95f   :  { %5618 = vmatpush2.bf16.msra.mxu0 %v11683_v38  ;;  %v21882_v38 = vld [vmem:[#allocation97_spill] sm:$0xff] }
 0x960   :  { %5671 = vmatpush2.bf16.msra.mxu1 %v11685_v44  ;;  %5619 = vmatprep.subr.bf16.mxu0 %v11680_v25  ;;  %v11664_v44 = vcombine.high %v21882_v38, %v21881_v48  ;;  %v11666_v25 = vcombine.high %v21884_v29, %v21883_v15  ;;  %v11663_v8 = vcombine.low %v21882_v38, %v21881_v48  ;;  %v21893_v48 = vld [vmem:[#allocation31_spill] sm:$0xff]  ;;  %v21894_v38 = vld [vmem:[#allocation29_spill] sm:$0xff]  ;;  %v21895_v15 = vld [vmem:[#allocation32_spill] sm:$0xff] }
 0x961   :  { %5672 = vmatprep.subr.bf16.mxu1 %v11682_v34  ;;  %v21885_v34 = vld [vmem:[#allocation39_spill] sm:$0xff]  ;;  %v21896_v29 = vld [vmem:[#allocation30_spill] sm:$0xff] }
 0x963   :  { %5620 = vmatpush2.bf16.msra.mxu0 %v11679_v39  ;;  %v21886_v39 = vld [vmem:[#allocation37_spill] sm:$0xff] }
 0x964   :  { %5673 = vmatpush2.bf16.msra.mxu1 %v11681_v4  ;;  %5621 = vmatprep.subr.bf16.mxu0 %v11676_v14  ;;  %v11720_v4 = vcombine.high %v21886_v39, %v21885_v34  ;;  %v11722_v14 = vcombine.high %v21888_v1, %v21887_v26  ;;  %v11713_v26 = vcombine.low %v21896_v29, %v21895_v15 }
 0x965   :  { %5674 = vmatprep.subr.bf16.mxu1 %v11678_v56 }
 0x967   :  { %5622 = vmatpush2.bf16.msra.mxu0 %v11675_v17 }
 0x968   :  { %5675 = vmatpush2.bf16.msra.mxu1 %v11677_v46  ;;  %5623 = vmatprep.subr.bf16.mxu0 %v11672_v58  ;;  %v11719_v58 = vcombine.low %v21886_v39, %v21885_v34 }
 0x969   :  { %5676 = vmatprep.subr.bf16.mxu1 %v11674_v45  ;;  %v21889_v45 = vld [vmem:[#allocation35_spill] sm:$0xff] }
 0x96b   :  { %5624 = vmatpush2.bf16.msra.mxu0 %v11671_v3  ;;  %v21890_v3 = vld [vmem:[#allocation33_spill] sm:$0xff] }
 0x96c   :  { %5677 = vmatpush2.bf16.msra.mxu1 %v11673_v37  ;;  %5625 = vmatprep.subr.bf16.mxu0 %v11668_v41  ;;  %v11716_v37 = vcombine.high %v21890_v3, %v21889_v45  ;;  %v11718_v41 = vcombine.high %v21892_v6, %v21891_v11 }
 0x96d   :  { %5678 = vmatprep.subr.bf16.mxu1 %v11670_v57 }
 0x96f   :  { %5626 = vmatpush2.bf16.msra.mxu0 %v11667_v18  ;;  %v11715_v18 = vcombine.low %v21890_v3, %v21889_v45  ;;  %v21901_v45 = vld [vmem:[#allocation23_spill] sm:$0xff]  ;;  %v21902_v3 = vld [vmem:[#allocation21_spill] sm:$0xff] }
 0x970   :  { %5679 = vmatpush2.bf16.msra.mxu1 %v11669_v32  ;;  %5627 = vmatprep.subr.bf16.mxu0 %v11664_v44  ;;  %v11717_v32 = vcombine.low %v21892_v6, %v21891_v11  ;;  %v11712_v44 = vcombine.high %v21894_v38, %v21893_v48  ;;  %v21903_v11 = vld [vmem:[#allocation24_spill] sm:$0xff]  ;;  %v21904_v6 = vld [vmem:[#allocation22_spill] sm:$0xff] }
 0x971   :  { %5680 = vmatprep.subr.bf16.mxu1 %v11666_v25  ;;  %v11714_v25 = vcombine.high %v21896_v29, %v21895_v15 }
 0x973   :  { %5628 = vmatpush2.bf16.msra.mxu0 %v11663_v8 }
 0x974   :  { %5681 = vmatpush2.bf16.msra.mxu1 %v11665_v19  ;;  %5989 = vmatprep.subr.bf16.mxu0 %v11720_v4  ;;  %v11711_v4 = vcombine.low %v21894_v38, %v21893_v48  ;;  %v21907_v48 = vld [vmem:[#allocation20_spill] sm:$0xff]  ;;  %v21908_v38 = vld [vmem:[#allocation18_spill] sm:$0xff] }
 0x975   :  { %6042 = vmatprep.subr.bf16.mxu1 %v11722_v14  ;;  %v21897_v14 = vld [vmem:[#allocation27_spill] sm:$0xff]  ;;  %v11701_v29 = vcombine.low %v21908_v38, %v21907_v48 }
 0x9fd   :  { %v5230_v9 = vpop.f32.mrf.mxu1 }
 0x9fe   :  { %v17597_v56 = vpop.f32.mrf.mxu0 }
 0x9ff   :  { %v5232_v47 = vpop.f32.mrf.mxu1 }
 0xa00   :  { %v5113_v35 = vpop.f32.mrf.mxu0 }
 0xa01   :  { %v5234_v17 = vpop.f32.mrf.mxu1 }
 0xa02   :  { %v5249_v28 = vpack.c.bf16 %v5234_v17, %v5230_v9  ;;  %v17609_v57 = vpop.f32.mrf.mxu0  ;;  %v21898_v9 = vld [vmem:[#allocation25_spill] sm:$0xff]  ;;  %v21899_v17 = vld [vmem:[#allocation28_spill] sm:$0xff] }
 0xa03   :  { %v5236_v46 = vpop.f32.mrf.mxu1 }
 0xa04   :  { %v5250_v55 = vpack.c.bf16 %v5236_v46, %v5232_v47  ;;  %v5117_v39 = vpop.f32.mrf.mxu0  ;;  %v11708_v47 = vcombine.high %v21898_v9, %v21897_v14  ;;  %v21900_v46 = vld [vmem:[#allocation26_spill] sm:$0xff] }
 0xa05   :  { %v5240_v7 = vpop.f32.mrf.mxu1 }
 0xa06   :  { %11687 = vmatprep.mubr.msk.bf16.mxu0 %vm20941_vm13, %v5250_v55  ;;  %11689 = vmatprep.mubr.msk.bf16.mxu1 %vm20941_vm13, %v5250_v55  ;;  %v11710_v55 = vcombine.high %v21900_v46, %v21899_v17 }
 0xa07   :  { %5630 = vmatmul.mubr.bf16.vlgmr.msra.gmra.mxu0 %v5249_v28  ;;  %5683 = vmatmul.mubr.bf16.vlgmr.msra.gmra.mxu1 %v5249_v28  ;;  %v5242_v13 = vpop.f32.mrf.mxu1  ;;  %v11709_v28 = vcombine.low %v21900_v46, %v21899_v17  ;;  %v21915_v17 = vld [vmem:[#allocation12_spill] sm:$0xff]  ;;  %v21916_v46 = vld [vmem:[#allocation10_spill] sm:$0xff] }
 0xa08   :  { %5990 = vmatpush1.bf16.msra.mxu0 %v11719_v58  ;;  %6043 = vmatpush1.bf16.msra.mxu1 %v11721_v62  ;;  %v5131_v58 = vpack.c.bf16 %v5117_v39, %v5113_v35  ;;  %v11707_v62 = vcombine.low %v21898_v9, %v21897_v14  ;;  %v11703_v35 = vcombine.low %v21902_v3, %v21901_v45  ;;  %v21912_v39 = vld [vmem:[#allocation14_spill] sm:$0xff]  ;;  %v21913_v14 = vld [vmem:[#allocation11_spill] sm:$0xff]  ;;  %v21914_v9 = vld [vmem:[#allocation9_spill] sm:$0xff] }
 0xa09   :  { %5991 = vmatprep.subr.bf16.mxu0 %v11716_v37  ;;  %6044 = vmatprep.subr.bf16.mxu1 %v11718_v41  ;;  %v5244_v8 = vpop.f32.mrf.mxu1  ;;  %v11704_v37 = vcombine.high %v21902_v3, %v21901_v45  ;;  %v11706_v41 = vcombine.high %v21904_v6, %v21903_v11  ;;  %v21918_v45 = vld [vmem:[#allocation61_spill] sm:$0xff] }
 0xa0a   :  { %v5251_v19 = vpack.c.bf16 %v5244_v8, %v5240_v7  ;;  %v11705_v7 = vcombine.low %v21904_v6, %v21903_v11  ;;  %v21910_v8 = vld [vmem:[#allocation13_spill] sm:$0xff]  ;;  %v21920_v11 = vld [vmem:[#allocation62_spill] sm:$0xff] }
 0xa0b   :  { %v5246_v34 = vpop.f32.mrf.mxu1 }
 0xa0c   :  { %5992 = vmatpush1.bf16.msra.mxu0 %v11715_v18  ;;  %6045 = vmatpush1.bf16.msra.mxu1 %v11717_v32  ;;  %v5252_v1 = vpack.c.bf16 %v5246_v34, %v5242_v13  ;;  %v21905_v13 = vld [vmem:[#allocation19_spill] sm:$0xff]  ;;  %v21906_v18 = vld [vmem:[#allocation17_spill] sm:$0xff]  ;;  %v21911_v34 = vld [vmem:[#allocation16_spill] sm:$0xff] }
 0xa0d   :  { %5993 = vmatprep.subr.bf16.mxu0 %v11712_v44  ;;  %6046 = vmatprep.subr.bf16.mxu1 %v11714_v25  ;;  %v11700_v32 = vcombine.high %v21906_v18, %v21905_v13  ;;  %v11702_v44 = vcombine.high %v21908_v38, %v21907_v48  ;;  %v11699_v15 = vcombine.low %v21906_v18, %v21905_v13  ;;  %v21909_v25 = vld [vmem:[#allocation15_spill] sm:$0xff]  ;;  %v21922_v13 = vld [vmem:[#allocation57_spill] sm:$0xff]  ;;  %v21924_v48 = vld [vmem:[#allocation58_spill] sm:$0xff] }
 0xa0e   :  { %11688 = vmatprep.mubr.msk.bf16.mxu0 %vm20941_vm13, %v5252_v1  ;;  %11690 = vmatprep.mubr.msk.bf16.mxu1 %vm20941_vm13, %v5252_v1  ;;  %v11697_v1 = vcombine.low %v21912_v39, %v21911_v34 }
 0xa0f   :  { %5640 = vmatmul.mubr.bf16.gmra.mxu0 %v5251_v19  ;;  %5693 = vmatmul.mubr.bf16.gmra.mxu1 %v5251_v19  ;;  %v11696_v19 = vcombine.high %v21910_v8, %v21909_v25 }
 0xa10   :  { %5994 = vmatpush1.bf16.msra.mxu0 %v11711_v4  ;;  %6047 = vmatpush1.bf16.msra.mxu1 %v11713_v26  ;;  %v11698_v4 = vcombine.high %v21912_v39, %v21911_v34  ;;  %v11695_v26 = vcombine.low %v21910_v8, %v21909_v25  ;;  %v21926_v25 = vld [vmem:[#allocation53_spill] sm:$0xff]  ;;  %v21928_v34 = vld [vmem:[#allocation54_spill] sm:$0xff] }
 0xa11   :  { %5995 = vmatprep.subr.bf16.mxu0 %v11708_v47  ;;  %6048 = vmatprep.subr.bf16.mxu1 %v11710_v55  ;;  %v11692_v47 = vcombine.high %v21914_v9, %v21913_v14  ;;  %v11694_v55 = vcombine.high %v21916_v46, %v21915_v17 }
 0xa12   :  { %11747 = vmatprep.mubr.msk.bf16.mxu0 %vm20941_vm13, %v5131_v58  ;;  %11749 = vmatprep.mubr.msk.bf16.mxu1 %vm20941_vm13, %v5131_v58  ;;  %v11691_v58 = vcombine.low %v21914_v9, %v21913_v14  ;;  %v21930_v14 = vld [vmem:[#allocation49_spill] sm:$0xff] }
 0xa14   :  { %5996 = vmatpush1.bf16.msra.mxu0 %v11707_v62  ;;  %6049 = vmatpush1.bf16.msra.mxu1 %v11709_v28  ;;  %v11693_v62 = vcombine.low %v21916_v46, %v21915_v17  ;;  %v21917_v28 = vld [vmem:[#allocation63_spill] sm:$0xff]  ;;  %v21932_v17 = vld [vmem:[#allocation50_spill] sm:$0xff] }
 0xa15   :  { %5997 = vmatprep.subr.bf16.mxu0 %v11704_v37  ;;  %6050 = vmatprep.subr.bf16.mxu1 %v11706_v41  ;;  %v11744_v3 = vcombine.high %v21918_v45, %v21917_v28  ;;  %v21919_v37 = vld [vmem:[#allocation64_spill] sm:$0xff]  ;;  %v11743_v41 = vcombine.low %v21918_v45, %v21917_v28  ;;  %v21933_v28 = vld [vmem:[#allocation47_spill] sm:$0xff]  ;;  %v21934_v45 = vld [vmem:[#allocation45_spill] sm:$0xff] }
 0xa16   :  { %v11746_v6 = vcombine.high %v21920_v11, %v21919_v37 }
 0xa18   :  { %5998 = vmatpush1.bf16.msra.mxu0 %v11703_v35  ;;  %6051 = vmatpush1.bf16.msra.mxu1 %v11705_v7  ;;  %v11745_v35 = vcombine.low %v21920_v11, %v21919_v37  ;;  %v21921_v7 = vld [vmem:[#allocation59_spill] sm:$0xff]  ;;  %v21935_v37 = vld [vmem:[#allocation48_spill] sm:$0xff]  ;;  %v21936_v11 = vld [vmem:[#allocation46_spill] sm:$0xff] }
 0xa19   :  { %5999 = vmatprep.subr.bf16.mxu0 %v11700_v32  ;;  %6052 = vmatprep.subr.bf16.mxu1 %v11702_v44  ;;  %v11740_v18 = vcombine.high %v21922_v13, %v21921_v7  ;;  %v21923_v32 = vld [vmem:[#allocation60_spill] sm:$0xff]  ;;  %v11739_v44 = vcombine.low %v21922_v13, %v21921_v7  ;;  %v11729_v7 = vcombine.low %v21936_v11, %v21935_v37 }
 0xa1a   :  { %v11742_v38 = vcombine.high %v21924_v48, %v21923_v32 }
 0xa1c   :  { %6000 = vmatpush1.bf16.msra.mxu0 %v11699_v15  ;;  %6053 = vmatpush1.bf16.msra.mxu1 %v11701_v29  ;;  %v11741_v15 = vcombine.low %v21924_v48, %v21923_v32  ;;  %v21925_v29 = vld [vmem:[#allocation55_spill] sm:$0xff]  ;;  %v21938_v32 = vld [vmem:[#allocation41_spill] sm:$0xff] }
 0xa1d   :  { %6001 = vmatprep.subr.bf16.mxu0 %v11696_v19  ;;  %6054 = vmatprep.subr.bf16.mxu1 %v11698_v4  ;;  %v11736_v8 = vcombine.high %v21926_v25, %v21925_v29  ;;  %v21927_v19 = vld [vmem:[#allocation56_spill] sm:$0xff]  ;;  %v11735_v4 = vcombine.low %v21926_v25, %v21925_v29 }
 0xa1e   :  { %v11738_v39 = vcombine.high %v21928_v34, %v21927_v19 }
 0xa20   :  { %6002 = vmatpush1.bf16.msra.mxu0 %v11695_v26  ;;  %6055 = vmatpush1.bf16.msra.mxu1 %v11697_v1  ;;  %v11737_v26 = vcombine.low %v21928_v34, %v21927_v19  ;;  %v21929_v1 = vld [vmem:[#allocation51_spill] sm:$0xff]  ;;  %v5130_v34 = vpack.c.bf16 %v17609_v57, %v17597_v56  ;;  %v21943_v57 = vld [vmem:[#allocation149_spill] sm:$0xff] }
 0xa21   :  { %6003 = vmatprep.subr.bf16.mxu0 %v11692_v47  ;;  %6056 = vmatprep.subr.bf16.mxu1 %v11694_v55  ;;  %v11732_v9 = vcombine.high %v21930_v14, %v21929_v1  ;;  %v21931_v47 = vld [vmem:[#allocation52_spill] sm:$0xff]  ;;  %v5121_v55 = vpop.f32.mrf.mxu0  ;;  %v21942_v56 = vld [vmem:[#allocation151_spill] sm:$0xff] }
 0xa22   :  { %v11734_v46 = vcombine.high %v21932_v17, %v21931_v47 }
 0xa24   :  { %6004 = vmatpush1.bf16.msra.mxu0 %v11691_v58  ;;  %6057 = vmatpush1.bf16.msra.mxu1 %v11693_v62  ;;  %v11731_v58 = vcombine.low %v21930_v14, %v21929_v1  ;;  %v11733_v62 = vcombine.low %v21932_v17, %v21931_v47  ;;  %v21945_v1 = vld [vmem:[#allocation150_spill] sm:$0xff]  ;;  %v21946_v17 = vld [vmem:[#allocation147_spill] sm:$0xff] }
 0xa25   :  { %6009 = vmatprep.subr.bf16.mxu0 %v11744_v3  ;;  %6062 = vmatprep.subr.bf16.mxu1 %v11746_v6  ;;  %v11728_v3 = vcombine.high %v21934_v45, %v21933_v28  ;;  %v11730_v6 = vcombine.high %v21936_v11, %v21935_v37 }
 0xa28   :  { %6010 = vmatpush2.bf16.msra.mxu0 %v11743_v41  ;;  %6063 = vmatpush2.bf16.msra.mxu1 %v11745_v35  ;;  %v5123_v41 = vpop.f32.mrf.mxu0  ;;  %v11727_v35 = vcombine.low %v21934_v45, %v21933_v28  ;;  %v21950_v45 = vld [vmem:[#allocation306_spill] sm:$0xff] }
 0xa29   :  { %6011 = vmatprep.subr.bf16.mxu0 %v11740_v18  ;;  %6064 = vmatprep.subr.bf16.mxu1 %v11742_v38  ;;  %v21937_v18 = vld [vmem:[#allocation43_spill] sm:$0xff]  ;;  %v21939_v38 = vld [vmem:[#allocation44_spill] sm:$0xff] }
 0xa2a   :  { %v5125_v13 = vpop.f32.mrf.mxu0  ;;  %v11724_v48 = vcombine.high %v21938_v32, %v21937_v18  ;;  %v11723_v29 = vcombine.low %v21938_v32, %v21937_v18  ;;  %v21957_v18 = vld [vmem:[#allocation142_spill] sm:$0xff] }
 0xa2c   :  { %6012 = vmatpush2.bf16.msra.mxu0 %v11739_v44  ;;  %6065 = vmatpush2.bf16.msra.mxu1 %v11741_v15  ;;  %v21940_v44 = vld [vmem:[#allocation42_spill] sm:$0xff] }
 0xa2d   :  { %6013 = vmatprep.subr.bf16.mxu0 %v11736_v8  ;;  %6066 = vmatprep.subr.bf16.mxu1 %v11738_v39  ;;  %v11726_v15 = vcombine.high %v21940_v44, %v21939_v38  ;;  %v11725_v25 = vcombine.low %v21940_v44, %v21939_v38  ;;  %v5127_v8 = vpop.f32.mrf.mxu0  ;;  %v5132_v39 = vpack.c.bf16 %v5125_v13, %v5121_v55  ;;  %v21956_v13 = vld [vmem:[#allocation144_spill] sm:$0xff]  ;;  %v21958_v44 = vld [vmem:[#allocation139_spill] sm:$0xff] }
 0xa2e   :  { %v5133_v19 = vpack.c.bf16 %v5127_v8, %v5123_v41  ;;  %v21954_v41 = vld [vmem:[#allocation143_spill] sm:$0xff]  ;;  %v11777_v32 = vcombine.high %v21957_v18, %v21956_v13  ;;  %v11776_v38 = vcombine.low %v21957_v18, %v21956_v13  ;;  %v21961_v8 = vld [vmem:[#allocation138_spill] sm:$0xff]  ;;  %v21976_v13 = vld [vmem:[#allocation128_spill] sm:$0xff] }
 0xa2f   :  { %v21977_v18 = vld [vmem:[#allocation126_spill] sm:$0xff] }
 0xa30   :  { %6014 = vmatpush2.bf16.msra.mxu0 %v11735_v4  ;;  %6067 = vmatpush2.bf16.msra.mxu1 %v11737_v26  ;;  %v11783_v4 = vcombine.high %v21943_v57, %v21942_v56  ;;  %v21944_v26 = vld [vmem:[#allocation152_spill] sm:$0xff] }
 0xa31   :  { %6015 = vmatprep.subr.bf16.mxu0 %v11732_v9  ;;  %6068 = vmatprep.subr.bf16.mxu1 %v11734_v46  ;;  %v11785_v14 = vcombine.high %v21945_v1, %v21944_v26  ;;  %v11782_v9 = vcombine.low %v21943_v57, %v21942_v56  ;;  %v11784_v47 = vcombine.low %v21945_v1, %v21944_v26  ;;  %v21947_v46 = vld [vmem:[#allocation145_spill] sm:$0xff]  ;;  %v21966_v26 = vld [vmem:[#allocation135_spill] sm:$0xff] }
 0xa32   :  { %v11779_v55 = vcombine.high %v21947_v46, %v21946_v17  ;;  %v11778_v11 = vcombine.low %v21947_v46, %v21946_v17  ;;  %v21967_v1 = vld [vmem:[#allocation133_spill] sm:$0xff] }
 0xa33   :  { %v11766_v46 = vcombine.low %v21967_v1, %v21966_v26 }
 0xa34   :  { %6016 = vmatpush2.bf16.msra.mxu0 %v11731_v58  ;;  %6069 = vmatpush2.bf16.msra.mxu1 %v11733_v62  ;;  %v21948_v58 = vld [vmem:[#allocation148_spill] sm:$0xff]  ;;  %v21949_v62 = vld [vmem:[#allocation146_spill] sm:$0xff] }
 0xa35   :  { %6017 = vmatprep.subr.bf16.mxu0 %v11728_v3  ;;  %6070 = vmatprep.subr.bf16.mxu1 %v11730_v6  ;;  %v11781_v28 = vcombine.high %v21949_v62, %v21948_v58  ;;  %v21951_v3 = vld [vmem:[#allocation305_spill] sm:$0xff]  ;;  %v11780_v6 = vcombine.low %v21949_v62, %v21948_v58  ;;  %v21970_v58 = vld [vmem:[#allocation131_spill] sm:$0xff] }
 0xa36   :  { %v21952_v37 = vpack.c.bf16 %v21950_v45, %v21951_v3  ;;  %v21971_v62 = vld [vmem:[#allocation129_spill] sm:$0xff]  ;;  %v21972_v45 = vld [vmem:[#allocation132_spill] sm:$0xff]  ;;  %v21973_v3 = vld [vmem:[#allocation130_spill] sm:$0xff] }
 0xa38   :  { %6018 = vmatpush2.bf16.msra.mxu0 %v11727_v35  ;;  %6071 = vmatpush2.bf16.msra.mxu1 %v11729_v7  ;;  %v21955_v35 = vld [vmem:[#allocation141_spill] sm:$0xff] }
 0xa39   :  { %6019 = vmatprep.subr.bf16.mxu0 %v11724_v48  ;;  %6072 = vmatprep.subr.bf16.mxu1 %v11726_v15  ;;  %v11775_v7 = vcombine.high %v21955_v35, %v21954_v41  ;;  %v11774_v48 = vcombine.low %v21955_v35, %v21954_v41  ;;  %v21959_v15 = vld [vmem:[#allocation137_spill] sm:$0xff]  ;;  %v21974_v41 = vld [vmem:[#allocation127_spill] sm:$0xff] }
 0xa3a   :  { %v11770_v57 = vcombine.low %v21959_v15, %v21958_v44  ;;  %v21975_v35 = vld [vmem:[#allocation125_spill] sm:$0xff] }
 0xa3c   :  { %6020 = vmatpush2.bf16.msra.mxu0 %v11723_v29  ;;  %6073 = vmatpush2.bf16.msra.mxu1 %v11725_v25  ;;  %v11771_v29 = vcombine.high %v21959_v15, %v21958_v44  ;;  %v21960_v25 = vld [vmem:[#allocation140_spill] sm:$0xff]  ;;  %v21978_v44 = vld [vmem:[#allocation123_spill] sm:$0xff]  ;;  %v21979_v15 = vld [vmem:[#allocation121_spill] sm:$0xff] }
 0xa3d   :  { %11751 = vmatprep.subr.msk.bf16.mxu0 %vm21941_vm6, %v17441_v24  ;;  %6501 = vmatprep.subr.bf16.mxu1 %v11783_v4  ;;  %v11772_v4 = vcombine.low %v21961_v8, %v21960_v25 }
 0xa3f   :  { %6022 = vmatmul.mubr.bf16.vlgmr.msra.gmra.mxu0 %v5130_v34  ;;  %6075 = vmatmul.mubr.bf16.vlgmr.msra.gmra.mxu1 %v5130_v34  ;;  %v21962_v34 = vld [vmem:[#allocation308_spill] sm:$0xff] }
 0xa40   :  { %11748 = vmatprep.mubr.msk.bf16.mxu0 %vm20941_vm13, %v5133_v19  ;;  %11750 = vmatprep.mubr.msk.bf16.mxu1 %vm20941_vm13, %v5133_v19  ;;  %v11773_v19 = vcombine.high %v21961_v8, %v21960_v25  ;;  %v21980_v25 = vld [vmem:[#allocation124_spill] sm:$0xff]  ;;  %v21981_v8 = vld [vmem:[#allocation122_spill] sm:$0xff] }
 0xa41   :  { %6114 = vmatpush1.bf16.msra.mxu0 %v17451_v59  ;;  %6502 = vmatpush1.bf16.msra.mxu1 %v11782_v9  ;;  %v21968_v9 = vld [vmem:[#allocation136_spill] sm:$0xff] }
 0xa42   :  { %6115 = vmatprep.subr.bf16.mxu0 %v17443_v5  ;;  %6503 = vmatprep.subr.bf16.mxu1 %v11779_v55 }
 0xa45   :  { %6116 = vmatpush1.bf16.msra.mxu0 %v17456_v61  ;;  %6504 = vmatpush1.bf16.msra.mxu1 %v11778_v11  ;;  %v11762_v11 = vcombine.low %v21971_v62, %v21970_v58 }
 0xa46   :  { %6554 = vmatprep.subr.bf16.mxu0 %v11785_v14  ;;  %6505 = vmatprep.subr.bf16.mxu1 %v11775_v7  ;;  %v11767_v14 = vcombine.high %v21967_v1, %v21966_v26  ;;  %v11759_v7 = vcombine.high %v21975_v35, %v21974_v41  ;;  %v21984_v26 = vld [vmem:[#allocation176_spill] sm:$0xff]  ;;  %v21985_v1 = vld [vmem:[#allocation174_spill] sm:$0xff] }
 0xa47   :  { %6032 = vmatmul.mubr.bf16.gmra.mxu0 %v5132_v39  ;;  %6085 = vmatmul.mubr.bf16.gmra.mxu1 %v5132_v39  ;;  %v21963_v39 = vld [vmem:[#allocation307_spill] sm:$0xff] }
 0xa48   :  { %6133 = vmatprep.mubr.bf16.mxu0 %v21808_v2  ;;  %v21964_v56 = vpack.c.bf16 %v21962_v34, %v21963_v39  ;;  %v11754_v34 = vcombine.low %v21979_v15, %v21978_v44  ;;  %v11756_v39 = vcombine.low %v21981_v8, %v21980_v25 }
 0xa49   :  { %6506 = vmatpush1.bf16.msra.mxu1 %v11774_v48  ;;  %v11758_v48 = vcombine.low %v21975_v35, %v21974_v41  ;;  %v21992_v41 = vld [vmem:[#allocation168_spill] sm:$0xff]  ;;  %v21993_v35 = vld [vmem:[#allocation166_spill] sm:$0xff] }
 0xa4a   :  { %6507 = vmatprep.subr.bf16.mxu1 %v11771_v29  ;;  %v11755_v29 = vcombine.high %v21979_v15, %v21978_v44  ;;  %v21996_v44 = vld [vmem:[#allocation164_spill] sm:$0xff]  ;;  %v21997_v15 = vld [vmem:[#allocation162_spill] sm:$0xff] }
 0xa4d   :  { %6508 = vmatpush1.bf16.msra.mxu1 %v11770_v57  ;;  %v21983_v57 = vld [vmem:[#allocation173_spill] sm:$0xff] }
 0xa4e   :  { %6509 = vmatprep.subr.bf16.mxu1 %v11767_v14  ;;  %v11809_v14 = vcombine.high %v21985_v1, %v21984_v26 }
 0xa4f   :  { %11752 = vmatmul.mubr.msk.bf16.vlgmr.msra.gmra.mxu0 %vm21953_vm4, %v21952_v37  ;;  %v11765_v37 = vcombine.high %v21973_v3, %v21972_v45 }
 0xa50   :  { %6143 = vmatprep.mubr.bf16.mxu0 %v21808_v2  ;;  %6555 = vmatpush1.bf16.msra.mxu0 %v11784_v47  ;;  %v21969_v47 = vld [vmem:[#allocation134_spill] sm:$0xff] }
 0xa51   :  { %6556 = vmatprep.subr.bf16.mxu0 %v11781_v28  ;;  %v11769_v17 = vcombine.high %v21969_v47, %v21968_v9  ;;  %v11768_v55 = vcombine.low %v21969_v47, %v21968_v9  ;;  %v11763_v28 = vcombine.high %v21971_v62, %v21970_v58  ;;  %6510 = vmatpush1.bf16.msra.mxu1 %v11766_v46  ;;  %v21987_v46 = vld [vmem:[#allocation169_spill] sm:$0xff]  ;;  %v21988_v58 = vld [vmem:[#allocation172_spill] sm:$0xff]  ;;  %v21989_v62 = vld [vmem:[#allocation170_spill] sm:$0xff] }
 0xa52   :  { %v11808_v47 = vcombine.low %v21985_v1, %v21984_v26 }
 0xa53   :  { %6511 = vmatprep.subr.bf16.mxu1 %v11763_v28  ;;  %v11805_v28 = vcombine.high %v21989_v62, %v21988_v58 }
 0xa54   :  { %6557 = vmatpush1.bf16.msra.mxu0 %v11780_v6  ;;  %v11764_v6 = vcombine.low %v21973_v3, %v21972_v45  ;;  %v11804_v3 = vcombine.low %v21989_v62, %v21988_v58 }
 0xa55   :  { %6558 = vmatprep.subr.bf16.mxu0 %v11777_v32  ;;  %v11761_v32 = vcombine.high %v21977_v18, %v21976_v13  ;;  %6512 = vmatpush1.bf16.msra.mxu1 %v11762_v11  ;;  %v21991_v11 = vld [vmem:[#allocation165_spill] sm:$0xff] }
 0xa56   :  { %6513 = vmatprep.subr.bf16.mxu1 %v11759_v7  ;;  %v11801_v7 = vcombine.high %v21993_v35, %v21992_v41 }
 0xa57   :  { %11753 = vmatmul.mubr.msk.bf16.gmra.mxu0 %vm21965_vm15, %v21964_v56  ;;  %v21982_v56 = vld [vmem:[#allocation175_spill] sm:$0xff] }
 0xa58   :  { %6559 = vmatpush1.bf16.msra.mxu0 %v11776_v38  ;;  %v11760_v38 = vcombine.low %v21977_v18, %v21976_v13  ;;  %v11806_v9 = vcombine.low %v21983_v57, %v21982_v56  ;;  %v11800_v18 = vcombine.low %v21993_v35, %v21992_v41 }
 0xa59   :  { %6560 = vmatprep.subr.bf16.mxu0 %v11773_v19  ;;  %v11757_v19 = vcombine.high %v21981_v8, %v21980_v25  ;;  %6514 = vmatpush1.bf16.msra.mxu1 %v11758_v48  ;;  %v21995_v48 = vld [vmem:[#allocation161_spill] sm:$0xff]  ;;  %v11796_v8 = vcombine.low %v21997_v15, %v21996_v44 }
 0xa5a   :  { %6515 = vmatprep.subr.bf16.mxu1 %v11755_v29  ;;  %v11797_v29 = vcombine.high %v21997_v15, %v21996_v44 }
 0xa5c   :  { %6561 = vmatpush1.bf16.msra.mxu0 %v11772_v4  ;;  %v11807_v4 = vcombine.high %v21983_v57, %v21982_v56  ;;  %v22000_v56 = vld [vmem:[#allocation160_spill] sm:$0xff]  ;;  %v22001_v57 = vld [vmem:[#allocation158_spill] sm:$0xff] }
 0xa5d   :  { %6562 = vmatprep.subr.bf16.mxu0 %v11769_v17  ;;  %6516 = vmatpush1.bf16.msra.mxu1 %v11754_v34  ;;  %v21986_v17 = vld [vmem:[#allocation171_spill] sm:$0xff]  ;;  %v21999_v34 = vld [vmem:[#allocation157_spill] sm:$0xff]  ;;  %v11792_v1 = vcombine.low %v22001_v57, %v22000_v56 }
 0xa5e   :  { %6521 = vmatprep.subr.bf16.mxu1 %v11807_v4  ;;  %v11802_v45 = vcombine.low %v21987_v46, %v21986_v17  ;;  %v11793_v4 = vcombine.high %v22001_v57, %v22000_v56 }
 0xa60   :  { %6563 = vmatpush1.bf16.msra.mxu0 %v11768_v55  ;;  %v11803_v55 = vcombine.high %v21987_v46, %v21986_v17  ;;  %v22004_v17 = vld [vmem:[#allocation156_spill] sm:$0xff]  ;;  %v22005_v46 = vld [vmem:[#allocation154_spill] sm:$0xff] }
 0xa61   :  { %6564 = vmatprep.subr.bf16.mxu0 %v11765_v37  ;;  %6522 = vmatpush2.bf16.msra.mxu1 %v11806_v9  ;;  %v21990_v37 = vld [vmem:[#allocation167_spill] sm:$0xff]  ;;  %v22003_v9 = vld [vmem:[#allocation153_spill] sm:$0xff]  ;;  %v11788_v62 = vcombine.low %v22005_v46, %v22004_v17 }
 0xa62   :  { %6523 = vmatprep.subr.bf16.mxu1 %v11803_v55  ;;  %v11798_v13 = vcombine.low %v21991_v11, %v21990_v37  ;;  %v11789_v55 = vcombine.high %v22005_v46, %v22004_v17 }
 0xa64   :  { %6565 = vmatpush1.bf16.msra.mxu0 %v11764_v6  ;;  %v11799_v6 = vcombine.high %v21991_v11, %v21990_v37 }
 0xa65   :  { %6566 = vmatprep.subr.bf16.mxu0 %v11761_v32  ;;  %6524 = vmatpush2.bf16.msra.mxu1 %v11802_v45  ;;  %v21994_v32 = vld [vmem:[#allocation163_spill] sm:$0xff]  ;;  %v22008_v45 = vld [vmem:[#allocation205_spill] sm:$0xff] }
 0xa66   :  { %6525 = vmatprep.subr.bf16.mxu1 %v11799_v6  ;;  %v11794_v25 = vcombine.low %v21995_v48, %v21994_v32 }
 0xa68   :  { %6567 = vmatpush1.bf16.msra.mxu0 %v11760_v38  ;;  %v11795_v38 = vcombine.high %v21995_v48, %v21994_v32 }
 0xa69   :  { %6568 = vmatprep.subr.bf16.mxu0 %v11757_v19  ;;  %6526 = vmatpush2.bf16.msra.mxu1 %v11798_v13  ;;  %v21998_v19 = vld [vmem:[#allocation159_spill] sm:$0xff] }
 0xa6a   :  { %6527 = vmatprep.subr.bf16.mxu1 %v11795_v38  ;;  %v11790_v26 = vcombine.low %v21999_v34, %v21998_v19 }
 0xa6c   :  { %6569 = vmatpush1.bf16.msra.mxu0 %v11756_v39  ;;  %v11791_v39 = vcombine.high %v21999_v34, %v21998_v19 }
 0xa6d   :  { %6574 = vmatprep.subr.bf16.mxu0 %v11809_v14  ;;  %6528 = vmatpush2.bf16.msra.mxu1 %v11794_v25  ;;  %v22002_v14 = vld [vmem:[#allocation155_spill] sm:$0xff] }
 0xa6e   :  { %6529 = vmatprep.subr.bf16.mxu1 %v11791_v39  ;;  %v11786_v58 = vcombine.low %v22003_v9, %v22002_v14 }
 0xa70   :  { %6575 = vmatpush2.bf16.msra.mxu0 %v11808_v47  ;;  %v11787_v47 = vcombine.high %v22003_v9, %v22002_v14 }
 0xa71   :  { %6576 = vmatprep.subr.bf16.mxu0 %v11805_v28  ;;  %6530 = vmatpush2.bf16.msra.mxu1 %v11790_v26  ;;  %v22007_v28 = vld [vmem:[#allocation207_spill] sm:$0xff] }
 0xa72   :  { %6531 = vmatprep.subr.bf16.mxu1 %v11787_v47 }
 0xa74   :  { %6577 = vmatpush2.bf16.msra.mxu0 %v11804_v3  ;;  %v11846_v3 = vcombine.high %v22008_v45, %v22007_v28 }
 0xa75   :  { %6578 = vmatprep.subr.bf16.mxu0 %v11801_v7  ;;  %6532 = vmatpush2.bf16.msra.mxu1 %v11786_v58 }
 0xa76   :  { %11814 = vmatprep.subr.msk.bf16.mxu1 %vm22006_vm11, %v17441_v24 }
 0xa78   :  { %6579 = vmatpush2.bf16.msra.mxu0 %v11800_v18 }
 0xa79   :  { %6580 = vmatprep.subr.bf16.mxu0 %v11797_v29 }
 0xa7c   :  { %6581 = vmatpush2.bf16.msra.mxu0 %v11796_v8 }
 0xa7d   :  { %6582 = vmatprep.subr.bf16.mxu0 %v11793_v4 }
 0xa80   :  { %6583 = vmatpush2.bf16.msra.mxu0 %v11792_v1 }
 0xa81   :  { %6584 = vmatprep.subr.bf16.mxu0 %v11789_v55 }
 0xa84   :  { %6585 = vmatpush2.bf16.msra.mxu0 %v11788_v62 }
 0xa85   :  { %7029 = vmatprep.subr.bf16.mxu0 %v11846_v3 }
 0xac7   :  { %v5631_v37 = vpop.f32.mrf.mxu0  ;;  %v5684_v11 = vpop.f32.mrf.mxu1 }
 0xac9   :  { %v5633_v6 = vpop.f32.mrf.mxu0  ;;  %v5686_v41 = vpop.f32.mrf.mxu1 }
 0xacb   :  { %v5635_v35 = vpop.f32.mrf.mxu0  ;;  %v5688_v7 = vpop.f32.mrf.mxu1 }
 0xacd   :  { %v5637_v13 = vpop.f32.mrf.mxu0  ;;  %v5690_v18 = vpop.f32.mrf.mxu1 }
 0xacf   :  { %v5641_v32 = vpop.f32.mrf.mxu0  ;;  %v5694_v48 = vpop.f32.mrf.mxu1 }
 0xad1   :  { %v5643_v38 = vpop.f32.mrf.mxu0  ;;  %v5696_v44 = vpop.f32.mrf.mxu1 }
 0xad3   :  { %v5645_v15 = vpop.f32.mrf.mxu0  ;;  %v5698_v29 = vpop.f32.mrf.mxu1 }
 0xad5   :  { %v5647_v25 = vpop.f32.mrf.mxu0  ;;  %v17850_v8 = vpop.f32.mrf.mxu1 }
 0xaff   :  { %v6023_v19 = vpop.f32.mrf.mxu0  ;;  %v6076_v34 = vpop.f32.mrf.mxu1 }
 0xb00   :  { %v17852_v39 = vadd.f32 %v6023_v19, %v5631_v37  ;;  %v17854_v56 = vadd.f32 %v6076_v34, %v5684_v11 }
 0xb01   :  { %v6025_v57 = vpop.f32.mrf.mxu0  ;;  %v6078_v4 = vpop.f32.mrf.mxu1 }
 0xb02   :  { %v17856_v26 = vadd.f32 %v6025_v57, %v5633_v6  ;;  %v17858_v1 = vadd.f32 %v6078_v4, %v5686_v41 }
 0xb03   :  { %v6027_v14 = vpop.f32.mrf.mxu0  ;;  %v6080_v9 = vpop.f32.mrf.mxu1 }
 0xb04   :  { %v17860_v47 = vadd.f32 %v6027_v14, %v5635_v35  ;;  %v17862_v17 = vadd.f32 %v6080_v9, %v5688_v7 }
 0xb05   :  { %v6029_v46 = vpop.f32.mrf.mxu0  ;;  %v6082_v55 = vpop.f32.mrf.mxu1 }
 0xb06   :  { %v17864_v58 = vadd.f32 %v6029_v46, %v5637_v13  ;;  %v17866_v62 = vadd.f32 %v6082_v55, %v5690_v18 }
 0xb07   :  { %v6033_v3 = vpop.f32.mrf.mxu0  ;;  %v6086_v37 = vpop.f32.mrf.mxu1 }
 0xb08   :  { %v17868_v11 = vadd.f32 %v6033_v3, %v5641_v32  ;;  %v17870_v6 = vadd.f32 %v6086_v37, %v5694_v48  ;;  %v22009_v37 = vld [vmem:[#allocation203_spill] sm:$0xff] }
 0xb09   :  { %v6035_v41 = vpop.f32.mrf.mxu0  ;;  %v6088_v19 = vpop.f32.mrf.mxu1 }
 0xb0a   :  { %v17872_v34 = vadd.f32 %v6035_v41, %v5643_v38  ;;  %v17874_v35 = vadd.f32 %v6088_v19, %v5696_v44  ;;  %v11845_v38 = vcombine.low %v22008_v45, %v22007_v28  ;;  %v22010_v41 = vld [vmem:[#allocation201_spill] sm:$0xff]  ;;  %v22011_v28 = vld [vmem:[#allocation208_spill] sm:$0xff]  ;;  %v22012_v45 = vld [vmem:[#allocation206_spill] sm:$0xff] }
 0xb0b   :  { %v6037_v7 = vpop.f32.mrf.mxu0  ;;  %v6090_v57 = vpop.f32.mrf.mxu1  ;;  %v11842_v19 = vcombine.high %v22010_v41, %v22009_v37 }
 0xb0c   :  { %v17876_v4 = vadd.f32 %v6037_v7, %v5645_v15  ;;  %v17878_v13 = vadd.f32 %v6090_v57, %v5698_v29  ;;  %v11841_v29 = vcombine.low %v22010_v41, %v22009_v37  ;;  %v11848_v7 = vcombine.high %v22012_v45, %v22011_v28  ;;  %v22013_v57 = vld [vmem:[#allocation199_spill] sm:$0xff] }
 0xb0d   :  { %v6039_v18 = vpop.f32.mrf.mxu0 }
 0xb0e   :  { %v17880_v14 = vadd.f32 %v6039_v18, %v5647_v25  ;;  %v22014_v18 = vld [vmem:[#allocation197_spill] sm:$0xff] }
 0xb0f   :  { %v6135_v9 = vpop.f32.mrf.mxu0 }
 0xb11   :  { %v6137_v32 = vpop.f32.mrf.mxu0 }
 0xb13   :  { %v6139_v46 = vpop.f32.mrf.mxu0 }
 0xb14   :  { %v6154_v3 = vpack.c.bf16 %v6139_v46, %v6135_v9  ;;  %v11838_v9 = vcombine.high %v22014_v18, %v22013_v57 }
 0xb15   :  { %v6141_v48 = vpop.f32.mrf.mxu0 }
 0xb16   :  { %v6155_v55 = vpack.c.bf16 %v6141_v48, %v6137_v32  ;;  %v11837_v48 = vcombine.low %v22014_v18, %v22013_v57 }
 0xb17   :  { %v6145_v44 = vpop.f32.mrf.mxu0 }
 0xb18   :  { %11810 = vmatprep.mubr.msk.bf16.mxu1 %vm20941_vm13, %v6155_v55  ;;  %11812 = vmatprep.mubr.msk.bf16.mxu0 %vm20941_vm13, %v6155_v55 }
 0xb19   :  { %v6147_v15 = vpop.f32.mrf.mxu0  ;;  %6534 = vmatmul.mubr.bf16.vlgmr.msra.gmra.mxu1 %v6154_v3  ;;  %6587 = vmatmul.mubr.bf16.vlgmr.msra.gmra.mxu0 %v6154_v3  ;;  %v22016_v3 = vld [vmem:[#allocation193_spill] sm:$0xff] }
 0xb1a   :  { %6642 = vmatpush1.bf16.msra.mxu1 %v17451_v59  ;;  %7030 = vmatpush1.bf16.msra.mxu0 %v11845_v38  ;;  %v22015_v38 = vld [vmem:[#allocation195_spill] sm:$0xff] }
 0xb1b   :  { %v6149_v25 = vpop.f32.mrf.mxu0  ;;  %6643 = vmatprep.subr.bf16.mxu1 %v17443_v5  ;;  %7031 = vmatprep.subr.bf16.mxu0 %v11842_v19  ;;  %v11834_v37 = vcombine.high %v22016_v3, %v22015_v38  ;;  %v11833_v41 = vcombine.low %v22016_v3, %v22015_v38  ;;  %v22017_v19 = vld [vmem:[#allocation191_spill] sm:$0xff]  ;;  %v22028_v3 = vld [vmem:[#allocation198_spill] sm:$0xff] }
 0xb1c   :  { %v6156_v55 = vpack.c.bf16 %v6149_v25, %v6145_v44  ;;  %v22018_v44 = vld [vmem:[#allocation189_spill] sm:$0xff]  ;;  %v22019_v25 = vld [vmem:[#allocation204_spill] sm:$0xff] }
 0xb1d   :  { %v6151_v32 = vpop.f32.mrf.mxu0  ;;  %v11829_v18 = vcombine.low %v22018_v44, %v22017_v19 }
 0xb1e   :  { %v6157_v46 = vpack.c.bf16 %v6151_v32, %v6147_v15  ;;  %6644 = vmatpush1.bf16.msra.mxu1 %v17456_v61  ;;  %7032 = vmatpush1.bf16.msra.mxu0 %v11841_v29  ;;  %v11830_v15 = vcombine.high %v22018_v44, %v22017_v19  ;;  %v11847_v29 = vcombine.low %v22012_v45, %v22011_v28  ;;  %v22022_v32 = vld [vmem:[#allocation185_spill] sm:$0xff]  ;;  %v22027_v45 = vld [vmem:[#allocation200_spill] sm:$0xff]  ;;  %v22029_v19 = vld [vmem:[#allocation183_spill] sm:$0xff] }
 0xb1f   :  { %7082 = vmatprep.subr.bf16.mxu1 %v11848_v7  ;;  %7033 = vmatprep.subr.bf16.mxu0 %v11838_v9  ;;  %v22020_v7 = vld [vmem:[#allocation202_spill] sm:$0xff]  ;;  %v22021_v9 = vld [vmem:[#allocation187_spill] sm:$0xff]  ;;  %v22030_v44 = vld [vmem:[#allocation181_spill] sm:$0xff] }
 0xb20   :  { %11811 = vmatprep.mubr.msk.bf16.mxu1 %vm20941_vm13, %v6157_v46  ;;  %11813 = vmatprep.mubr.msk.bf16.mxu0 %vm20941_vm13, %v6157_v46  ;;  %v11844_v57 = vcombine.high %v22020_v7, %v22019_v25  ;;  %v11826_v46 = vcombine.high %v22022_v32, %v22021_v9  ;;  %v11843_v28 = vcombine.low %v22020_v7, %v22019_v25 }
 0xb21   :  { %6544 = vmatmul.mubr.bf16.gmra.mxu1 %v6156_v55  ;;  %6597 = vmatmul.mubr.bf16.gmra.mxu0 %v6156_v55  ;;  %v22024_v55 = vld [vmem:[#allocation309_spill] sm:$0xff]  ;;  %v11821_v7 = vcombine.low %v22030_v44, %v22029_v19 }
 0xb22   :  { %6661 = vmatprep.mubr.bf16.mxu1 %v21808_v2  ;;  %7034 = vmatpush1.bf16.msra.mxu0 %v11837_v48  ;;  %v22023_v48 = vld [vmem:[#allocation310_spill] sm:$0xff] }
 0xb23   :  { %7035 = vmatprep.subr.bf16.mxu0 %v11834_v37  ;;  %v22025_v38 = vpack.c.bf16 %v22023_v48, %v22024_v55  ;;  %v11840_v37 = vcombine.high %v22028_v3, %v22027_v45  ;;  %v11839_v48 = vcombine.low %v22028_v3, %v22027_v45  ;;  %v22032_v55 = vld [vmem:[#allocation194_spill] sm:$0xff]  ;;  %v22039_v45 = vld [vmem:[#allocation192_spill] sm:$0xff] }
 0xb24   :  { %v22040_v3 = vld [vmem:[#allocation190_spill] sm:$0xff] }
 0xb26   :  { %7036 = vmatpush1.bf16.msra.mxu0 %v11833_v41  ;;  %v11825_v41 = vcombine.low %v22022_v32, %v22021_v9  ;;  %v22035_v32 = vld [vmem:[#allocation312_spill] sm:$0xff] }
 0xb27   :  { %7037 = vmatprep.subr.bf16.mxu0 %v11830_v15  ;;  %v11822_v15 = vcombine.high %v22030_v44, %v22029_v19  ;;  %v11831_v19 = vcombine.low %v22040_v3, %v22039_v45  ;;  %v22041_v44 = vld [vmem:[#allocation188_spill] sm:$0xff] }
 0xb29   :  { %11815 = vmatmul.mubr.msk.bf16.vlgmr.msra.gmra.mxu1 %vm22026_vm0, %v22025_v38 }
 0xb2a   :  { %6671 = vmatprep.mubr.bf16.mxu1 %v21808_v2  ;;  %7083 = vmatpush1.bf16.msra.mxu1 %v11847_v29  ;;  %v22031_v29 = vld [vmem:[#allocation196_spill] sm:$0xff] }
 0xb2b   :  { %7084 = vmatprep.subr.bf16.mxu1 %v11844_v57  ;;  %7038 = vmatpush1.bf16.msra.mxu0 %v11829_v18  ;;  %v11836_v25 = vcombine.high %v22032_v55, %v22031_v29  ;;  %v22033_v57 = vld [vmem:[#allocation179_spill] sm:$0xff]  ;;  %v22034_v18 = vld [vmem:[#allocation177_spill] sm:$0xff] }
 0xb2c   :  { %7039 = vmatprep.subr.bf16.mxu0 %v11826_v46  ;;  %v11818_v9 = vcombine.high %v22034_v18, %v22033_v57  ;;  %v22036_v46 = vld [vmem:[#allocation311_spill] sm:$0xff] }
 0xb2d   :  { %v22037_v38 = vpack.c.bf16 %v22035_v32, %v22036_v46 }
 0xb2e   :  { %7085 = vmatpush1.bf16.msra.mxu1 %v11843_v28  ;;  %v11835_v28 = vcombine.low %v22032_v55, %v22031_v29  ;;  %v22043_v55 = vld [vmem:[#allocation184_spill] sm:$0xff] }
 0xb2f   :  { %7086 = vmatprep.subr.bf16.mxu1 %v11840_v37  ;;  %7040 = vmatpush1.bf16.msra.mxu0 %v11825_v41  ;;  %v11832_v37 = vcombine.high %v22040_v3, %v22039_v45  ;;  %v11817_v41 = vcombine.low %v22034_v18, %v22033_v57  ;;  %v22045_v18 = vld [vmem:[#allocation180_spill] sm:$0xff] }
 0xb30   :  { %7041 = vmatprep.subr.bf16.mxu0 %v11822_v15  ;;  %v22042_v15 = vld [vmem:[#allocation186_spill] sm:$0xff]  ;;  %v22049_v3 = vld [vmem:[#allocation232_spill] sm:$0xff] }
 0xb31   :  { %11816 = vmatmul.mubr.msk.bf16.gmra.mxu1 %vm22038_vm9, %v22037_v38  ;;  %v11827_v29 = vcombine.low %v22042_v15, %v22041_v44  ;;  %v22047_v38 = vld [vmem:[#allocation231_spill] sm:$0xff] }
 0xb32   :  { %7087 = vmatpush1.bf16.msra.mxu1 %v11839_v48  ;;  %v11828_v48 = vcombine.high %v22042_v15, %v22041_v44  ;;  %v22051_v15 = vld [vmem:[#allocation227_spill] sm:$0xff] }
 0xb33   :  { %7088 = vmatprep.subr.bf16.mxu1 %v11836_v25  ;;  %7042 = vmatpush1.bf16.msra.mxu0 %v11821_v7  ;;  %v22044_v25 = vld [vmem:[#allocation182_spill] sm:$0xff] }
 0xb34   :  { %7043 = vmatprep.subr.bf16.mxu0 %v11818_v9  ;;  %v11824_v7 = vcombine.high %v22044_v25, %v22043_v55  ;;  %v11823_v57 = vcombine.low %v22044_v25, %v22043_v55  ;;  %v22046_v9 = vld [vmem:[#allocation178_spill] sm:$0xff]  ;;  %v22053_v55 = vld [vmem:[#allocation228_spill] sm:$0xff] }
 0xb35   :  { %v11820_v32 = vcombine.high %v22046_v9, %v22045_v18  ;;  %v11819_v46 = vcombine.low %v22046_v9, %v22045_v18  ;;  %v22054_v25 = vld [vmem:[#allocation226_spill] sm:$0xff]  ;;  %v22055_v9 = vld [vmem:[#allocation223_spill] sm:$0xff] }
 0xb36   :  { %7089 = vmatpush1.bf16.msra.mxu1 %v11835_v28  ;;  %v22048_v28 = vld [vmem:[#allocation229_spill] sm:$0xff]  ;;  %v11867_v18 = vcombine.low %v22054_v25, %v22053_v55 }
 0xb37   :  { %7090 = vmatprep.subr.bf16.mxu1 %v11832_v37  ;;  %7044 = vmatpush1.bf16.msra.mxu0 %v11817_v41  ;;  %v11870_v45 = vcombine.high %v22048_v28, %v22047_v38  ;;  %v22050_v37 = vld [vmem:[#allocation230_spill] sm:$0xff] }
 0xb38   :  { %v11872_v41 = vcombine.high %v22050_v37, %v22049_v3  ;;  %v11871_v44 = vcombine.low %v22050_v37, %v22049_v3 }
 0xb39   :  { %7049 = vmatprep.subr.bf16.mxu0 %v11870_v45 }
 0xb3a   :  { %7091 = vmatpush1.bf16.msra.mxu1 %v11831_v19  ;;  %v11869_v19 = vcombine.low %v22048_v28, %v22047_v38  ;;  %v22057_v38 = vld [vmem:[#allocation224_spill] sm:$0xff]  ;;  %v22058_v28 = vld [vmem:[#allocation222_spill] sm:$0xff] }
 0xb3b   :  { %7092 = vmatprep.subr.bf16.mxu1 %v11828_v48  ;;  %v22052_v48 = vld [vmem:[#allocation225_spill] sm:$0xff]  ;;  %v11864_v45 = vcombine.high %v22058_v28, %v22057_v38  ;;  %v11863_v37 = vcombine.low %v22058_v28, %v22057_v38 }
 0xb3c   :  { %7050 = vmatpush2.bf16.msra.mxu0 %v11869_v19  ;;  %v22060_v19 = vld [vmem:[#allocation217_spill] sm:$0xff] }
 0xb3e   :  { %7093 = vmatpush1.bf16.msra.mxu1 %v11827_v29  ;;  %v11866_v29 = vcombine.high %v22052_v48, %v22051_v15 }
 0xb3f   :  { %7094 = vmatprep.subr.bf16.mxu1 %v11824_v7  ;;  %v11868_v7 = vcombine.high %v22054_v25, %v22053_v55 }
 0xb40   :  { %7051 = vmatprep.subr.bf16.mxu0 %v11866_v29 }
 0xb42   :  { %7095 = vmatpush1.bf16.msra.mxu1 %v11823_v57  ;;  %v11865_v57 = vcombine.low %v22052_v48, %v22051_v15  ;;  %v22061_v15 = vld [vmem:[#allocation220_spill] sm:$0xff]  ;;  %v22062_v48 = vld [vmem:[#allocation218_spill] sm:$0xff] }
 0xb43   :  { %7096 = vmatprep.subr.bf16.mxu1 %v11820_v32  ;;  %v22056_v32 = vld [vmem:[#allocation221_spill] sm:$0xff]  ;;  %v11860_v29 = vcombine.high %v22062_v48, %v22061_v15  ;;  %v11859_v25 = vcombine.low %v22062_v48, %v22061_v15 }
 0xb44   :  { %7052 = vmatpush2.bf16.msra.mxu0 %v11865_v57  ;;  %v11861_v3 = vcombine.low %v22056_v32, %v22055_v9  ;;  %v22064_v57 = vld [vmem:[#allocation213_spill] sm:$0xff] }
 0xb46   :  { %7097 = vmatpush1.bf16.msra.mxu1 %v11819_v46  ;;  %v11862_v46 = vcombine.high %v22056_v32, %v22055_v9  ;;  %v22065_v9 = vld [vmem:[#allocation216_spill] sm:$0xff]  ;;  %v22066_v32 = vld [vmem:[#allocation214_spill] sm:$0xff] }
 0xb47   :  { %7102 = vmatprep.subr.bf16.mxu1 %v11872_v41  ;;  %v22059_v41 = vld [vmem:[#allocation219_spill] sm:$0xff]  ;;  %v11855_v28 = vcombine.low %v22066_v32, %v22065_v9 }
 0xb48   :  { %7053 = vmatprep.subr.bf16.mxu0 %v11862_v46  ;;  %v11857_v55 = vcombine.low %v22060_v19, %v22059_v41  ;;  %v11856_v46 = vcombine.high %v22066_v32, %v22065_v9 }
 0xb49   :  { %7054 = vmatpush2.bf16.msra.mxu0 %v11861_v3  ;;  %v22068_v3 = vld [vmem:[#allocation209_spill] sm:$0xff] }
 0xb4a   :  { %7103 = vmatpush2.bf16.msra.mxu1 %v11871_v44  ;;  %v11858_v44 = vcombine.high %v22060_v19, %v22059_v41  ;;  %v22069_v41 = vld [vmem:[#allocation212_spill] sm:$0xff]  ;;  %v22070_v19 = vld [vmem:[#allocation210_spill] sm:$0xff] }
 0xb4b   :  { %7104 = vmatprep.subr.bf16.mxu1 %v11868_v7  ;;  %v22063_v7 = vld [vmem:[#allocation215_spill] sm:$0xff]  ;;  %v11851_v48 = vcombine.low %v22070_v19, %v22069_v41 }
 0xb4c   :  { %7055 = vmatprep.subr.bf16.mxu0 %v11858_v44  ;;  %v11853_v38 = vcombine.low %v22064_v57, %v22063_v7  ;;  %v11852_v44 = vcombine.high %v22070_v19, %v22069_v41 }
 0xb4d   :  { %7056 = vmatpush2.bf16.msra.mxu0 %v11857_v55  ;;  %v22073_v55 = vld [vmem:[#allocation261_spill] sm:$0xff] }
 0xb4e   :  { %7105 = vmatpush2.bf16.msra.mxu1 %v11867_v18  ;;  %v11854_v18 = vcombine.high %v22064_v57, %v22063_v7  ;;  %v18013_v7 = vpop.f32.mrf.mxu1 }
 0xb4f   :  { %7106 = vmatprep.subr.bf16.mxu1 %v11864_v45  ;;  %v22067_v45 = vld [vmem:[#allocation211_spill] sm:$0xff] }
 0xb50   :  { %7057 = vmatprep.subr.bf16.mxu0 %v11854_v18  ;;  %v11849_v15 = vcombine.low %v22068_v3, %v22067_v45 }
 0xb51   :  { %7058 = vmatpush2.bf16.msra.mxu0 %v11853_v38 }
 0xb52   :  { %7107 = vmatpush2.bf16.msra.mxu1 %v11863_v37  ;;  %v11850_v37 = vcombine.high %v22068_v3, %v22067_v45 }
 0xb53   :  { %7108 = vmatprep.subr.bf16.mxu1 %v11860_v29  ;;  %v22072_v29 = vld [vmem:[#allocation263_spill] sm:$0xff] }
 0xb54   :  { %7059 = vmatprep.subr.bf16.mxu0 %v11850_v37 }
 0xb55   :  { %7060 = vmatpush2.bf16.msra.mxu0 %v11849_v15 }
 0xb56   :  { %7109 = vmatpush2.bf16.msra.mxu1 %v11859_v25  ;;  %11877 = vmatprep.subr.msk.bf16.mxu0 %vm22071_vm7, %v17441_v24  ;;  %v11909_v25 = vcombine.high %v22073_v55, %v22072_v29 }
 0xb57   :  { %7110 = vmatprep.subr.bf16.mxu1 %v11856_v46 }
 0xb5a   :  { %7111 = vmatpush2.bf16.msra.mxu1 %v11855_v28 }
 0xb5b   :  { %7112 = vmatprep.subr.bf16.mxu1 %v11852_v44 }
 0xb5e   :  { %7113 = vmatpush2.bf16.msra.mxu1 %v11851_v48 }
 0xb5f   :  { %7557 = vmatprep.subr.bf16.mxu1 %v11909_v25 }
 0xbd9   :  { %v6535_v57 = vpop.f32.mrf.mxu1  ;;  %v6588_v18 = vpop.f32.mrf.mxu0 }
 0xbda   :  { %v18016_v9 = vadd.f32 %v6535_v57, %v17852_v39  ;;  %v18019_v32 = vadd.f32 %v6588_v18, %v17854_v56 }
 0xbdb   :  { %v6537_v46 = vpop.f32.mrf.mxu1  ;;  %v6590_v38 = vpop.f32.mrf.mxu0 }
 0xbdc   :  { %v18022_v28 = vadd.f32 %v6537_v46, %v17856_v26  ;;  %v18025_v24 = vadd.f32 %v6590_v38, %v17858_v1 }
 0xbdd   :  { %v6539_v45 = vpop.f32.mrf.mxu1  ;;  %v6592_v3 = vpop.f32.mrf.mxu0 }
 0xbde   :  { %v18028_v37 = vadd.f32 %v6539_v45, %v17860_v47  ;;  %v18031_v41 = vadd.f32 %v6592_v3, %v17862_v17 }
 0xbdf   :  { %v6541_v39 = vpop.f32.mrf.mxu1  ;;  %v6594_v19 = vpop.f32.mrf.mxu0 }
 0xbe0   :  { %v18034_v56 = vadd.f32 %v6541_v39, %v17864_v58  ;;  %v18037_v44 = vadd.f32 %v6594_v19, %v17866_v62 }
 0xbe1   :  { %v6545_v26 = vpop.f32.mrf.mxu1  ;;  %v6598_v15 = vpop.f32.mrf.mxu0 }
 0xbe2   :  { %v18040_v1 = vadd.f32 %v6545_v26, %v17868_v11  ;;  %v18043_v48 = vadd.f32 %v6598_v15, %v17870_v6  ;;  %v22074_v15 = vld [vmem:[#allocation259_spill] sm:$0xff] }
 0xbe3   :  { %v6547_v47 = vpop.f32.mrf.mxu1  ;;  %v6600_v25 = vpop.f32.mrf.mxu0 }
 0xbe4   :  { %v18046_v17 = vadd.f32 %v6547_v47, %v17872_v34  ;;  %v18049_v57 = vadd.f32 %v6600_v25, %v17874_v35  ;;  %v11908_v35 = vcombine.low %v22073_v55, %v22072_v29  ;;  %v22076_v29 = vld [vmem:[#allocation264_spill] sm:$0xff]  ;;  %v22077_v55 = vld [vmem:[#allocation262_spill] sm:$0xff] }
 0xbe5   :  { %v6549_v58 = vpop.f32.mrf.mxu1  ;;  %v6602_v18 = vpop.f32.mrf.mxu0 }
 0xbe6   :  { %v18052_v62 = vadd.f32 %v6549_v58, %v17876_v4  ;;  %v18055_v46 = vadd.f32 %v6602_v18, %v17878_v13  ;;  %v22075_v4 = vld [vmem:[#allocation257_spill] sm:$0xff]  ;;  %v11911_v58 = vcombine.high %v22077_v55, %v22076_v29  ;;  %v22078_v18 = vld [vmem:[#allocation255_spill] sm:$0xff] }
 0xbe7   :  { %v6551_v11 = vpop.f32.mrf.mxu1  ;;  %v11905_v47 = vcombine.high %v22075_v4, %v22074_v15 }
 0xbe8   :  { %v18058_v6 = vadd.f32 %v6551_v11, %v17880_v14  ;;  %v11904_v14 = vcombine.low %v22075_v4, %v22074_v15  ;;  %v22079_v11 = vld [vmem:[#allocation253_spill] sm:$0xff]  ;;  %v11910_v4 = vcombine.low %v22077_v55, %v22076_v29  ;;  %v22092_v55 = vld [vmem:[#allocation256_spill] sm:$0xff] }
 0xbe9   :  { %v6663_v38 = vpop.f32.mrf.mxu1 }
 0xbeb   :  { %v6665_v45 = vpop.f32.mrf.mxu1 }
 0xbed   :  { %v6667_v3 = vpop.f32.mrf.mxu1 }
 0xbee   :  { %v6682_v19 = vpack.c.bf16 %v6667_v3, %v6663_v38  ;;  %v11901_v38 = vcombine.high %v22079_v11, %v22078_v18 }
 0xbef   :  { %v6669_v34 = vpop.f32.mrf.mxu1 }
 0xbf0   :  { %v6683_v39 = vpack.c.bf16 %v6669_v34, %v6665_v45 }
 0xbf1   :  { %v6673_v26 = vpop.f32.mrf.mxu1 }
 0xbf2   :  { %11873 = vmatprep.mubr.msk.bf16.mxu0 %vm20941_vm13, %v6683_v39  ;;  %11875 = vmatprep.mubr.msk.bf16.mxu1 %vm20941_vm13, %v6683_v39  ;;  %v22080_v39 = vld [vmem:[#allocation251_spill] sm:$0xff] }
 0xbf3   :  { %v6675_v13 = vpop.f32.mrf.mxu1  ;;  %7062 = vmatmul.mubr.bf16.vlgmr.msra.gmra.mxu0 %v6682_v19  ;;  %7115 = vmatmul.mubr.bf16.vlgmr.msra.gmra.mxu1 %v6682_v19  ;;  %v22082_v19 = vld [vmem:[#allocation247_spill] sm:$0xff] }
 0xbf4   :  { %7170 = vmatpush1.bf16.msra.mxu0 %v17451_v59  ;;  %7558 = vmatpush1.bf16.msra.mxu1 %v11908_v35  ;;  %v11900_v59 = vcombine.low %v22079_v11, %v22078_v18  ;;  %v22087_v18 = vld [vmem:[#allocation241_spill] sm:$0xff] }
 0xbf5   :  { %v6677_v25 = vpop.f32.mrf.mxu1  ;;  %7171 = vmatprep.subr.bf16.mxu0 %v17443_v5  ;;  %7559 = vmatprep.subr.bf16.mxu1 %v11905_v47  ;;  %v22081_v5 = vld [vmem:[#allocation249_spill] sm:$0xff]  ;;  %v22084_v47 = vld [vmem:[#allocation260_spill] sm:$0xff] }
 0xbf6   :  { %v6684_v34 = vpack.c.bf16 %v6677_v25, %v6673_v26  ;;  %v11897_v35 = vcombine.high %v22081_v5, %v22080_v39  ;;  %v22083_v26 = vld [vmem:[#allocation245_spill] sm:$0xff] }
 0xbf7   :  { %v6679_v45 = vpop.f32.mrf.mxu1  ;;  %v11893_v15 = vcombine.high %v22083_v26, %v22082_v19  ;;  %v11892_v25 = vcombine.low %v22083_v26, %v22082_v19  ;;  %v22096_v26 = vld [vmem:[#allocation252_spill] sm:$0xff] }
 0xbf8   :  { %v6685_v3 = vpack.c.bf16 %v6679_v45, %v6675_v13  ;;  %7172 = vmatpush1.bf16.msra.mxu0 %v17456_v61  ;;  %7560 = vmatpush1.bf16.msra.mxu1 %v11904_v14  ;;  %v11896_v61 = vcombine.low %v22081_v5, %v22080_v39  ;;  %v22085_v13 = vld [vmem:[#allocation258_spill] sm:$0xff]  ;;  %v22089_v45 = vld [vmem:[#allocation321_spill] sm:$0xff]  ;;  %v22094_v5 = vld [vmem:[#allocation239_spill] sm:$0xff] }
 0xbf9   :  { %7610 = vmatprep.subr.bf16.mxu0 %v11911_v58  ;;  %7561 = vmatprep.subr.bf16.mxu1 %v11901_v38  ;;  %v11907_v14 = vcombine.high %v22085_v13, %v22084_v47  ;;  %v22086_v58 = vld [vmem:[#allocation243_spill] sm:$0xff]  ;;  %v22088_v38 = vld [vmem:[#allocation322_spill] sm:$0xff]  ;;  %v11906_v29 = vcombine.low %v22085_v13, %v22084_v47 }
 0xbfa   :  { %11874 = vmatprep.mubr.msk.bf16.mxu0 %vm20941_vm13, %v6685_v3  ;;  %11876 = vmatprep.mubr.msk.bf16.mxu1 %vm20941_vm13, %v6685_v3  ;;  %v11889_v11 = vcombine.high %v22087_v18, %v22086_v58  ;;  %v22090_v3 = vpack.c.bf16 %v22088_v38, %v22089_v45  ;;  %v11888_v39 = vcombine.low %v22087_v18, %v22086_v58  ;;  %v22098_v13 = vld [vmem:[#allocation235_spill] sm:$0xff]  ;;  %v22100_v58 = vld [vmem:[#allocation324_spill] sm:$0xff] }
 0xbfb   :  { %7072 = vmatmul.mubr.bf16.gmra.mxu0 %v6684_v34  ;;  %7125 = vmatmul.mubr.bf16.gmra.mxu1 %v6684_v34  ;;  %v22101_v18 = vld [vmem:[#allocation323_spill] sm:$0xff]  ;;  %v22104_v45 = vld [vmem:[#allocation248_spill] sm:$0xff] }
 0xbfc   :  { %7189 = vmatprep.mubr.bf16.mxu0 %v21808_v2  ;;  %7562 = vmatpush1.bf16.msra.mxu1 %v11900_v59  ;;  %v22093_v59 = vld [vmem:[#allocation254_spill] sm:$0xff] }
 0xbfd   :  { %7563 = vmatprep.subr.bf16.mxu1 %v11897_v35  ;;  %v11903_v34 = vcombine.high %v22093_v59, %v22092_v55  ;;  %v22095_v35 = vld [vmem:[#allocation237_spill] sm:$0xff]  ;;  %v11902_v19 = vcombine.low %v22093_v59, %v22092_v55 }
 0xbfe   :  { %v11884_v47 = vcombine.low %v22095_v35, %v22094_v5 }
 0xc00   :  { %7564 = vmatpush1.bf16.msra.mxu1 %v11896_v61  ;;  %v11885_v61 = vcombine.high %v22095_v35, %v22094_v5 }
 0xc01   :  { %7565 = vmatprep.subr.bf16.mxu1 %v11893_v15  ;;  %v22097_v15 = vld [vmem:[#allocation250_spill] sm:$0xff] }
 0xc02   :  { %v11898_v38 = vcombine.low %v22097_v15, %v22096_v26 }
 0xc03   :  { %11878 = vmatmul.mubr.msk.bf16.vlgmr.msra.gmra.mxu0 %vm22091_vm12, %v22090_v3  ;;  %v22105_v3 = vld [vmem:[#allocation246_spill] sm:$0xff] }
 0xc04   :  { %7199 = vmatprep.mubr.bf16.mxu0 %v21808_v2  ;;  %7611 = vmatpush1.bf16.msra.mxu0 %v11910_v4  ;;  %v11899_v4 = vcombine.high %v22097_v15, %v22096_v26  ;;  %v11894_v59 = vcombine.low %v22105_v3, %v22104_v45 }
 0xc05   :  { %7612 = vmatprep.subr.bf16.mxu0 %v11907_v14  ;;  %7566 = vmatpush1.bf16.msra.mxu1 %v11892_v25  ;;  %v22099_v14 = vld [vmem:[#allocation233_spill] sm:$0xff] }
 0xc06   :  { %7567 = vmatprep.subr.bf16.mxu1 %v11889_v11  ;;  %v11881_v25 = vcombine.high %v22099_v14, %v22098_v13  ;;  %v22102_v11 = vpack.c.bf16 %v22100_v58, %v22101_v18  ;;  %v11880_v55 = vcombine.low %v22099_v14, %v22098_v13  ;;  %v22113_v58 = vld [vmem:[#allocation285_spill] sm:$0xff] }
 0xc08   :  { %7613 = vmatpush1.bf16.msra.mxu0 %v11906_v29  ;;  %v11895_v29 = vcombine.high %v22105_v3, %v22104_v45 }
 0xc09   :  { %7614 = vmatprep.subr.bf16.mxu0 %v11903_v34  ;;  %7568 = vmatpush1.bf16.msra.mxu1 %v11888_v39  ;;  %v22106_v34 = vld [vmem:[#allocation244_spill] sm:$0xff]  ;;  %v22107_v39 = vld [vmem:[#allocation242_spill] sm:$0xff] }
 0xc0a   :  { %7569 = vmatprep.subr.bf16.mxu1 %v11885_v61  ;;  %v11891_v5 = vcombine.high %v22107_v39, %v22106_v34  ;;  %v11890_v35 = vcombine.low %v22107_v39, %v22106_v34  ;;  %v22108_v61 = vld [vmem:[#allocation240_spill] sm:$0xff] }
 0xc0b   :  { %11879 = vmatmul.mubr.msk.bf16.gmra.mxu0 %vm22103_vm14, %v22102_v11  ;;  %v22114_v11 = vld [vmem:[#allocation288_spill] sm:$0xff] }
 0xc0c   :  { %7615 = vmatpush1.bf16.msra.mxu0 %v11902_v19  ;;  %v22109_v19 = vld [vmem:[#allocation238_spill] sm:$0xff]  ;;  %v22118_v39 = vld [vmem:[#allocation284_spill] sm:$0xff] }
 0xc0d   :  { %7616 = vmatprep.subr.bf16.mxu0 %v11899_v4  ;;  %7570 = vmatpush1.bf16.msra.mxu1 %v11884_v47  ;;  %v11887_v26 = vcombine.high %v22109_v19, %v22108_v61  ;;  %v11886_v15 = vcombine.low %v22109_v19, %v22108_v61  ;;  %v22110_v4 = vld [vmem:[#allocation236_spill] sm:$0xff]  ;;  %v22111_v47 = vld [vmem:[#allocation234_spill] sm:$0xff] }
 0xc0e   :  { %7571 = vmatprep.subr.bf16.mxu1 %v11881_v25  ;;  %v11883_v13 = vcombine.high %v22111_v47, %v22110_v4  ;;  %v11882_v14 = vcombine.low %v22111_v47, %v22110_v4  ;;  %v22112_v25 = vld [vmem:[#allocation287_spill] sm:$0xff]  ;;  %v22122_v47 = vld [vmem:[#allocation280_spill] sm:$0xff] }
 0xc0f   :  { %v11933_v18 = vcombine.high %v22113_v58, %v22112_v25  ;;  %v11932_v3 = vcombine.low %v22113_v58, %v22112_v25 }
 0xc10   :  { %7617 = vmatpush1.bf16.msra.mxu0 %v11898_v38  ;;  %v22115_v38 = vld [vmem:[#allocation286_spill] sm:$0xff] }
 0xc11   :  { %7618 = vmatprep.subr.bf16.mxu0 %v11895_v29  ;;  %7572 = vmatpush1.bf16.msra.mxu1 %v11880_v55  ;;  %v11935_v45 = vcombine.high %v22115_v38, %v22114_v11  ;;  %v11934_v29 = vcombine.low %v22115_v38, %v22114_v11  ;;  %v22116_v55 = vld [vmem:[#allocation283_spill] sm:$0xff]  ;;  %v22125_v11 = vld [vmem:[#allocation273_spill] sm:$0xff] }
 0xc12   :  { %7577 = vmatprep.subr.bf16.mxu1 %v11933_v18  ;;  %v22124_v18 = vld [vmem:[#allocation275_spill] sm:$0xff] }
 0xc13   :  { %v11921_v38 = vcombine.high %v22125_v11, %v22124_v18 }
 0xc14   :  { %7619 = vmatpush1.bf16.msra.mxu0 %v11894_v59  ;;  %v22117_v59 = vld [vmem:[#allocation281_spill] sm:$0xff] }
 0xc15   :  { %7620 = vmatprep.subr.bf16.mxu0 %v11891_v5  ;;  %7578 = vmatpush2.bf16.msra.mxu1 %v11932_v3  ;;  %v11929_v34 = vcombine.high %v22117_v59, %v22116_v55  ;;  %v22119_v5 = vld [vmem:[#allocation282_spill] sm:$0xff]  ;;  %v11928_v61 = vcombine.low %v22117_v59, %v22116_v55  ;;  %v11920_v55 = vcombine.low %v22125_v11, %v22124_v18 }
 0xc16   :  { %v11930_v19 = vcombine.low %v22119_v5, %v22118_v39  ;;  %v22127_v3 = vld [vmem:[#allocation274_spill] sm:$0xff] }
 0xc17   :  { %7579 = vmatprep.subr.bf16.mxu1 %v11929_v34  ;;  %v22128_v34 = vld [vmem:[#allocation271_spill] sm:$0xff] }
 0xc18   :  { %7621 = vmatpush1.bf16.msra.mxu0 %v11890_v35  ;;  %v11931_v35 = vcombine.high %v22119_v5, %v22118_v39  ;;  %v22129_v39 = vld [vmem:[#allocation269_spill] sm:$0xff] }
 0xc19   :  { %7622 = vmatprep.subr.bf16.mxu0 %v11887_v26  ;;  %7580 = vmatpush2.bf16.msra.mxu1 %v11928_v61  ;;  %v22120_v26 = vld [vmem:[#allocation279_spill] sm:$0xff]  ;;  %v11917_v5 = vcombine.high %v22129_v39, %v22128_v34  ;;  %v22131_v61 = vld [vmem:[#allocation270_spill] sm:$0xff] }
 0xc1c   :  { %7623 = vmatpush1.bf16.msra.mxu0 %v11886_v15  ;;  %v22121_v15 = vld [vmem:[#allocation277_spill] sm:$0xff] }
 0xc1d   :  { %7624 = vmatprep.subr.bf16.mxu0 %v11883_v13  ;;  %v11925_v4 = vcombine.high %v22121_v15, %v22120_v26  ;;  %v22123_v13 = vld [vmem:[#allocation278_spill] sm:$0xff]  ;;  %v11924_v25 = vcombine.low %v22121_v15, %v22120_v26  ;;  %v11916_v26 = vcombine.low %v22129_v39, %v22128_v34 }
 0xc1e   :  { %v11926_v58 = vcombine.low %v22123_v13, %v22122_v47 }
 0xc1f   :  { %7581 = vmatprep.subr.bf16.mxu1 %v11925_v4  ;;  %v22132_v4 = vld [vmem:[#allocation267_spill] sm:$0xff] }
 0xc20   :  { %7625 = vmatpush1.bf16.msra.mxu0 %v11882_v14  ;;  %v11927_v14 = vcombine.high %v22123_v13, %v22122_v47  ;;  %7582 = vmatpush2.bf16.msra.mxu1 %v11924_v25  ;;  %v22133_v47 = vld [vmem:[#allocation265_spill] sm:$0xff]  ;;  %v22135_v25 = vld [vmem:[#allocation266_spill] sm:$0xff] }
 0xc21   :  { %7630 = vmatprep.subr.bf16.mxu0 %v11935_v45  ;;  %v22126_v45 = vld [vmem:[#allocation276_spill] sm:$0xff]  ;;  %7583 = vmatprep.subr.bf16.mxu1 %v11921_v38  ;;  %v11913_v13 = vcombine.high %v22133_v47, %v22132_v4  ;;  %v11912_v18 = vcombine.low %v22133_v47, %v22132_v4  ;;  %v18188_v38 = vpop.f32.mrf.mxu0 }
 0xc22   :  { %v11922_v59 = vcombine.low %v22127_v3, %v22126_v45 }
 0xc24   :  { %7631 = vmatpush2.bf16.msra.mxu0 %v11934_v29  ;;  %v11923_v29 = vcombine.high %v22127_v3, %v22126_v45  ;;  %7584 = vmatpush2.bf16.msra.mxu1 %v11920_v55 }
 0xc25   :  { %7632 = vmatprep.subr.bf16.mxu0 %v11931_v35  ;;  %v22130_v35 = vld [vmem:[#allocation272_spill] sm:$0xff]  ;;  %7585 = vmatprep.subr.bf16.mxu1 %v11917_v5 }
 0xc26   :  { %v11918_v15 = vcombine.low %v22131_v61, %v22130_v35 }
 0xc28   :  { %7633 = vmatpush2.bf16.msra.mxu0 %v11930_v19  ;;  %v11919_v19 = vcombine.high %v22131_v61, %v22130_v35  ;;  %7586 = vmatpush2.bf16.msra.mxu1 %v11916_v26 }
 0xc29   :  { %7634 = vmatprep.subr.bf16.mxu0 %v11927_v14  ;;  %v22134_v14 = vld [vmem:[#allocation268_spill] sm:$0xff]  ;;  %7587 = vmatprep.subr.bf16.mxu1 %v11913_v13  ;;  %v7726_v13 = vand.u32 31, %v21739_v22 }
 0xc2a   :  { %v11914_v11 = vcombine.low %v22135_v25, %v22134_v14 }
 0xc2c   :  { %7635 = vmatpush2.bf16.msra.mxu0 %v11926_v58  ;;  %v11915_v58 = vcombine.high %v22135_v25, %v22134_v14  ;;  %7588 = vmatpush2.bf16.msra.mxu1 %v11912_v18  ;;  %v22136_v18 = vld [vmem:[#allocation290_spill] sm:$0xff] }
 0xc2d   :  { %7636 = vmatprep.subr.bf16.mxu0 %v11923_v29  ;;  %vm18217_vm1 = vcmp.eq.s32.totalorder %v7726_v13, %v22136_v18  ;;  %v7721_v13 = vand.u32 31, %v21758_v10 }
 0xc2f   :  { %vm18267_vm8 = vcmp.eq.s32.totalorder %v7721_v13, %v22136_v18  ;;  %v7693_v13 = vand.u32 31, %v21710_v40  ;;  %v22234_v40 = vld [vmem:[#allocation375_spill] sm:$0xff] }
 0xc30   :  { %7637 = vmatpush2.bf16.msra.mxu0 %v11922_v59  ;;  %v7733_v2 = vand.u32 31, %v22234_v40  ;;  %v22248_v40 = vld [vmem:[#allocation295_spill] sm:$0xff] }
 0xc31   :  { %7638 = vmatprep.subr.bf16.mxu0 %v11919_v19  ;;  %vm18338_vm7 = vcmp.eq.s32.totalorder %v7693_v13, %v22136_v18  ;;  %v7716_v13 = vand.u32 31, %v21767_v21  ;;  %v22175_v21 = vmov 0 }
 0xc34   :  { %7639 = vmatpush2.bf16.msra.mxu0 %v11918_v15 }
 0xc35   :  { %7640 = vmatprep.subr.bf16.mxu0 %v11915_v58 }
 0xc38   :  { %7641 = vmatpush2.bf16.msra.mxu0 %v11914_v11 }
 0xc39   :  { %8059 = vmatprep.subr.mxu0 %v21809_v20 }
 0xcb3   :  { %v7063_v45 = vpop.f32.mrf.mxu0 }
 0xcb4   :  { %v18191_v3 = vadd.f32 %v7063_v45, %v18016_v9 }
 0xcb5   :  { %v7065_v29 = vpop.f32.mrf.mxu0 }
 0xcb6   :  { %v18194_v55 = vadd.f32 %v7065_v29, %v18022_v28  ;;  %v22141_v29 = vmov 1.0  }
 0xcb7   :  { %v7067_v59 = vpop.f32.mrf.mxu0 }
 0xcb8   :  { %v18197_v34 = vadd.f32 %v7067_v59, %v18028_v37 }
 0xcb9   :  { %v7069_v39 = vpop.f32.mrf.mxu0 }
 0xcba   :  { %v18200_v5 = vadd.f32 %v7069_v39, %v18034_v56 }
 0xcbb   :  { %v7073_v35 = vpop.f32.mrf.mxu0 }
 0xcbc   :  { %v18203_v61 = vadd.f32 %v7073_v35, %v18040_v1  ;;  %v7725_v1 = vand.u32 31, %v21738_v63  ;;  %v22144_v35 = vld [vmem:[#allocation318_spill] sm:$0xff] }
 0xcbd   :  { %v7075_v19 = vpop.f32.mrf.mxu0  ;;  %v22213_v63 = vld [vmem:[#allocation366_spill] sm:$0xff] }
 0xcbe   :  { %v18206_v9 = vadd.f32 %v7075_v19, %v18046_v17  ;;  %vm18225_vm2 = vcmp.eq.s32.totalorder %v7725_v1, %v22136_v18  ;;  %v7723_v19 = vand.u32 31, %v22144_v35  ;;  %v7720_v1 = vand.u32 31, %v21763_v60 }
 0xcbf   :  { %v7077_v26 = vpop.f32.mrf.mxu0 }
 0xcc0   :  { %v18209_v28 = vadd.f32 %v7077_v26, %v18052_v62  ;;  %v7724_v62 = vand.u32 31, %v21743_v0  ;;  %vm18249_vm10 = vcmp.eq.s32.totalorder %v7723_v19, %v22136_v18  ;;  %vm18277_vm6 = vcmp.eq.s32.totalorder %v7720_v1, %v22136_v18  ;;  %v22203_v0 = vld [vmem:[#allocation359_spill] sm:$0xff] }
 0xcc1   :  { %v7079_v15 = vpop.f32.mrf.mxu0  ;;  %v7718_v19 = vand.u32 31, %v21765_v23  ;;  %v7717_v1 = vand.u32 31, %v21764_v31  ;;  %v22185_v23 = vld [vmem:[#allocation347_spill] sm:$0xff]  ;;  %v7712_v35 = vand.u32 31, %v22203_v0  ;;  %v22208_v0 = vmov 0 }
 0xcc2   :  { %v18212_v37 = vadd.f32 %v7079_v15, %v18058_v6  ;;  %vm18234_vm3 = vcmp.eq.s32.totalorder %v7724_v62, %v22136_v18  ;;  %v7722_v15 = vand.u32 31, %v21759_v43  ;;  %v22154_v62 = vmov 0  ;;  %v22193_v31 = vld [vmem:[#allocation351_spill] sm:$0xff] }
 0xcc3   :  { %v7191_v4 = vpop.f32.mrf.mxu0  ;;  %vm18316_vm0 = vcmp.eq.s32.totalorder %v7718_v19, %v22136_v18  ;;  %vm18343_vm12 = vcmp.eq.s32.totalorder %v7717_v1, %v22136_v18  ;;  %v7708_v19 = vand.u32 31, %v21745_v54  ;;  %v7707_v54 = vand.u32 31, %v21744_v52 }
 0xcc4   :  { %vm18257_vm5 = vcmp.eq.s32.totalorder %v7722_v15, %v22136_v18  ;;  %v7709_v15 = vand.u32 31, %v21740_v16  ;;  %v7715_v16 = vand.u32 31, %v21766_v49  ;;  %v22180_v52 = vmov 0 }
 0xcc5   :  { %v7193_v47 = vpop.f32.mrf.mxu0  ;;  %vm18357_vm14 = vcmp.eq.s32.totalorder %v7708_v19, %v22136_v18  ;;  %v7691_v19 = vand.u32 31, %v21712_v33  ;;  %v22182_v49 = vmov 0  ;;  %v7713_v60 = vand.u32 31, %v22193_v31 }
 0xcc6   :  { %vm18329_vm9 = vcmp.eq.s32.totalorder %v7709_v15, %v22136_v18  ;;  %v7692_v15 = vand.u32 31, %v21717_v27  ;;  %v22197_v43 = vmov 0  ;;  %v22199_v31 = vmov 0 }
 0xcc7   :  { %v7195_v56 = vpop.f32.mrf.mxu0  ;;  %v22218_v27 = vmov 0 }
 0xcc8   :  { %v7210_v58 = vpack.c.bf16 %v7195_v56, %v7191_v4  ;;  %v22145_v56 = vmov 0 }
 0xcc9   :  { %v7197_v14 = vpop.f32.mrf.mxu0  ;;  %v22146_v56 = vsel %vm18249_vm10, 4294967295, %v22145_v56 }
 0xcca   :  { %v7211_v25 = vpack.c.bf16 %v7197_v14, %v7193_v47  ;;  %v22147_v14 = vmov 0 }
 0xccb   :  { %v7201_v17 = vpop.f32.mrf.mxu0  ;;  %v22148_v14 = vsel %vm18257_vm5, 4294967295, %v22147_v14 }
 0xccc   :  { %11936 = vmatprep.mubr.msk.bf16.mxu1 %vm20941_vm13, %v7211_v25  ;;  %11938 = vmatprep.mubr.msk.bf16.mxu0 %vm20941_vm13, %v7211_v25  ;;  %v22149_v25 = vmov 0 }
 0xccd   :  { %v7203_v6 = vpop.f32.mrf.mxu0  ;;  %7590 = vmatmul.mubr.bf16.vlgmr.msra.gmra.mxu1 %v7210_v58  ;;  %7643 = vmatmul.mubr.bf16.vlgmr.msra.gmra.mxu0 %v7210_v58  ;;  %v22150_v25 = vsel %vm18267_vm8, 4294967295, %v22149_v25  ;;  %v7719_v58 = vand.u32 31, %v21762_v12 }
 0xcce   :  { %11972 = vmatpush1.msk.msra.mxu0 %vm18217_vm1, %v22141_v29 }
 0xccf   :  { %v7205_v59 = vpop.f32.mrf.mxu0  ;;  %8061 = vmatprep.subr.mxu0 %v21809_v20  ;;  %vm18286_vm4 = vcmp.eq.s32.totalorder %v7719_v58, %v22136_v18 }
 0xcd0   :  { %11973 = vmatpush1.msk.msra.mxu0 %vm18225_vm2, %v22141_v29  ;;  %v7212_v47 = vpack.c.bf16 %v7205_v59, %v7201_v17  ;;  %v22151_v17 = vmov 0  ;;  %v22155_v62 = vsel %vm18286_vm4, 4294967295, %v22154_v62  ;;  %v7694_v59 = vand.u32 31, %v21711_v30  ;;  %v22233_v30 = vld [vmem:[#allocation297_spill] sm:$0xff] }
 0xcd1   :  { %v7207_v26 = vpop.f32.mrf.mxu0  ;;  %8063 = vmatprep.subr.mxu0 %v21809_v20  ;;  %v22152_v17 = vsel %vm18277_vm6, 4294967295, %v22151_v17  ;;  %22156 = vst [vmem:[#allocation325_spill] sm:$0xff] %v22155_v62 }
 0xcd2   :  { %v7213_v4 = vpack.c.bf16 %v7207_v26, %v7203_v6  ;;  %11974 = vmatpush1.msk.msra.mxu0 %vm18234_vm3, %v22141_v29  ;;  %22153 = vst [vmem:[#allocation358_spill] sm:$0xff] %v22152_v17  ;;  %v7710_v6 = vand.u32 31, %v21741_v53  ;;  %vm18311_vm11 = vcmp.eq.s32.totalorder %v7694_v59, %v22136_v18  ;;  %v22168_v59 = vmov 0 }
 0xcd3   :  { %8065 = vmatprep.subr.mxu0 %v21809_v20  ;;  %v22169_v59 = vsel %vm18343_vm12, 4294967295, %v22168_v59  ;;  %v6093_v26 = vadd.f32 %v18013_v7, %v17850_v8 }
 0xcd4   :  { %11937 = vmatprep.mubr.msk.bf16.mxu1 %vm20941_vm13, %v7213_v4  ;;  %11939 = vmatprep.mubr.msk.bf16.mxu0 %vm20941_vm13, %v7213_v4  ;;  %vm18302_vm15 = vcmp.eq.s32.totalorder %v7710_v6, %v22136_v18  ;;  %22170 = vst [vmem:[#allocation362_spill] sm:$0xff] %v22169_v59  ;;  %vm18367_vm13 = vcmp.eq.s32.totalorder %v7692_v15, %v22136_v18  ;;  %v22178_v15 = vmov 0 }
 0xcd5   :  { %7600 = vmatmul.mubr.bf16.gmra.mxu1 %v7212_v47  ;;  %7653 = vmatmul.mubr.bf16.gmra.mxu0 %v7212_v47  ;;  %v22161_v47 = vmov 0 }
 0xcd6   :  { %11975 = vmatpush1.msk.msra.mxu0 %vm18249_vm10, %v22141_v29  ;;  %12723 = vmatprep.subr.msk.mxu1 %vm18302_vm15, %v22141_v29  ;;  %v22162_v47 = vsel %vm18316_vm0, 4294967295, %v22161_v47 }
 0xcd7   :  { %8067 = vmatprep.subr.mxu0 %v21809_v20  ;;  %22163 = vst [vmem:[#allocation361_spill] sm:$0xff] %v22162_v47  ;;  %12724 = vmatpush3.msk.msra.mxu1 %vm18311_vm11, %v22141_v29  ;;  %v6622_v47 = vadd.f32 %v18188_v38, %v6093_v26 }
 0xcd8   :  { %11976 = vmatpush1.msk.msra.mxu0 %vm18257_vm5, %v22141_v29  ;;  %12725 = vmatprep.subr.msk.mxu1 %vm18329_vm9, %v22141_v29 }
 0xcd9   :  { %8069 = vmatprep.subr.mxu0 %v21809_v20  ;;  %12726 = vmatpush3.msk.msra.mxu1 %vm18338_vm7, %v22141_v29 }
 0xcda   :  { %11977 = vmatpush1.msk.msra.mxu0 %vm18267_vm8, %v22141_v29  ;;  %12727 = vmatprep.subr.msk.mxu1 %vm18357_vm14, %v22141_v29 }
 0xcdb   :  { %8071 = vmatprep.subr.mxu0 %v21809_v20  ;;  %12728 = vmatpush3.msk.msra.mxu1 %vm18367_vm13, %v22141_v29 }
 0xcdc   :  { %11978 = vmatpush1.msk.msra.mxu0 %vm18277_vm6, %v22141_v29 }
 0xcdd   :  { %8073 = vmatprep.subr.mxu0 %v21809_v20 }
 0xcde   :  { %11979 = vmatpush1.msk.msra.mxu0 %vm18286_vm4, %v22141_v29  ;;  %vm18395_vm4 = vcmp.eq.s32.totalorder %v7691_v19, %v22136_v18  ;;  %v22186_v19 = vmov 0 }
 0xcdf   :  { %8075 = vmatprep.subr.mxu0 %v21809_v20  ;;  %v22181_v52 = vsel %vm18395_vm4, 4294967295, %v22180_v52 }
 0xce0   :  { %11980 = vmatpush1.msk.msra.mxu0 %vm18316_vm0, %v22141_v29  ;;  %vm18385_vm0 = vcmp.eq.s32.totalorder %v7707_v54, %v22136_v18  ;;  %v7690_v54 = vand.u32 31, %v21727_v51  ;;  %v22217_v51 = vld [vmem:[#allocation365_spill] sm:$0xff] }
 0xce1   :  { %8077 = vmatprep.subr.mxu0 %v21809_v20  ;;  %v22179_v15 = vsel %vm18385_vm0, 4294967295, %v22178_v15  ;;  %12729 = vmatprep.subr.msk.mxu1 %vm18385_vm0, %v22141_v29 }
 0xce2   :  { %11981 = vmatpush1.msk.msra.mxu0 %vm18343_vm12, %v22141_v29  ;;  %vm18372_vm12 = vcmp.eq.s32.totalorder %v7716_v13, %v22136_v18  ;;  %v7706_v13 = vand.u32 31, %v21748_v42  ;;  %v7714_v42 = vand.u32 31, %v22185_v23  ;;  %12730 = vmatpush3.msk.msra.mxu1 %vm18395_vm4, %v22141_v29  ;;  %vm18422_vm8 = vcmp.eq.s32.totalorder %v7690_v54, %v22136_v18 }
 0xce3   :  { %8079 = vmatprep.subr.mxu0 %v21809_v20  ;;  %v22176_v21 = vsel %vm18372_vm12, 4294967295, %v22175_v21  ;;  %v22190_v23 = vmov 0  ;;  %v7689_v54 = vand.u32 31, %v21726_v50  ;;  %v7702_v50 = vand.u32 31, %v22217_v51  ;;  %v22228_v51 = vld [vmem:[#allocation369_spill] sm:$0xff] }
 0xce4   :  { %22177 = vst [vmem:[#allocation328_spill] sm:$0xff] %v22176_v21  ;;  %11982 = vmatpush1.msk.msra.mxu0 %vm18372_vm12, %v22141_v29  ;;  %vm18400_vm12 = vcmp.eq.s32.totalorder %v7715_v16, %v22136_v18  ;;  %vm18413_vm6 = vcmp.eq.s32.totalorder %v7706_v13, %v22136_v18  ;;  %v22188_v16 = vmov 0  ;;  %vm18427_vm5 = vcmp.eq.s32.totalorder %v7714_v42, %v22136_v18 }
 0xce5   :  { %8081 = vmatprep.subr.mxu0 %v21809_v20  ;;  %v22183_v49 = vsel %vm18400_vm12, 4294967295, %v22182_v49  ;;  %v22187_v19 = vsel %vm18413_vm6, 4294967295, %v22186_v19  ;;  %12731 = vmatprep.subr.msk.mxu1 %vm18413_vm6, %v22141_v29  ;;  %v22189_v16 = vsel %vm18422_vm8, 4294967295, %v22188_v16  ;;  %v22191_v23 = vsel %vm18427_vm5, 4294967295, %v22190_v23 }
 0xce6   :  { %22184 = vst [vmem:[#allocation370_spill] sm:$0xff] %v22183_v49  ;;  %11983 = vmatpush1.msk.msra.mxu0 %vm18400_vm12, %v22141_v29  ;;  %22192 = vst [vmem:[#allocation371_spill] sm:$0xff] %v22191_v23  ;;  %v7705_v13 = vand.u32 31, %v21747_v36  ;;  %12732 = vmatpush3.msk.msra.mxu1 %vm18422_vm8, %v22141_v29  ;;  %v22194_v42 = vmov 0  ;;  %v22196_v36 = vld [vmem:[#allocation349_spill] sm:$0xff]  ;;  %vm18451_vm8 = vcmp.eq.s32.totalorder %v7689_v54, %v22136_v18  ;;  %v22204_v54 = vmov 0 }
 0xce7   :  { %8083 = vmatprep.subr.mxu0 %v21809_v20  ;;  %v7704_v12 = vand.u32 31, %v22196_v36  ;;  %v22198_v43 = vsel %vm18451_vm8, 4294967295, %v22197_v43  ;;  %v22212_v36 = vld [vmem:[#allocation363_spill] sm:$0xff]  ;;  %v22266_v49 = vld [vmem:[#allocation293_spill] sm:$0xff] }
 0xce8   :  { %11984 = vmatpush1.msk.msra.mxu0 %vm18427_vm5, %v22141_v29  ;;  %vm18441_vm12 = vcmp.eq.s32.totalorder %v7705_v13, %v22136_v18  ;;  %vm18456_vm5 = vcmp.eq.s32.totalorder %v7713_v60, %v22136_v18  ;;  %v22202_v13 = vld [vmem:[#allocation354_spill] sm:$0xff]  ;;  %v22206_v60 = vmov 0  ;;  %v7687_v22 = vand.u32 31, %v22212_v36  ;;  %v22229_v36 = vld [vmem:[#allocation368_spill] sm:$0xff] }
 0xce9   :  { %v22195_v42 = vsel %vm18441_vm12, 4294967295, %v22194_v42  ;;  %8085 = vmatprep.subr.mxu0 %v21809_v20  ;;  %12733 = vmatprep.subr.msk.mxu1 %vm18441_vm12, %v22141_v29  ;;  %v22200_v31 = vsel %vm18456_vm5, 4294967295, %v22199_v31  ;;  %v7688_v10 = vand.u32 31, %v22202_v13  ;;  %vm18469_vm12 = vcmp.eq.s32.totalorder %v7704_v12, %v22136_v18  ;;  %v22211_v12 = vld [vmem:[#allocation357_spill] sm:$0xff] }
 0xcea   :  { %22201 = vst [vmem:[#allocation333_spill] sm:$0xff] %v22200_v31  ;;  %12734 = vmatpush3.msk.msra.mxu1 %vm18451_vm8, %v22141_v29  ;;  %11985 = vmatpush1.msk.msra.mxu0 %vm18456_vm5, %v22141_v29  ;;  %v22205_v54 = vsel %vm18469_vm12, 4294967295, %v22204_v54  ;;  %vm18483_vm8 = vcmp.eq.s32.totalorder %v7712_v35, %v22136_v18  ;;  %v7711_v13 = vand.u32 31, %v22213_v63  ;;  %v22214_v35 = vmov 0  ;;  %v22261_v31 = vld [vmem:[#allocation382_spill] sm:$0xff] }
 0xceb   :  { %12735 = vmatprep.subr.msk.mxu1 %vm18469_vm12, %v22141_v29  ;;  %8087 = vmatprep.subr.mxu0 %v21809_v20  ;;  %vm18478_vm6 = vcmp.eq.s32.totalorder %v7688_v10, %v22136_v18  ;;  %v22209_v0 = vsel %vm18483_vm8, 4294967295, %v22208_v0  ;;  %v7703_v10 = vand.u32 31, %v22211_v12  ;;  %v22221_v12 = vmov 0 }
 0xcec   :  { %v22207_v60 = vsel %vm18478_vm6, 4294967295, %v22206_v60  ;;  %22210 = vst [vmem:[#allocation373_spill] sm:$0xff] %v22209_v0  ;;  %12736 = vmatpush3.msk.msra.mxu1 %vm18478_vm6, %v22141_v29  ;;  %11986 = vmatpush1.msk.msra.mxu0 %vm18483_vm8, %v22141_v29  ;;  %vm18507_vm8 = vcmp.eq.s32.totalorder %v7687_v22, %v22136_v18  ;;  %vm18512_vm6 = vcmp.eq.s32.totalorder %v7711_v13, %v22136_v18  ;;  %v22225_v22 = vmov 0 }
 0xced   :  { %8089 = vmatprep.subr.mxu0 %v21809_v20  ;;  %vm18498_vm5 = vcmp.eq.s32.totalorder %v7703_v10, %v22136_v18  ;;  %v22219_v27 = vsel %vm18507_vm8, 4294967295, %v22218_v27  ;;  %v22222_v12 = vsel %vm18512_vm6, 4294967295, %v22221_v12  ;;  %v22224_v10 = vld [vmem:[#allocation367_spill] sm:$0xff]  ;;  %v7734_v13 = vand.u32 31, %v22228_v51 }
 0xcee   :  { %v22215_v35 = vsel %vm18498_vm5, 4294967295, %v22214_v35  ;;  %12737 = vmatprep.subr.msk.mxu1 %vm18498_vm5, %v22141_v29  ;;  %22220 = vst [vmem:[#allocation336_spill] sm:$0xff] %v22219_v27  ;;  %22223 = vst [vmem:[#allocation380_spill] sm:$0xff] %v22222_v12  ;;  %v7686_v63 = vand.u32 31, %v22224_v10  ;;  %11987 = vmatpush1.msk.msra.mxu0 %vm18512_vm6, %v22141_v29  ;;  %vm18524_vm5 = vcmp.eq.s32.totalorder %v7702_v50, %v22136_v18  ;;  %v7701_v33 = vand.u32 31, %v22229_v36 }
 0xcef   :  { %22216 = vst [vmem:[#allocation376_spill] sm:$0xff] %v22215_v35  ;;  %12738 = vmatpush3.msk.msra.mxu1 %vm18507_vm8, %v22141_v29  ;;  %v22226_v22 = vsel %vm18524_vm5, 4294967295, %v22225_v22  ;;  %8107 = vmatprep.subr.mxu0 %v21809_v20  ;;  %v22230_v10 = vmov 0  ;;  %v7685_v50 = vand.u32 31, %v22233_v30  ;;  %vm18545_vm6 = vcmp.eq.s32.totalorder %v7734_v13, %v22136_v18  ;;  %v22249_v30 = vld [vmem:[#allocation379_spill] sm:$0xff] }
 0xcf0   :  { %22227 = vst [vmem:[#allocation383_spill] sm:$0xff] %v22226_v22  ;;  %12739 = vmatprep.subr.msk.mxu1 %vm18524_vm5, %v22141_v29  ;;  %vm18535_vm8 = vcmp.eq.s32.totalorder %v7686_v63, %v22136_v18  ;;  %v22235_v51 = vmov 0  ;;  %vm18550_vm5 = vcmp.eq.s32.totalorder %v7701_v33, %v22136_v18  ;;  %v22238_v36 = vmov 0  ;;  %v22241_v63 = vld [vmem:[#allocation374_spill] sm:$0xff]  ;;  %11988 = vmatpush2.msk.msra.mxu0 %vm18545_vm6, %v22141_v29 }
 0xcf1   :  { %v22231_v10 = vsel %vm18535_vm8, 4294967295, %v22230_v10  ;;  %12740 = vmatpush3.msk.msra.mxu1 %vm18535_vm8, %v22141_v29  ;;  %v22236_v51 = vsel %vm18545_vm6, 4294967295, %v22235_v51  ;;  %v22239_v36 = vsel %vm18550_vm5, 4294967295, %v22238_v36  ;;  %v7700_v12 = vand.u32 31, %v22241_v63  ;;  %8109 = vmatprep.subr.mxu0 %v21809_v20 }
 0xcf2   :  { %22232 = vst [vmem:[#allocation341_spill] sm:$0xff] %v22231_v10  ;;  %22237 = vst [vmem:[#allocation385_spill] sm:$0xff] %v22236_v51  ;;  %12741 = vmatprep.subr.msk.mxu1 %vm18550_vm5, %v22141_v29  ;;  %vm18562_vm8 = vcmp.eq.s32.totalorder %v7685_v50, %v22136_v18  ;;  %v22242_v13 = vmov 0  ;;  %vm18567_vm12 = vcmp.eq.s32.totalorder %v7733_v2, %v22136_v18  ;;  %v22245_v33 = vmov 0  ;;  %v22253_v51 = vld [vmem:[#allocation378_spill] sm:$0xff] }
 0xcf3   :  { %22240 = vst [vmem:[#allocation386_spill] sm:$0xff] %v22239_v36  ;;  %v22243_v13 = vsel %vm18562_vm8, 4294967295, %v22242_v13  ;;  %v22246_v33 = vsel %vm18567_vm12, 4294967295, %v22245_v33  ;;  %v7684_v63 = vand.u32 31, %v22248_v40  ;;  %v7732_v0 = vand.u32 31, %v22249_v30  ;;  %12742 = vmatpush3.msk.msra.mxu1 %vm18562_vm8, %v22141_v29  ;;  %11989 = vmatpush2.msk.msra.mxu0 %vm18567_vm12, %v22141_v29  ;;  %v22260_v40 = vld [vmem:[#allocation294_spill] sm:$0xff] }
 0xcf4   :  { %22244 = vst [vmem:[#allocation344_spill] sm:$0xff] %v22243_v13  ;;  %22247 = vst [vmem:[#allocation388_spill] sm:$0xff] %v22246_v33  ;;  %vm18578_vm6 = vcmp.eq.s32.totalorder %v7700_v12, %v22136_v18  ;;  %v22250_v50 = vmov 0  ;;  %v7699_v2 = vand.u32 31, %v22253_v51  ;;  %v22254_v30 = vmov 0  ;;  %8111 = vmatprep.subr.mxu0 %v21809_v20  ;;  %v22265_v33 = vld [vmem:[#allocation381_spill] sm:$0xff] }
 0xcf5   :  { %v22251_v50 = vsel %vm18578_vm6, 4294967295, %v22250_v50  ;;  %12743 = vmatprep.subr.msk.mxu1 %vm18578_vm6, %v22141_v29  ;;  %vm18590_vm5 = vcmp.eq.s32.totalorder %v7684_v63, %v22136_v18  ;;  %vm18595_vm8 = vcmp.eq.s32.totalorder %v7732_v0, %v22136_v18  ;;  %v22257_v12 = vmov 0  ;;  %v22299_v13 = vld [vmem:[#allocation289_spill] sm:$0xff] }
 0xcf6   :  { %22252 = vst [vmem:[#allocation391_spill] sm:$0xff] %v22251_v50  ;;  %v22255_v30 = vsel %vm18590_vm5, 4294967295, %v22254_v30  ;;  %v22258_v12 = vsel %vm18595_vm8, 4294967295, %v22257_v12  ;;  %v7683_v51 = vand.u32 31, %v22260_v40  ;;  %v7731_v23 = vand.u32 31, %v22261_v31  ;;  %12744 = vmatpush3.msk.msra.mxu1 %vm18590_vm5, %v22141_v29  ;;  %v22267_v50 = vld [vmem:[#allocation390_spill] sm:$0xff]  ;;  %11990 = vmatpush2.msk.msra.mxu0 %vm18595_vm8, %v22141_v29 }
 0xcf7   :  { %22256 = vst [vmem:[#allocation350_spill] sm:$0xff] %v22255_v30  ;;  %22259 = vst [vmem:[#allocation395_spill] sm:$0xff] %v22258_v12  ;;  %vm18606_vm12 = vcmp.eq.s32.totalorder %v7699_v2, %v22136_v18  ;;  %v22262_v63 = vmov 0  ;;  %v7698_v0 = vand.u32 31, %v22265_v33  ;;  %v7682_v21 = vand.u32 31, %v22266_v49  ;;  %v22274_v33 = vld [vmem:[#allocation389_spill] sm:$0xff]  ;;  %8113 = vmatprep.subr.mxu0 %v21809_v20 }
 0xcf8   :  { %v22263_v63 = vsel %vm18606_vm12, 4294967295, %v22262_v63  ;;  %v7730_v59 = vand.u32 31, %v22267_v50  ;;  %12745 = vmatprep.subr.msk.mxu1 %vm18606_vm12, %v22141_v29  ;;  %vm18620_vm5 = vcmp.eq.s32.totalorder %v7683_v51, %v22136_v18  ;;  %v22268_v2 = vmov 0  ;;  %v22275_v40 = vld [vmem:[#allocation292_spill] sm:$0xff] }
 0xcf9   :  { %22264 = vst [vmem:[#allocation397_spill] sm:$0xff] %v22263_v63  ;;  %v22269_v2 = vsel %vm18620_vm5, 4294967295, %v22268_v2  ;;  %vm18625_vm6 = vcmp.eq.s32.totalorder %v7731_v23, %v22136_v18  ;;  %v22271_v31 = vmov 0  ;;  %v7697_v50 = vand.u32 31, %v22274_v33  ;;  %12746 = vmatpush3.msk.msra.mxu1 %vm18620_vm5, %v22141_v29  ;;  %v22350_v39 = vld [vmem:[#allocation376_spill] sm:$0xff] }
 0xcfa   :  { %22270 = vst [vmem:[#allocation355_spill] sm:$0xff] %v22269_v2  ;;  %v22272_v31 = vsel %vm18625_vm6, 4294967295, %v22271_v31  ;;  %v7681_v49 = vand.u32 31, %v22275_v40  ;;  %vm18636_vm8 = vcmp.eq.s32.totalorder %v7698_v0, %v22136_v18  ;;  %v22276_v51 = vmov 0  ;;  %v22285_v40 = vld [vmem:[#allocation394_spill] sm:$0xff]  ;;  %11991 = vmatpush2.msk.msra.mxu0 %vm18625_vm6, %v22141_v29  ;;  %v22292_v0 = vld [vmem:[#allocation393_spill] sm:$0xff] }
 0xcfb   :  { %22273 = vst [vmem:[#allocation399_spill] sm:$0xff] %v22272_v31  ;;  %v22277_v51 = vsel %vm18636_vm8, 4294967295, %v22276_v51  ;;  %vm18641_vm12 = vcmp.eq.s32.totalorder %v7682_v21, %v22136_v18  ;;  %v22279_v23 = vmov 0  ;;  %vm18646_vm10 = vcmp.eq.s32.totalorder %v7730_v59, %v22136_v18  ;;  %12747 = vmatprep.subr.msk.mxu1 %vm18636_vm8, %v22141_v29  ;;  %v22293_v2 = vld [vmem:[#allocation291_spill] sm:$0xff]  ;;  %8115 = vmatprep.subr.mxu0 %v21809_v20  ;;  %v22297_v31 = vld [vmem:[#allocation400_spill] sm:$0xff] }
 0xcfc   :  { %22278 = vst [vmem:[#allocation401_spill] sm:$0xff] %v22277_v51  ;;  %v22280_v23 = vsel %vm18641_vm12, 4294967295, %v22279_v23  ;;  %v22282_v33 = vmov 0  ;;  %v7729_v12 = vand.u32 31, %v22285_v40  ;;  %vm18658_vm5 = vcmp.eq.s32.totalorder %v7697_v50, %v22136_v18  ;;  %12748 = vmatpush3.msk.msra.mxu1 %vm18641_vm12, %v22141_v29  ;;  %v22298_v51 = vld [vmem:[#allocation396_spill] sm:$0xff]  ;;  %11992 = vmatpush2.msk.msra.mxu0 %vm18646_vm10, %v22141_v29 }
 0xcfd   :  { %22281 = vst [vmem:[#allocation360_spill] sm:$0xff] %v22280_v23  ;;  %v22283_v33 = vsel %vm18646_vm10, 4294967295, %v22282_v33  ;;  %v22286_v21 = vmov 0  ;;  %vm18663_vm4 = vcmp.eq.s32.totalorder %v7681_v49, %v22136_v18  ;;  %v22289_v59 = vmov 0  ;;  %12749 = vmatprep.subr.msk.mxu1 %vm18658_vm5, %v22141_v29  ;;  %8117 = vmatprep.subr.mxu0 %v21809_v20 }
 0xcfe   :  { %22284 = vst [vmem:[#allocation403_spill] sm:$0xff] %v22283_v33  ;;  %v22287_v21 = vsel %vm18658_vm5, 4294967295, %v22286_v21  ;;  %v22290_v59 = vsel %vm18663_vm4, 4294967295, %v22289_v59  ;;  %v7696_v40 = vand.u32 31, %v22292_v0  ;;  %v7680_v63 = vand.u32 31, %v22293_v2  ;;  %v22306_v0 = vld [vmem:[#allocation404_spill] sm:$0xff]  ;;  %12750 = vmatpush3.msk.msra.mxu1 %vm18663_vm4, %v22141_v29 }
 0xcff   :  { %22288 = vst [vmem:[#allocation405_spill] sm:$0xff] %v22287_v21  ;;  %22291 = vst [vmem:[#allocation364_spill] sm:$0xff] %v22290_v59  ;;  %vm18674_vm6 = vcmp.eq.s32.totalorder %v7729_v12, %v22136_v18  ;;  %v22294_v50 = vmov 0  ;;  %v7728_v49 = vand.u32 31, %v22297_v31  ;;  %v7695_v30 = vand.u32 31, %v22298_v51 }
 0xd00   :  { %v22295_v50 = vsel %vm18674_vm6, 4294967295, %v22294_v50  ;;  %v7679_v36 = vand.u32 31, %v22299_v13  ;;  %vm18688_vm12 = vcmp.eq.s32.totalorder %v7696_v40, %v22136_v18  ;;  %v22300_v12 = vmov 0  ;;  %11993 = vmatpush2.msk.msra.mxu0 %vm18674_vm6, %v22141_v29 }
 0xd01   :  { %22296 = vst [vmem:[#allocation407_spill] sm:$0xff] %v22295_v50  ;;  %v22301_v12 = vsel %vm18688_vm12, 4294967295, %v22300_v12  ;;  %vm18693_vm8 = vcmp.eq.s32.totalorder %v7680_v63, %v22136_v18  ;;  %v22303_v31 = vmov 0  ;;  %v7727_v51 = vand.u32 31, %v22306_v0  ;;  %12751 = vmatprep.subr.msk.mxu1 %vm18688_vm12, %v22141_v29  ;;  %8119 = vmatprep.subr.mxu0 %v21809_v20 }
 0xd02   :  { %22302 = vst [vmem:[#allocation372_spill] sm:$0xff] %v22301_v12  ;;  %v22304_v31 = vsel %vm18693_vm8, 4294967295, %v22303_v31  ;;  %vm18703_vm10 = vcmp.eq.s32.totalorder %v7728_v49, %v22136_v18  ;;  %v22307_v13 = vmov 0  ;;  %vm18708_vm5 = vcmp.eq.s32.totalorder %v7695_v30, %v22136_v18  ;;  %12752 = vmatpush3.msk.msra.mxu1 %vm18693_vm8, %v22141_v29 }
 0xd03   :  { %22305 = vst [vmem:[#allocation377_spill] sm:$0xff] %v22304_v31  ;;  %v22308_v13 = vsel %vm18703_vm10, 4294967295, %v22307_v13  ;;  %v22310_v40 = vmov 0  ;;  %vm18719_vm4 = vcmp.eq.s32.totalorder %v7679_v36, %v22136_v18  ;;  %v22313_v63 = vmov 0  ;;  %11994 = vmatpush2.msk.msra.mxu0 %vm18703_vm10, %v22141_v29  ;;  %12753 = vmatprep.subr.msk.mxu1 %vm18708_vm5, %v22141_v29  ;;  %v7116_v36 = vpop.f32.mrf.mxu1 }
 0xd04   :  { %22309 = vst [vmem:[#allocation384_spill] sm:$0xff] %v22308_v13  ;;  %v22311_v40 = vsel %vm18708_vm5, 4294967295, %v22310_v40  ;;  %v22314_v63 = vsel %vm18719_vm4, 4294967295, %v22313_v63  ;;  %vm18728_vm0 = vcmp.eq.s32.totalorder %v7727_v51, %v22136_v18  ;;  %v22316_v30 = vmov 0  ;;  %8121 = vmatprep.subr.mxu0 %v21809_v20  ;;  %12754 = vmatpush3.msk.msra.mxu1 %vm18719_vm4, %v22141_v29 }
 0xd05   :  { %22312 = vst [vmem:[#allocation387_spill] sm:$0xff] %v22311_v40  ;;  %22315 = vst [vmem:[#allocation392_spill] sm:$0xff] %v22314_v63  ;;  %v22317_v30 = vsel %vm18728_vm0, 4294967295, %v22316_v30  ;;  %11995 = vmatpush2.msk.msra.mxu0 %vm18728_vm0, %v22141_v29  ;;  %12758 = vmatprep.subr.msk.mxu1 %vm18302_vm15, %v22141_v29  ;;  %v7118_v51 = vpop.f32.mrf.mxu1  ;;  %v7137_v22 = vadd.f32 %v7116_v36, %v18019_v32  ;;  %vm22322_vm0 = vcmask 523264   ;;  %vm22324_vm10 = vcmask 1043456  }
 0xd06   :  { %22318 = vst [vmem:[#allocation398_spill] sm:$0xff] %v22317_v30  ;;  %8204 = vmatprep.subr.mxu0 %v21809_v20  ;;  %v7138_v59 = vadd.f32 %v7118_v51, %v18025_v24  ;;  %vm22323_vm15 = vmmov %vm22322_vm0 }
 0xd07   :  { %v7120_v49 = vpop.f32.mrf.mxu1  ;;  %vm22325_vm6 = vmmov %vm22324_vm10 }
 0xd08   :  { %v7141_v10 = vadd.f32 %v7120_v49, %v18031_v41 }
 0xd09   :  { %v7122_v0 = vpop.f32.mrf.mxu1 }
 0xd0a   :  { %v7142_v7 = vadd.f32 %v7122_v0, %v18037_v44 }
 0xd0b   :  { %v7126_v2 = vpop.f32.mrf.mxu1 }
 0xd0c   :  { %v7145_v24 = vadd.f32 %v7126_v2, %v18043_v48 }
 0xd0d   :  { %v7128_v18 = vpop.f32.mrf.mxu1 }
 0xd0e   :  { %v7146_v32 = vadd.f32 %v7128_v18, %v18049_v57 }
 0xd0f   :  { %v7130_v13 = vpop.f32.mrf.mxu1 }
 0xd10   :  { %v7149_v38 = vadd.f32 %v7130_v13, %v18055_v46 }
 0xd11   :  { %v7132_v50 = vpop.f32.mrf.mxu1 }
 0xd12   :  { %v7150_v44 = vadd.f32 %v7132_v50, %v6622_v47 }
 0xd8d   :  { %v7591_v33 = vpop.f32.mrf.mxu1  ;;  %v7644_v63 = vpop.f32.mrf.mxu0 }
 0xd8e   :  { %v18778_v0 = vadd.f32 %v7644_v63, %v7137_v22 }
 0xd8f   :  { %v7593_v40 = vpop.f32.mrf.mxu1  ;;  %v7646_v31 = vpop.f32.mrf.mxu0 }
 0xd90   :  { %v18756_v62 = vadd.f32 %v7593_v40, %v18194_v55  ;;  %v18758_v27 = vadd.f32 %v7646_v31, %v7138_v59  ;;  %v18773_v31 = vadd.f32 %v7591_v33, %v18191_v3  ;;  %v7929_v6 = vmul.f32 %v18778_v0, %v18778_v0 }
 0xd91   :  { %v7595_v30 = vpop.f32.mrf.mxu1  ;;  %v7648_v12 = vpop.f32.mrf.mxu0 }
 0xd92   :  { %22319 = vst [vmem:[#allocation402_spill] sm:$0xff] %v18758_v27  ;;  %v18761_v35 = vadd.f32 %v7595_v30, %v18197_v34  ;;  %v18765_v51 = vadd.f32 %v7648_v12, %v7141_v10  ;;  %v7928_v57 = vmul.f32 %v18756_v62, %v18756_v62  ;;  %v7930_v46 = vmul.f32 %v18758_v27, %v18758_v27 }
 0xd93   :  { %v7597_v21 = vpop.f32.mrf.mxu1  ;;  %v7650_v23 = vpop.f32.mrf.mxu0  ;;  %v7913_v13 = vsel %vm22322_vm0, %v18758_v27, 0.0 }
 0xd94   :  { %v18768_v41 = vadd.f32 %v7597_v21, %v18200_v5  ;;  %v18780_v48 = vadd.f32 %v7650_v23, %v7142_v7  ;;  %v7883_v3 = vadd.f32 %v18761_v35, %v18773_v31  ;;  %v7903_v18 = vadd.f32 %v18765_v51, %v18778_v0 }
 0xd95   :  { %v7601_v17 = vpop.f32.mrf.mxu1  ;;  %v7654_v8 = vpop.f32.mrf.mxu0  ;;  %v7973_v63 = vsel %vm22322_vm0, %v7930_v46, 0.0 }
 0xd96   :  { %v18776_v55 = vadd.f32 %v7601_v17, %v18203_v61  ;;  %22320 = vst [vmem:[#allocation406_spill] sm:$0xff] %v18780_v48  ;;  %v18782_v10 = vadd.f32 %v7654_v8, %v7145_v24  ;;  %v7932_v17 = vmul.f32 %v18768_v41, %v18768_v41  ;;  %v7914_v21 = vsel %vm22323_vm15, %v18780_v48, 0.0  ;;  %vm22326_vm15 = vmmov %vm22322_vm0 }
 0xd97   :  { %v7603_v34 = vpop.f32.mrf.mxu1  ;;  %v7656_v59 = vpop.f32.mrf.mxu0  ;;  %v7934_v50 = vmul.f32 %v18780_v48, %v18780_v48  ;;  %v7893_v26 = vadd.f32 %v18768_v41, %v18756_v62 }
 0xd98   :  { %v18794_v47 = vadd.f32 %v7656_v59, %v7146_v32  ;;  %v7884_v33 = vadd.f32 %v7883_v3, %v18776_v55  ;;  %v18803_v2 = vadd.f32 %v7603_v34, %v18206_v9  ;;  %v7904_v12 = vadd.f32 %v7903_v18, %v18782_v10 }
 0xd99   :  { %v7605_v5 = vpop.f32.mrf.mxu1  ;;  %v7658_v61 = vpop.f32.mrf.mxu0  ;;  %v7953_v8 = vadd.f32 %v7932_v17, %v7928_v57  ;;  %v7915_v32 = vadd.f32 %v7914_v21, %v7913_v13  ;;  %v7937_v1 = vmul.f32 %v18782_v10, %v18782_v10 }
 0xd9a   :  { %22321 = vst [vmem:[#allocation408_spill] sm:$0xff] %v18794_v47  ;;  %v18797_v22 = vadd.f32 %v7605_v5, %v18209_v28  ;;  %v18805_v23 = vadd.f32 %v7658_v61, %v7149_v38  ;;  %v7938_v9 = vmul.f32 %v18794_v47, %v18794_v47  ;;  %v7916_v7 = vsel %vm22326_vm15, %v18794_v47, 0.0 }
 0xd9b   :  { %v7607_v40 = vpop.f32.mrf.mxu1  ;;  %v7660_v49 = vpop.f32.mrf.mxu0  ;;  %v7936_v38 = vmul.f32 %v18803_v2, %v18803_v2  ;;  %v7894_v3 = vadd.f32 %v7893_v26, %v18803_v2  ;;  %v7917_v57 = vadd.f32 %v7916_v7, %v7915_v32  ;;  %vm22331_vm15 = vcmask 519168  }
 0xd9c   :  { %v7885_v28 = vsel %vm22324_vm10, %v18797_v22, 0.0  ;;  %v7905_v36 = vsel %vm22325_vm6, %v18805_v23, 0.0  ;;  %v18826_v59 = vadd.f32 %v7607_v40, %v18212_v37  ;;  %vm22327_vm10 = vmmov %vm22322_vm0  ;;  %v18830_v61 = vadd.f32 %v7660_v49, %v7150_v44 }
 0xd9d   :  { %v7886_v30 = vadd.f32 %v7885_v28, %v7884_v33  ;;  %v7906_v24 = vadd.f32 %v7905_v36, %v7904_v12  ;;  %v7974_v46 = vsel %vm22327_vm10, %v7934_v50, 0.0  ;;  %vm22329_vm6 = vmmov %vm22322_vm0  ;;  %vm22330_vm0 = vcmask 1043456  }
 0xd9e   :  { %22328 = vst [vmem:[#allocation415_spill] sm:$0xff] %v18830_v61  ;;  %v7976_v18 = vsel %vm22329_vm6, %v7938_v9, 0.0  ;;  %v7895_v13 = vsel %vm22330_vm0, %v18826_v59, 0.0  ;;  %v7940_v37 = vmul.f32 %v18826_v59, %v18826_v59  ;;  %v7919_v50 = vsel %vm22331_vm15, %v18830_v61, 0.0  ;;  %vm22332_vm10 = vmmov %vm22330_vm0 }
 0xd9f   :  { %v7887_v34 = vrot.slane %v7886_v30, 4  ;;  %v7907_v5 = vrot.slane %v7906_v24, 4  ;;  %v7896_v21 = vadd.f32 %v7895_v13, %v7894_v3  ;;  %v7975_v12 = vadd.f32 %v7974_v46, %v7973_v63  ;;  %vm22333_vm6 = vmmov %vm22331_vm15 }
 0xda0   :  { %v7954_v28 = vadd.f32 %v7953_v8, %v7936_v38  ;;  %v7920_v44 = vadd.f32 %v7919_v50, %v7917_v57  ;;  %v7955_v49 = vsel %vm22332_vm10, %v7940_v37, 0.0  ;;  %v7942_v9 = vmul.f32 %v18830_v61, %v18830_v61  ;;  %vm22336_vm15 = vmmov %vm22332_vm10 }
 0xda1   :  { %v7888_v17 = vadd.f32 %v7887_v34, %v7886_v30  ;;  %v7908_v33 = vadd.f32 %v7907_v5, %v7906_v24  ;;  %v7897_v36 = vrot.slane %v7896_v21, 4  ;;  %v7977_v30 = vadd.f32 %v7976_v18, %v7975_v12 }
 0xda2   :  { %v7956_v7 = vadd.f32 %v7955_v49, %v7954_v28  ;;  %v7921_v24 = vrot.slane %v7920_v44, 4  ;;  %v7978_v32 = vsel %vm22333_vm6, %v7942_v9, 0.0  ;;  %vm22334_vm0 = vcmask 523264  }
 0xda3   :  { %v7889_v40 = vrot.slane %v7888_v17, 2  ;;  %v7909_v26 = vrot.slane %v7908_v33, 2  ;;  %v7898_v34 = vadd.f32 %v7897_v36, %v7896_v21  ;;  %v7979_v13 = vadd.f32 %v7978_v32, %v7977_v30 }
 0xda4   :  { %v7957_v5 = vrot.slane %v7956_v7, 4  ;;  %v7922_v8 = vadd.f32 %v7921_v24, %v7920_v44  ;;  %v7939_v24 = vmul.f32 %v18797_v22, %v18797_v22  ;;  %vm22344_vm10 = vnez %v22198_v43 }
 0xda5   :  { %v7890_v3 = vadd.f32 %v7889_v40, %v7888_v17  ;;  %v7899_v63 = vrot.slane %v7898_v34, 2  ;;  %v7910_v38 = vadd.f32 %v7909_v26, %v7908_v33  ;;  %v7980_v57 = vrot.slane %v7979_v13, 4 }
 0xda6   :  { %v7958_v46 = vadd.f32 %v7957_v5, %v7956_v7  ;;  %v7923_v37 = vrot.slane %v7922_v8, 2  ;;  %v7931_v33 = vmul.f32 %v18761_v35, %v18761_v35  ;;  %v7945_v4 = vsel %vm22336_vm15, %v7939_v24, 0.0 }
 0xda7   :  { %v7900_v50 = vadd.f32 %v7899_v63, %v7898_v34  ;;  %v7891_v48 = vrot.slane %v7890_v3, 1  ;;  %v7981_v61 = vadd.f32 %v7980_v57, %v7979_v13  ;;  %v7911_v28 = vrot.slane %v7910_v38, 1  ;;  %v22365_v34 = vld [vmem:[#allocation344_spill] sm:$0xff]  ;;  %v22369_v13 = vld [vmem:[#allocation391_spill] sm:$0xff]  ;;  %v22371_v63 = vld [vmem:[#allocation350_spill] sm:$0xff] }
 0xda8   :  { %v7959_v27 = vrot.slane %v7958_v46, 2  ;;  %v7924_v12 = vadd.f32 %v7923_v37, %v7922_v8  ;;  %vm22345_vm6 = vnez %v22150_v25  ;;  %v7933_v43 = vmul.f32 %v18765_v51, %v18765_v51  ;;  %v22354_v25 = vld [vmem:[#allocation325_spill] sm:$0xff]  ;;  %v22373_v8 = vld [vmem:[#allocation328_spill] sm:$0xff]  ;;  %v22379_v37 = vld [vmem:[#allocation370_spill] sm:$0xff] }
 0xda9   :  { %v7901_v18 = vrot.slane %v7900_v50, 1  ;;  %v7982_v47 = vrot.slane %v7981_v61, 2  ;;  %v7892_v17 = vadd.f32 %v7891_v48, %v7890_v3  ;;  %v7912_v30 = vadd.f32 %v7911_v28, %v7910_v38  ;;  %v22367_v3 = vld [vmem:[#allocation362_spill] sm:$0xff]  ;;  %v22385_v28 = vld [vmem:[#allocation371_spill] sm:$0xff] }
 0xdaa   :  { %v7960_v49 = vadd.f32 %v7959_v27, %v7958_v46  ;;  %v7925_v21 = vrot.slane %v7924_v12, 1  ;;  %v7927_v27 = vmul.f32 %v18773_v31, %v18773_v31  ;;  %v7935_v48 = vmul.f32 %v18776_v55, %v18776_v55  ;;  %v22375_v46 = vld [vmem:[#allocation397_spill] sm:$0xff] }
 0xdab   :  { %v7902_v9 = vadd.f32 %v7901_v18, %v7900_v50  ;;  %v7983_v36 = vadd.f32 %v7982_v47, %v7981_v61  ;;  %v22377_v50 = vld [vmem:[#allocation355_spill] sm:$0xff]  ;;  %v22381_v18 = vld [vmem:[#allocation401_spill] sm:$0xff] }
 0xdac   :  { %v7961_v40 = vrot.slane %v7960_v49, 1  ;;  %v7926_v44 = vadd.f32 %v7925_v21, %v7924_v12  ;;  %v7943_v61 = vadd.f32 %v7931_v33, %v7927_v27  ;;  %v22383_v12 = vld [vmem:[#allocation360_spill] sm:$0xff]  ;;  %v22395_v33 = vld [vmem:[#allocation373_spill] sm:$0xff] }
 0xdad   :  { %8053 = vmatprep.mubr.f32.mxu1 %v7902_v9  ;;  %v7984_v7 = vrot.slane %v7983_v36, 1  ;;  %v22387_v9 = vld [vmem:[#allocation405_spill] sm:$0xff]  ;;  %v22399_v27 = vld [vmem:[#allocation380_spill] sm:$0xff] }
 0xdae   :  { %8054 = vmatmul.mubr.f32.vlgmr.msra.gmra.mxu1 %v7892_v17  ;;  %v7962_v26 = vadd.f32 %v7961_v40, %v7960_v49  ;;  %11996 = vmatprep.mubr.msk.f32.mxu0 %vm22334_vm0, %v7926_v44  ;;  %v7944_v58 = vadd.f32 %v7943_v61, %v7935_v48  ;;  %v22389_v17 = vld [vmem:[#allocation364_spill] sm:$0xff]  ;;  %v22391_v40 = vld [vmem:[#allocation333_spill] sm:$0xff] }
 0xdaf   :  { %12759 = vmatpush3.msk.msra.mxu1 %vm18311_vm11, %v22141_v29  ;;  %8124 = vmatmul.mubr.f32.vlgmr.msra.gmra.mxu0 %v7912_v30  ;;  %v7985_v47 = vadd.f32 %v7984_v7, %v7983_v36  ;;  %vm22335_vm11 = vmmov %vm22334_vm0  ;;  %vm22346_vm0 = vnez %v22205_v54  ;;  %v22401_v48 = vld [vmem:[#allocation385_spill] sm:$0xff]  ;;  %v22403_v61 = vld [vmem:[#allocation388_spill] sm:$0xff] }
 0xdb0   :  { %12760 = vmatprep.subr.msk.mxu1 %vm18329_vm9, %v22141_v29  ;;  %12029 = vmatpush1.msk.msra.mxu0 %vm18217_vm1, %v22141_v29  ;;  %v7946_v11 = vadd.f32 %v7945_v4, %v7944_v58  ;;  %vm22337_vm1 = vnez %v22179_v15  ;;  %vm22339_vm9 = vnez %v22146_v56  ;;  %v7941_v56 = vmul.f32 %v18805_v23, %v18805_v23  ;;  %v22356_v15 = vld [vmem:[#allocation383_spill] sm:$0xff]  ;;  %v8278_v44 = vld [vmem:[%s20356_s5] sm:$0x1] }
 0xdb1   :  { %8198 = vmatprep.mubr.f32.mxu1 %v7962_v26  ;;  %8206 = vmatprep.subr.mxu0 %v21809_v20  ;;  %v22405_v4 = vld [vmem:[#allocation395_spill] sm:$0xff] }
 0xdb2   :  { %12053 = vmatprep.mubr.msk.f32.mxu0 %vm22335_vm11, %v7985_v47  ;;  %12761 = vmatpush3.msk.msra.mxu1 %vm18338_vm7, %v22141_v29  ;;  %vm22342_vm7 = vnez %v22148_v14  ;;  %v7947_v53 = vrot.slane %v7946_v11, 4  ;;  %vm22347_vm11 = vnez %v22207_v60  ;;  %v22352_v14 = vld [vmem:[#allocation336_spill] sm:$0xff]  ;;  %v22362_v60 = vld [vmem:[#allocation386_spill] sm:$0xff] }
 0xdb3   :  { %12030 = vmatpush1.msk.msra.mxu0 %vm18225_vm2, %v22141_v29  ;;  %12762 = vmatprep.subr.msk.mxu1 %vm18357_vm14, %v22141_v29  ;;  %vm22338_vm2 = vnez %v22181_v52  ;;  %vm22343_vm14 = vnez %v22195_v42  ;;  %v22348_v52 = vld [vmem:[#allocation358_spill] sm:$0xff]  ;;  %v7963_v42 = vadd.f32 %v7933_v43, %v7929_v6  ;;  %v22411_v43 = vld [vmem:[#allocation407_spill] sm:$0xff] }
 0xdb4   :  { %8208 = vmatprep.subr.mxu0 %v21809_v20  ;;  %12763 = vmatpush3.msk.msra.mxu1 %vm18367_vm13, %v22141_v29  ;;  %vm22340_vm13 = vnez %v22187_v19  ;;  %vm22349_vm15 = vnez %v22348_v52  ;;  %v7948_v45 = vadd.f32 %v7947_v53, %v7946_v11  ;;  %v22358_v19 = vld [vmem:[#allocation341_spill] sm:$0xff]  ;;  %v22407_v11 = vld [vmem:[#allocation399_spill] sm:$0xff] }
 0xdb5   :  { %12031 = vmatpush1.msk.msra.mxu0 %vm18234_vm3, %v22141_v29  ;;  %12764 = vmatprep.subr.msk.mxu1 %vm22337_vm1, %v22141_v29  ;;  %vm22341_vm3 = vnez %v22189_v16  ;;  %vm22351_vm1 = vnez %v22350_v39  ;;  %v22360_v16 = vld [vmem:[#allocation361_spill] sm:$0xff]  ;;  %v7964_v5 = vadd.f32 %v7963_v42, %v7937_v1  ;;  %v22409_v53 = vld [vmem:[#allocation403_spill] sm:$0xff]  ;;  %v22419_v1 = vld [vmem:[#allocation290_spill] sm:$0xff] }
 0xdb6   :  { %8210 = vmatprep.subr.mxu0 %v21809_v20  ;;  %12765 = vmatpush3.msk.msra.mxu1 %vm22338_vm2, %v22141_v29  ;;  %vm22353_vm2 = vnez %v22352_v14  ;;  %v7949_v54 = vrot.slane %v7948_v45, 2  ;;  %v22417_v14 = vmov 0   ;;  %v22422_v42 = vld [vmem:[#allocation291_spill] sm:$0xff] }
 0xdb7   :  { %12032 = vmatpush1.msk.msra.mxu0 %vm22339_vm9, %v22141_v29  ;;  %12766 = vmatprep.subr.msk.mxu1 %vm22340_vm13, %v22141_v29  ;;  %vm22355_vm9 = vnez %v22354_v25  ;;  %vm22357_vm13 = vnez %v22356_v15  ;;  %v22418_v25 = vld [vmem:[#allocation352_spill] sm:$0xff]  ;;  %v19057_v15 = vand.u32 31, %v22419_v1 }
 0xdb8   :  { %8212 = vmatprep.subr.mxu0 %v21809_v20  ;;  %12767 = vmatpush3.msk.msra.mxu1 %vm22341_vm3, %v22141_v29  ;;  %vm22359_vm3 = vnez %v22358_v19  ;;  %v7950_v57 = vadd.f32 %v7949_v54, %v7948_v45  ;;  %v22413_v45 = vld [vmem:[#allocation384_spill] sm:$0xff]  ;;  %v19054_v6 = vand.u32 31, %v22418_v25  ;;  %v22420_v19 = vld [vmem:[#allocation293_spill] sm:$0xff]  ;;  %v22423_v54 = vld [vmem:[#allocation411_spill] sm:$0xff] }
 0xdb9   :  { %12033 = vmatpush1.msk.msra.mxu0 %vm22342_vm7, %v22141_v29  ;;  %12768 = vmatprep.subr.msk.mxu1 %vm22343_vm14, %v22141_v29  ;;  %vm22361_vm7 = vnez %v22360_v16  ;;  %vm22363_vm14 = vnez %v22362_v60  ;;  %v22421_v16 = vld [vmem:[#allocation292_spill] sm:$0xff]  ;;  %v19078_v60 = vand.u32 31, %v22423_v54 }
 0xdba   :  { %8214 = vmatprep.subr.mxu0 %v21809_v20  ;;  %12769 = vmatpush3.msk.msra.mxu1 %vm22344_vm10, %v22141_v29  ;;  %vm22364_vm10 = vcmask 1043456   ;;  %v7951_v21 = vrot.slane %v7950_v57, 1 }
 0xdbb   :  { %12034 = vmatpush1.msk.msra.mxu0 %vm22345_vm6, %v22141_v29  ;;  %12770 = vmatprep.subr.msk.mxu1 %vm22346_vm0, %v22141_v29  ;;  %v7965_v32 = vsel %vm22364_vm10, %v7941_v56, 0.0  ;;  %vm22366_vm6 = vnez %v22365_v34  ;;  %vm22368_vm0 = vnez %v22367_v3  ;;  %vm22388_vm10 = vnez %v22387_v9  ;;  %v22415_v56 = vld [vmem:[#allocation398_spill] sm:$0xff] }
 0xdbc   :  { %8216 = vmatprep.subr.mxu0 %v21809_v20  ;;  %12771 = vmatpush3.msk.msra.mxu1 %vm22347_vm11, %v22141_v29  ;;  %vm22370_vm11 = vnez %v22369_v13  ;;  %v7966_v38 = vadd.f32 %v7965_v32, %v7964_v5  ;;  %v7952_v7 = vadd.f32 %v7951_v21, %v7950_v57  ;;  %v22424_v32 = vld [vmem:[#allocation289_spill] sm:$0xff] }
 0xdbd   :  { %12035 = vmatpush1.msk.msra.mxu0 %vm22349_vm15, %v22141_v29  ;;  %12772 = vmatprep.subr.msk.mxu1 %vm22351_vm1, %v22141_v29  ;;  %vm22372_vm15 = vnez %v22371_v63  ;;  %vm22374_vm1 = vnez %v22373_v8 }
 0xdbe   :  { %8218 = vmatprep.subr.mxu0 %v21809_v20  ;;  %12773 = vmatpush3.msk.msra.mxu1 %vm22353_vm2, %v22141_v29  ;;  %vm22376_vm2 = vnez %v22375_v46  ;;  %v7967_v49 = vrot.slane %v7966_v38, 4 }
 0xdbf   :  { %12036 = vmatpush1.msk.msra.mxu0 %vm22355_vm9, %v22141_v29  ;;  %12774 = vmatprep.subr.msk.mxu1 %vm22357_vm13, %v22141_v29  ;;  %vm22378_vm9 = vnez %v22377_v50  ;;  %vm22380_vm13 = vnez %v22379_v37 }
 0xdc0   :  { %8220 = vmatprep.subr.mxu0 %v21809_v20  ;;  %12775 = vmatpush3.msk.msra.mxu1 %vm22359_vm3, %v22141_v29  ;;  %vm22382_vm3 = vnez %v22381_v18  ;;  %v7968_v30 = vadd.f32 %v7967_v49, %v7966_v38 }
 0xdc1   :  { %12037 = vmatpush1.msk.msra.mxu0 %vm22361_vm7, %v22141_v29  ;;  %12776 = vmatprep.subr.msk.mxu1 %vm22363_vm14, %v22141_v29  ;;  %vm22384_vm7 = vnez %v22383_v12  ;;  %vm22386_vm14 = vnez %v22385_v28 }
 0xdc2   :  { %8222 = vmatprep.subr.mxu0 %v21809_v20  ;;  %12777 = vmatpush3.msk.msra.mxu1 %vm22366_vm6, %v22141_v29  ;;  %vm22390_vm6 = vnez %v22389_v17  ;;  %v7969_v47 = vrot.slane %v7968_v30, 2 }
 0xdc3   :  { %12038 = vmatpush1.msk.msra.mxu0 %vm22368_vm0, %v22141_v29  ;;  %12778 = vmatprep.subr.msk.mxu1 %vm22370_vm11, %v22141_v29  ;;  %vm22392_vm0 = vnez %v22391_v40  ;;  %vm22396_vm11 = vnez %v22395_v33  ;;  %v22425_v40 = vld [vmem:[#allocation353_spill] sm:$0xff] }
 0xdc4   :  { %8224 = vmatprep.subr.mxu0 %v21809_v20  ;;  %12779 = vmatpush3.msk.msra.mxu1 %vm22372_vm15, %v22141_v29  ;;  %v7970_v58 = vadd.f32 %v7969_v47, %v7968_v30  ;;  %vm22408_vm15 = vnez %v22407_v11  ;;  %v7849_v36 = vand.u32 31, %v22425_v40 }
 0xdc5   :  { %12039 = vmatpush1.msk.msra.mxu0 %vm22374_vm1, %v22141_v29  ;;  %12780 = vmatprep.subr.msk.mxu1 %vm22376_vm2, %v22141_v29  ;;  %vm22410_vm1 = vnez %v22409_v53  ;;  %vm22412_vm2 = vnez %v22411_v43  ;;  %v22428_v53 = vmul.u32 2, %v22418_v25 }
 0xdc6   :  { %8226 = vmatprep.subr.mxu0 %v21809_v20  ;;  %12781 = vmatpush3.msk.msra.mxu1 %vm22378_vm9, %v22141_v29  ;;  %v7971_v52 = vrot.slane %v7970_v58, 1  ;;  %vm22414_vm9 = vnez %v22413_v45 }
 0xdc7   :  { %12040 = vmatpush1.msk.msra.mxu0 %vm22380_vm13, %v22141_v29  ;;  %12782 = vmatprep.subr.msk.mxu1 %vm22382_vm3, %v22141_v29  ;;  %vm22416_vm13 = vnez %v22415_v56  ;;  %vm7864_vm3 = vcmp.eq.s32.totalorder %v19054_v6, %v22420_v19 }
 0xdc8   :  { %8228 = vmatprep.subr.mxu0 %v21809_v20  ;;  %12783 = vmatpush3.msk.msra.mxu1 %vm22384_vm7, %v22141_v29  ;;  %v7972_v39 = vadd.f32 %v7971_v52, %v7970_v58  ;;  %vm7863_vm7 = vcmp.eq.s32.totalorder %v19057_v15, %v22420_v19  ;;  %v19230_v52 = vsub.s32 %v22428_v53, %v19054_v6 }
 0xdc9   :  { %12041 = vmatpush1.msk.msra.mxu0 %vm22386_vm14, %v22141_v29  ;;  %12784 = vmatprep.subr.msk.mxu1 %vm22388_vm10, %v22141_v29  ;;  %vm7860_vm14 = vcmp.eq.s32.totalorder %v19054_v6, %v22421_v16  ;;  %vm7859_vm10 = vcmp.eq.s32.totalorder %v19057_v15, %v22421_v16 }
 0xdca   :  { %8230 = vmatprep.subr.mxu0 %v21809_v20  ;;  %12785 = vmatpush3.msk.msra.mxu1 %vm22390_vm6, %v22141_v29  ;;  %vm7856_vm6 = vcmp.eq.s32.totalorder %v19054_v6, %v22422_v42 }
 0xdcb   :  { %12042 = vmatpush1.msk.msra.mxu0 %vm22392_vm0, %v22141_v29  ;;  %12786 = vmatprep.subr.msk.mxu1 %vm18688_vm12, %v22141_v29  ;;  %vm22400_vm12 = vnez %v22399_v27  ;;  %vm7855_vm0 = vcmp.eq.s32.totalorder %v19057_v15, %v22422_v42 }
 0xdcc   :  { %8232 = vmatprep.subr.mxu0 %v21809_v20  ;;  %12787 = vmatpush3.msk.msra.mxu1 %vm18693_vm8, %v22141_v29  ;;  %vm22402_vm8 = vnez %v22401_v48 }
 0xdcd   :  { %12043 = vmatpush1.msk.msra.mxu0 %vm22396_vm11, %v22141_v29  ;;  %12788 = vmatprep.subr.msk.mxu1 %vm18708_vm5, %v22141_v29  ;;  %vm22404_vm5 = vnez %v22403_v61  ;;  %vm7852_vm11 = vcmp.eq.s32.totalorder %v19054_v6, %v22424_v32  ;;  %v22427_v61 = vld [vmem:[#allocation315_spill] sm:$0xff] }
 0xdce   :  { %8234 = vmatprep.subr.mxu0 %v21809_v20  ;;  %12789 = vmatpush3.msk.msra.mxu1 %vm18719_vm4, %v22141_v29  ;;  %vm22406_vm4 = vnez %v22405_v4 }
 0xdcf   :  { %12044 = vmatpush1.msk.msra.mxu0 %vm22400_vm12, %v22141_v29  ;;  %8199 = vmatmul.mubr.f32.vlgmr.msra.gmra.mxu1 %v7952_v7  ;;  %vm7851_vm12 = vcmp.eq.s32.totalorder %v19057_v15, %v22424_v32  ;;  %v8282_v7 = vld [vmem:[%s20357_s6] sm:$0x1] }
 0xdd0   :  { %8252 = vmatprep.subr.mxu0 %v21809_v20  ;;  %8353 = vmatprep.mubr.f32.mxu1 %v21809_v20 }
 0xdd1   :  { %12045 = vmatpush2.msk.msra.mxu0 %vm22402_vm8, %v22141_v29  ;;  %12054 = vmatprep.subr.msk.mxu1 %vm7864_vm3, %v22141_v29  ;;  %vm7866_vm8 = vcmp.eq.s32.totalorder %v19078_v60, %v22420_v19 }
 0xdd2   :  { %8254 = vmatprep.subr.mxu0 %v21809_v20  ;;  %12055 = vmatpush1.msk.msra.mxu1 %vm7863_vm7, %v22141_v29 }
 0xdd3   :  { %12046 = vmatpush2.msk.msra.mxu0 %vm22404_vm5, %v22141_v29  ;;  %12056 = vmatprep.subr.msk.mxu1 %vm7860_vm14, %v22141_v29  ;;  %vm8285_vm5 = vcmask 261120  }
 0xdd4   :  { %8256 = vmatprep.subr.mxu0 %v21809_v20  ;;  %12057 = vmatpush1.msk.msra.mxu1 %vm7859_vm10, %v22141_v29 }
 0xdd5   :  { %12047 = vmatpush2.msk.msra.mxu0 %vm22406_vm4, %v22141_v29  ;;  %12058 = vmatprep.subr.msk.mxu1 %vm7856_vm6, %v22141_v29  ;;  %vm21049_vm4 = vcmp.eq.s32.totalorder %v7849_v36, %v22420_v19 }
 0xdd6   :  { %8258 = vmatprep.subr.mxu0 %v21809_v20  ;;  %12059 = vmatpush1.msk.msra.mxu1 %vm7855_vm0, %v22141_v29 }
 0xdd7   :  { %12048 = vmatpush2.msk.msra.mxu0 %vm22408_vm15, %v22141_v29  ;;  %12060 = vmatprep.subr.msk.mxu1 %vm7852_vm11, %v22141_v29  ;;  %vm7862_vm15 = vcmp.eq.s32.totalorder %v19078_v60, %v22421_v16 }
 0xdd8   :  { %8260 = vmatprep.subr.mxu0 %v21809_v20  ;;  %12061 = vmatpush1.msk.msra.mxu1 %vm7851_vm12, %v22141_v29 }
 0xdd9   :  { %12049 = vmatpush2.msk.msra.mxu0 %vm22410_vm1, %v22141_v29  ;;  %12063 = vmatprep.subr.msk.mxu1 %vm7866_vm8, %v22141_v29  ;;  %vm7861_vm1 = vcmp.eq.s32.totalorder %v7849_v36, %v22421_v16 }
 0xdda   :  { %8262 = vmatprep.subr.mxu0 %v21809_v20 }
 0xddb   :  { %12050 = vmatpush2.msk.msra.mxu0 %vm22412_vm2, %v22141_v29  ;;  %vm7858_vm2 = vcmp.eq.s32.totalorder %v19078_v60, %v22422_v42 }
 0xddc   :  { %8264 = vmatprep.subr.mxu0 %v21809_v20 }
 0xddd   :  { %12051 = vmatpush2.msk.msra.mxu0 %vm22414_vm9, %v22141_v29  ;;  %vm7857_vm9 = vcmp.eq.s32.totalorder %v7849_v36, %v22422_v42 }
 0xdde   :  { %8266 = vmatprep.subr.mxu0 %v21809_v20 }
 0xddf   :  { %12052 = vmatpush2.msk.msra.mxu0 %vm22416_vm13, %v22141_v29  ;;  %vm7854_vm13 = vcmp.eq.s32.totalorder %v19078_v60, %v22424_v32  ;;  %v22429_v60 = vmul.u32 2, %v22419_v1 }
 0xde0   :  { %8269 = vmatmul.mubr.f32.vlgmr.msra.gmra.mxu0 %v7972_v39 }
 0xde1   :  { %9362 = vmatprep.mubr.bf16.mxu0 %v22417_v14 }
 0xe6e   :  { %v12755_v5 = vpop.f32.mrf.mxu1 }
 0xe6f   :  { %v8125_v34 = vpop.f32.mrf.mxu0 }
 0xe70   :  { %v12756_v13 = vpop.f32.mrf.mxu1 }
 0xe71   :  { %v8127_v3 = vpop.f32.mrf.mxu0  ;;  %v12757_v63 = vadd.f32 %v12756_v13, %v12755_v5 }
 0xe73   :  { %v8126_v38 = vadd.f32 %v12757_v63, %v8125_v34  ;;  %v19240_v34 = vsub.s32 %v22429_v60, %v19057_v15 }
 0xe75   :  { %v8130_v57 = vmul.f32 0.0025510204, %v8126_v38 }
 0xe77   :  { %v8275_v49 = vmul.f32 %v8130_v57, %v8130_v57 }
 0xe8f   :  { %v12790_v8 = vpop.f32.mrf.mxu1 }
 0xe91   :  { %v12791_v46 = vpop.f32.mrf.mxu1 }
 0xe92   :  { %v12792_v50 = vadd.f32 %v12791_v46, %v12790_v8  ;;  %v22430_v8 = vld [vmem:[#allocation332_spill] sm:$0xff]  ;;  %v22431_v46 = vld [vmem:[#allocation329_spill] sm:$0xff] }
 0xea0   :  { %v8270_v37 = vpop.f32.mrf.mxu0 }
 0xea1   :  { %v8271_v18 = vadd.f32 %v12792_v50, %v8270_v37 }
 0xea2   :  { %v8272_v12 = vpop.f32.mrf.mxu0 }
 0xea3   :  { %v8274_v28 = vmul.f32 0.0025510204, %v8271_v18 }
 0xea5   :  { %v8276_v9 = vsub.f32 %v8274_v28, %v8275_v49 }
 0xea7   :  { %v8277_v21 = vmax.f32 %v8276_v9, 0.0 }
 0xea9   :  { %v8279_v17 = vadd.f32 1e-05, %v8277_v21 }
 0xeab   :  { %13043 = vrsqrt.f32 %v8279_v17 }
 0xeb8   :  { %v13044_v33 = vpop.eup %13043 }
 0xeb9   :  { %v8281_v30 = vmul.f32 %v13044_v33, %v8278_v44 }
 0xebb   :  { %12062 = vmatmul.mubr.msk.f32.vlgmr.msra.gmra.mxu1 %vm8285_vm5, %v8281_v30  ;;  %v8283_v26 = vmul.f32 %v8281_v30, %v8130_v57 }
 0xebc   :  { %12064 = vmatpush1.msk.msra.mxu1 %vm21049_vm4, %v22141_v29  ;;  %8424 = vmatprep.mubr.f32.mxu1 %v21809_v20  ;;  %vm7853_vm4 = vcmp.eq.s32.totalorder %v7849_v36, %v22424_v32 }
 0xebd   :  { %12065 = vmatprep.subr.msk.mxu1 %vm7862_vm15, %v22141_v29  ;;  %v8284_v24 = vsub.f32 %v8282_v7, %v8283_v26  ;;  %v22432_v7 = vld [vmem:[#allocation408_spill] sm:$0xff] }
 0xebe   :  { %12066 = vmatpush1.msk.msra.mxu1 %vm7861_vm1, %v22141_v29 }
 0xebf   :  { %12067 = vmatprep.subr.msk.mxu1 %vm7858_vm2, %v22141_v29 }
 0xec0   :  { %12068 = vmatpush1.msk.msra.mxu1 %vm7857_vm9, %v22141_v29 }
 0xec1   :  { %12069 = vmatprep.subr.msk.mxu1 %vm7854_vm13, %v22141_v29 }
 0xec2   :  { %12070 = vmatpush1.msk.msra.mxu1 %vm7853_vm4, %v22141_v29 }
 0xec3   :  { %12071 = vmatmul.mubr.msk.f32.vlgmr.msra.gmra.mxu1 %vm8285_vm5, %v8281_v30  ;;  %12072 = vmatprep.subr.msk.mxu1 %vm7864_vm3, %v22141_v29  ;;  %vm22426_vm3 = vcmp.eq.s32.totalorder %v7849_v36, %v22420_v19 }
 0xec4   :  { %12073 = vmatpush1.msk.msra.mxu1 %vm7863_vm7, %v22141_v29  ;;  %8498 = vmatprep.mubr.f32.mxu1 %v21809_v20  ;;  %vm8687_vm7 = vcmp.eq.s32.totalorder %v22430_v8, %v19230_v52 }
 0xec5   :  { %12074 = vmatprep.subr.msk.mxu1 %vm7860_vm14, %v22141_v29  ;;  %vm8689_vm14 = vcmp.eq.s32.totalorder %v22431_v46, %v19230_v52 }
 0xec6   :  { %12075 = vmatpush1.msk.msra.mxu1 %vm7859_vm10, %v22141_v29  ;;  %vm22436_vm10 = vcmask 1045504  }
 0xec7   :  { %12076 = vmatprep.subr.msk.mxu1 %vm7856_vm6, %v22141_v29  ;;  %vm22437_vm6 = vmmov %vm22436_vm10 }
 0xec8   :  { %12077 = vmatpush1.msk.msra.mxu1 %vm7855_vm0, %v22141_v29  ;;  %vm22438_vm0 = vmmov %vm22437_vm6 }
 0xec9   :  { %12078 = vmatprep.subr.msk.mxu1 %vm7852_vm11, %v22141_v29  ;;  %vm12098_vm11 = vmpackc.low %vm8689_vm14, %vm8687_vm7 }
 0xeca   :  { %12079 = vmatpush1.msk.msra.mxu1 %vm7851_vm12, %v22141_v29  ;;  %vm8686_vm12 = vcmp.eq.s32.totalorder %v22430_v8, %v19240_v34 }
 0xecb   :  { %12080 = vmatmul.mubr.msk.f32.vlgmr.msra.gmra.mxu1 %vm8285_vm5, %v8284_v24  ;;  %12081 = vmatprep.subr.msk.mxu1 %vm7866_vm8, %v22141_v29  ;;  %vm8688_vm8 = vcmp.eq.s32.totalorder %v22431_v46, %v19240_v34 }
 0xecc   :  { %12082 = vmatpush1.msk.msra.mxu1 %vm22426_vm3, %v22141_v29  ;;  %8569 = vmatprep.mubr.f32.mxu1 %v21809_v20 }
 0xecd   :  { %12083 = vmatprep.subr.msk.mxu1 %vm7862_vm15, %v22141_v29  ;;  %vm22443_vm15 = vcmask 228352  }
 0xece   :  { %12084 = vmatpush1.msk.msra.mxu1 %vm7861_vm1, %v22141_v29  ;;  %vm22444_vm1 = vmmov %vm22438_vm0 }
 0xecf   :  { %12085 = vmatprep.subr.msk.mxu1 %vm7858_vm2, %v22141_v29  ;;  %vm22445_vm2 = vmmov %vm22438_vm0 }
 0xed0   :  { %12086 = vmatpush1.msk.msra.mxu1 %vm7857_vm9, %v22141_v29  ;;  %vm12100_vm9 = vmpackc.low %vm8688_vm8, %vm8686_vm12 }
 0xed1   :  { %12087 = vmatprep.subr.msk.mxu1 %vm7854_vm13, %v22141_v29  ;;  %vm22447_vm13 = vmmov %vm22443_vm15 }
 0xed2   :  { %12088 = vmatpush1.msk.msra.mxu1 %vm7853_vm4, %v22141_v29 }
 0xed3   :  { %12089 = vmatmul.mubr.msk.f32.vlgmr.msra.gmra.mxu1 %vm8285_vm5, %v8284_v24 }
 0xed4   :  { %9274 = vmatprep.mubr.bf16.mxu1 %v22417_v14 }
 0xf7b   :  { %v8355_v27 = vpop.f32.mrf.mxu1 }
 0xf7c   :  { %v8579_v4 = vrot.slane %v8355_v27, %v22427_v61  ;;  %v22433_v27 = vld [vmem:[#allocation415_spill] sm:$0xff] }
 0xf7d   :  { %v8357_v48 = vpop.f32.mrf.mxu1 }
 0xf7e   :  { %v8583_v58 = vrot.slane %v8357_v48, %v22427_v61  ;;  %v8592_v43 = vmul.f32 %v8579_v4, %v18773_v31  ;;  %v8596_v45 = vmul.f32 %v8579_v4, %v18761_v35  ;;  %v8600_v54 = vmul.f32 %v8579_v4, %v18776_v55 }
 0xf7f   :  { %v8604_v31 = vmul.f32 %v8579_v4, %v18797_v22 }
 0xf80   :  { %v8601_v25 = vmul.f32 %v8583_v58, %v18803_v2  ;;  %v8605_v6 = vmul.f32 %v8583_v58, %v18826_v59  ;;  %v8593_v38 = vmul.f32 %v8583_v58, %v18756_v62  ;;  %v8597_v15 = vmul.f32 %v8583_v58, %v18768_v41  ;;  %v22435_v58 = vld [vmem:[#allocation406_spill] sm:$0xff] }
 0xf83   :  { %v8426_v47 = vpop.f32.mrf.mxu1 }
 0xf84   :  { %v8587_v39 = vrot.slane %v8426_v47, %v22427_v61  ;;  %v22434_v47 = vld [vmem:[#allocation402_spill] sm:$0xff] }
 0xf85   :  { %v8428_v11 = vpop.f32.mrf.mxu1 }
 0xf86   :  { %v8594_v2 = vmul.f32 %v8587_v39, %v18778_v0  ;;  %v8591_v22 = vrot.slane %v8428_v11, %v22427_v61  ;;  %v8598_v62 = vmul.f32 %v8587_v39, %v18765_v51  ;;  %v8602_v33 = vmul.f32 %v8587_v39, %v18782_v10 }
 0xf87   :  { %v8606_v30 = vmul.f32 %v8587_v39, %v18805_v23 }
 0xf88   :  { %v8603_v24 = vmul.f32 %v8591_v22, %v22432_v7  ;;  %v8607_v48 = vmul.f32 %v8591_v22, %v22433_v27  ;;  %v8595_v4 = vmul.f32 %v8591_v22, %v22434_v47  ;;  %v8599_v51 = vmul.f32 %v8591_v22, %v22435_v58  ;;  %v22466_v7 = vld [vmem:[#allocation320_spill] sm:$0xff]  ;;  %v22468_v27 = vld [vmem:[#allocation331_spill] sm:$0xff]  ;;  %v22470_v47 = vld [vmem:[#allocation326_spill] sm:$0xff] }
 0xf89   :  { %v22472_v58 = vld [vmem:[#allocation339_spill] sm:$0xff] }
 0xf8b   :  { %v8500_v29 = vpop.f32.mrf.mxu1 }
 0xf8c   :  { %v8611_v56 = vrot.slane %v8500_v29, %v22427_v61 }
 0xf8d   :  { %v8502_v3 = vpop.f32.mrf.mxu1 }
 0xf8e   :  { %v8624_v5 = vadd.f32 %v8611_v56, %v8592_v43  ;;  %v8628_v35 = vadd.f32 %v8611_v56, %v8596_v45  ;;  %v8615_v13 = vrot.slane %v8502_v3, %v22427_v61  ;;  %v8632_v63 = vadd.f32 %v8611_v56, %v8600_v54 }
 0xf8f   :  { %v8636_v55 = vadd.f32 %v8611_v56, %v8604_v31 }
 0xf90   :  { %v8633_v59 = vadd.f32 %v8615_v13, %v8601_v25  ;;  %v8637_v57 = vadd.f32 %v8615_v13, %v8605_v6  ;;  %v8648_v50 = vmax.f32 %v8632_v63, 0.0  ;;  %v8625_v18 = vadd.f32 %v8615_v13, %v8593_v38  ;;  %v22440_v38 = vld [vmem:[#allocation340_spill] sm:$0xff] }
 0xf91   :  { %v8652_v37 = vmax.f32 %v8636_v55, 0.0  ;;  %v8629_v12 = vadd.f32 %v8615_v13, %v8597_v15  ;;  %v8640_v28 = vmax.f32 %v8624_v5, 0.0  ;;  %v8644_v49 = vmax.f32 %v8628_v35, 0.0  ;;  %v22441_v15 = vld [vmem:[#allocation337_spill] sm:$0xff] }
 0xf92   :  { %v8649_v9 = vmax.f32 %v8633_v59, 0.0  ;;  %v8653_v21 = vmax.f32 %v8637_v57, 0.0  ;;  %v8641_v40 = vmax.f32 %v8625_v18, 0.0  ;;  %v22439_v55 = vmov 1.0|1.0   ;;  %v22442_v59 = vld [vmem:[#allocation356_spill] sm:$0xff] }
 0xf93   :  { %v8571_v41 = vpop.f32.mrf.mxu1  ;;  %v9224_v17 = vpack.c.bf16 %v8652_v37, %v8648_v50  ;;  %v8645_v36 = vmax.f32 %v8629_v12, 0.0  ;;  %v9220_v43 = vpack.c.bf16 %v8644_v49, %v8640_v28  ;;  %vm8683_vm5 = vcmp.eq.s32.totalorder %v22440_v38, %v19230_v52  ;;  %v22446_v37 = vld [vmem:[#allocation413_spill] sm:$0xff]  ;;  %v22448_v18 = vld [vmem:[#allocation348_spill] sm:$0xff]  ;;  %v22451_v49 = vld [vmem:[#allocation363_spill] sm:$0xff] }
 0xf94   :  { %v8619_v0 = vrot.slane %v8571_v41, %v22427_v61  ;;  %v9225_v44 = vpack.c.bf16 %v8653_v21, %v8649_v9  ;;  %vm8685_vm4 = vcmp.eq.s32.totalorder %v22441_v15, %v19230_v52  ;;  %vm8682_vm7 = vcmp.eq.s32.totalorder %v22440_v38, %v19240_v34  ;;  %v22449_v12 = vld [vmem:[#allocation345_spill] sm:$0xff]  ;;  %v22452_v9 = vld [vmem:[#allocation354_spill] sm:$0xff] }
 0xf95   :  { %v8573_v26 = vpop.f32.mrf.mxu1  ;;  %v9231_v53 = vsel %vm22438_vm0, %v9224_v17, 0  ;;  %v9221_v10 = vpack.c.bf16 %v8645_v36, %v8641_v40  ;;  %vm12102_vm3 = vmpackc.low %vm8685_vm4, %vm8683_vm5  ;;  %vm8684_vm14 = vcmp.eq.s32.totalorder %v22441_v15, %v19240_v34  ;;  %vm8678_vm12 = vcmp.eq.s32.totalorder %v22448_v18, %v19240_v34  ;;  %v22454_v21 = vld [vmem:[#allocation317_spill] sm:$0xff]  ;;  %v22457_v17 = vld [vmem:[#allocation367_spill] sm:$0xff] }
 0xf96   :  { %v8623_v11 = vrot.slane %v8573_v26, %v22427_v61  ;;  %12090 = vmatprep.subr.msk.bf16.mxu1 %vm22436_vm10, %v9225_v44  ;;  %12094 = vmatprep.subr.msk.bf16.mxu0 %vm22437_vm6, %v9225_v44  ;;  %v8626_v23 = vadd.f32 %v8619_v0, %v8594_v2  ;;  %v8634_v29 = vadd.f32 %v8619_v0, %v8602_v33  ;;  %vm12104_vm0 = vmpackc.low %vm8684_vm14, %vm8682_vm7  ;;  %v22456_v41 = vld [vmem:[#allocation297_spill] sm:$0xff]  ;;  %v22458_v40 = vld [vmem:[#allocation318_spill] sm:$0xff] }
 0xf97   :  { %9255 = vmatpush1.bf16.msra.mxu1 %v9231_v53  ;;  %9343 = vmatpush1.bf16.msra.mxu0 %v9231_v53  ;;  %v8638_v45 = vadd.f32 %v8619_v0, %v8606_v30  ;;  %v8630_v39 = vadd.f32 %v8619_v0, %v8598_v62  ;;  %vm8679_vm10 = vcmp.eq.s32.totalorder %v22448_v18, %v19230_v52  ;;  %vm22450_vm5 = vmmov %vm22444_vm1  ;;  %v22455_v62 = vld [vmem:[#allocation316_spill] sm:$0xff]  ;;  %v22459_v36 = vld [vmem:[#allocation313_spill] sm:$0xff] }
 0xf98   :  { %9256 = vmatprep.subr.bf16.mxu1 %v9221_v10  ;;  %9344 = vmatprep.subr.bf16.mxu0 %v9221_v10  ;;  %v8635_v56 = vadd.f32 %v8623_v11, %v8603_v24  ;;  %v8639_v54 = vadd.f32 %v8623_v11, %v8607_v48  ;;  %v8650_v60 = vmax.f32 %v8634_v29, 0.0  ;;  %v8627_v3 = vadd.f32 %v8623_v11, %v8595_v4  ;;  %v22460_v0 = vld [vmem:[#allocation294_spill] sm:$0xff]  ;;  %v22461_v44 = vld [vmem:[#allocation295_spill] sm:$0xff]  ;;  %v22479_v29 = vld [vmem:[#allocation368_spill] sm:$0xff] }
 0xf99   :  { %v8654_v61 = vmax.f32 %v8638_v45, 0.0  ;;  %v8631_v25 = vadd.f32 %v8623_v11, %v8599_v51  ;;  %v8642_v2 = vmax.f32 %v8626_v23, 0.0  ;;  %v8646_v22 = vmax.f32 %v8630_v39, 0.0  ;;  %v22463_v33 = vld [vmem:[#allocation319_spill] sm:$0xff]  ;;  %v22464_v30 = vld [vmem:[#allocation314_spill] sm:$0xff]  ;;  %v22478_v23 = vld [vmem:[#allocation349_spill] sm:$0xff] }
 0xf9a   :  { %v8651_v6 = vmax.f32 %v8635_v56, 0.0  ;;  %v8655_v31 = vmax.f32 %v8639_v54, 0.0  ;;  %v8643_v35 = vmax.f32 %v8627_v3, 0.0  ;;  %vm8681_vm6 = vcmp.eq.s32.totalorder %v22449_v12, %v19230_v52  ;;  %v22465_v26 = vld [vmem:[#allocation327_spill] sm:$0xff]  ;;  %v22469_v48 = vld [vmem:[#allocation330_spill] sm:$0xff]  ;;  %v22480_v45 = vld [vmem:[#allocation365_spill] sm:$0xff] }
 0xf9b   :  { %9257 = vmatpush1.bf16.msra.mxu1 %v9220_v43  ;;  %9345 = vmatpush1.bf16.msra.mxu0 %v9220_v43  ;;  %v9226_v5 = vpack.c.bf16 %v8654_v61, %v8650_v60  ;;  %v8647_v13 = vmax.f32 %v8631_v25, 0.0  ;;  %v9222_v28 = vpack.c.bf16 %v8646_v22, %v8642_v2  ;;  %vm8680_vm8 = vcmp.eq.s32.totalorder %v22449_v12, %v19240_v34  ;;  %v22467_v24 = vld [vmem:[#allocation335_spill] sm:$0xff]  ;;  %v22473_v51 = vld [vmem:[#allocation338_spill] sm:$0xff]  ;;  %v22477_v43 = vld [vmem:[#allocation357_spill] sm:$0xff] }
 0xf9c   :  { %v9227_v63 = vpack.c.bf16 %v8655_v31, %v8651_v6  ;;  %12099 = vmatprep.subr.msk.bf16.mxu0 %vm12098_vm11, %v22439_v55  ;;  %vm12106_vm11 = vmpackc.low %vm8681_vm6, %vm8679_vm10  ;;  %vm8675_vm4 = vcmp.eq.s32.totalorder %v22451_v49, %v19230_v52  ;;  %vm8674_vm7 = vcmp.eq.s32.totalorder %v22451_v49, %v19240_v34  ;;  %vm8676_vm14 = vcmp.eq.s32.totalorder %v22452_v9, %v19240_v34  ;;  %v22471_v4 = vld [vmem:[#allocation343_spill] sm:$0xff]  ;;  %v22474_v11 = vld [vmem:[#allocation334_spill] sm:$0xff] }
 0xf9d   :  { %v9237_v57 = vsel %vm22445_vm2, %v9226_v5, 0  ;;  %v9223_v50 = vpack.c.bf16 %v8647_v13, %v8643_v35  ;;  %vm12108_vm2 = vmpackc.low %vm8680_vm8, %vm8678_vm12  ;;  %vm8671_vm10 = vcmp.eq.s32.totalorder %v22456_v41, %v19230_v52  ;;  %vm8673_vm6 = vcmp.eq.s32.totalorder %v22457_v17, %v19230_v52  ;;  %v22475_v53 = vld [vmem:[#allocation346_spill] sm:$0xff]  ;;  %v22483_v54 = vld [vmem:[#allocation389_spill] sm:$0xff] }
 0xf9e   :  { %12091 = vmatmul.mubr.msk.bf16.vlgmr.msra.gmra.mxu1 %vm22443_vm15, %v22442_v59  ;;  %12092 = vmatprep.subr.msk.bf16.mxu1 %vm22444_vm1, %v9227_v63  ;;  %vm8677_vm15 = vcmp.eq.s32.totalorder %v22452_v9, %v19230_v52  ;;  %vm22453_vm1 = vmmov %vm22447_vm13  ;;  %vm8752_vm12 = vcmp.eq.s32.totalorder %v22455_v62, %v19240_v34  ;;  %v22476_v10 = vld [vmem:[#allocation342_spill] sm:$0xff]  ;;  %v22484_v60 = vld [vmem:[#allocation381_spill] sm:$0xff]  ;;  %v19522_v35 = vadd.s32 32, %v19230_v52 }
 0xf9f   :  { %12095 = vmatmul.mubr.msk.bf16.vlgmr.msra.gmra.mxu0 %vm22447_vm13, %v22446_v37  ;;  %9298 = vmatpush1.bf16.msra.mxu1 %v9237_v57  ;;  %vm8753_vm13 = vcmp.eq.s32.totalorder %v22455_v62, %v19230_v52  ;;  %vm12112_vm8 = vmpackc.low %vm8676_vm14, %vm8674_vm7  ;;  %vm8746_vm14 = vcmp.eq.s32.totalorder %v22458_v40, %v19240_v34  ;;  %v22481_v39 = vld [vmem:[#allocation378_spill] sm:$0xff]  ;;  %v22485_v61 = vld [vmem:[#allocation351_spill] sm:$0xff] }
 0xfa0   :  { %9299 = vmatprep.subr.bf16.mxu1 %v9223_v50  ;;  %9317 = vmatprep.mubr.bf16.mxu1 %v22417_v14  ;;  %v22482_v56 = vld [vmem:[#allocation374_spill] sm:$0xff]  ;;  %v22486_v3 = vld [vmem:[#allocation347_spill] sm:$0xff]  ;;  %v22487_v25 = vld [vmem:[#allocation396_spill] sm:$0xff] }
 0xfa1   :  { %12101 = vmatpush1.bf16.msk.msra.mxu0 %vm12100_vm9, %v22439_v55  ;;  %vm8751_vm9 = vcmp.eq.s32.totalorder %v22454_v21, %v19230_v52  ;;  %v22488_v6 = vld [vmem:[#allocation393_spill] sm:$0xff]  ;;  %v22489_v31 = vld [vmem:[#allocation366_spill] sm:$0xff]  ;;  %v22490_v5 = vld [vmem:[#allocation359_spill] sm:$0xff] }
 0xfa2   :  { %12103 = vmatprep.subr.msk.bf16.mxu0 %vm12102_vm3, %v22439_v55  ;;  %vm12110_vm3 = vmpackc.low %vm8677_vm15, %vm8675_vm4  ;;  %vm8749_vm4 = vcmp.eq.s32.totalorder %v22459_v36, %v19230_v52  ;;  %v22491_v13 = vld [vmem:[#allocation375_spill] sm:$0xff]  ;;  %v22493_v2 = vld [vmem:[#allocation382_spill] sm:$0xff] }
 0xfa3   :  { %9300 = vmatpush1.bf16.msra.mxu1 %v9222_v28  ;;  %vm12114_vm15 = vmpackc.low %vm8673_vm6, %vm8671_vm10  ;;  %vm8748_vm10 = vcmp.eq.s32.totalorder %v22459_v36, %v19240_v34  ;;  %vm22462_vm6 = vcmask 228352   ;;  %v22494_v22 = vld [vmem:[#allocation379_spill] sm:$0xff] }
 0xfa4   :  { %12096 = vmatprep.subr.msk.bf16.mxu1 %vm22450_vm5, %v9227_v63  ;;  %vm8747_vm5 = vcmp.eq.s32.totalorder %v22458_v40, %v19230_v52  ;;  %v22492_v63 = vld [vmem:[#allocation369_spill] sm:$0xff] }
 0xfa5   :  { %12105 = vmatpush1.bf16.msk.msra.mxu0 %vm12104_vm0, %v22439_v55  ;;  %vm12162_vm0 = vmpackc.low %vm8753_vm13, %vm8751_vm9  ;;  %vm8667_vm9 = vcmp.eq.s32.totalorder %v22460_v0, %v19230_v52  ;;  %vm8669_vm13 = vcmp.eq.s32.totalorder %v22461_v44, %v19230_v52 }
 0xfa6   :  { %12093 = vmatmul.mubr.msk.bf16.vlgmr.msra.gmra.mxu1 %vm22453_vm1, %v22442_v59  ;;  %12107 = vmatprep.subr.msk.bf16.mxu0 %vm12106_vm11, %v22439_v55  ;;  %vm8750_vm11 = vcmp.eq.s32.totalorder %v22454_v21, %v19240_v34  ;;  %vm8670_vm1 = vcmp.eq.s32.totalorder %v22456_v41, %v19240_v34  ;;  %vm12166_vm7 = vmpackc.low %vm8749_vm4, %vm8747_vm5  ;;  %vm8666_vm5 = vcmp.eq.s32.totalorder %v22460_v0, %v19240_v34  ;;  %v22495_v59 = vld [vmem:[#allocation394_spill] sm:$0xff] }
 0xfa7   :  { %9386 = vmatpush1.bf16.msra.mxu1 %v9237_v57  ;;  %9405 = vmatprep.mubr.bf16.mxu1 %v22417_v14  ;;  %vm8668_vm4 = vcmp.eq.s32.totalorder %v22461_v44, %v19240_v34  ;;  %v22496_v57 = vld [vmem:[#allocation390_spill] sm:$0xff] }
 0xfa8   :  { %9387 = vmatprep.subr.bf16.mxu1 %v9223_v50  ;;  %v22497_v50 = vld [vmem:[#allocation404_spill] sm:$0xff] }
 0xfa9   :  { %12109 = vmatpush1.bf16.msk.msra.mxu0 %vm12108_vm2, %v22439_v55  ;;  %vm8672_vm2 = vcmp.eq.s32.totalorder %v22457_v17, %v19240_v34 }
 0xfaa   :  { %12111 = vmatprep.subr.msk.bf16.mxu0 %vm12110_vm3, %v22439_v55  ;;  %vm12164_vm3 = vmpackc.low %vm8752_vm12, %vm8750_vm11  ;;  %vm8743_vm11 = vcmp.eq.s32.totalorder %v22463_v33, %v19230_v52  ;;  %vm8745_vm12 = vcmp.eq.s32.totalorder %v22464_v30, %v19230_v52 }
 0xfab   :  { %9388 = vmatpush1.bf16.msra.mxu1 %v9222_v28 }
 0xfac   :  { %12163 = vmatprep.subr.msk.bf16.mxu1 %vm12162_vm0, %v22439_v55  ;;  %vm12116_vm0 = vmpackc.low %vm8672_vm2, %vm8670_vm1 }
 0xfad   :  { %12113 = vmatpush1.bf16.msk.msra.mxu0 %vm12112_vm8, %v22439_v55  ;;  %vm12118_vm8 = vmpackc.low %vm8669_vm13, %vm8667_vm9  ;;  %vm8742_vm9 = vcmp.eq.s32.totalorder %v22463_v33, %v19240_v34  ;;  %vm8744_vm13 = vcmp.eq.s32.totalorder %v22464_v30, %v19240_v34 }
 0xfae   :  { %12097 = vmatmul.mubr.msk.bf16.vlgmr.msra.gmra.mxu1 %vm22462_vm6, %v22446_v37  ;;  %12115 = vmatprep.subr.msk.bf16.mxu0 %vm12114_vm15, %v22439_v55  ;;  %vm8663_vm6 = vcmp.eq.s32.totalorder %v22421_v16, %v19230_v52  ;;  %vm8665_vm15 = vcmp.eq.s32.totalorder %v22420_v19, %v19230_v52  ;;  %vm12168_vm1 = vmpackc.low %vm8748_vm10, %vm8746_vm14  ;;  %vm8741_vm10 = vcmp.eq.s32.totalorder %v22466_v7, %v19230_v52  ;;  %v22498_v37 = vld [vmem:[#allocation400_spill] sm:$0xff] }
 0xfaf   :  { %12165 = vmatpush1.bf16.msk.msra.mxu1 %vm12164_vm3, %v22439_v55  ;;  %vm12170_vm2 = vmpackc.low %vm8745_vm12, %vm8743_vm11  ;;  %vm8664_vm11 = vcmp.eq.s32.totalorder %v22420_v19, %v19240_v34  ;;  %vm8659_vm12 = vcmp.eq.s32.totalorder %v22424_v32, %v19230_v52 }
 0xfb0   :  { %12167 = vmatprep.subr.msk.bf16.mxu1 %vm12166_vm7, %v22439_v55  ;;  %vm12120_vm3 = vmpackc.low %vm8668_vm4, %vm8666_vm5  ;;  %vm8739_vm7 = vcmp.eq.s32.totalorder %v22465_v26, %v19230_v52 }
 0xfb1   :  { %12117 = vmatpush1.bf16.msk.msra.mxu0 %vm12116_vm0, %v22439_v55  ;;  %vm12122_vm14 = vmpackc.low %vm8665_vm15, %vm8663_vm6  ;;  %vm8662_vm0 = vcmp.eq.s32.totalorder %v22421_v16, %v19240_v34  ;;  %vm8738_vm6 = vcmp.eq.s32.totalorder %v22465_v26, %v19240_v34  ;;  %vm8740_vm15 = vcmp.eq.s32.totalorder %v22466_v7, %v19240_v34 }
 0xfb2   :  { %12119 = vmatprep.subr.msk.bf16.mxu0 %vm12118_vm8, %v22439_v55  ;;  %vm8661_vm8 = vcmp.eq.s32.totalorder %v22422_v42, %v19230_v52  ;;  %vm12172_vm5 = vmpackc.low %vm8744_vm13, %vm8742_vm9  ;;  %vm8737_vm9 = vcmp.eq.s32.totalorder %v22468_v27, %v19230_v52 }
 0xfb3   :  { %12169 = vmatpush1.bf16.msk.msra.mxu1 %vm12168_vm1, %v22439_v55  ;;  %vm12174_vm4 = vmpackc.low %vm8741_vm10, %vm8739_vm7  ;;  %vm8660_vm7 = vcmp.eq.s32.totalorder %v22422_v42, %v19240_v34  ;;  %vm8719_vm10 = vcmp.eq.s32.totalorder %v22469_v48, %v19230_v52 }
 0xfb4   :  { %12171 = vmatprep.subr.msk.bf16.mxu1 %vm12170_vm2, %v22439_v55  ;;  %vm12124_vm1 = vmpackc.low %vm8664_vm11, %vm8662_vm0  ;;  %vm8735_vm2 = vcmp.eq.s32.totalorder %v22467_v24, %v19230_v52 }
 0xfb5   :  { %12121 = vmatpush1.bf16.msk.msra.mxu0 %vm12120_vm3, %v22439_v55  ;;  %vm12126_vm13 = vmpackc.low %vm8661_vm8, %vm8659_vm12  ;;  %vm8658_vm3 = vcmp.eq.s32.totalorder %v22424_v32, %v19240_v34  ;;  %vm8734_vm12 = vcmp.eq.s32.totalorder %v22467_v24, %v19240_v34  ;;  %vm8736_vm8 = vcmp.eq.s32.totalorder %v22468_v27, %v19240_v34 }
 0xfb6   :  { %12123 = vmatprep.subr.msk.bf16.mxu0 %vm12122_vm14, %v22439_v55  ;;  %vm8721_vm14 = vcmp.eq.s32.totalorder %v22470_v47, %v19230_v52  ;;  %vm12176_vm0 = vmpackc.low %vm8740_vm15, %vm8738_vm6  ;;  %vm8733_vm6 = vcmp.eq.s32.totalorder %v22472_v58, %v19230_v52 }
 0xfb7   :  { %12173 = vmatpush1.bf16.msk.msra.mxu1 %vm12172_vm5, %v22439_v55  ;;  %vm12178_vm11 = vmpackc.low %vm8737_vm9, %vm8735_vm2  ;;  %vm8720_vm2 = vcmp.eq.s32.totalorder %v22470_v47, %v19240_v34  ;;  %vm8715_vm9 = vcmp.eq.s32.totalorder %v22473_v51, %v19230_v52 }
 0xfb8   :  { %12175 = vmatprep.subr.msk.bf16.mxu1 %vm12174_vm4, %v22439_v55  ;;  %vm12128_vm5 = vmpackc.low %vm8660_vm7, %vm8658_vm3  ;;  %vm8731_vm4 = vcmp.eq.s32.totalorder %v22471_v4, %v19230_v52 }
 0xfb9   :  { %12125 = vmatpush1.bf16.msk.msra.mxu0 %vm12124_vm1, %v22439_v55  ;;  %vm12130_vm15 = vmpackc.low %vm8721_vm14, %vm8719_vm10  ;;  %vm8718_vm1 = vcmp.eq.s32.totalorder %v22469_v48, %v19240_v34 }
 0xfba   :  { %12127 = vmatprep.subr.msk.bf16.mxu0 %vm12126_vm13, %v22439_v55  ;;  %vm8717_vm13 = vcmp.eq.s32.totalorder %v22474_v11, %v19230_v52  ;;  %vm12180_vm3 = vmpackc.low %vm8736_vm8, %vm8734_vm12  ;;  %vm8711_vm8 = vcmp.eq.s32.totalorder %v22475_v53, %v19230_v52  ;;  %vm8713_vm12 = vcmp.eq.s32.totalorder %v22476_v10, %v19230_v52 }
 0xfbb   :  { %12177 = vmatpush1.bf16.msk.msra.mxu1 %vm12176_vm0, %v22439_v55  ;;  %vm12182_vm7 = vmpackc.low %vm8733_vm6, %vm8731_vm4  ;;  %vm8714_vm0 = vcmp.eq.s32.totalorder %v22473_v51, %v19240_v34  ;;  %vm8710_vm6 = vcmp.eq.s32.totalorder %v22475_v53, %v19240_v34 }
 0xfbc   :  { %12179 = vmatprep.subr.msk.bf16.mxu1 %vm12178_vm11, %v22439_v55  ;;  %vm12132_vm10 = vmpackc.low %vm8720_vm2, %vm8718_vm1  ;;  %vm8716_vm11 = vcmp.eq.s32.totalorder %v22474_v11, %v19240_v34  ;;  %vm8707_vm1 = vcmp.eq.s32.totalorder %v22477_v43, %v19230_v52  ;;  %vm8709_vm2 = vcmp.eq.s32.totalorder %v22478_v23, %v19230_v52 }
 0xfbd   :  { %12129 = vmatpush1.bf16.msk.msra.mxu0 %vm12128_vm5, %v22439_v55  ;;  %vm12134_vm14 = vmpackc.low %vm8717_vm13, %vm8715_vm9 }
 0xfbe   :  { %12131 = vmatprep.subr.msk.bf16.mxu0 %vm12130_vm15, %v22439_v55  ;;  %vm12136_vm5 = vmpackc.low %vm8716_vm11, %vm8714_vm0  ;;  %vm8712_vm15 = vcmp.eq.s32.totalorder %v22476_v10, %v19240_v34 }
 0xfbf   :  { %12181 = vmatpush1.bf16.msk.msra.mxu1 %vm12180_vm3, %v22439_v55  ;;  %vm12138_vm4 = vmpackc.low %vm8713_vm12, %vm8711_vm8  ;;  %vm8706_vm3 = vcmp.eq.s32.totalorder %v22477_v43, %v19240_v34  ;;  %vm8702_vm8 = vcmp.eq.s32.totalorder %v22479_v29, %v19240_v34  ;;  %vm8704_vm12 = vcmp.eq.s32.totalorder %v22480_v45, %v19240_v34 }
 0xfc0   :  { %12183 = vmatprep.subr.msk.bf16.mxu1 %vm12182_vm7, %v22439_v55  ;;  %vm12140_vm9 = vmpackc.low %vm8712_vm15, %vm8710_vm6  ;;  %vm8708_vm7 = vcmp.eq.s32.totalorder %v22478_v23, %v19240_v34 }
 0xfc1   :  { %12133 = vmatpush2.bf16.msk.msra.mxu0 %vm12132_vm10, %v22439_v55  ;;  %vm12142_vm13 = vmpackc.low %vm8709_vm2, %vm8707_vm1  ;;  %vm8703_vm10 = vcmp.eq.s32.totalorder %v22479_v29, %v19230_v52  ;;  %vm8698_vm1 = vcmp.eq.s32.totalorder %v22481_v39, %v19240_v34  ;;  %vm8700_vm2 = vcmp.eq.s32.totalorder %v22482_v56, %v19240_v34 }
 0xfc2   :  { %12135 = vmatprep.subr.msk.bf16.mxu0 %vm12134_vm14, %v22439_v55  ;;  %vm8705_vm14 = vcmp.eq.s32.totalorder %v22480_v45, %v19230_v52  ;;  %vm12144_vm0 = vmpackc.low %vm8708_vm7, %vm8706_vm3 }
 0xfc3   :  { %vm12146_vm11 = vmpackc.low %vm8705_vm14, %vm8703_vm10  ;;  %vm8695_vm10 = vcmp.eq.s32.totalorder %v22483_v54, %v19230_v52  ;;  %vm8697_vm14 = vcmp.eq.s32.totalorder %v22484_v60, %v19230_v52 }
 0xfc4   :  { %vm12148_vm6 = vmpackc.low %vm8704_vm12, %vm8702_vm8  ;;  %vm8694_vm12 = vcmp.eq.s32.totalorder %v22483_v54, %v19240_v34 }
 0xfc5   :  { %12137 = vmatpush2.bf16.msk.msra.mxu0 %vm12136_vm5, %v22439_v55  ;;  %vm8699_vm5 = vcmp.eq.s32.totalorder %v22481_v39, %v19230_v52  ;;  %vm12152_vm3 = vmpackc.low %vm8700_vm2, %vm8698_vm1 }
 0xfc6   :  { %12139 = vmatprep.subr.msk.bf16.mxu0 %vm12138_vm4, %v22439_v55  ;;  %vm8701_vm4 = vcmp.eq.s32.totalorder %v22482_v56, %v19230_v52  ;;  %vm12154_vm8 = vmpackc.low %vm8697_vm14, %vm8695_vm10  ;;  %vm8690_vm14 = vcmp.eq.s32.totalorder %v22487_v25, %v19240_v34 }
 0xfc7   :  { %vm12150_vm15 = vmpackc.low %vm8701_vm4, %vm8699_vm5  ;;  %vm8696_vm5 = vcmp.eq.s32.totalorder %v22484_v60, %v19240_v34  ;;  %vm8726_vm4 = vcmp.eq.s32.totalorder %v22485_v61, %v19240_v34 }
 0xfc8   :  { %vm12156_vm1 = vmpackc.low %vm8696_vm5, %vm8694_vm12 }
 0xfc9   :  { %12141 = vmatpush2.bf16.msk.msra.mxu0 %vm12140_vm9, %v22439_v55  ;;  %vm8730_vm9 = vcmp.eq.s32.totalorder %v22471_v4, %v19240_v34 }
 0xfca   :  { %12143 = vmatprep.subr.msk.bf16.mxu0 %vm12142_vm13, %v22439_v55  ;;  %vm8732_vm13 = vcmp.eq.s32.totalorder %v22472_v58, %v19240_v34 }
 0xfcb   :  { %vm12184_vm7 = vmpackc.low %vm8732_vm13, %vm8730_vm9  ;;  %vm8691_vm9 = vcmp.eq.s32.totalorder %v22487_v25, %v19230_v52  ;;  %vm8693_vm13 = vcmp.eq.s32.totalorder %v22488_v6, %v19230_v52  ;;  %v19578_v25 = vadd.s32 32, %v19240_v34 }
 0xfcc   :  { %12185 = vmatpush1.bf16.msk.msra.mxu1 %vm12184_vm7, %v22439_v55  ;;  %vm8725_vm7 = vcmp.eq.s32.totalorder %v22490_v5, %v19230_v52  ;;  %vm12158_vm10 = vmpackc.low %vm8693_vm13, %vm8691_vm9  ;;  %vm8766_vm13 = vcmp.eq.s32.totalorder %v22491_v13, %v19240_v34 }
 0xfcd   :  { %12145 = vmatpush2.bf16.msk.msra.mxu0 %vm12144_vm0, %v22439_v55  ;;  %vm8727_vm0 = vcmp.eq.s32.totalorder %v22485_v61, %v19230_v52 }
 0xfce   :  { %12147 = vmatprep.subr.msk.bf16.mxu0 %vm12146_vm11, %v22439_v55  ;;  %vm8729_vm11 = vcmp.eq.s32.totalorder %v22486_v3, %v19230_v52 }
 0xfd1   :  { %12149 = vmatpush2.bf16.msk.msra.mxu0 %vm12148_vm6, %v22439_v55  ;;  %vm8728_vm6 = vcmp.eq.s32.totalorder %v22486_v3, %v19240_v34 }
 0xfd2   :  { %12151 = vmatprep.subr.msk.bf16.mxu0 %vm12150_vm15, %v22439_v55  ;;  %vm12186_vm15 = vmpackc.low %vm8729_vm11, %vm8727_vm0  ;;  %vm8692_vm0 = vcmp.eq.s32.totalorder %v22488_v6, %v19240_v34  ;;  %vm8722_vm11 = vcmp.eq.s32.totalorder %v22489_v31, %v19240_v34 }
 0xfd3   :  { %12187 = vmatprep.subr.msk.bf16.mxu1 %vm12186_vm15, %v22439_v55  ;;  %vm12188_vm2 = vmpackc.low %vm8728_vm6, %vm8726_vm4  ;;  %vm8767_vm6 = vcmp.eq.s32.totalorder %v22491_v13, %v19230_v52  ;;  %vm8769_vm15 = vcmp.eq.s32.totalorder %v22492_v63, %v19230_v52 }
 0xfd4   :  { %12189 = vmatpush1.bf16.msk.msra.mxu1 %vm12188_vm2, %v22439_v55  ;;  %vm12160_vm5 = vmpackc.low %vm8692_vm0, %vm8690_vm14  ;;  %vm9035_vm2 = vcmp.eq.s32.totalorder %v22455_v62, %v19522_v35  ;;  %vm8763_vm14 = vcmp.eq.s32.totalorder %v22493_v2, %v19230_v52  ;;  %vm8765_vm0 = vcmp.eq.s32.totalorder %v22494_v22, %v19230_v52 }
 0xfd5   :  { %12153 = vmatpush2.bf16.msk.msra.mxu0 %vm12152_vm3, %v22439_v55  ;;  %vm8723_vm3 = vcmp.eq.s32.totalorder %v22489_v31, %v19230_v52  ;;  %vm12194_vm9 = vmpackc.low %vm8769_vm15, %vm8767_vm6  ;;  %vm8761_vm6 = vcmp.eq.s32.totalorder %v22496_v57, %v19230_v52 }
 0xfd6   :  { %12155 = vmatprep.subr.msk.bf16.mxu0 %vm12154_vm8, %v22439_v55  ;;  %vm8724_vm8 = vcmp.eq.s32.totalorder %v22490_v5, %v19240_v34  ;;  %vm12190_vm12 = vmpackc.low %vm8725_vm7, %vm8723_vm3  ;;  %vm8768_vm3 = vcmp.eq.s32.totalorder %v22492_v63, %v19240_v34 }
 0xfd7   :  { %12191 = vmatprep.subr.msk.bf16.mxu1 %vm12190_vm12, %v22439_v55  ;;  %vm12192_vm4 = vmpackc.low %vm8724_vm8, %vm8722_vm11  ;;  %vm8762_vm8 = vcmp.eq.s32.totalorder %v22493_v2, %v19240_v34  ;;  %vm8764_vm12 = vcmp.eq.s32.totalorder %v22494_v22, %v19240_v34 }
 0xfd8   :  { %12193 = vmatpush1.bf16.msk.msra.mxu1 %vm12192_vm4, %v22439_v55  ;;  %vm12198_vm11 = vmpackc.low %vm8765_vm0, %vm8763_vm14  ;;  %vm8759_vm4 = vcmp.eq.s32.totalorder %v22495_v59, %v19230_v52  ;;  %vm8756_vm14 = vcmp.eq.s32.totalorder %v22498_v37, %v19240_v34 }
 0xfd9   :  { %12157 = vmatpush2.bf16.msk.msra.mxu0 %vm12156_vm1, %v22439_v55  ;;  %vm9033_vm1 = vcmp.eq.s32.totalorder %v22454_v21, %v19522_v35  ;;  %12195 = vmatprep.subr.msk.bf16.mxu1 %vm12194_vm9, %v22439_v55  ;;  %vm12202_vm15 = vmpackc.low %vm8761_vm6, %vm8759_vm4  ;;  %vm9034_vm4 = vcmp.eq.s32.totalorder %v22455_v62, %v19578_v25  ;;  %vm9029_vm6 = vcmp.eq.s32.totalorder %v22458_v40, %v19522_v35 }
 0xfda   :  { %12159 = vmatprep.subr.msk.bf16.mxu0 %vm12158_vm10, %v22439_v55  ;;  %vm12275_vm7 = vmpackc.low %vm9035_vm2, %vm9033_vm1  ;;  %vm8758_vm1 = vcmp.eq.s32.totalorder %v22495_v59, %v19240_v34  ;;  %vm8760_vm2 = vcmp.eq.s32.totalorder %v22496_v57, %v19240_v34 }
 0xfdb   :  { %vm12196_vm10 = vmpackc.low %vm8768_vm3, %vm8766_vm13  ;;  %vm8755_vm13 = vcmp.eq.s32.totalorder %v22497_v50, %v19230_v52  ;;  %vm8757_vm3 = vcmp.eq.s32.totalorder %v22498_v37, %v19230_v52 }
 0xfdc   :  { %12197 = vmatpush2.bf16.msk.msra.mxu1 %vm12196_vm10, %v22439_v55  ;;  %vm12204_vm9 = vmpackc.low %vm8760_vm2, %vm8758_vm1  ;;  %vm8754_vm10 = vcmp.eq.s32.totalorder %v22497_v50, %v19240_v34 }
 0xfdd   :  { %12161 = vmatpush2.bf16.msk.msra.mxu0 %vm12160_vm5, %v22439_v55  ;;  %12199 = vmatprep.subr.msk.bf16.mxu1 %vm12198_vm11, %v22439_v55  ;;  %vm12200_vm5 = vmpackc.low %vm8764_vm12, %vm8762_vm8  ;;  %vm8969_vm11 = vcmp.eq.s32.totalorder %v22430_v8, %v19522_v35  ;;  %vm8971_vm8 = vcmp.eq.s32.totalorder %v22431_v46, %v19522_v35 }
 0xfde   :  { %12276 = vmatprep.subr.msk.bf16.mxu0 %vm12275_vm7, %v22439_v55  ;;  %vm12206_vm7 = vmpackc.low %vm8757_vm3, %vm8755_vm13  ;;  %vm9030_vm13 = vcmp.eq.s32.totalorder %v22459_v36, %v19578_v25  ;;  %vm9025_vm3 = vcmp.eq.s32.totalorder %v22463_v33, %v19522_v35 }
 0xfdf   :  { %vm12208_vm0 = vmpackc.low %vm8756_vm14, %vm8754_vm10 }
 0xfe0   :  { %12201 = vmatpush2.bf16.msk.msra.mxu1 %vm12200_vm5, %v22439_v55  ;;  %vm12211_vm12 = vmpackc.low %vm8971_vm8, %vm8969_vm11  ;;  %vm9032_vm5 = vcmp.eq.s32.totalorder %v22454_v21, %v19578_v25  ;;  %vm9026_vm11 = vcmp.eq.s32.totalorder %v22464_v30, %v19578_v25  ;;  %vm9021_vm8 = vcmp.eq.s32.totalorder %v22465_v26, %v19522_v35 }
 0xfe1   :  { %12203 = vmatprep.subr.msk.bf16.mxu1 %vm12202_vm15, %v22439_v55  ;;  %vm9031_vm15 = vcmp.eq.s32.totalorder %v22459_v36, %v19522_v35  ;;  %vm12277_vm1 = vmpackc.low %vm9034_vm4, %vm9032_vm5 }
 0xfe2   :  { %vm12279_vm2 = vmpackc.low %vm9031_vm15, %vm9029_vm6  ;;  %vm9020_vm6 = vcmp.eq.s32.totalorder %v22465_v26, %v19578_v25  ;;  %vm9022_vm15 = vcmp.eq.s32.totalorder %v22466_v7, %v19578_v25 }
 0xfe4   :  { %12205 = vmatpush2.bf16.msk.msra.mxu1 %vm12204_vm9, %v22439_v55  ;;  %vm9028_vm9 = vcmp.eq.s32.totalorder %v22458_v40, %v19578_v25 }
 0xfe5   :  { %12207 = vmatprep.subr.msk.bf16.mxu1 %vm12206_vm7, %v22439_v55  ;;  %vm9027_vm7 = vcmp.eq.s32.totalorder %v22464_v30, %v19522_v35  ;;  %vm12281_vm10 = vmpackc.low %vm9030_vm13, %vm9028_vm9  ;;  %vm8968_vm9 = vcmp.eq.s32.totalorder %v22430_v8, %v19578_v25  ;;  %vm8970_vm13 = vcmp.eq.s32.totalorder %v22431_v46, %v19578_v25 }
 0xfe6   :  { %vm12283_vm14 = vmpackc.low %vm9027_vm7, %vm9025_vm3  ;;  %vm9016_vm7 = vcmp.eq.s32.totalorder %v22467_v24, %v19578_v25 }
 0xfe7   :  { %vm12289_vm3 = vmpackc.low %vm9022_vm15, %vm9020_vm6  ;;  %vm8964_vm6 = vcmp.eq.s32.totalorder %v22440_v38, %v19578_v25  ;;  %vm8966_vm15 = vcmp.eq.s32.totalorder %v22441_v15, %v19578_v25 }
 0xfe8   :  { %12209 = vmatpush2.bf16.msk.msra.mxu1 %vm12208_vm0, %v22439_v55  ;;  %vm9024_vm0 = vcmp.eq.s32.totalorder %v22463_v33, %v19578_v25 }
 0xfe9   :  { %12212 = vmatprep.subr.msk.bf16.mxu1 %vm12211_vm12, %v22439_v55  ;;  %vm9023_vm12 = vcmp.eq.s32.totalorder %v22466_v7, %v19522_v35  ;;  %vm12285_vm5 = vmpackc.low %vm9026_vm11, %vm9024_vm0  ;;  %vm8965_vm0 = vcmp.eq.s32.totalorder %v22440_v38, %v19522_v35  ;;  %vm8967_vm11 = vcmp.eq.s32.totalorder %v22441_v15, %v19522_v35  ;;  %v22508_v38 = vld [vmem:[#allocation365_spill] sm:$0xff]  ;;  %v22509_v15 = vld [vmem:[#allocation378_spill] sm:$0xff] }
 0xfea   :  { %vm12287_vm4 = vmpackc.low %vm9023_vm12, %vm9021_vm8  ;;  %vm9013_vm12 = vcmp.eq.s32.totalorder %v22471_v4, %v19522_v35 }
 0xfeb   :  { %vm19636_vm8 = vmpackc.low %vm8970_vm13, %vm8968_vm9  ;;  %vm9012_vm9 = vcmp.eq.s32.totalorder %v22471_v4, %v19578_v25  ;;  %vm9014_vm13 = vcmp.eq.s32.totalorder %v22472_v58, %v19578_v25  ;;  %v12951_v4 = vld [vmem:[%s20358_s7 + $0x8] sm:$0xff]  }
0x105e   :  { %v9276_v52 = vpop.f32.mrf.mxu1 }
0x105f   :  { %v9364_v28 = vpop.f32.mrf.mxu0 }
0x1060   :  { %v9278_v20 = vpop.f32.mrf.mxu1  ;;  %v9416_v43 = vmax.f32 %v9276_v52, %v9364_v28 }
0x1061   :  { %v9366_v1 = vpop.f32.mrf.mxu0 }
0x1062   :  { %v9280_v6 = vpop.f32.mrf.mxu1  ;;  %v9417_v45 = vmax.f32 %v9278_v20, %v9366_v1 }
0x1063   :  { %v9368_v60 = vpop.f32.mrf.mxu0 }
0x1064   :  { %v9282_v54 = vpop.f32.mrf.mxu1  ;;  %v9420_v56 = vmax.f32 %v9280_v6, %v9368_v60 }
0x1065   :  { %v9370_v39 = vpop.f32.mrf.mxu0 }
0x1066   :  { %v9421_v29 = vmax.f32 %v9282_v54, %v9370_v39  ;;  %v9319_v23 = vpop.f32.mrf.mxu1  ;;  %v19590_v6 = vpack.c.bf16 %v9420_v56, %v9416_v43  ;;  %v12957_v43 = vld [vmem:[%s20358_s7 + $0x48] sm:$0xff]  }
0x1068   :  { %v19588_v34 = vpack.c.bf16 %v9421_v29, %v9417_v45  ;;  %v9321_v60 = vpop.f32.mrf.mxu1 }
0x106a   :  { %9463 = vmatprep.mubr.bf16.mxu0 %v19588_v34  ;;  %v9323_v20 = vpop.f32.mrf.mxu1 }
0x106b   :  { %9464 = vmatmul.mubr.bf16.vlgmr.msra.gmra.mxu0 %v19590_v6 }
0x106c   :  { %12278 = vmatpush1.bf16.msk.msra.mxu0 %vm12277_vm1, %v22439_v55  ;;  %v9325_v1 = vpop.f32.mrf.mxu1  ;;  %vm9017_vm1 = vcmp.eq.s32.totalorder %v22467_v24, %v19522_v35 }
0x106d   :  { %12280 = vmatprep.subr.msk.bf16.mxu0 %vm12279_vm2, %v22439_v55  ;;  %vm9019_vm2 = vcmp.eq.s32.totalorder %v22468_v27, %v19522_v35 }
0x106e   :  { %v9407_v21 = vpop.f32.mrf.mxu1 }
0x106f   :  { %v9418_v7 = vmax.f32 %v9319_v23, %v9407_v21  ;;  %v12958_v23 = vld [vmem:[%s20358_s7 + $0x40] sm:$0xff]  }
0x1070   :  { %12282 = vmatpush1.bf16.msk.msra.mxu0 %vm12281_vm10, %v22439_v55  ;;  %v9409_v62 = vpop.f32.mrf.mxu1  ;;  %vm9018_vm10 = vcmp.eq.s32.totalorder %v22468_v27, %v19578_v25 }
0x1071   :  { %12284 = vmatprep.subr.msk.bf16.mxu0 %vm12283_vm14, %v22439_v55  ;;  %v9419_v30 = vmax.f32 %v9321_v60, %v9409_v62  ;;  %vm12291_vm14 = vmpackc.low %vm9019_vm2, %vm9017_vm1  ;;  %vm22503_vm1 = vcmask 523264  }
0x1072   :  { %v9411_v40 = vpop.f32.mrf.mxu1  ;;  %vm12215_vm2 = vmpackc.low %vm8967_vm11, %vm8965_vm0  ;;  %vm9009_vm0 = vcmp.eq.s32.totalorder %v22485_v61, %v19522_v35  ;;  %vm9011_vm11 = vcmp.eq.s32.totalorder %v22486_v3, %v19522_v35 }
0x1073   :  { %v9422_v36 = vmax.f32 %v9323_v20, %v9411_v40 }
0x1074   :  { %12286 = vmatpush1.bf16.msk.msra.mxu0 %vm12285_vm5, %v22439_v55  ;;  %v9413_v33 = vpop.f32.mrf.mxu1  ;;  %vm9015_vm5 = vcmp.eq.s32.totalorder %v22472_v58, %v19522_v35  ;;  %v12952_v58 = vld [vmem:[%s20358_s7] sm:$0xff]  }
0x1075   :  { %v9423_v26 = vmax.f32 %v9325_v1, %v9413_v33  ;;  %12288 = vmatprep.subr.msk.bf16.mxu0 %vm12287_vm4, %v22439_v55  ;;  %v19644_v24 = vpack.c.bf16 %v9422_v36, %v9418_v7  ;;  %vm19647_vm4 = vmpackc.low %vm9018_vm10, %vm9016_vm7  ;;  %vm8961_vm10 = vcmp.eq.s32.totalorder %v22448_v18, %v19522_v35  ;;  %v22516_v33 = vmov 0.0  }
0x1076   :  { %vm12295_vm7 = vmpackc.low %vm9015_vm5, %vm9013_vm12  ;;  %vm8960_vm5 = vcmp.eq.s32.totalorder %v22448_v18, %v19578_v25  ;;  %v22510_v18 = vld [vmem:[#allocation374_spill] sm:$0xff] }
0x1077   :  { %v9427_v8 = vpack.c.bf16 %v9423_v26, %v9419_v30  ;;  %vm12297_vm12 = vmpackc.low %vm9014_vm13, %vm9012_vm9  ;;  %vm8959_vm9 = vcmp.eq.s32.totalorder %v22452_v9, %v19522_v35 }
0x1078   :  { %12290 = vmatpush1.bf16.msk.msra.mxu0 %vm12289_vm3, %v22439_v55  ;;  %vm22504_vm3 = vmmov %vm22503_vm1 }
0x1079   :  { %12210 = vmatprep.mubr.msk.bf16.mxu1 %vm22503_vm1, %v9427_v8  ;;  %12292 = vmatprep.subr.msk.bf16.mxu0 %vm12291_vm14, %v22439_v55  ;;  %vm8963_vm1 = vcmp.eq.s32.totalorder %v22449_v12, %v19522_v35  ;;  %vm12217_vm14 = vmpackc.low %vm8966_vm15, %vm8964_vm6  ;;  %vm9008_vm15 = vcmp.eq.s32.totalorder %v22485_v61, %v19578_v25 }
0x107a   :  { %12323 = vmatprep.mubr.msk.bf16.mxu0 %vm22504_vm3, %v9427_v8  ;;  %9507 = vmatmul.mubr.bf16.vlgmr.msra.gmra.mxu1 %v19644_v24  ;;  %vm12219_vm6 = vmpackc.low %vm8963_vm1, %vm8961_vm10  ;;  %vm9010_vm3 = vcmp.eq.s32.totalorder %v22486_v3, %v19578_v25  ;;  %vm9007_vm10 = vcmp.eq.s32.totalorder %v22490_v5, %v19522_v35 }
0x107b   :  { %12214 = vmatpush1.bf16.msk.msra.mxu1 %vm19636_vm8, %v22439_v55  ;;  %9549 = vmatprep.mubr.bf16.mxu1 %v19588_v34  ;;  %vm8962_vm8 = vcmp.eq.s32.totalorder %v22449_v12, %v19578_v25  ;;  %vm12301_vm1 = vmpackc.low %vm9010_vm3, %vm9008_vm15  ;;  %vm8955_vm15 = vcmp.eq.s32.totalorder %v22457_v17, %v19522_v35  ;;  %v22511_v12 = vld [vmem:[#allocation389_spill] sm:$0xff] }
0x107c   :  { %12294 = vmatpush1.bf16.msk.msra.mxu0 %vm19647_vm4, %v22439_v55  ;;  %12216 = vmatprep.subr.msk.bf16.mxu1 %vm12215_vm2, %v22439_v55  ;;  %vm12299_vm4 = vmpackc.low %vm9011_vm11, %vm9009_vm0  ;;  %vm8957_vm2 = vcmp.eq.s32.totalorder %v22451_v49, %v19522_v35  ;;  %vm8956_vm0 = vcmp.eq.s32.totalorder %v22451_v49, %v19578_v25  ;;  %vm8958_vm11 = vcmp.eq.s32.totalorder %v22452_v9, %v19578_v25  ;;  %v22512_v49 = vld [vmem:[#allocation381_spill] sm:$0xff]  ;;  %v22513_v9 = vld [vmem:[#allocation396_spill] sm:$0xff] }
0x107d   :  { %12296 = vmatprep.subr.msk.bf16.mxu0 %vm12295_vm7, %v22439_v55  ;;  %vm12221_vm13 = vmpackc.low %vm8962_vm8, %vm8960_vm5  ;;  %vm9005_vm7 = vcmp.eq.s32.totalorder %v22489_v31, %v19522_v35  ;;  %vm9004_vm5 = vcmp.eq.s32.totalorder %v22489_v31, %v19578_v25  ;;  %vm9006_vm8 = vcmp.eq.s32.totalorder %v22490_v5, %v19578_v25 }
0x107e   :  { %vm12225_vm3 = vmpackc.low %vm8958_vm11, %vm8956_vm0  ;;  %vm9048_vm0 = vcmp.eq.s32.totalorder %v22491_v13, %v19578_v25  ;;  %vm9050_vm11 = vcmp.eq.s32.totalorder %v22492_v63, %v19578_v25 }
0x107f   :  { %12218 = vmatpush1.bf16.msk.msra.mxu1 %vm12217_vm14, %v22439_v55  ;;  %vm12223_vm14 = vmpackc.low %vm8959_vm9, %vm8957_vm2  ;;  %vm9051_vm2 = vcmp.eq.s32.totalorder %v22492_v63, %v19522_v35 }
0x1080   :  { %12298 = vmatpush1.bf16.msk.msra.mxu0 %vm12297_vm12, %v22439_v55  ;;  %12220 = vmatprep.subr.msk.bf16.mxu1 %vm12219_vm6, %v22439_v55  ;;  %vm12303_vm12 = vmpackc.low %vm9007_vm10, %vm9005_vm7  ;;  %vm8953_vm6 = vcmp.eq.s32.totalorder %v22456_v41, %v19522_v35  ;;  %vm8952_vm7 = vcmp.eq.s32.totalorder %v22456_v41, %v19578_v25  ;;  %vm8954_vm10 = vcmp.eq.s32.totalorder %v22457_v17, %v19578_v25  ;;  %v22514_v41 = vld [vmem:[#allocation393_spill] sm:$0xff]  ;;  %v12945_v17 = vld [vmem:[%s20358_s7 + $0x38] sm:$0xff]  }
0x1081   :  { %12300 = vmatprep.subr.msk.bf16.mxu0 %vm12299_vm4, %v22439_v55  ;;  %vm9049_vm4 = vcmp.eq.s32.totalorder %v22491_v13, %v19522_v35  ;;  %vm12305_vm9 = vmpackc.low %vm9006_vm8, %vm9004_vm5  ;;  %vm8951_vm5 = vcmp.eq.s32.totalorder %v22461_v44, %v19522_v35 }
0x1082   :  { %vm12229_vm8 = vmpackc.low %vm8954_vm10, %vm8952_vm7  ;;  %vm9044_vm7 = vcmp.eq.s32.totalorder %v22493_v2, %v19578_v25  ;;  %vm9046_vm10 = vcmp.eq.s32.totalorder %v22494_v22, %v19578_v25 }
0x1083   :  { %12222 = vmatpush1.bf16.msk.msra.mxu1 %vm12221_vm13, %v22439_v55  ;;  %vm12227_vm13 = vmpackc.low %vm8955_vm15, %vm8953_vm6  ;;  %vm9047_vm6 = vcmp.eq.s32.totalorder %v22494_v22, %v19522_v35 }
0x1084   :  { %12302 = vmatpush1.bf16.msk.msra.mxu0 %vm12301_vm1, %v22439_v55  ;;  %12224 = vmatprep.subr.msk.bf16.mxu1 %vm12223_vm14, %v22439_v55  ;;  %vm12307_vm1 = vmpackc.low %vm9051_vm2, %vm9049_vm4  ;;  %vm8949_vm14 = vcmp.eq.s32.totalorder %v22460_v0, %v19522_v35  ;;  %vm8948_vm4 = vcmp.eq.s32.totalorder %v22460_v0, %v19578_v25  ;;  %vm8950_vm2 = vcmp.eq.s32.totalorder %v22461_v44, %v19578_v25  ;;  %v12946_v0 = vld [vmem:[%s20358_s7 + $0x30] sm:$0xff]   ;;  %v12948_v44 = vld [vmem:[%s20358_s7 + $0x20] sm:$0xff]  }
0x1085   :  { %12304 = vmatprep.subr.msk.bf16.mxu0 %vm12303_vm12, %v22439_v55  ;;  %vm9045_vm12 = vcmp.eq.s32.totalorder %v22493_v2, %v19522_v35  ;;  %vm12309_vm15 = vmpackc.low %vm9050_vm11, %vm9048_vm0  ;;  %vm8947_vm0 = vcmp.eq.s32.totalorder %v22420_v19, %v19522_v35  ;;  %v19934_v2 = vmul.u32 7, %v22424_v32 }
0x1086   :  { %vm12233_vm11 = vmpackc.low %vm8950_vm2, %vm8948_vm4  ;;  %vm9040_vm4 = vcmp.eq.s32.totalorder %v22495_v59, %v19578_v25  ;;  %vm9042_vm2 = vcmp.eq.s32.totalorder %v22496_v57, %v19578_v25 }
0x1087   :  { %12226 = vmatpush1.bf16.msk.msra.mxu1 %vm12225_vm3, %v22439_v55  ;;  %vm12231_vm3 = vmpackc.low %vm8951_vm5, %vm8949_vm14  ;;  %vm9043_vm14 = vcmp.eq.s32.totalorder %v22496_v57, %v19522_v35  ;;  %v9831_v7 = vadd.s32 1, %v19934_v2 }
0x1088   :  { %12306 = vmatpush1.bf16.msk.msra.mxu0 %vm12305_vm9, %v22439_v55  ;;  %12228 = vmatprep.subr.msk.bf16.mxu1 %vm12227_vm13, %v22439_v55  ;;  %vm12311_vm9 = vmpackc.low %vm9047_vm6, %vm9045_vm12  ;;  %vm8945_vm13 = vcmp.eq.s32.totalorder %v22421_v16, %v19522_v35  ;;  %vm8944_vm12 = vcmp.eq.s32.totalorder %v22421_v16, %v19578_v25  ;;  %vm8946_vm6 = vcmp.eq.s32.totalorder %v22420_v19, %v19578_v25  ;;  %v22505_v19 = vld [vmem:[#allocation357_spill] sm:$0xff] }
0x1089   :  { %12308 = vmatprep.subr.msk.bf16.mxu0 %vm12307_vm1, %v22439_v55  ;;  %vm9041_vm1 = vcmp.eq.s32.totalorder %v22495_v59, %v19522_v35  ;;  %vm12313_vm5 = vmpackc.low %vm9046_vm10, %vm9044_vm7  ;;  %vm8943_vm7 = vcmp.eq.s32.totalorder %v22422_v42, %v19522_v35  ;;  %v22506_v16 = vld [vmem:[#allocation349_spill] sm:$0xff] }
0x108a   :  { %vm12237_vm10 = vmpackc.low %vm8946_vm6, %vm8944_vm12  ;;  %vm9036_vm12 = vcmp.eq.s32.totalorder %v22497_v50, %v19578_v25  ;;  %vm9038_vm6 = vcmp.eq.s32.totalorder %v22498_v37, %v19578_v25 }
0x108b   :  { %12230 = vmatpush1.bf16.msk.msra.mxu1 %vm12229_vm8, %v22439_v55  ;;  %vm12235_vm8 = vmpackc.low %vm8947_vm0, %vm8945_vm13  ;;  %vm9039_vm13 = vcmp.eq.s32.totalorder %v22498_v37, %v19522_v35 }
0x108c   :  { %12310 = vmatpush2.bf16.msk.msra.mxu0 %vm12309_vm15, %v22439_v55  ;;  %12232 = vmatprep.subr.msk.bf16.mxu1 %vm12231_vm3, %v22439_v55  ;;  %vm12315_vm15 = vmpackc.low %vm9043_vm14, %vm9041_vm1  ;;  %vm8941_vm3 = vcmp.eq.s32.totalorder %v22424_v32, %v19522_v35  ;;  %vm8940_vm1 = vcmp.eq.s32.totalorder %v22424_v32, %v19578_v25  ;;  %vm8942_vm14 = vcmp.eq.s32.totalorder %v22422_v42, %v19578_v25  ;;  %v22507_v42 = vld [vmem:[#allocation368_spill] sm:$0xff] }
0x108d   :  { %12312 = vmatprep.subr.msk.bf16.mxu0 %vm12311_vm9, %v22439_v55  ;;  %vm9037_vm9 = vcmp.eq.s32.totalorder %v22497_v50, %v19522_v35  ;;  %vm12317_vm0 = vmpackc.low %vm9042_vm2, %vm9040_vm4  ;;  %vm9003_vm4 = vcmp.eq.s32.totalorder %v22470_v47, %v19522_v35 }
0x108e   :  { %vm12241_vm2 = vmpackc.low %vm8942_vm14, %vm8940_vm1  ;;  %vm8996_vm14 = vcmp.eq.s32.totalorder %v22473_v51, %v19578_v25 }
0x108f   :  { %12234 = vmatpush1.bf16.msk.msra.mxu1 %vm12233_vm11, %v22439_v55  ;;  %vm12239_vm11 = vmpackc.low %vm8943_vm7, %vm8941_vm3  ;;  %vm9000_vm7 = vcmp.eq.s32.totalorder %v22469_v48, %v19578_v25 }
0x1090   :  { %12314 = vmatpush2.bf16.msk.msra.mxu0 %vm12313_vm5, %v22439_v55  ;;  %12236 = vmatprep.subr.msk.bf16.mxu1 %vm12235_vm8, %v22439_v55  ;;  %vm12319_vm5 = vmpackc.low %vm9039_vm13, %vm9037_vm9  ;;  %vm9001_vm8 = vcmp.eq.s32.totalorder %v22469_v48, %v19522_v35  ;;  %vm9002_vm9 = vcmp.eq.s32.totalorder %v22470_v47, %v19578_v25  ;;  %vm8997_vm13 = vcmp.eq.s32.totalorder %v22473_v51, %v19522_v35  ;;  %v12949_v48 = vld [vmem:[%s20358_s7 + $0x18] sm:$0xff]   ;;  %v12950_v47 = vld [vmem:[%s20358_s7 + $0x10] sm:$0xff]  }
0x1091   :  { %12316 = vmatprep.subr.msk.bf16.mxu0 %vm12315_vm15, %v22439_v55  ;;  %vm12321_vm15 = vmpackc.low %vm9038_vm6, %vm9036_vm12  ;;  %vm8993_vm12 = vcmp.eq.s32.totalorder %v22475_v53, %v19522_v35  ;;  %vm8995_vm6 = vcmp.eq.s32.totalorder %v22476_v10, %v19522_v35  ;;  %v12953_v51 = vld [vmem:[%s20358_s7 + $0x68] sm:$0xff]  }
0x1092   :  { %vm12243_vm3 = vmpackc.low %vm9003_vm4, %vm9001_vm8  ;;  %vm8992_vm4 = vcmp.eq.s32.totalorder %v22475_v53, %v19578_v25  ;;  %v12955_v53 = vld [vmem:[%s20358_s7 + $0x58] sm:$0xff]  }
0x1093   :  { %12238 = vmatpush1.bf16.msk.msra.mxu1 %vm12237_vm10, %v22439_v55  ;;  %vm8999_vm10 = vcmp.eq.s32.totalorder %v22474_v11, %v19522_v35  ;;  %vm12251_vm8 = vmpackc.low %vm8995_vm6, %vm8993_vm12  ;;  %vm8984_vm12 = vcmp.eq.s32.totalorder %v22507_v42, %v19578_v25  ;;  %vm8986_vm6 = vcmp.eq.s32.totalorder %v22508_v38, %v19578_v25 }
0x1094   :  { %12318 = vmatpush2.bf16.msk.msra.mxu0 %vm12317_vm0, %v22439_v55  ;;  %12240 = vmatprep.subr.msk.bf16.mxu1 %vm12239_vm11, %v22439_v55  ;;  %vm12245_vm0 = vmpackc.low %vm9002_vm9, %vm9000_vm7  ;;  %vm8998_vm11 = vcmp.eq.s32.totalorder %v22474_v11, %v19578_v25  ;;  %v12954_v11 = vld [vmem:[%s20358_s7 + $0x60] sm:$0xff]  }
0x1095   :  { %12320 = vmatprep.subr.msk.bf16.mxu0 %vm12319_vm5, %v22439_v55  ;;  %vm12247_vm1 = vmpackc.low %vm8999_vm10, %vm8997_vm13  ;;  %vm8988_vm13 = vcmp.eq.s32.totalorder %v22505_v19, %v19578_v25  ;;  %vm8990_vm10 = vcmp.eq.s32.totalorder %v22506_v16, %v19578_v25 }
0x1096   :  { %vm12249_vm5 = vmpackc.low %vm8998_vm11, %vm8996_vm14 }
0x1097   :  { %12242 = vmatpush1.bf16.msk.msra.mxu1 %vm12241_vm2, %v22439_v55  ;;  %vm8994_vm2 = vcmp.eq.s32.totalorder %v22476_v10, %v19578_v25  ;;  %vm12257_vm14 = vmpackc.low %vm8990_vm10, %vm8988_vm13  ;;  %v12956_v10 = vld [vmem:[%s20358_s7 + $0x50] sm:$0xff]  }
0x1098   :  { %12322 = vmatpush2.bf16.msk.msra.mxu0 %vm12321_vm15, %v22439_v55  ;;  %12244 = vmatprep.subr.msk.bf16.mxu1 %vm12243_vm3, %v22439_v55  ;;  %vm8989_vm15 = vcmp.eq.s32.totalorder %v22505_v19, %v19522_v35  ;;  %vm8991_vm3 = vcmp.eq.s32.totalorder %v22506_v16, %v19522_v35  ;;  %vm12253_vm7 = vmpackc.low %vm8994_vm2, %vm8992_vm4  ;;  %v12959_v19 = vld [vmem:[%s20358_s7 + $0xa8] sm:$0xff]   ;;  %v12960_v16 = vld [vmem:[%s20358_s7 + $0xa0] sm:$0xff]  }
0x1099   :  { %vm12255_vm9 = vmpackc.low %vm8991_vm3, %vm8989_vm15  ;;  %vm8980_vm15 = vcmp.eq.s32.totalorder %v22509_v15, %v19578_v25  ;;  %vm8982_vm3 = vcmp.eq.s32.totalorder %v22510_v18, %v19578_v25 }
0x109a   :  { %vm12261_vm4 = vmpackc.low %vm8986_vm6, %vm8984_vm12 }
0x109b   :  { %9593 = vmatmul.mubr.bf16.vlgmr.msra.gmra.mxu0 %v19644_v24  ;;  %12246 = vmatpush2.bf16.msk.msra.mxu1 %vm12245_vm0, %v22439_v55  ;;  %vm8985_vm0 = vcmp.eq.s32.totalorder %v22507_v42, %v19522_v35  ;;  %vm12265_vm13 = vmpackc.low %vm8982_vm3, %vm8980_vm15  ;;  %vm9625_vm15 = vcmask 1046528   ;;  %vm9621_vm3 = vcmask 113664   ;;  %v12961_v42 = vld [vmem:[%s20358_s7 + $0x98] sm:$0xff]  }
0x109c   :  { %12248 = vmatprep.subr.msk.bf16.mxu1 %vm12247_vm1, %v22439_v55  ;;  %9664 = vmatprep.mubr.bf16.mxu0 %v22417_v14  ;;  %vm8987_vm1 = vcmp.eq.s32.totalorder %v22508_v38, %v19522_v35  ;;  %v12962_v38 = vld [vmem:[%s20358_s7 + $0x90] sm:$0xff]  }
0x109d   :  { %vm12259_vm11 = vmpackc.low %vm8987_vm1, %vm8985_vm0  ;;  %vm8976_vm0 = vcmp.eq.s32.totalorder %v22511_v12, %v19578_v25  ;;  %vm8978_vm1 = vcmp.eq.s32.totalorder %v22512_v49, %v19578_v25 }
0x109e   :  { %vm12269_vm12 = vmpackc.low %vm8978_vm1, %vm8976_vm0 }
0x109f   :  { %12250 = vmatpush2.bf16.msk.msra.mxu1 %vm12249_vm5, %v22439_v55  ;;  %vm8981_vm5 = vcmp.eq.s32.totalorder %v22509_v15, %v19522_v35  ;;  %v12963_v15 = vld [vmem:[%s20358_s7 + $0x88] sm:$0xff]  }
0x10a0   :  { %12252 = vmatprep.subr.msk.bf16.mxu1 %vm12251_vm8, %v22439_v55  ;;  %vm8983_vm8 = vcmp.eq.s32.totalorder %v22510_v18, %v19522_v35  ;;  %v12964_v18 = vld [vmem:[%s20358_s7 + $0x80] sm:$0xff]  }
0x10a1   :  { %vm12263_vm2 = vmpackc.low %vm8983_vm8, %vm8981_vm5  ;;  %vm8972_vm5 = vcmp.eq.s32.totalorder %v22513_v9, %v19578_v25  ;;  %vm8974_vm8 = vcmp.eq.s32.totalorder %v22514_v41, %v19578_v25 }
0x10a3   :  { %12254 = vmatpush2.bf16.msk.msra.mxu1 %vm12253_vm7, %v22439_v55  ;;  %vm8977_vm7 = vcmp.eq.s32.totalorder %v22511_v12, %v19522_v35  ;;  %v12965_v12 = vld [vmem:[%s20358_s7 + $0x78] sm:$0xff]  }
0x10a4   :  { %12256 = vmatprep.subr.msk.bf16.mxu1 %vm12255_vm9, %v22439_v55  ;;  %vm8979_vm9 = vcmp.eq.s32.totalorder %v22512_v49, %v19522_v35  ;;  %v12966_v49 = vld [vmem:[%s20358_s7 + $0x70] sm:$0xff]  }
0x10a5   :  { %vm12267_vm10 = vmpackc.low %vm8979_vm9, %vm8977_vm7 }
0x10a7   :  { %12258 = vmatpush2.bf16.msk.msra.mxu1 %vm12257_vm14, %v22439_v55  ;;  %vm8973_vm14 = vcmp.eq.s32.totalorder %v22513_v9, %v19522_v35  ;;  %v12967_v9 = vld [vmem:[%s20358_s7 + $0xd8] sm:$0xff]  }
0x10a8   :  { %12260 = vmatprep.subr.msk.bf16.mxu1 %vm12259_vm11, %v22439_v55  ;;  %vm8975_vm11 = vcmp.eq.s32.totalorder %v22514_v41, %v19522_v35  ;;  %v12968_v41 = vld [vmem:[%s20358_s7 + $0xd0] sm:$0xff]  }
0x10a9   :  { %vm12271_vm6 = vmpackc.low %vm8975_vm11, %vm8973_vm14 }
0x10ab   :  { %12262 = vmatpush2.bf16.msk.msra.mxu1 %vm12261_vm4, %v22439_v55  ;;  %vm12273_vm4 = vmpackc.low %vm8974_vm8, %vm8972_vm5 }
0x10ac   :  { %12264 = vmatprep.subr.msk.bf16.mxu1 %vm12263_vm2, %v22439_v55 }
0x10af   :  { %12266 = vmatpush2.bf16.msk.msra.mxu1 %vm12265_vm13, %v22439_v55  ;;  %vm22517_vm13 = vcmask 785408  }
0x10b0   :  { %12268 = vmatprep.subr.msk.bf16.mxu1 %vm12267_vm10, %v22439_v55  ;;  %vm22518_vm0 = vmmov %vm22517_vm13 }
0x10b1   :  { %vm22519_vm14 = vmmov %vm22518_vm0 }
0x10b2   :  { %vm22521_vm5 = vmmov %vm22518_vm0 }
0x10b3   :  { %12270 = vmatpush2.bf16.msk.msra.mxu1 %vm12269_vm12, %v22439_v55  ;;  %vm22520_vm12 = vmmov %vm22518_vm0 }
0x10b4   :  { %12272 = vmatprep.subr.msk.bf16.mxu1 %vm12271_vm6, %v22439_v55  ;;  %vm22522_vm8 = vmmov %vm22518_vm0 }
0x10b7   :  { %12274 = vmatpush2.bf16.msk.msra.mxu1 %vm12273_vm4, %v22439_v55  ;;  %v12947_v55 = vld [vmem:[%s20358_s7 + $0x28] sm:$0xff]   ;;  %vm22523_vm4 = vmmov %vm22518_vm0 }
0x10b8   :  { %9790 = vmatprep.subr.bf16.mxu1 %v22417_v14 }
0x10ba   :  { %9550 = vmatmul.mubr.bf16.vlgmr.msra.gmra.mxu1 %v19590_v6  ;;  %v22515_v6 = vld [vmem:[#allocation290_spill] sm:$0xff] }
0x10bb   :  { %9791 = vmatpush1.bf16.msra.mxu1 %v12945_v17  ;;  %vm9618_vm2 = vcmp.eq.s32.totalorder %v22515_v6, %v19934_v2  ;;  %vm9832_vm7 = vcmp.eq.s32.totalorder %v22515_v6, %v9831_v7  ;;  %v12969_v17 = vld [vmem:[%s20358_s7 + $0xc8] sm:$0xff]  }
0x10bc   :  { %9792 = vmatprep.subr.bf16.mxu1 %v22417_v14  ;;  %v9619_v30 = vsel %vm9618_vm2, 1.0, %v22516_v33  ;;  %v9833_v24 = vsel %vm9832_vm7, 1.0, %v22516_v33  ;;  %v12995_v7 = vld [vmem:[%s20358_s7 + $0x128] sm:$0xff]   ;;  %vm11074_vm2 = vcmask 123904  }
0x10bd   :  { %v9620_v46 = vpack.c.bf16 %v9619_v30, %v9619_v30  ;;  %v9834_v27 = vpack.c.bf16 %v9833_v24, %v9833_v24  ;;  %v12994_v30 = vld [vmem:[%s20358_s7 + $0x1b0] sm:$0xff]   ;;  %v12997_v24 = vld [vmem:[%s20358_s7 + $0x120] sm:$0xff]  }
0x10bf   :  { %9793 = vmatpush1.bf16.msra.mxu1 %v12946_v0  ;;  %v12970_v0 = vld [vmem:[%s20358_s7 + $0xc0] sm:$0xff]  }
0x10c0   :  { %9794 = vmatprep.subr.bf16.mxu1 %v22417_v14 }
0x10c3   :  { %9795 = vmatpush1.bf16.msra.mxu1 %v12947_v55  ;;  %v12971_v55 = vld [vmem:[%s20358_s7 + $0xb8] sm:$0xff]  }
0x10c4   :  { %9796 = vmatprep.subr.bf16.mxu1 %v22417_v14 }
0x10c7   :  { %9797 = vmatpush1.bf16.msra.mxu1 %v12948_v44  ;;  %v12972_v44 = vld [vmem:[%s20358_s7 + $0xb0] sm:$0xff]  }
0x10c8   :  { %9798 = vmatprep.subr.bf16.mxu1 %v22417_v14 }
0x10cb   :  { %9799 = vmatpush1.bf16.msra.mxu1 %v12949_v48 }
0x10cc   :  { %9800 = vmatprep.subr.bf16.mxu1 %v22417_v14 }
0x10cf   :  { %9801 = vmatpush1.bf16.msra.mxu1 %v12950_v47  ;;  %v10038_v47 = vadd.s32 2, %v19934_v2 }
0x10d0   :  { %9802 = vmatprep.subr.bf16.mxu1 %v22417_v14 }
0x10d1   :  { %vm10039_vm9 = vcmp.eq.s32.totalorder %v22515_v6, %v10038_v47 }
0x10d3   :  { %9803 = vmatpush1.bf16.msra.mxu1 %v12951_v4 }
0x10d4   :  { %9804 = vmatprep.subr.bf16.mxu1 %v22417_v14 }
0x10d7   :  { %9805 = vmatpush1.bf16.msra.mxu1 %v12952_v58 }
0x10d8   :  { %9810 = vmatprep.subr.bf16.mxu1 %v22417_v14 }
0x10db   :  { %9811 = vmatpush2.bf16.msra.mxu1 %v12953_v51 }
0x10dc   :  { %9812 = vmatprep.subr.bf16.mxu1 %v22417_v14 }
0x10df   :  { %9813 = vmatpush2.bf16.msra.mxu1 %v12954_v11 }
0x10e0   :  { %9814 = vmatprep.subr.bf16.mxu1 %v22417_v14 }
0x10e3   :  { %9815 = vmatpush2.bf16.msra.mxu1 %v12955_v53 }
0x10e4   :  { %9816 = vmatprep.subr.bf16.mxu1 %v22417_v14 }
0x10e7   :  { %9817 = vmatpush2.bf16.msra.mxu1 %v12956_v10  ;;  %v10040_v10 = vsel %vm10039_vm9, 1.0, %v22516_v33 }
0x10e8   :  { %9818 = vmatprep.subr.bf16.mxu1 %v22417_v14 }
0x10eb   :  { %9819 = vmatpush2.bf16.msra.mxu1 %v12957_v43 }
0x10ec   :  { %9820 = vmatprep.subr.bf16.mxu1 %v22417_v14 }
0x10ef   :  { %9821 = vmatpush2.bf16.msra.mxu1 %v12958_v23  ;;  %v10245_v23 = vadd.s32 3, %v19934_v2 }
0x10f1   :  { %vm10246_vm10 = vcmp.eq.s32.totalorder %v22515_v6, %v10245_v23 }
0x112b   :  { %v9465_v29 = vpop.f32.mrf.mxu0 }
0x112d   :  { %v9467_v45 = vpop.f32.mrf.mxu0 }
0x112f   :  { %v9469_v56 = vpop.f32.mrf.mxu0 }
0x1131   :  { %v9471_v61 = vpop.f32.mrf.mxu0 }
0x113a   :  { %v9508_v39 = vpop.f32.mrf.mxu1 }
0x113b   :  { %v9509_v57 = vadd.f32 %v9508_v39, %v9465_v29  ;;  %v10041_v39 = vpack.c.bf16 %v10040_v10, %v10040_v10 }
0x113c   :  { %v9510_v54 = vpop.f32.mrf.mxu1 }
0x113d   :  { %v9511_v28 = vadd.f32 %v9510_v54, %v9467_v45  ;;  %v12973_v54 = vld [vmem:[%s20358_s7 + $0x118] sm:$0xff]  }
0x113e   :  { %v9512_v3 = vpop.f32.mrf.mxu1 }
0x113f   :  { %v9513_v50 = vadd.f32 %v9512_v3, %v9469_v56 }
0x1140   :  { %v9514_v31 = vpop.f32.mrf.mxu1 }
0x1141   :  { %v9515_v20 = vadd.f32 %v9514_v31, %v9471_v61  ;;  %v10247_v31 = vsel %vm10246_vm10, 1.0, %v22516_v33 }
0x115b   :  { %v9594_v25 = vpop.f32.mrf.mxu0 }
0x115d   :  { %v9596_v5 = vpop.f32.mrf.mxu0 }
0x115f   :  { %v9598_v13 = vpop.f32.mrf.mxu0 }
0x1161   :  { %v9600_v34 = vpop.f32.mrf.mxu0 }
0x117a   :  { %v9551_v35 = vpop.f32.mrf.mxu1 }
0x117b   :  { %v9595_v22 = vadd.f32 %v9594_v25, %v9551_v35  ;;  %v12974_v25 = vld [vmem:[%s20358_s7 + $0x110] sm:$0xff]   ;;  %v12975_v35 = vld [vmem:[%s20358_s7 + $0x108] sm:$0xff]  }
0x117c   :  { %v9553_v63 = vpop.f32.mrf.mxu1 }
0x117d   :  { %v9597_v37 = vadd.f32 %v9596_v5, %v9553_v63  ;;  %v9603_v1 = vmax.f32 %v9509_v57, %v9595_v22  ;;  %v10248_v5 = vpack.c.bf16 %v10247_v31, %v10247_v31  ;;  %v12977_v63 = vld [vmem:[%s20358_s7 + $0x100] sm:$0xff]   ;;  %v12980_v57 = vld [vmem:[%s20358_s7 + $0x178] sm:$0xff]  }
0x117e   :  { %v9555_v59 = vpop.f32.mrf.mxu1  ;;  %v12978_v22 = vld [vmem:[%s20358_s7 + $0x180] sm:$0xff]  }
0x117f   :  { %v9599_v52 = vadd.f32 %v9598_v13, %v9555_v59  ;;  %v9604_v40 = vmax.f32 %v9511_v28, %v9597_v37  ;;  %v12976_v13 = vld [vmem:[%s20358_s7 + $0x188] sm:$0xff]   ;;  %v12979_v59 = vld [vmem:[%s20358_s7 + $0xf8] sm:$0xff]   ;;  %v12982_v37 = vld [vmem:[%s20358_s7 + $0x170] sm:$0xff]  }
0x1180   :  { %v9557_v60 = vpop.f32.mrf.mxu1  ;;  %v12984_v28 = vld [vmem:[%s20358_s7 + $0x168] sm:$0xff]  }
0x1181   :  { %v9605_v21 = vmax.f32 %v9513_v50, %v9599_v52  ;;  %v9601_v62 = vadd.f32 %v9600_v34, %v9557_v60  ;;  %v12981_v50 = vld [vmem:[%s20358_s7 + $0xf0] sm:$0xff]   ;;  %v12983_v52 = vld [vmem:[%s20358_s7 + $0xe8] sm:$0xff]   ;;  %v12985_v34 = vld [vmem:[%s20358_s7 + $0xe0] sm:$0xff]  }
0x1182   :  { %v12986_v60 = vld [vmem:[%s20358_s7 + $0x160] sm:$0xff]  }
0x1183   :  { %v9607_v36 = vpack.c.bf16 %v9605_v21, %v9603_v1  ;;  %v9606_v32 = vmax.f32 %v9515_v20, %v9601_v62  ;;  %v12987_v20 = vld [vmem:[%s20358_s7 + $0x148] sm:$0xff]   ;;  %v12988_v1 = vld [vmem:[%s20358_s7 + $0x158] sm:$0xff]   ;;  %v12989_v21 = vld [vmem:[%s20358_s7 + $0x140] sm:$0xff]  }
0x1184   :  { %v12990_v62 = vld [vmem:[%s20358_s7 + $0x150] sm:$0xff]  }
0x1185   :  { %v19939_v26 = vpack.c.bf16 %v9606_v32, %v9604_v40  ;;  %v19943_v8 = vsel %vm9625_vm15, %v9607_v36, 0  ;;  %v12991_v40 = vld [vmem:[%s20358_s7 + $0x138] sm:$0xff]   ;;  %v12993_v32 = vld [vmem:[%s20358_s7 + $0x130] sm:$0xff]  }
0x1186   :  { %v12992_v36 = vld [vmem:[%s20358_s7 + $0x1b8] sm:$0xff]  }
0x1187   :  { %12325 = vmatprep.subr.msk.bf16.mxu0 %vm9625_vm15, %v19939_v26  ;;  %12387 = vmatprep.subr.msk.bf16.mxu1 %vm9625_vm15, %v19939_v26 }
0x1188   :  { %9647 = vmatpush1.bf16.msra.mxu0 %v19943_v8 }
0x1189   :  { %12342 = vmatprep.subr.msk.bf16.mxu0 %vm9625_vm15, %v19939_v26 }
0x118b   :  { %12326 = vmatmul.mubr.msk.bf16.vlgmr.msra.gmra.mxu0 %vm9621_vm3, %v9620_v46  ;;  %v12996_v46 = vld [vmem:[%s20358_s7 + $0x1a8] sm:$0xff]  }
0x118c   :  { %9853 = vmatpush1.bf16.msra.mxu0 %v19943_v8  ;;  %9870 = vmatprep.mubr.bf16.mxu0 %v22417_v14 }
0x118d   :  { %9997 = vmatprep.subr.bf16.mxu0 %v22417_v14 }
0x1193   :  { %12343 = vmatmul.mubr.msk.bf16.vlgmr.msra.gmra.mxu0 %vm9621_vm3, %v9834_v27  ;;  %v12998_v27 = vld [vmem:[%s20358_s7 + $0x1a0] sm:$0xff]  }
0x1194   :  { %9998 = vmatpush1.bf16.msra.mxu0 %v12959_v19  ;;  %v12999_v19 = vld [vmem:[%s20358_s7 + $0x198] sm:$0xff]  }
0x1195   :  { %9999 = vmatprep.subr.bf16.mxu0 %v22417_v14 }
0x1198   :  { %10000 = vmatpush1.bf16.msra.mxu0 %v12960_v16  ;;  %v13000_v16 = vld [vmem:[%s20358_s7 + $0x190] sm:$0xff]  }
0x1199   :  { %10001 = vmatprep.subr.bf16.mxu0 %v22417_v14 }
0x119c   :  { %10002 = vmatpush1.bf16.msra.mxu0 %v12961_v42 }
0x119d   :  { %10003 = vmatprep.subr.bf16.mxu0 %v22417_v14 }
0x11a0   :  { %10004 = vmatpush1.bf16.msra.mxu0 %v12962_v38 }
0x11a1   :  { %10005 = vmatprep.subr.bf16.mxu0 %v22417_v14 }
0x11a4   :  { %10006 = vmatpush1.bf16.msra.mxu0 %v12963_v15  ;;  %v12324_v15 = vld [vmem:[%s20359_s8] ss:$0 sm:$0xff] }
0x11a5   :  { %10007 = vmatprep.subr.bf16.mxu0 %v22417_v14 }
0x11a8   :  { %10008 = vmatpush1.bf16.msra.mxu0 %v12964_v18 }
0x11a9   :  { %10009 = vmatprep.subr.bf16.mxu0 %v22417_v14 }
0x11ac   :  { %10010 = vmatpush1.bf16.msra.mxu0 %v12965_v12 }
0x11ad   :  { %10011 = vmatprep.subr.bf16.mxu0 %v22417_v14 }
0x11b0   :  { %10012 = vmatpush1.bf16.msra.mxu0 %v12966_v49 }
0x11b1   :  { %10017 = vmatprep.subr.bf16.mxu0 %v22417_v14 }
0x11b4   :  { %10018 = vmatpush2.bf16.msra.mxu0 %v12967_v9 }
0x11b5   :  { %10019 = vmatprep.subr.bf16.mxu0 %v22417_v14 }
0x11b8   :  { %10020 = vmatpush2.bf16.msra.mxu0 %v12968_v41 }
0x11b9   :  { %10021 = vmatprep.subr.bf16.mxu0 %v22417_v14 }
0x11bc   :  { %10022 = vmatpush2.bf16.msra.mxu0 %v12969_v17  ;;  %v10452_v17 = vadd.s32 4, %v19934_v2 }
0x11bd   :  { %10023 = vmatprep.subr.bf16.mxu0 %v22417_v14 }
0x11be   :  { %vm10453_vm1 = vcmp.eq.s32.totalorder %v22515_v6, %v10452_v17 }
0x11c0   :  { %10024 = vmatpush2.bf16.msra.mxu0 %v12970_v0 }
0x11c1   :  { %10025 = vmatprep.subr.bf16.mxu0 %v22417_v14 }
0x11c4   :  { %10026 = vmatpush2.bf16.msra.mxu0 %v12971_v55 }
0x11c5   :  { %10027 = vmatprep.subr.bf16.mxu0 %v22417_v14 }
0x11c8   :  { %10028 = vmatpush2.bf16.msra.mxu0 %v12972_v44 }
0x11c9   :  { %12432 = vmatprep.subr.msk.bf16.mxu0 %vm9625_vm15, %v19939_v26 }
0x124b   :  { %v9666_v48 = vpop.f32.mrf.mxu0 }
0x124c   :  { %v9673_v51 = vpack.c.bf16 %v9666_v48, %v9666_v48 }
0x124d   :  { %v9668_v4 = vpop.f32.mrf.mxu0 }
0x124e   :  { %v9674_v58 = vpack.c.bf16 %v9668_v4, %v9668_v4 }
0x124f   :  { %v9670_v11 = vpop.f32.mrf.mxu0 }
0x1250   :  { %12341 = vmatprep.mubr.msk.bf16.mxu1 %vm22517_vm13, %v9674_v58 }
0x1251   :  { %v9671_v53 = vpop.f32.mrf.mxu0  ;;  %9823 = vmatmul.mubr.bf16.vlgmr.msra.gmra.mxu1 %v9673_v51 }
0x1252   :  { %10060 = vmatpush1.bf16.msra.mxu1 %v19943_v8  ;;  %10077 = vmatprep.mubr.bf16.mxu1 %v22417_v14  ;;  %v10454_v53 = vsel %vm10453_vm1, 1.0, %v22516_v33 }
0x1253   :  { %v9872_v43 = vpop.f32.mrf.mxu0  ;;  %10204 = vmatprep.subr.bf16.mxu1 %v22417_v14 }
0x1254   :  { %v9879_v29 = vpack.c.bf16 %v9872_v43, %v9872_v43  ;;  %v10659_v43 = vadd.s32 5, %v19934_v2 }
0x1255   :  { %v9874_v45 = vpop.f32.mrf.mxu0 }
0x1256   :  { %v9880_v56 = vpack.c.bf16 %v9874_v45, %v9874_v45  ;;  %v10455_v45 = vpack.c.bf16 %v10454_v53, %v10454_v53  ;;  %vm10660_vm11 = vcmp.eq.s32.totalorder %v22515_v6, %v10659_v43 }
0x1257   :  { %v9876_v61 = vpop.f32.mrf.mxu0 }
0x1258   :  { %12386 = vmatprep.mubr.msk.bf16.mxu0 %vm22518_vm0, %v9880_v56  ;;  %v13001_v56 = vld [vmem:[%s20358_s7 + $0x1f8] sm:$0xff]  }
0x1259   :  { %10030 = vmatmul.mubr.bf16.vlgmr.msra.gmra.mxu0 %v9879_v29  ;;  %12388 = vmatmul.mubr.msk.bf16.vlgmr.msra.gmra.mxu1 %vm9621_vm3, %v10041_v39  ;;  %v9877_v3 = vpop.f32.mrf.mxu0 }
0x125a   :  { %10205 = vmatpush1.bf16.msra.mxu1 %v12973_v54  ;;  %10267 = vmatpush1.bf16.msra.mxu0 %v19943_v8  ;;  %v13002_v3 = vld [vmem:[%s20358_s7 + $0x1f0] sm:$0xff]  }
0x125b   :  { %10206 = vmatprep.subr.bf16.mxu1 %v22417_v14  ;;  %10284 = vmatprep.mubr.bf16.mxu0 %v22417_v14 }
0x125c   :  { %10411 = vmatprep.subr.bf16.mxu0 %v22417_v14 }
0x125e   :  { %10207 = vmatpush1.bf16.msra.mxu1 %v12974_v25  ;;  %v10661_v25 = vsel %vm10660_vm11, 1.0, %v22516_v33 }
0x125f   :  { %10208 = vmatprep.subr.bf16.mxu1 %v22417_v14  ;;  %v10662_v31 = vpack.c.bf16 %v10661_v25, %v10661_v25  ;;  %v13039_v25 = vld [vmem:[%s20358_s7 + $0x2f8] sm:$0xff]  }
0x1261   :  { %12433 = vmatmul.mubr.msk.bf16.vlgmr.msra.gmra.mxu0 %vm9621_vm3, %v10248_v5  ;;  %v13003_v5 = vld [vmem:[%s20358_s7 + $0x1e8] sm:$0xff]  }
0x1262   :  { %10209 = vmatpush1.bf16.msra.mxu1 %v12975_v35  ;;  %10412 = vmatpush1.bf16.msra.mxu0 %v12976_v13  ;;  %v13015_v35 = vld [vmem:[%s20358_s7 + $0x268] sm:$0xff]   ;;  %v13004_v13 = vld [vmem:[%s20358_s7 + $0x1e0] sm:$0xff]  }
0x1263   :  { %10210 = vmatprep.subr.bf16.mxu1 %v22417_v14  ;;  %10413 = vmatprep.subr.bf16.mxu0 %v22417_v14 }
0x1266   :  { %10211 = vmatpush1.bf16.msra.mxu1 %v12977_v63  ;;  %10414 = vmatpush1.bf16.msra.mxu0 %v12978_v22  ;;  %v13016_v63 = vld [vmem:[%s20358_s7 + $0x260] sm:$0xff]   ;;  %v13005_v22 = vld [vmem:[%s20358_s7 + $0x1d8] sm:$0xff]  }
0x1267   :  { %10212 = vmatprep.subr.bf16.mxu1 %v22417_v14  ;;  %10415 = vmatprep.subr.bf16.mxu0 %v22417_v14 }
0x126a   :  { %10213 = vmatpush1.bf16.msra.mxu1 %v12979_v59  ;;  %10416 = vmatpush1.bf16.msra.mxu0 %v12980_v57  ;;  %v13017_v59 = vld [vmem:[%s20358_s7 + $0x258] sm:$0xff]   ;;  %v13006_v57 = vld [vmem:[%s20358_s7 + $0x1d0] sm:$0xff]  }
0x126b   :  { %10214 = vmatprep.subr.bf16.mxu1 %v22417_v14  ;;  %10417 = vmatprep.subr.bf16.mxu0 %v22417_v14 }
0x126e   :  { %10215 = vmatpush1.bf16.msra.mxu1 %v12981_v50  ;;  %10418 = vmatpush1.bf16.msra.mxu0 %v12982_v37  ;;  %v13018_v50 = vld [vmem:[%s20358_s7 + $0x250] sm:$0xff]   ;;  %v13007_v37 = vld [vmem:[%s20358_s7 + $0x1c8] sm:$0xff]  }
0x126f   :  { %10216 = vmatprep.subr.bf16.mxu1 %v22417_v14  ;;  %10419 = vmatprep.subr.bf16.mxu0 %v22417_v14 }
0x1272   :  { %10217 = vmatpush1.bf16.msra.mxu1 %v12983_v52  ;;  %10420 = vmatpush1.bf16.msra.mxu0 %v12984_v28  ;;  %v13019_v52 = vld [vmem:[%s20358_s7 + $0x248] sm:$0xff]   ;;  %v13008_v28 = vld [vmem:[%s20358_s7 + $0x1c0] sm:$0xff]  }
0x1273   :  { %10218 = vmatprep.subr.bf16.mxu1 %v22417_v14  ;;  %10421 = vmatprep.subr.bf16.mxu0 %v22417_v14 }
0x1276   :  { %10219 = vmatpush1.bf16.msra.mxu1 %v12985_v34  ;;  %10422 = vmatpush1.bf16.msra.mxu0 %v12986_v60  ;;  %v13020_v34 = vld [vmem:[%s20358_s7 + $0x240] sm:$0xff]   ;;  %v13009_v60 = vld [vmem:[%s20358_s7 + $0x228] sm:$0xff]  }
0x1277   :  { %10224 = vmatprep.subr.bf16.mxu1 %v22417_v14  ;;  %10423 = vmatprep.subr.bf16.mxu0 %v22417_v14 }
0x127a   :  { %10225 = vmatpush2.bf16.msra.mxu1 %v12987_v20  ;;  %10424 = vmatpush1.bf16.msra.mxu0 %v12988_v1  ;;  %v13021_v20 = vld [vmem:[%s20358_s7 + $0x238] sm:$0xff]   ;;  %v13010_v1 = vld [vmem:[%s20358_s7 + $0x220] sm:$0xff]  }
0x127b   :  { %10226 = vmatprep.subr.bf16.mxu1 %v22417_v14  ;;  %10425 = vmatprep.subr.bf16.mxu0 %v22417_v14 }
0x127e   :  { %10227 = vmatpush2.bf16.msra.mxu1 %v12989_v21  ;;  %10426 = vmatpush1.bf16.msra.mxu0 %v12990_v62  ;;  %v13022_v21 = vld [vmem:[%s20358_s7 + $0x230] sm:$0xff]   ;;  %v13011_v62 = vld [vmem:[%s20358_s7 + $0x218] sm:$0xff]  }
0x127f   :  { %10228 = vmatprep.subr.bf16.mxu1 %v22417_v14  ;;  %10431 = vmatprep.subr.bf16.mxu0 %v22417_v14 }
0x1282   :  { %10229 = vmatpush2.bf16.msra.mxu1 %v12991_v40  ;;  %10432 = vmatpush2.bf16.msra.mxu0 %v12992_v36  ;;  %v13023_v40 = vld [vmem:[%s20358_s7 + $0x298] sm:$0xff]   ;;  %v13012_v36 = vld [vmem:[%s20358_s7 + $0x210] sm:$0xff]  }
0x1283   :  { %10230 = vmatprep.subr.bf16.mxu1 %v22417_v14  ;;  %10433 = vmatprep.subr.bf16.mxu0 %v22417_v14 }
0x1286   :  { %10231 = vmatpush2.bf16.msra.mxu1 %v12993_v32  ;;  %10434 = vmatpush2.bf16.msra.mxu0 %v12994_v30  ;;  %v13013_v32 = vld [vmem:[%s20358_s7 + $0x208] sm:$0xff]   ;;  %v13014_v30 = vld [vmem:[%s20358_s7 + $0x200] sm:$0xff]  }
0x1287   :  { %10232 = vmatprep.subr.bf16.mxu1 %v22417_v14  ;;  %10435 = vmatprep.subr.bf16.mxu0 %v22417_v14 }
0x128a   :  { %10233 = vmatpush2.bf16.msra.mxu1 %v12995_v7  ;;  %10436 = vmatpush2.bf16.msra.mxu0 %v12996_v46  ;;  %v13024_v7 = vld [vmem:[%s20358_s7 + $0x290] sm:$0xff]   ;;  %v13025_v46 = vld [vmem:[%s20358_s7 + $0x288] sm:$0xff]  }
0x128b   :  { %10234 = vmatprep.subr.bf16.mxu1 %v22417_v14  ;;  %10437 = vmatprep.subr.bf16.mxu0 %v22417_v14 }
0x128e   :  { %10235 = vmatpush2.bf16.msra.mxu1 %v12997_v24  ;;  %10438 = vmatpush2.bf16.msra.mxu0 %v12998_v27  ;;  %v13026_v24 = vld [vmem:[%s20358_s7 + $0x280] sm:$0xff]   ;;  %v13028_v27 = vld [vmem:[%s20358_s7 + $0x270] sm:$0xff]  }
0x128f   :  { %12477 = vmatprep.subr.msk.bf16.mxu1 %vm9625_vm15, %v19939_v26  ;;  %10439 = vmatprep.subr.bf16.mxu0 %v22417_v14 }
0x1292   :  { %10440 = vmatpush2.bf16.msra.mxu0 %v12999_v19 }
0x1293   :  { %10441 = vmatprep.subr.bf16.mxu0 %v22417_v14 }
0x1296   :  { %10442 = vmatpush2.bf16.msra.mxu0 %v13000_v16 }
0x1297   :  { %12522 = vmatprep.subr.msk.bf16.mxu0 %vm9625_vm15, %v19939_v26 }
0x1311   :  { %v9824_v42 = vpop.f32.mrf.mxu1 }
0x1312   :  { %v9830_v49 = vadd.f32 %v12324_v15, %v9824_v42 }
0x1313   :  { %v9826_v38 = vpop.f32.mrf.mxu1 }
0x1315   :  { %v9827_v18 = vpop.f32.mrf.mxu1 }
0x1317   :  { %v9828_v12 = vpop.f32.mrf.mxu1 }
0x1319   :  { %v10031_v9 = vpop.f32.mrf.mxu0  ;;  %v10079_v41 = vpop.f32.mrf.mxu1 }
0x131a   :  { %v20150_v0 = vadd.f32 %v10031_v9, %v9830_v49  ;;  %v10086_v47 = vpack.c.bf16 %v10079_v41, %v10079_v41  ;;  %v10866_v49 = vadd.s32 6, %v19934_v2 }
0x131b   :  { %v10033_v55 = vpop.f32.mrf.mxu0  ;;  %v10081_v44 = vpop.f32.mrf.mxu1 }
0x131c   :  { %v10087_v48 = vpack.c.bf16 %v10081_v44, %v10081_v44  ;;  %vm10867_vm6 = vcmp.eq.s32.totalorder %v22515_v6, %v10866_v49  ;;  %v13029_v6 = vld [vmem:[%s20358_s7 + $0x2d8] sm:$0xff]  }
0x131d   :  { %v10034_v4 = vpop.f32.mrf.mxu0  ;;  %v10083_v58 = vpop.f32.mrf.mxu1  ;;  %v10868_v2 = vsel %vm10867_vm6, 1.0, %v22516_v33  ;;  %v13030_v33 = vld [vmem:[%s20358_s7 + $0x2d0] sm:$0xff]  }
0x131e   :  { %12431 = vmatprep.mubr.msk.bf16.mxu1 %vm22519_vm14, %v10087_v48  ;;  %v10869_v53 = vpack.c.bf16 %v10868_v2, %v10868_v2 }
0x131f   :  { %v10035_v51 = vpop.f32.mrf.mxu0  ;;  %v10084_v11 = vpop.f32.mrf.mxu1  ;;  %10237 = vmatmul.mubr.bf16.vlgmr.msra.gmra.mxu1 %v10086_v47 }
0x1320   :  { %10474 = vmatpush1.bf16.msra.mxu1 %v19943_v8  ;;  %10491 = vmatprep.mubr.bf16.mxu1 %v22417_v14 }
0x1321   :  { %v10286_v10 = vpop.f32.mrf.mxu0  ;;  %10618 = vmatprep.subr.bf16.mxu1 %v22417_v14 }
0x1322   :  { %v10293_v23 = vpack.c.bf16 %v10286_v10, %v10286_v10 }
0x1323   :  { %v10288_v29 = vpop.f32.mrf.mxu0 }
0x1324   :  { %v10294_v39 = vpack.c.bf16 %v10288_v29, %v10288_v29  ;;  %v13032_v29 = vld [vmem:[%s20358_s7 + $0x2c0] sm:$0xff]  }
0x1325   :  { %v10290_v54 = vpop.f32.mrf.mxu0 }
0x1326   :  { %12476 = vmatprep.mubr.msk.bf16.mxu0 %vm22520_vm12, %v10294_v39  ;;  %v13034_v39 = vld [vmem:[%s20358_s7 + $0x2b0] sm:$0xff]   ;;  %v13036_v54 = vld [vmem:[%s20358_s7 + $0x2a0] sm:$0xff]  }
0x1327   :  { %10444 = vmatmul.mubr.bf16.vlgmr.msra.gmra.mxu0 %v10293_v23  ;;  %12478 = vmatmul.mubr.msk.bf16.vlgmr.msra.gmra.mxu1 %vm9621_vm3, %v10455_v45  ;;  %v10291_v61 = vpop.f32.mrf.mxu0  ;;  %v13031_v23 = vld [vmem:[%s20358_s7 + $0x2c8] sm:$0xff]   ;;  %v13033_v45 = vld [vmem:[%s20358_s7 + $0x2b8] sm:$0xff]  }
0x1328   :  { %10619 = vmatpush1.bf16.msra.mxu1 %v13001_v56  ;;  %10681 = vmatpush1.bf16.msra.mxu0 %v19943_v8  ;;  %v13035_v56 = vld [vmem:[%s20358_s7 + $0x2a8] sm:$0xff]  }
0x1329   :  { %10620 = vmatprep.subr.bf16.mxu1 %v22417_v14  ;;  %10698 = vmatprep.mubr.bf16.mxu0 %v22417_v14  ;;  %v13037_v61 = vld [vmem:[%s20358_s7 + $0x308] sm:$0xff]  }
0x132a   :  { %10825 = vmatprep.subr.bf16.mxu0 %v22417_v14 }
0x132c   :  { %10621 = vmatpush1.bf16.msra.mxu1 %v13002_v3  ;;  %v13038_v3 = vld [vmem:[%s20358_s7 + $0x300] sm:$0xff]  }
0x132d   :  { %10622 = vmatprep.subr.bf16.mxu1 %v22417_v14 }
0x132f   :  { %12523 = vmatmul.mubr.msk.bf16.vlgmr.msra.gmra.mxu0 %vm9621_vm3, %v10662_v31  ;;  %v13040_v31 = vld [vmem:[%s20358_s7 + $0x2f0] sm:$0xff]  }
0x1330   :  { %10623 = vmatpush1.bf16.msra.mxu1 %v13003_v5  ;;  %10826 = vmatpush1.bf16.msra.mxu0 %v13015_v35  ;;  %v13041_v5 = vld [vmem:[%s20358_s7 + $0x2e8] sm:$0xff]   ;;  %v13042_v35 = vld [vmem:[%s20358_s7 + $0x2e0] sm:$0xff]  }
0x1331   :  { %10624 = vmatprep.subr.bf16.mxu1 %v22417_v14  ;;  %10827 = vmatprep.subr.bf16.mxu0 %v22417_v14 }
0x1334   :  { %10625 = vmatpush1.bf16.msra.mxu1 %v13004_v13  ;;  %10828 = vmatpush1.bf16.msra.mxu0 %v13016_v63 }
0x1335   :  { %10626 = vmatprep.subr.bf16.mxu1 %v22417_v14  ;;  %10829 = vmatprep.subr.bf16.mxu0 %v22417_v14 }
0x1338   :  { %10627 = vmatpush1.bf16.msra.mxu1 %v13005_v22  ;;  %10830 = vmatpush1.bf16.msra.mxu0 %v13017_v59 }
0x1339   :  { %10628 = vmatprep.subr.bf16.mxu1 %v22417_v14  ;;  %10831 = vmatprep.subr.bf16.mxu0 %v22417_v14 }
0x133c   :  { %10629 = vmatpush1.bf16.msra.mxu1 %v13006_v57  ;;  %10832 = vmatpush1.bf16.msra.mxu0 %v13018_v50 }
0x133d   :  { %10630 = vmatprep.subr.bf16.mxu1 %v22417_v14  ;;  %10833 = vmatprep.subr.bf16.mxu0 %v22417_v14 }
0x1340   :  { %10631 = vmatpush1.bf16.msra.mxu1 %v13007_v37  ;;  %10834 = vmatpush1.bf16.msra.mxu0 %v13019_v52 }
0x1341   :  { %10632 = vmatprep.subr.bf16.mxu1 %v22417_v14  ;;  %10835 = vmatprep.subr.bf16.mxu0 %v22417_v14 }
0x1344   :  { %10633 = vmatpush1.bf16.msra.mxu1 %v13008_v28  ;;  %10836 = vmatpush1.bf16.msra.mxu0 %v13020_v34 }
0x1345   :  { %10638 = vmatprep.subr.bf16.mxu1 %v22417_v14  ;;  %10837 = vmatprep.subr.bf16.mxu0 %v22417_v14 }
0x1348   :  { %10639 = vmatpush2.bf16.msra.mxu1 %v13009_v60  ;;  %10838 = vmatpush1.bf16.msra.mxu0 %v13021_v20 }
0x1349   :  { %10640 = vmatprep.subr.bf16.mxu1 %v22417_v14  ;;  %10839 = vmatprep.subr.bf16.mxu0 %v22417_v14 }
0x134c   :  { %10641 = vmatpush2.bf16.msra.mxu1 %v13010_v1  ;;  %10840 = vmatpush1.bf16.msra.mxu0 %v13022_v21 }
0x134d   :  { %10642 = vmatprep.subr.bf16.mxu1 %v22417_v14  ;;  %10845 = vmatprep.subr.bf16.mxu0 %v22417_v14 }
0x1350   :  { %10643 = vmatpush2.bf16.msra.mxu1 %v13011_v62  ;;  %10846 = vmatpush2.bf16.msra.mxu0 %v13023_v40 }
0x1351   :  { %10644 = vmatprep.subr.bf16.mxu1 %v22417_v14  ;;  %10847 = vmatprep.subr.bf16.mxu0 %v22417_v14 }
0x1354   :  { %10645 = vmatpush2.bf16.msra.mxu1 %v13012_v36  ;;  %10848 = vmatpush2.bf16.msra.mxu0 %v13024_v7 }
0x1355   :  { %10646 = vmatprep.subr.bf16.mxu1 %v22417_v14  ;;  %10849 = vmatprep.subr.bf16.mxu0 %v22417_v14 }
0x1358   :  { %10647 = vmatpush2.bf16.msra.mxu1 %v13013_v32  ;;  %10850 = vmatpush2.bf16.msra.mxu0 %v13025_v46 }
0x1359   :  { %10648 = vmatprep.subr.bf16.mxu1 %v22417_v14  ;;  %10851 = vmatprep.subr.bf16.mxu0 %v22417_v14 }
0x135c   :  { %10649 = vmatpush2.bf16.msra.mxu1 %v13014_v30  ;;  %10852 = vmatpush2.bf16.msra.mxu0 %v13026_v24 }
0x135d   :  { %12567 = vmatprep.subr.msk.bf16.mxu1 %vm9625_vm15, %v19939_v26  ;;  %10853 = vmatprep.subr.bf16.mxu0 %v22417_v14  ;;  %v13027_v26 = vld [vmem:[%s20358_s7 + $0x278] sm:$0xff]   ;;  %s13073_s7 = smov [#allocation4]  }
0x135e   :  { %s11082_s28 = sshll.u32 %s13073_s7, 4  ;;  %s11083_s28 = int_to_ptr.vmem [resolvable:$true] %s11082_s28 }
0x135f   :  { %s13045_s6 = scalar_lea.vmem %s11083_s28, 32  ;;  %p13050_p1 = scmp.lt.s32.totalorder %s11083_s28, %s11083_s28 }
0x1360   :  { %10854 = vmatpush2.bf16.msra.mxu0 %v13027_v26  ;;  %p13046_p0 = scmp.ne.s32.totalorder %s11083_s28, %s13045_s6  ;;  %p13051_p2 = scmp.lt.s32.totalorder %s13045_s6, %s13045_s6 }
0x1361   :  { %10855 = vmatprep.subr.bf16.mxu0 %v22417_v14 }
0x1362   :  { %p13052_p3 = por %p13051_p2, %p13050_p1 }
0x1364   :  { %10856 = vmatpush2.bf16.msra.mxu0 %v13028_v27  ;;  %p13053_p4 = pnand %p13052_p3, %p13046_p0 }
0x13df   :  { %v10238_v19 = vpop.f32.mrf.mxu1 }
0x13e0   :  { %v10244_v16 = vadd.f32 %v10238_v19, %v20150_v0 }
0x13e1   :  { %v10240_v42 = vpop.f32.mrf.mxu1 }
0x13e3   :  { %v10241_v38 = vpop.f32.mrf.mxu1 }
0x13e5   :  { %v10242_v15 = vpop.f32.mrf.mxu1 }
0x13e7   :  { %v10445_v18 = vpop.f32.mrf.mxu0  ;;  %v10493_v12 = vpop.f32.mrf.mxu1 }
0x13e8   :  { %v20281_v9 = vadd.f32 %v10445_v18, %v10244_v16  ;;  %v10500_v44 = vpack.c.bf16 %v10493_v12, %v10493_v12 }
0x13e9   :  { %v10447_v41 = vpop.f32.mrf.mxu0  ;;  %v10495_v17 = vpop.f32.mrf.mxu1 }
0x13ea   :  { %v10501_v55 = vpack.c.bf16 %v10495_v17, %v10495_v17 }
0x13eb   :  { %v10448_v48 = vpop.f32.mrf.mxu0  ;;  %v10497_v47 = vpop.f32.mrf.mxu1 }
0x13ec   :  { %12521 = vmatprep.mubr.msk.bf16.mxu1 %vm22521_vm5, %v10501_v55 }
0x13ed   :  { %v10449_v0 = vpop.f32.mrf.mxu0  ;;  %v10498_v4 = vpop.f32.mrf.mxu1  ;;  %10651 = vmatmul.mubr.bf16.vlgmr.msra.gmra.mxu1 %v10500_v44 }
0x13ee   :  { %10888 = vmatpush1.bf16.msra.mxu1 %v19943_v8  ;;  %10905 = vmatprep.mubr.bf16.mxu1 %v22417_v14 }
0x13ef   :  { %v10700_v58 = vpop.f32.mrf.mxu0  ;;  %11032 = vmatprep.subr.bf16.mxu1 %v22417_v14 }
0x13f0   :  { %v10707_v51 = vpack.c.bf16 %v10700_v58, %v10700_v58 }
0x13f1   :  { %v10702_v11 = vpop.f32.mrf.mxu0 }
0x13f2   :  { %v10708_v10 = vpack.c.bf16 %v10702_v11, %v10702_v11 }
0x13f3   :  { %v10704_v43 = vpop.f32.mrf.mxu0 }
0x13f4   :  { %12566 = vmatprep.mubr.msk.bf16.mxu0 %vm22522_vm8, %v10708_v10 }
0x13f5   :  { %10858 = vmatmul.mubr.bf16.vlgmr.msra.gmra.mxu0 %v10707_v51  ;;  %12568 = vmatmul.mubr.msk.bf16.vlgmr.msra.gmra.mxu1 %vm9621_vm3, %v10869_v53  ;;  %v10705_v8 = vpop.f32.mrf.mxu0 }
0x13f6   :  { %11033 = vmatpush1.bf16.msra.mxu1 %v13029_v6 }
0x13f7   :  { %11034 = vmatprep.subr.bf16.mxu1 %v22417_v14 }
0x13fa   :  { %11035 = vmatpush1.bf16.msra.mxu1 %v13030_v33 }
0x13fb   :  { %11036 = vmatprep.subr.bf16.mxu1 %v22417_v14 }
0x13fe   :  { %11037 = vmatpush1.bf16.msra.mxu1 %v13031_v23 }
0x13ff   :  { %11038 = vmatprep.subr.bf16.mxu1 %v22417_v14 }
0x1402   :  { %11039 = vmatpush1.bf16.msra.mxu1 %v13032_v29 }
0x1403   :  { %11040 = vmatprep.subr.bf16.mxu1 %v22417_v14 }
0x1406   :  { %11041 = vmatpush1.bf16.msra.mxu1 %v13033_v45 }
0x1407   :  { %11042 = vmatprep.subr.bf16.mxu1 %v22417_v14 }
0x140a   :  { %11043 = vmatpush1.bf16.msra.mxu1 %v13034_v39 }
0x140b   :  { %11044 = vmatprep.subr.bf16.mxu1 %v22417_v14 }
0x140e   :  { %11045 = vmatpush1.bf16.msra.mxu1 %v13035_v56 }
0x140f   :  { %11046 = vmatprep.subr.bf16.mxu1 %v22417_v14 }
0x1412   :  { %11047 = vmatpush1.bf16.msra.mxu1 %v13036_v54 }
0x1413   :  { %11052 = vmatprep.subr.bf16.mxu1 %v22417_v14 }
0x1416   :  { %11053 = vmatpush2.bf16.msra.mxu1 %v13037_v61 }
0x1417   :  { %11054 = vmatprep.subr.bf16.mxu1 %v22417_v14 }
0x141a   :  { %11055 = vmatpush2.bf16.msra.mxu1 %v13038_v3 }
0x141b   :  { %11056 = vmatprep.subr.bf16.mxu1 %v22417_v14 }
0x141e   :  { %11057 = vmatpush2.bf16.msra.mxu1 %v13039_v25 }
0x141f   :  { %11058 = vmatprep.subr.bf16.mxu1 %v22417_v14 }
0x1422   :  { %11059 = vmatpush2.bf16.msra.mxu1 %v13040_v31 }
0x1423   :  { %11060 = vmatprep.subr.bf16.mxu1 %v22417_v14 }
0x1426   :  { %11061 = vmatpush2.bf16.msra.mxu1 %v13041_v5 }
0x1427   :  { %11062 = vmatprep.subr.bf16.mxu1 %v22417_v14 }
0x142a   :  { %11063 = vmatpush2.bf16.msra.mxu1 %v13042_v35 }
0x14ad   :  { %v10652_v13 = vpop.f32.mrf.mxu1 }
0x14ae   :  { %v10658_v63 = vadd.f32 %v10652_v13, %v20281_v9 }
0x14af   :  { %v10654_v22 = vpop.f32.mrf.mxu1 }
0x14b1   :  { %v10655_v59 = vpop.f32.mrf.mxu1 }
0x14b3   :  { %v10656_v57 = vpop.f32.mrf.mxu1 }
0x14b5   :  { %v10859_v50 = vpop.f32.mrf.mxu0  ;;  %v10907_v37 = vpop.f32.mrf.mxu1 }
0x14b6   :  { %v10865_v52 = vadd.f32 %v10859_v50, %v10658_v63  ;;  %v10914_v20 = vpack.c.bf16 %v10907_v37, %v10907_v37 }
0x14b7   :  { %v10909_v28 = vpop.f32.mrf.mxu1  ;;  %v10861_v34 = vpop.f32.mrf.mxu0 }
0x14b8   :  { %v10915_v60 = vpack.c.bf16 %v10909_v28, %v10909_v28 }
0x14b9   :  { %v10911_v1 = vpop.f32.mrf.mxu1  ;;  %v10862_v14 = vpop.f32.mrf.mxu0 }
0x14ba   :  { %12611 = vmatprep.mubr.msk.bf16.mxu1 %vm22523_vm4, %v10915_v60 }
0x14bb   :  { %v10912_v21 = vpop.f32.mrf.mxu1  ;;  %11065 = vmatmul.mubr.bf16.vlgmr.msra.gmra.mxu1 %v10914_v20  ;;  %v10863_v62 = vpop.f32.mrf.mxu0 }
0x157b   :  { %v11066_v40 = vpop.f32.mrf.mxu1 }
0x157c   :  { %v11072_v36 = vadd.f32 %v11066_v40, %v10865_v52 }
0x157d   :  { %v11068_v32 = vpop.f32.mrf.mxu1 }
0x157e   :  { %11075 = vst.msk [vmem:[#allocation4] sm:$0x3] %vm11074_vm2, %v11072_v36 }
0x157f   :  { %v11069_v30 = vpop.f32.mrf.mxu1 }
0x1580   :  { %13056 = shalt.err (!%p13053_p4)
}
0x1581   :  { %11085 = dma.vmem_to_hbm [thread:$0]  %s11083_s28, 32, %s20360_s9, [#allocation5]   ;;  %v11070_v7 = vpop.f32.mrf.mxu1 }
0x1582   :  { %13067 = dma.done.wait [#allocation5], 32  }
0x1583   :  { %13068 = vsyncadd [#allocation5], 4294967264 }
0x1584   :  { %11089 = vsyncpa [#allocation5], 1 }
0x1585   :  { %11090 = vsyncmov [#allocation3] }
0x1588   :  { %s11091_s29 = vpop.sfrf %11090 }
0x1589   :  { %p12612_p5 = scmp.ne.s32.totalorder %s11091_s29, 0 }
0x158b   :  { %11095 = shalt.err (%p12612_p5)  }

</bundles_post_ra>
